<compile_context>
chip_gen: v7x
topology: tpu7x:2x2x1
jax: 0.10.0
libtpu: 0.0.40
codegen_flags: <defaults>
</compile_context>

<pallas_src>
import functools

import jax
import jax.numpy as jnp
from jax.experimental import pallas as pl
from jax.experimental.pallas import tpu as pltpu


def _scaled_maxplus_kernel(x_ref, wt_ref, f_ref, o_ref, *, rb):
    """One (tm, tn) output block; K reduced fully inside the body.

    x_ref : (tm, K)   batch rows, full in_features
    wt_ref: (K, tn)   W transposed -> reduction axis is NOT lane-minor
    f_ref : (1, tn)   per-output scale factors (lane-aligned with outputs)
    o_ref : (tm, tn)
    """
    tm, K = x_ref.shape
    tn = o_ref.shape[1]
    f = f_ref[...]                                        # (1, tn)

    r0 = 0
    while r0 < tm:                                        # static 8-row batch sub-blocks
        rr = min(rb, tm - r0)
        # Hoisted broadcasts (JAX does not CSE broadcast_in_dim inside the loop).
        f_rows = jnp.broadcast_to(f, (rr, tn))            # (rr, tn)
        x_rows = x_ref[r0:r0 + rr, :]                     # (rr, K) -- a couple of vregs
        acc = jnp.full((rr, tn), -jnp.inf, dtype=o_ref.dtype)

        # Running elementwise max over k: only lane-/sublane-broadcasts + VPU
        # mul/add/max on (rr, tn) tiles -- no 3-D intermediate, no lane reduce.
        for k in range(K):                                # static unroll, static slices
            xk = x_rows[:, k:k + 1]                       # (rr, 1)  -> lane-broadcast
            wk = wt_ref[k:k + 1, :]                       # (1, tn)  -> sublane-broadcast
            acc = jnp.maximum(acc, xk * f_rows + wk)

        o_ref[r0:r0 + rr, :] = acc                        # lane-dense store, no cast
        r0 += rr


def _pick_tile(dim, candidates):
    for c in candidates:
        if dim % c == 0:
            return c
    return dim


@functools.partial(jax.jit, static_argnames=("tm", "tn"))
def scaled_maxplus(x, w, factors, *, tm=None, tn=None):
    """Y[b, o] = max_k (x[b, k] * factors[o] + w[o, k])  (ScaledMaxPlus.forward)."""
    B, K = x.shape
    N, K2 = w.shape
    assert K == K2, "in_features mismatch"
    assert factors.size == N, "factors must have one entry per output feature"

    # Common compute dtype: bf16 in -> bf16 compute (v6e/v7x win), f32 in -> f32.
    cdt = jnp.promote_types(jnp.promote_types(x.dtype, w.dtype), factors.dtype)
    x = x.astype(cdt)
    wt = w.astype(cdt).T                    # (K, N): reduction axis off the lanes
    f = factors.reshape(1, N).astype(cdt)   # (1, N): lane-aligned with outputs

    # Tile selection: whole (small) batch per block for max W reuse; lane-dense
    # output tiles of 256/128 so realistic N gives >= 2 j-blocks for megacore.
    if tm is None:
        tm = B if B <= 32 else _pick_tile(B, (32, 16, 8))
    if tn is None:
        tn = _pick_tile(N, (256, 128)) if N >= 128 else N
    assert B % tm == 0 and N % tn == 0, "pad batch/out_features to tile multiples"

    grid = (B // tm, N // tn)
    return pl.pallas_call(
        functools.partial(_scaled_maxplus_kernel, rb=8),
        out_shape=jax.ShapeDtypeStruct((B, N), cdt),
        grid=grid,
        in_specs=[
            pl.BlockSpec((tm, K), lambda i, j: (i, 0)),   # X rows, full K resident
            pl.BlockSpec((K, tn), lambda i, j: (0, j)),   # W^T columns, full K resident
            pl.BlockSpec((1, tn), lambda i, j: (0, j)),   # factors slice
        ],
        out_specs=pl.BlockSpec((tm, tn), lambda i, j: (i, j)),
        compiler_params=pltpu.CompilerParams(
            dimension_semantics=("parallel", "parallel"),
        ),
    )(x, wt, f)


def init_xavier_uniform(key, in_features, out_features, dtype=jnp.float32):
    """Deterministic xavier_uniform matching torch.nn.init.xavier_uniform_."""
    bound = (6.0 / (in_features + out_features)) ** 0.5
    return jax.random.uniform(
        key, (out_features, in_features), dtype=dtype, minval=-bound, maxval=bound
    )


def scaled_maxplus_reference(x, w, factors):
    # Pure-JAX reference mirroring the PyTorch forward.
    s = w[None, :, :] + x[:, None, :] * factors.reshape(1, -1, 1)
    return jnp.max(s, axis=-1)


if __name__ == "__main__":
    batch = 8
    in_features = 256
    out_features = 256

    key = jax.random.PRNGKey(0)
    kx, kw, kf = jax.random.split(key, 3)

    x = jax.random.normal(kx, (batch, in_features), dtype=jnp.float32)
    W = init_xavier_uniform(kw, in_features, out_features, dtype=jnp.float32)
    # Module inits factors to ones; use non-trivial values to exercise the scaling path.
    factors = jax.random.uniform(
        kf, (out_features, 1), dtype=jnp.float32, minval=0.5, maxval=1.5
    )

    y = jax.block_until_ready(scaled_maxplus(x, W, factors))
    y_ref = scaled_maxplus_reference(x, W, factors)

    assert y.shape == (batch, out_features)
    assert jnp.allclose(y, y_ref, atol=1e-5, rtol=1e-5), "mismatch vs reference"

    print("KERNEL_OK")
</pallas_src>

<mosaic_0001>
module attributes {stable_mosaic.version = 11 : i64} {
  func.func @_scaled_maxplus_kernel(%arg0: i32, %arg1: i32, %arg2: memref<8x256xf32, #tpu.memory_space<vmem>>, %arg3: memref<256x256xf32, #tpu.memory_space<vmem>>, %arg4: memref<1x256xf32, #tpu.memory_space<vmem>>, %arg5: memref<8x256xf32, #tpu.memory_space<vmem>>) attributes {dimension_semantics = [#tpu.dimension_semantics<parallel>, #tpu.dimension_semantics<parallel>], iteration_bounds = array<i64: 1, 1>, scalar_prefetch = 0 : i64, scratch_operands = 0 : i64, tpu.core_type = #tpu.core_type<tc>, window_params = [{transform_indices = @transform_0, window_bounds = array<i64: 8, 256>}, {transform_indices = @transform_1, window_bounds = array<i64: 256, 256>}, {transform_indices = @transform_2, window_bounds = array<i64: 1, 256>}, {transform_indices = @transform_3, window_bounds = array<i64: 8, 256>}]} {
    %c0 = arith.constant 0 : index
    %c0_0 = arith.constant 0 : index
    %0 = vector.load %arg4[%c0, %c0_0] : memref<1x256xf32, #tpu.memory_space<vmem>>, vector<1x256xf32>
    %1 = vector.shape_cast %0 : vector<1x256xf32> to vector<1x256xf32>
    %2 = vector.broadcast %1 : vector<1x256xf32> to vector<8x256xf32>
    %c0_1 = arith.constant 0 : index
    %c0_2 = arith.constant 0 : index
    %3 = vector.load %arg2[%c0_1, %c0_2] : memref<8x256xf32, #tpu.memory_space<vmem>>, vector<8x256xf32>
    %cst = arith.constant 0xFF800000 : f32
    %4 = vector.broadcast %cst : f32 to vector<8x256xf32>
    %5 = vector.extract_strided_slice %3 {offsets = [0, 0], sizes = [8, 1], strides = [1, 1]} : vector<8x256xf32> to vector<8x1xf32>
    %c0_3 = arith.constant 0 : index
    %c0_4 = arith.constant 0 : index
    %6 = vector.load %arg3[%c0_3, %c0_4] : memref<256x256xf32, #tpu.memory_space<vmem>>, vector<1x256xf32>
    %7 = vector.broadcast %5 : vector<8x1xf32> to vector<8x256xf32>
    %8 = arith.mulf %7, %2 : vector<8x256xf32>
    %9 = vector.broadcast %6 : vector<1x256xf32> to vector<8x256xf32>
    %10 = arith.addf %8, %9 : vector<8x256xf32>
    %11 = arith.maximumf %4, %10 : vector<8x256xf32>
    %12 = vector.extract_strided_slice %3 {offsets = [0, 1], sizes = [8, 1], strides = [1, 1]} : vector<8x256xf32> to vector<8x1xf32>
    %c1 = arith.constant 1 : index
    %c0_5 = arith.constant 0 : index
    %13 = vector.load %arg3[%c1, %c0_5] : memref<256x256xf32, #tpu.memory_space<vmem>>, vector<1x256xf32>
    %14 = vector.broadcast %12 : vector<8x1xf32> to vector<8x256xf32>
    %15 = arith.mulf %14, %2 : vector<8x256xf32>
    %16 = vector.broadcast %13 : vector<1x256xf32> to vector<8x256xf32>
    %17 = arith.addf %15, %16 : vector<8x256xf32>
    %18 = arith.maximumf %11, %17 : vector<8x256xf32>
    %19 = vector.extract_strided_slice %3 {offsets = [0, 2], sizes = [8, 1], strides = [1, 1]} : vector<8x256xf32> to vector<8x1xf32>
    %c2 = arith.constant 2 : index
    %c0_6 = arith.constant 0 : index
    %20 = vector.load %arg3[%c2, %c0_6] : memref<256x256xf32, #tpu.memory_space<vmem>>, vector<1x256xf32>
    %21 = vector.broadcast %19 : vector<8x1xf32> to vector<8x256xf32>
    %22 = arith.mulf %21, %2 : vector<8x256xf32>
    %23 = vector.broadcast %20 : vector<1x256xf32> to vector<8x256xf32>
    %24 = arith.addf %22, %23 : vector<8x256xf32>
    %25 = arith.maximumf %18, %24 : vector<8x256xf32>
    %26 = vector.extract_strided_slice %3 {offsets = [0, 3], sizes = [8, 1], strides = [1, 1]} : vector<8x256xf32> to vector<8x1xf32>
    %c3 = arith.constant 3 : index
    %c0_7 = arith.constant 0 : index
    %27 = vector.load %arg3[%c3, %c0_7] : memref<256x256xf32, #tpu.memory_space<vmem>>, vector<1x256xf32>
    %28 = vector.broadcast %26 : vector<8x1xf32> to vector<8x256xf32>
    %29 = arith.mulf %28, %2 : vector<8x256xf32>
    %30 = vector.broadcast %27 : vector<1x256xf32> to vector<8x256xf32>
    %31 = arith.addf %29, %30 : vector<8x256xf32>
    %32 = arith.maximumf %25, %31 : vector<8x256xf32>
    %33 = vector.extract_strided_slice %3 {offsets = [0, 4], sizes = [8, 1], strides = [1, 1]} : vector<8x256xf32> to vector<8x1xf32>
    %c4 = arith.constant 4 : index
    %c0_8 = arith.constant 0 : index
    %34 = vector.load %arg3[%c4, %c0_8] : memref<256x256xf32, #tpu.memory_space<vmem>>, vector<1x256xf32>
    %35 = vector.broadcast %33 : vector<8x1xf32> to vector<8x256xf32>
    %36 = arith.mulf %35, %2 : vector<8x256xf32>
    %37 = vector.broadcast %34 : vector<1x256xf32> to vector<8x256xf32>
    %38 = arith.addf %36, %37 : vector<8x256xf32>
    %39 = arith.maximumf %32, %38 : vector<8x256xf32>
    %40 = vector.extract_strided_slice %3 {offsets = [0, 5], sizes = [8, 1], strides = [1, 1]} : vector<8x256xf32> to vector<8x1xf32>
    %c5 = arith.constant 5 : index
    %c0_9 = arith.constant 0 : index
    %41 = vector.load %arg3[%c5, %c0_9] : memref<256x256xf32, #tpu.memory_space<vmem>>, vector<1x256xf32>
    %42 = vector.broadcast %40 : vector<8x1xf32> to vector<8x256xf32>
    %43 = arith.mulf %42, %2 : vector<8x256xf32>
    %44 = vector.broadcast %41 : vector<1x256xf32> to vector<8x256xf32>
    %45 = arith.addf %43, %44 : vector<8x256xf32>
    %46 = arith.maximumf %39, %45 : vector<8x256xf32>
    %47 = vector.extract_strided_slice %3 {offsets = [0, 6], sizes = [8, 1], strides = [1, 1]} : vector<8x256xf32> to vector<8x1xf32>
    %c6 = arith.constant 6 : index
    %c0_10 = arith.constant 0 : index
    %48 = vector.load %arg3[%c6, %c0_10] : memref<256x256xf32, #tpu.memory_space<vmem>>, vector<1x256xf32>
    %49 = vector.broadcast %47 : vector<8x1xf32> to vector<8x256xf32>
    %50 = arith.mulf %49, %2 : vector<8x256xf32>
    %51 = vector.broadcast %48 : vector<1x256xf32> to vector<8x256xf32>
    %52 = arith.addf %50, %51 : vector<8x256xf32>
    %53 = arith.maximumf %46, %52 : vector<8x256xf32>
    %54 = vector.extract_strided_slice %3 {offsets = [0, 7], sizes = [8, 1], strides = [1, 1]} : vector<8x256xf32> to vector<8x1xf32>
    %c7 = arith.constant 7 : index
    %c0_11 = arith.constant 0 : index
    %55 = vector.load %arg3[%c7, %c0_11] : memref<256x256xf32, #tpu.memory_space<vmem>>, vector<1x256xf32>
    %56 = vector.broadcast %54 : vector<8x1xf32> to vector<8x256xf32>
    %57 = arith.mulf %56, %2 : vector<8x256xf32>
    %58 = vector.broadcast %55 : vector<1x256xf32> to vector<8x256xf32>
    %59 = arith.addf %57, %58 : vector<8x256xf32>
    %60 = arith.maximumf %53, %59 : vector<8x256xf32>
    %61 = vector.extract_strided_slice %3 {offsets = [0, 8], sizes = [8, 1], strides = [1, 1]} : vector<8x256xf32> to vector<8x1xf32>
    %c8 = arith.constant 8 : index
    %c0_12 = arith.constant 0 : index
    %62 = vector.load %arg3[%c8, %c0_12] : memref<256x256xf32, #tpu.memory_space<vmem>>, vector<1x256xf32>
    %63 = vector.broadcast %61 : vector<8x1xf32> to vector<8x256xf32>
    %64 = arith.mulf %63, %2 : vector<8x256xf32>
    %65 = vector.broadcast %62 : vector<1x256xf32> to vector<8x256xf32>
    %66 = arith.addf %64, %65 : vector<8x256xf32>
    %67 = arith.maximumf %60, %66 : vector<8x256xf32>
    %68 = vector.extract_strided_slice %3 {offsets = [0, 9], sizes = [8, 1], strides = [1, 1]} : vector<8x256xf32> to vector<8x1xf32>
    %c9 = arith.constant 9 : index
    %c0_13 = arith.constant 0 : index
    %69 = vector.load %arg3[%c9, %c0_13] : memref<256x256xf32, #tpu.memory_space<vmem>>, vector<1x256xf32>
    %70 = vector.broadcast %68 : vector<8x1xf32> to vector<8x256xf32>
    %71 = arith.mulf %70, %2 : vector<8x256xf32>
    %72 = vector.broadcast %69 : vector<1x256xf32> to vector<8x256xf32>
    %73 = arith.addf %71, %72 : vector<8x256xf32>
    %74 = arith.maximumf %67, %73 : vector<8x256xf32>
    %75 = vector.extract_strided_slice %3 {offsets = [0, 10], sizes = [8, 1], strides = [1, 1]} : vector<8x256xf32> to vector<8x1xf32>
    %c10 = arith.constant 10 : index
    %c0_14 = arith.constant 0 : index
    %76 = vector.load %arg3[%c10, %c0_14] : memref<256x256xf32, #tpu.memory_space<vmem>>, vector<1x256xf32>
    %77 = vector.broadcast %75 : vector<8x1xf32> to vector<8x256xf32>
    %78 = arith.mulf %77, %2 : vector<8x256xf32>
    %79 = vector.broadcast %76 : vector<1x256xf32> to vector<8x256xf32>
    %80 = arith.addf %78, %79 : vector<8x256xf32>
    %81 = arith.maximumf %74, %80 : vector<8x256xf32>
    %82 = vector.extract_strided_slice %3 {offsets = [0, 11], sizes = [8, 1], strides = [1, 1]} : vector<8x256xf32> to vector<8x1xf32>
    %c11 = arith.constant 11 : index
    %c0_15 = arith.constant 0 : index
    %83 = vector.load %arg3[%c11, %c0_15] : memref<256x256xf32, #tpu.memory_space<vmem>>, vector<1x256xf32>
    %84 = vector.broadcast %82 : vector<8x1xf32> to vector<8x256xf32>
    %85 = arith.mulf %84, %2 : vector<8x256xf32>
    %86 = vector.broadcast %83 : vector<1x256xf32> to vector<8x256xf32>
    %87 = arith.addf %85, %86 : vector<8x256xf32>
    %88 = arith.maximumf %81, %87 : vector<8x256xf32>
    %89 = vector.extract_strided_slice %3 {offsets = [0, 12], sizes = [8, 1], strides = [1, 1]} : vector<8x256xf32> to vector<8x1xf32>
    %c12 = arith.constant 12 : index
    %c0_16 = arith.constant 0 : index
    %90 = vector.load %arg3[%c12, %c0_16] : memref<256x256xf32, #tpu.memory_space<vmem>>, vector<1x256xf32>
    %91 = vector.broadcast %89 : vector<8x1xf32> to vector<8x256xf32>
    %92 = arith.mulf %91, %2 : vector<8x256xf32>
    %93 = vector.broadcast %90 : vector<1x256xf32> to vector<8x256xf32>
    %94 = arith.addf %92, %93 : vector<8x256xf32>
    %95 = arith.maximumf %88, %94 : vector<8x256xf32>
    %96 = vector.extract_strided_slice %3 {offsets = [0, 13], sizes = [8, 1], strides = [1, 1]} : vector<8x256xf32> to vector<8x1xf32>
    %c13 = arith.constant 13 : index
    %c0_17 = arith.constant 0 : index
    %97 = vector.load %arg3[%c13, %c0_17] : memref<256x256xf32, #tpu.memory_space<vmem>>, vector<1x256xf32>
    %98 = vector.broadcast %96 : vector<8x1xf32> to vector<8x256xf32>
    %99 = arith.mulf %98, %2 : vector<8x256xf32>
    %100 = vector.broadcast %97 : vector<1x256xf32> to vector<8x256xf32>
    %101 = arith.addf %99, %100 : vector<8x256xf32>
    %102 = arith.maximumf %95, %101 : vector<8x256xf32>
    %103 = vector.extract_strided_slice %3 {offsets = [0, 14], sizes = [8, 1], strides = [1, 1]} : vector<8x256xf32> to vector<8x1xf32>
    %c14 = arith.constant 14 : index
    %c0_18 = arith.constant 0 : index
    %104 = vector.load %arg3[%c14, %c0_18] : memref<256x256xf32, #tpu.memory_space<vmem>>, vector<1x256xf32>
    %105 = vector.broadcast %103 : vector<8x1xf32> to vector<8x256xf32>
    %106 = arith.mulf %105, %2 : vector<8x256xf32>
    %107 = vector.broadcast %104 : vector<1x256xf32> to vector<8x256xf32>
    %108 = arith.addf %106, %107 : vector<8x256xf32>
    %109 = arith.maximumf %102, %108 : vector<8x256xf32>
    %110 = vector.extract_strided_slice %3 {offsets = [0, 15], sizes = [8, 1], strides = [1, 1]} : vector<8x256xf32> to vector<8x1xf32>
    %c15 = arith.constant 15 : index
    %c0_19 = arith.constant 0 : index
    %111 = vector.load %arg3[%c15, %c0_19] : memref<256x256xf32, #tpu.memory_space<vmem>>, vector<1x256xf32>
    %112 = vector.broadcast %110 : vector<8x1xf32> to vector<8x256xf32>
    %113 = arith.mulf %112, %2 : vector<8x256xf32>
    %114 = vector.broadcast %111 : vector<1x256xf32> to vector<8x256xf32>
    %115 = arith.addf %113, %114 : vector<8x256xf32>
    %116 = arith.maximumf %109, %115 : vector<8x256xf32>
    %117 = vector.extract_strided_slice %3 {offsets = [0, 16], sizes = [8, 1], strides = [1, 1]} : vector<8x256xf32> to vector<8x1xf32>
    %c16 = arith.constant 16 : index
    %c0_20 = arith.constant 0 : index
    %118 = vector.load %arg3[%c16, %c0_20] : memref<256x256xf32, #tpu.memory_space<vmem>>, vector<1x256xf32>
    %119 = vector.broadcast %117 : vector<8x1xf32> to vector<8x256xf32>
    %120 = arith.mulf %119, %2 : vector<8x256xf32>
    %121 = vector.broadcast %118 : vector<1x256xf32> to vector<8x256xf32>
    %122 = arith.addf %120, %121 : vector<8x256xf32>
    %123 = arith.maximumf %116, %122 : vector<8x256xf32>
    %124 = vector.extract_strided_slice %3 {offsets = [0, 17], sizes = [8, 1], strides = [1, 1]} : vector<8x256xf32> to vector<8x1xf32>
    %c17 = arith.constant 17 : index
    %c0_21 = arith.constant 0 : index
    %125 = vector.load %arg3[%c17, %c0_21] : memref<256x256xf32, #tpu.memory_space<vmem>>, vector<1x256xf32>
    %126 = vector.broadcast %124 : vector<8x1xf32> to vector<8x256xf32>
    %127 = arith.mulf %126, %2 : vector<8x256xf32>
    %128 = vector.broadcast %125 : vector<1x256xf32> to vector<8x256xf32>
    %129 = arith.addf %127, %128 : vector<8x256xf32>
    %130 = arith.maximumf %123, %129 : vector<8x256xf32>
    %131 = vector.extract_strided_slice %3 {offsets = [0, 18], sizes = [8, 1], strides = [1, 1]} : vector<8x256xf32> to vector<8x1xf32>
    %c18 = arith.constant 18 : index
    %c0_22 = arith.constant 0 : index
    %132 = vector.load %arg3[%c18, %c0_22] : memref<256x256xf32, #tpu.memory_space<vmem>>, vector<1x256xf32>
    %133 = vector.broadcast %131 : vector<8x1xf32> to vector<8x256xf32>
    %134 = arith.mulf %133, %2 : vector<8x256xf32>
    %135 = vector.broadcast %132 : vector<1x256xf32> to vector<8x256xf32>
    %136 = arith.addf %134, %135 : vector<8x256xf32>
    %137 = arith.maximumf %130, %136 : vector<8x256xf32>
    %138 = vector.extract_strided_slice %3 {offsets = [0, 19], sizes = [8, 1], strides = [1, 1]} : vector<8x256xf32> to vector<8x1xf32>
    %c19 = arith.constant 19 : index
    %c0_23 = arith.constant 0 : index
    %139 = vector.load %arg3[%c19, %c0_23] : memref<256x256xf32, #tpu.memory_space<vmem>>, vector<1x256xf32>
    %140 = vector.broadcast %138 : vector<8x1xf32> to vector<8x256xf32>
    %141 = arith.mulf %140, %2 : vector<8x256xf32>
    %142 = vector.broadcast %139 : vector<1x256xf32> to vector<8x256xf32>
    %143 = arith.addf %141, %142 : vector<8x256xf32>
    %144 = arith.maximumf %137, %143 : vector<8x256xf32>
    %145 = vector.extract_strided_slice %3 {offsets = [0, 20], sizes = [8, 1], strides = [1, 1]} : vector<8x256xf32> to vector<8x1xf32>
    %c20 = arith.constant 20 : index
    %c0_24 = arith.constant 0 : index
    %146 = vector.load %arg3[%c20, %c0_24] : memref<256x256xf32, #tpu.memory_space<vmem>>, vector<1x256xf32>
    %147 = vector.broadcast %145 : vector<8x1xf32> to vector<8x256xf32>
    %148 = arith.mulf %147, %2 : vector<8x256xf32>
    %149 = vector.broadcast %146 : vector<1x256xf32> to vector<8x256xf32>
    %150 = arith.addf %148, %149 : vector<8x256xf32>
    %151 = arith.maximumf %144, %150 : vector<8x256xf32>
    %152 = vector.extract_strided_slice %3 {offsets = [0, 21], sizes = [8, 1], strides = [1, 1]} : vector<8x256xf32> to vector<8x1xf32>
    %c21 = arith.constant 21 : index
    %c0_25 = arith.constant 0 : index
    %153 = vector.load %arg3[%c21, %c0_25] : memref<256x256xf32, #tpu.memory_space<vmem>>, vector<1x256xf32>
    %154 = vector.broadcast %152 : vector<8x1xf32> to vector<8x256xf32>
    %155 = arith.mulf %154, %2 : vector<8x256xf32>
    %156 = vector.broadcast %153 : vector<1x256xf32> to vector<8x256xf32>
    %157 = arith.addf %155, %156 : vector<8x256xf32>
    %158 = arith.maximumf %151, %157 : vector<8x256xf32>
    %159 = vector.extract_strided_slice %3 {offsets = [0, 22], sizes = [8, 1], strides = [1, 1]} : vector<8x256xf32> to vector<8x1xf32>
    %c22 = arith.constant 22 : index
    %c0_26 = arith.constant 0 : index
    %160 = vector.load %arg3[%c22, %c0_26] : memref<256x256xf32, #tpu.memory_space<vmem>>, vector<1x256xf32>
    %161 = vector.broadcast %159 : vector<8x1xf32> to vector<8x256xf32>
    %162 = arith.mulf %161, %2 : vector<8x256xf32>
    %163 = vector.broadcast %160 : vector<1x256xf32> to vector<8x256xf32>
    %164 = arith.addf %162, %163 : vector<8x256xf32>
    %165 = arith.maximumf %158, %164 : vector<8x256xf32>
    %166 = vector.extract_strided_slice %3 {offsets = [0, 23], sizes = [8, 1], strides = [1, 1]} : vector<8x256xf32> to vector<8x1xf32>
    %c23 = arith.constant 23 : index
    %c0_27 = arith.constant 0 : index
    %167 = vector.load %arg3[%c23, %c0_27] : memref<256x256xf32, #tpu.memory_space<vmem>>, vector<1x256xf32>
    %168 = vector.broadcast %166 : vector<8x1xf32> to vector<8x256xf32>
    %169 = arith.mulf %168, %2 : vector<8x256xf32>
    %170 = vector.broadcast %167 : vector<1x256xf32> to vector<8x256xf32>
    %171 = arith.addf %169, %170 : vector<8x256xf32>
    %172 = arith.maximumf %165, %171 : vector<8x256xf32>
    %173 = vector.extract_strided_slice %3 {offsets = [0, 24], sizes = [8, 1], strides = [1, 1]} : vector<8x256xf32> to vector<8x1xf32>
    %c24 = arith.constant 24 : index
    %c0_28 = arith.constant 0 : index
    %174 = vector.load %arg3[%c24, %c0_28] : memref<256x256xf32, #tpu.memory_space<vmem>>, vector<1x256xf32>
    %175 = vector.broadcast %173 : vector<8x1xf32> to vector<8x256xf32>
    %176 = arith.mulf %175, %2 : vector<8x256xf32>
    %177 = vector.broadcast %174 : vector<1x256xf32> to vector<8x256xf32>
    %178 = arith.addf %176, %177 : vector<8x256xf32>
    %179 = arith.maximumf %172, %178 : vector<8x256xf32>
    %180 = vector.extract_strided_slice %3 {offsets = [0, 25], sizes = [8, 1], strides = [1, 1]} : vector<8x256xf32> to vector<8x1xf32>
    %c25 = arith.constant 25 : index
    %c0_29 = arith.constant 0 : index
    %181 = vector.load %arg3[%c25, %c0_29] : memref<256x256xf32, #tpu.memory_space<vmem>>, vector<1x256xf32>
    %182 = vector.broadcast %180 : vector<8x1xf32> to vector<8x256xf32>
    %183 = arith.mulf %182, %2 : vector<8x256xf32>
    %184 = vector.broadcast %181 : vector<1x256xf32> to vector<8x256xf32>
    %185 = arith.addf %183, %184 : vector<8x256xf32>
    %186 = arith.maximumf %179, %185 : vector<8x256xf32>
    %187 = vector.extract_strided_slice %3 {offsets = [0, 26], sizes = [8, 1], strides = [1, 1]} : vector<8x256xf32> to vector<8x1xf32>
    %c26 = arith.constant 26 : index
    %c0_30 = arith.constant 0 : index
    %188 = vector.load %arg3[%c26, %c0_30] : memref<256x256xf32, #tpu.memory_space<vmem>>, vector<1x256xf32>
    %189 = vector.broadcast %187 : vector<8x1xf32> to vector<8x256xf32>
    %190 = arith.mulf %189, %2 : vector<8x256xf32>
    %191 = vector.broadcast %188 : vector<1x256xf32> to vector<8x256xf32>
    %192 = arith.addf %190, %191 : vector<8x256xf32>
    %193 = arith.maximumf %186, %192 : vector<8x256xf32>
    %194 = vector.extract_strided_slice %3 {offsets = [0, 27], sizes = [8, 1], strides = [1, 1]} : vector<8x256xf32> to vector<8x1xf32>
    %c27 = arith.constant 27 : index
    %c0_31 = arith.constant 0 : index
    %195 = vector.load %arg3[%c27, %c0_31] : memref<256x256xf32, #tpu.memory_space<vmem>>, vector<1x256xf32>
    %196 = vector.broadcast %194 : vector<8x1xf32> to vector<8x256xf32>
    %197 = arith.mulf %196, %2 : vector<8x256xf32>
    %198 = vector.broadcast %195 : vector<1x256xf32> to vector<8x256xf32>
    %199 = arith.addf %197, %198 : vector<8x256xf32>
    %200 = arith.maximumf %193, %199 : vector<8x256xf32>
    %201 = vector.extract_strided_slice %3 {offsets = [0, 28], sizes = [8, 1], strides = [1, 1]} : vector<8x256xf32> to vector<8x1xf32>
    %c28 = arith.constant 28 : index
    %c0_32 = arith.constant 0 : index
    %202 = vector.load %arg3[%c28, %c0_32] : memref<256x256xf32, #tpu.memory_space<vmem>>, vector<1x256xf32>
    %203 = vector.broadcast %201 : vector<8x1xf32> to vector<8x256xf32>
    %204 = arith.mulf %203, %2 : vector<8x256xf32>
    %205 = vector.broadcast %202 : vector<1x256xf32> to vector<8x256xf32>
    %206 = arith.addf %204, %205 : vector<8x256xf32>
    %207 = arith.maximumf %200, %206 : vector<8x256xf32>
    %208 = vector.extract_strided_slice %3 {offsets = [0, 29], sizes = [8, 1], strides = [1, 1]} : vector<8x256xf32> to vector<8x1xf32>
    %c29 = arith.constant 29 : index
    %c0_33 = arith.constant 0 : index
    %209 = vector.load %arg3[%c29, %c0_33] : memref<256x256xf32, #tpu.memory_space<vmem>>, vector<1x256xf32>
    %210 = vector.broadcast %208 : vector<8x1xf32> to vector<8x256xf32>
    %211 = arith.mulf %210, %2 : vector<8x256xf32>
    %212 = vector.broadcast %209 : vector<1x256xf32> to vector<8x256xf32>
    %213 = arith.addf %211, %212 : vector<8x256xf32>
    %214 = arith.maximumf %207, %213 : vector<8x256xf32>
    %215 = vector.extract_strided_slice %3 {offsets = [0, 30], sizes = [8, 1], strides = [1, 1]} : vector<8x256xf32> to vector<8x1xf32>
    %c30 = arith.constant 30 : index
    %c0_34 = arith.constant 0 : index
    %216 = vector.load %arg3[%c30, %c0_34] : memref<256x256xf32, #tpu.memory_space<vmem>>, vector<1x256xf32>
    %217 = vector.broadcast %215 : vector<8x1xf32> to vector<8x256xf32>
    %218 = arith.mulf %217, %2 : vector<8x256xf32>
    %219 = vector.broadcast %216 : vector<1x256xf32> to vector<8x256xf32>
    %220 = arith.addf %218, %219 : vector<8x256xf32>
    %221 = arith.maximumf %214, %220 : vector<8x256xf32>
    %222 = vector.extract_strided_slice %3 {offsets = [0, 31], sizes = [8, 1], strides = [1, 1]} : vector<8x256xf32> to vector<8x1xf32>
    %c31 = arith.constant 31 : index
    %c0_35 = arith.constant 0 : index
    %223 = vector.load %arg3[%c31, %c0_35] : memref<256x256xf32, #tpu.memory_space<vmem>>, vector<1x256xf32>
    %224 = vector.broadcast %222 : vector<8x1xf32> to vector<8x256xf32>
    %225 = arith.mulf %224, %2 : vector<8x256xf32>
    %226 = vector.broadcast %223 : vector<1x256xf32> to vector<8x256xf32>
    %227 = arith.addf %225, %226 : vector<8x256xf32>
    %228 = arith.maximumf %221, %227 : vector<8x256xf32>
    %229 = vector.extract_strided_slice %3 {offsets = [0, 32], sizes = [8, 1], strides = [1, 1]} : vector<8x256xf32> to vector<8x1xf32>
    %c32 = arith.constant 32 : index
    %c0_36 = arith.constant 0 : index
    %230 = vector.load %arg3[%c32, %c0_36] : memref<256x256xf32, #tpu.memory_space<vmem>>, vector<1x256xf32>
    %231 = vector.broadcast %229 : vector<8x1xf32> to vector<8x256xf32>
    %232 = arith.mulf %231, %2 : vector<8x256xf32>
    %233 = vector.broadcast %230 : vector<1x256xf32> to vector<8x256xf32>
    %234 = arith.addf %232, %233 : vector<8x256xf32>
    %235 = arith.maximumf %228, %234 : vector<8x256xf32>
    %236 = vector.extract_strided_slice %3 {offsets = [0, 33], sizes = [8, 1], strides = [1, 1]} : vector<8x256xf32> to vector<8x1xf32>
    %c33 = arith.constant 33 : index
    %c0_37 = arith.constant 0 : index
    %237 = vector.load %arg3[%c33, %c0_37] : memref<256x256xf32, #tpu.memory_space<vmem>>, vector<1x256xf32>
    %238 = vector.broadcast %236 : vector<8x1xf32> to vector<8x256xf32>
    %239 = arith.mulf %238, %2 : vector<8x256xf32>
    %240 = vector.broadcast %237 : vector<1x256xf32> to vector<8x256xf32>
    %241 = arith.addf %239, %240 : vector<8x256xf32>
    %242 = arith.maximumf %235, %241 : vector<8x256xf32>
    %243 = vector.extract_strided_slice %3 {offsets = [0, 34], sizes = [8, 1], strides = [1, 1]} : vector<8x256xf32> to vector<8x1xf32>
    %c34 = arith.constant 34 : index
    %c0_38 = arith.constant 0 : index
    %244 = vector.load %arg3[%c34, %c0_38] : memref<256x256xf32, #tpu.memory_space<vmem>>, vector<1x256xf32>
    %245 = vector.broadcast %243 : vector<8x1xf32> to vector<8x256xf32>
    %246 = arith.mulf %245, %2 : vector<8x256xf32>
    %247 = vector.broadcast %244 : vector<1x256xf32> to vector<8x256xf32>
    %248 = arith.addf %246, %247 : vector<8x256xf32>
    %249 = arith.maximumf %242, %248 : vector<8x256xf32>
    %250 = vector.extract_strided_slice %3 {offsets = [0, 35], sizes = [8, 1], strides = [1, 1]} : vector<8x256xf32> to vector<8x1xf32>
    %c35 = arith.constant 35 : index
    %c0_39 = arith.constant 0 : index
    %251 = vector.load %arg3[%c35, %c0_39] : memref<256x256xf32, #tpu.memory_space<vmem>>, vector<1x256xf32>
    %252 = vector.broadcast %250 : vector<8x1xf32> to vector<8x256xf32>
    %253 = arith.mulf %252, %2 : vector<8x256xf32>
    %254 = vector.broadcast %251 : vector<1x256xf32> to vector<8x256xf32>
    %255 = arith.addf %253, %254 : vector<8x256xf32>
    %256 = arith.maximumf %249, %255 : vector<8x256xf32>
    %257 = vector.extract_strided_slice %3 {offsets = [0, 36], sizes = [8, 1], strides = [1, 1]} : vector<8x256xf32> to vector<8x1xf32>
    %c36 = arith.constant 36 : index
    %c0_40 = arith.constant 0 : index
    %258 = vector.load %arg3[%c36, %c0_40] : memref<256x256xf32, #tpu.memory_space<vmem>>, vector<1x256xf32>
    %259 = vector.broadcast %257 : vector<8x1xf32> to vector<8x256xf32>
    %260 = arith.mulf %259, %2 : vector<8x256xf32>
    %261 = vector.broadcast %258 : vector<1x256xf32> to vector<8x256xf32>
    %262 = arith.addf %260, %261 : vector<8x256xf32>
    %263 = arith.maximumf %256, %262 : vector<8x256xf32>
    %264 = vector.extract_strided_slice %3 {offsets = [0, 37], sizes = [8, 1], strides = [1, 1]} : vector<8x256xf32> to vector<8x1xf32>
    %c37 = arith.constant 37 : index
    %c0_41 = arith.constant 0 : index
    %265 = vector.load %arg3[%c37, %c0_41] : memref<256x256xf32, #tpu.memory_space<vmem>>, vector<1x256xf32>
    %266 = vector.broadcast %264 : vector<8x1xf32> to vector<8x256xf32>
    %267 = arith.mulf %266, %2 : vector<8x256xf32>
    %268 = vector.broadcast %265 : vector<1x256xf32> to vector<8x256xf32>
    %269 = arith.addf %267, %268 : vector<8x256xf32>
    %270 = arith.maximumf %263, %269 : vector<8x256xf32>
    %271 = vector.extract_strided_slice %3 {offsets = [0, 38], sizes = [8, 1], strides = [1, 1]} : vector<8x256xf32> to vector<8x1xf32>
    %c38 = arith.constant 38 : index
    %c0_42 = arith.constant 0 : index
    %272 = vector.load %arg3[%c38, %c0_42] : memref<256x256xf32, #tpu.memory_space<vmem>>, vector<1x256xf32>
    %273 = vector.broadcast %271 : vector<8x1xf32> to vector<8x256xf32>
    %274 = arith.mulf %273, %2 : vector<8x256xf32>
    %275 = vector.broadcast %272 : vector<1x256xf32> to vector<8x256xf32>
    %276 = arith.addf %274, %275 : vector<8x256xf32>
    %277 = arith.maximumf %270, %276 : vector<8x256xf32>
    %278 = vector.extract_strided_slice %3 {offsets = [0, 39], sizes = [8, 1], strides = [1, 1]} : vector<8x256xf32> to vector<8x1xf32>
    %c39 = arith.constant 39 : index
    %c0_43 = arith.constant 0 : index
    %279 = vector.load %arg3[%c39, %c0_43] : memref<256x256xf32, #tpu.memory_space<vmem>>, vector<1x256xf32>
    %280 = vector.broadcast %278 : vector<8x1xf32> to vector<8x256xf32>
    %281 = arith.mulf %280, %2 : vector<8x256xf32>
    %282 = vector.broadcast %279 : vector<1x256xf32> to vector<8x256xf32>
    %283 = arith.addf %281, %282 : vector<8x256xf32>
    %284 = arith.maximumf %277, %283 : vector<8x256xf32>
    %285 = vector.extract_strided_slice %3 {offsets = [0, 40], sizes = [8, 1], strides = [1, 1]} : vector<8x256xf32> to vector<8x1xf32>
    %c40 = arith.constant 40 : index
    %c0_44 = arith.constant 0 : index
    %286 = vector.load %arg3[%c40, %c0_44] : memref<256x256xf32, #tpu.memory_space<vmem>>, vector<1x256xf32>
    %287 = vector.broadcast %285 : vector<8x1xf32> to vector<8x256xf32>
    %288 = arith.mulf %287, %2 : vector<8x256xf32>
    %289 = vector.broadcast %286 : vector<1x256xf32> to vector<8x256xf32>
    %290 = arith.addf %288, %289 : vector<8x256xf32>
    %291 = arith.maximumf %284, %290 : vector<8x256xf32>
    %292 = vector.extract_strided_slice %3 {offsets = [0, 41], sizes = [8, 1], strides = [1, 1]} : vector<8x256xf32> to vector<8x1xf32>
    %c41 = arith.constant 41 : index
    %c0_45 = arith.constant 0 : index
    %293 = vector.load %arg3[%c41, %c0_45] : memref<256x256xf32, #tpu.memory_space<vmem>>, vector<1x256xf32>
    %294 = vector.broadcast %292 : vector<8x1xf32> to vector<8x256xf32>
    %295 = arith.mulf %294, %2 : vector<8x256xf32>
    %296 = vector.broadcast %293 : vector<1x256xf32> to vector<8x256xf32>
    %297 = arith.addf %295, %296 : vector<8x256xf32>
    %298 = arith.maximumf %291, %297 : vector<8x256xf32>
    %299 = vector.extract_strided_slice %3 {offsets = [0, 42], sizes = [8, 1], strides = [1, 1]} : vector<8x256xf32> to vector<8x1xf32>
    %c42 = arith.constant 42 : index
    %c0_46 = arith.constant 0 : index
    %300 = vector.load %arg3[%c42, %c0_46] : memref<256x256xf32, #tpu.memory_space<vmem>>, vector<1x256xf32>
    %301 = vector.broadcast %299 : vector<8x1xf32> to vector<8x256xf32>
    %302 = arith.mulf %301, %2 : vector<8x256xf32>
    %303 = vector.broadcast %300 : vector<1x256xf32> to vector<8x256xf32>
    %304 = arith.addf %302, %303 : vector<8x256xf32>
    %305 = arith.maximumf %298, %304 : vector<8x256xf32>
    %306 = vector.extract_strided_slice %3 {offsets = [0, 43], sizes = [8, 1], strides = [1, 1]} : vector<8x256xf32> to vector<8x1xf32>
    %c43 = arith.constant 43 : index
    %c0_47 = arith.constant 0 : index
    %307 = vector.load %arg3[%c43, %c0_47] : memref<256x256xf32, #tpu.memory_space<vmem>>, vector<1x256xf32>
    %308 = vector.broadcast %306 : vector<8x1xf32> to vector<8x256xf32>
    %309 = arith.mulf %308, %2 : vector<8x256xf32>
    %310 = vector.broadcast %307 : vector<1x256xf32> to vector<8x256xf32>
    %311 = arith.addf %309, %310 : vector<8x256xf32>
    %312 = arith.maximumf %305, %311 : vector<8x256xf32>
    %313 = vector.extract_strided_slice %3 {offsets = [0, 44], sizes = [8, 1], strides = [1, 1]} : vector<8x256xf32> to vector<8x1xf32>
    %c44 = arith.constant 44 : index
    %c0_48 = arith.constant 0 : index
    %314 = vector.load %arg3[%c44, %c0_48] : memref<256x256xf32, #tpu.memory_space<vmem>>, vector<1x256xf32>
    %315 = vector.broadcast %313 : vector<8x1xf32> to vector<8x256xf32>
    %316 = arith.mulf %315, %2 : vector<8x256xf32>
    %317 = vector.broadcast %314 : vector<1x256xf32> to vector<8x256xf32>
    %318 = arith.addf %316, %317 : vector<8x256xf32>
    %319 = arith.maximumf %312, %318 : vector<8x256xf32>
    %320 = vector.extract_strided_slice %3 {offsets = [0, 45], sizes = [8, 1], strides = [1, 1]} : vector<8x256xf32> to vector<8x1xf32>
    %c45 = arith.constant 45 : index
    %c0_49 = arith.constant 0 : index
    %321 = vector.load %arg3[%c45, %c0_49] : memref<256x256xf32, #tpu.memory_space<vmem>>, vector<1x256xf32>
    %322 = vector.broadcast %320 : vector<8x1xf32> to vector<8x256xf32>
    %323 = arith.mulf %322, %2 : vector<8x256xf32>
    %324 = vector.broadcast %321 : vector<1x256xf32> to vector<8x256xf32>
    %325 = arith.addf %323, %324 : vector<8x256xf32>
    %326 = arith.maximumf %319, %325 : vector<8x256xf32>
    %327 = vector.extract_strided_slice %3 {offsets = [0, 46], sizes = [8, 1], strides = [1, 1]} : vector<8x256xf32> to vector<8x1xf32>
    %c46 = arith.constant 46 : index
    %c0_50 = arith.constant 0 : index
    %328 = vector.load %arg3[%c46, %c0_50] : memref<256x256xf32, #tpu.memory_space<vmem>>, vector<1x256xf32>
    %329 = vector.broadcast %327 : vector<8x1xf32> to vector<8x256xf32>
    %330 = arith.mulf %329, %2 : vector<8x256xf32>
    %331 = vector.broadcast %328 : vector<1x256xf32> to vector<8x256xf32>
    %332 = arith.addf %330, %331 : vector<8x256xf32>
    %333 = arith.maximumf %326, %332 : vector<8x256xf32>
    %334 = vector.extract_strided_slice %3 {offsets = [0, 47], sizes = [8, 1], strides = [1, 1]} : vector<8x256xf32> to vector<8x1xf32>
    %c47 = arith.constant 47 : index
    %c0_51 = arith.constant 0 : index
    %335 = vector.load %arg3[%c47, %c0_51] : memref<256x256xf32, #tpu.memory_space<vmem>>, vector<1x256xf32>
    %336 = vector.broadcast %334 : vector<8x1xf32> to vector<8x256xf32>
    %337 = arith.mulf %336, %2 : vector<8x256xf32>
    %338 = vector.broadcast %335 : vector<1x256xf32> to vector<8x256xf32>
    %339 = arith.addf %337, %338 : vector<8x256xf32>
    %340 = arith.maximumf %333, %339 : vector<8x256xf32>
    %341 = vector.extract_strided_slice %3 {offsets = [0, 48], sizes = [8, 1], strides = [1, 1]} : vector<8x256xf32> to vector<8x1xf32>
    %c48 = arith.constant 48 : index
    %c0_52 = arith.constant 0 : index
    %342 = vector.load %arg3[%c48, %c0_52] : memref<256x256xf32, #tpu.memory_space<vmem>>, vector<1x256xf32>
    %343 = vector.broadcast %341 : vector<8x1xf32> to vector<8x256xf32>
    %344 = arith.mulf %343, %2 : vector<8x256xf32>
    %345 = vector.broadcast %342 : vector<1x256xf32> to vector<8x256xf32>
    %346 = arith.addf %344, %345 : vector<8x256xf32>
    %347 = arith.maximumf %340, %346 : vector<8x256xf32>
    %348 = vector.extract_strided_slice %3 {offsets = [0, 49], sizes = [8, 1], strides = [1, 1]} : vector<8x256xf32> to vector<8x1xf32>
    %c49 = arith.constant 49 : index
    %c0_53 = arith.constant 0 : index
    %349 = vector.load %arg3[%c49, %c0_53] : memref<256x256xf32, #tpu.memory_space<vmem>>, vector<1x256xf32>
    %350 = vector.broadcast %348 : vector<8x1xf32> to vector<8x256xf32>
    %351 = arith.mulf %350, %2 : vector<8x256xf32>
    %352 = vector.broadcast %349 : vector<1x256xf32> to vector<8x256xf32>
    %353 = arith.addf %351, %352 : vector<8x256xf32>
    %354 = arith.maximumf %347, %353 : vector<8x256xf32>
    %355 = vector.extract_strided_slice %3 {offsets = [0, 50], sizes = [8, 1], strides = [1, 1]} : vector<8x256xf32> to vector<8x1xf32>
    %c50 = arith.constant 50 : index
    %c0_54 = arith.constant 0 : index
    %356 = vector.load %arg3[%c50, %c0_54] : memref<256x256xf32, #tpu.memory_space<vmem>>, vector<1x256xf32>
    %357 = vector.broadcast %355 : vector<8x1xf32> to vector<8x256xf32>
    %358 = arith.mulf %357, %2 : vector<8x256xf32>
    %359 = vector.broadcast %356 : vector<1x256xf32> to vector<8x256xf32>
    %360 = arith.addf %358, %359 : vector<8x256xf32>
    %361 = arith.maximumf %354, %360 : vector<8x256xf32>
    %362 = vector.extract_strided_slice %3 {offsets = [0, 51], sizes = [8, 1], strides = [1, 1]} : vector<8x256xf32> to vector<8x1xf32>
    %c51 = arith.constant 51 : index
    %c0_55 = arith.constant 0 : index
    %363 = vector.load %arg3[%c51, %c0_55] : memref<256x256xf32, #tpu.memory_space<vmem>>, vector<1x256xf32>
    %364 = vector.broadcast %362 : vector<8x1xf32> to vector<8x256xf32>
    %365 = arith.mulf %364, %2 : vector<8x256xf32>
    %366 = vector.broadcast %363 : vector<1x256xf32> to vector<8x256xf32>
    %367 = arith.addf %365, %366 : vector<8x256xf32>
    %368 = arith.maximumf %361, %367 : vector<8x256xf32>
    %369 = vector.extract_strided_slice %3 {offsets = [0, 52], sizes = [8, 1], strides = [1, 1]} : vector<8x256xf32> to vector<8x1xf32>
    %c52 = arith.constant 52 : index
    %c0_56 = arith.constant 0 : index
    %370 = vector.load %arg3[%c52, %c0_56] : memref<256x256xf32, #tpu.memory_space<vmem>>, vector<1x256xf32>
    %371 = vector.broadcast %369 : vector<8x1xf32> to vector<8x256xf32>
    %372 = arith.mulf %371, %2 : vector<8x256xf32>
    %373 = vector.broadcast %370 : vector<1x256xf32> to vector<8x256xf32>
    %374 = arith.addf %372, %373 : vector<8x256xf32>
    %375 = arith.maximumf %368, %374 : vector<8x256xf32>
    %376 = vector.extract_strided_slice %3 {offsets = [0, 53], sizes = [8, 1], strides = [1, 1]} : vector<8x256xf32> to vector<8x1xf32>
    %c53 = arith.constant 53 : index
    %c0_57 = arith.constant 0 : index
    %377 = vector.load %arg3[%c53, %c0_57] : memref<256x256xf32, #tpu.memory_space<vmem>>, vector<1x256xf32>
    %378 = vector.broadcast %376 : vector<8x1xf32> to vector<8x256xf32>
    %379 = arith.mulf %378, %2 : vector<8x256xf32>
    %380 = vector.broadcast %377 : vector<1x256xf32> to vector<8x256xf32>
    %381 = arith.addf %379, %380 : vector<8x256xf32>
    %382 = arith.maximumf %375, %381 : vector<8x256xf32>
    %383 = vector.extract_strided_slice %3 {offsets = [0, 54], sizes = [8, 1], strides = [1, 1]} : vector<8x256xf32> to vector<8x1xf32>
    %c54 = arith.constant 54 : index
    %c0_58 = arith.constant 0 : index
    %384 = vector.load %arg3[%c54, %c0_58] : memref<256x256xf32, #tpu.memory_space<vmem>>, vector<1x256xf32>
    %385 = vector.broadcast %383 : vector<8x1xf32> to vector<8x256xf32>
    %386 = arith.mulf %385, %2 : vector<8x256xf32>
    %387 = vector.broadcast %384 : vector<1x256xf32> to vector<8x256xf32>
    %388 = arith.addf %386, %387 : vector<8x256xf32>
    %389 = arith.maximumf %382, %388 : vector<8x256xf32>
    %390 = vector.extract_strided_slice %3 {offsets = [0, 55], sizes = [8, 1], strides = [1, 1]} : vector<8x256xf32> to vector<8x1xf32>
    %c55 = arith.constant 55 : index
    %c0_59 = arith.constant 0 : index
    %391 = vector.load %arg3[%c55, %c0_59] : memref<256x256xf32, #tpu.memory_space<vmem>>, vector<1x256xf32>
    %392 = vector.broadcast %390 : vector<8x1xf32> to vector<8x256xf32>
    %393 = arith.mulf %392, %2 : vector<8x256xf32>
    %394 = vector.broadcast %391 : vector<1x256xf32> to vector<8x256xf32>
    %395 = arith.addf %393, %394 : vector<8x256xf32>
    %396 = arith.maximumf %389, %395 : vector<8x256xf32>
    %397 = vector.extract_strided_slice %3 {offsets = [0, 56], sizes = [8, 1], strides = [1, 1]} : vector<8x256xf32> to vector<8x1xf32>
    %c56 = arith.constant 56 : index
    %c0_60 = arith.constant 0 : index
    %398 = vector.load %arg3[%c56, %c0_60] : memref<256x256xf32, #tpu.memory_space<vmem>>, vector<1x256xf32>
    %399 = vector.broadcast %397 : vector<8x1xf32> to vector<8x256xf32>
    %400 = arith.mulf %399, %2 : vector<8x256xf32>
    %401 = vector.broadcast %398 : vector<1x256xf32> to vector<8x256xf32>
    %402 = arith.addf %400, %401 : vector<8x256xf32>
    %403 = arith.maximumf %396, %402 : vector<8x256xf32>
    %404 = vector.extract_strided_slice %3 {offsets = [0, 57], sizes = [8, 1], strides = [1, 1]} : vector<8x256xf32> to vector<8x1xf32>
    %c57 = arith.constant 57 : index
    %c0_61 = arith.constant 0 : index
    %405 = vector.load %arg3[%c57, %c0_61] : memref<256x256xf32, #tpu.memory_space<vmem>>, vector<1x256xf32>
    %406 = vector.broadcast %404 : vector<8x1xf32> to vector<8x256xf32>
    %407 = arith.mulf %406, %2 : vector<8x256xf32>
    %408 = vector.broadcast %405 : vector<1x256xf32> to vector<8x256xf32>
    %409 = arith.addf %407, %408 : vector<8x256xf32>
    %410 = arith.maximumf %403, %409 : vector<8x256xf32>
    %411 = vector.extract_strided_slice %3 {offsets = [0, 58], sizes = [8, 1], strides = [1, 1]} : vector<8x256xf32> to vector<8x1xf32>
    %c58 = arith.constant 58 : index
    %c0_62 = arith.constant 0 : index
    %412 = vector.load %arg3[%c58, %c0_62] : memref<256x256xf32, #tpu.memory_space<vmem>>, vector<1x256xf32>
    %413 = vector.broadcast %411 : vector<8x1xf32> to vector<8x256xf32>
    %414 = arith.mulf %413, %2 : vector<8x256xf32>
    %415 = vector.broadcast %412 : vector<1x256xf32> to vector<8x256xf32>
    %416 = arith.addf %414, %415 : vector<8x256xf32>
    %417 = arith.maximumf %410, %416 : vector<8x256xf32>
    %418 = vector.extract_strided_slice %3 {offsets = [0, 59], sizes = [8, 1], strides = [1, 1]} : vector<8x256xf32> to vector<8x1xf32>
    %c59 = arith.constant 59 : index
    %c0_63 = arith.constant 0 : index
    %419 = vector.load %arg3[%c59, %c0_63] : memref<256x256xf32, #tpu.memory_space<vmem>>, vector<1x256xf32>
    %420 = vector.broadcast %418 : vector<8x1xf32> to vector<8x256xf32>
    %421 = arith.mulf %420, %2 : vector<8x256xf32>
    %422 = vector.broadcast %419 : vector<1x256xf32> to vector<8x256xf32>
    %423 = arith.addf %421, %422 : vector<8x256xf32>
    %424 = arith.maximumf %417, %423 : vector<8x256xf32>
    %425 = vector.extract_strided_slice %3 {offsets = [0, 60], sizes = [8, 1], strides = [1, 1]} : vector<8x256xf32> to vector<8x1xf32>
    %c60 = arith.constant 60 : index
    %c0_64 = arith.constant 0 : index
    %426 = vector.load %arg3[%c60, %c0_64] : memref<256x256xf32, #tpu.memory_space<vmem>>, vector<1x256xf32>
    %427 = vector.broadcast %425 : vector<8x1xf32> to vector<8x256xf32>
    %428 = arith.mulf %427, %2 : vector<8x256xf32>
    %429 = vector.broadcast %426 : vector<1x256xf32> to vector<8x256xf32>
    %430 = arith.addf %428, %429 : vector<8x256xf32>
    %431 = arith.maximumf %424, %430 : vector<8x256xf32>
    %432 = vector.extract_strided_slice %3 {offsets = [0, 61], sizes = [8, 1], strides = [1, 1]} : vector<8x256xf32> to vector<8x1xf32>
    %c61 = arith.constant 61 : index
    %c0_65 = arith.constant 0 : index
    %433 = vector.load %arg3[%c61, %c0_65] : memref<256x256xf32, #tpu.memory_space<vmem>>, vector<1x256xf32>
    %434 = vector.broadcast %432 : vector<8x1xf32> to vector<8x256xf32>
    %435 = arith.mulf %434, %2 : vector<8x256xf32>
    %436 = vector.broadcast %433 : vector<1x256xf32> to vector<8x256xf32>
    %437 = arith.addf %435, %436 : vector<8x256xf32>
    %438 = arith.maximumf %431, %437 : vector<8x256xf32>
    %439 = vector.extract_strided_slice %3 {offsets = [0, 62], sizes = [8, 1], strides = [1, 1]} : vector<8x256xf32> to vector<8x1xf32>
    %c62 = arith.constant 62 : index
    %c0_66 = arith.constant 0 : index
    %440 = vector.load %arg3[%c62, %c0_66] : memref<256x256xf32, #tpu.memory_space<vmem>>, vector<1x256xf32>
    %441 = vector.broadcast %439 : vector<8x1xf32> to vector<8x256xf32>
    %442 = arith.mulf %441, %2 : vector<8x256xf32>
    %443 = vector.broadcast %440 : vector<1x256xf32> to vector<8x256xf32>
    %444 = arith.addf %442, %443 : vector<8x256xf32>
    %445 = arith.maximumf %438, %444 : vector<8x256xf32>
    %446 = vector.extract_strided_slice %3 {offsets = [0, 63], sizes = [8, 1], strides = [1, 1]} : vector<8x256xf32> to vector<8x1xf32>
    %c63 = arith.constant 63 : index
    %c0_67 = arith.constant 0 : index
    %447 = vector.load %arg3[%c63, %c0_67] : memref<256x256xf32, #tpu.memory_space<vmem>>, vector<1x256xf32>
    %448 = vector.broadcast %446 : vector<8x1xf32> to vector<8x256xf32>
    %449 = arith.mulf %448, %2 : vector<8x256xf32>
    %450 = vector.broadcast %447 : vector<1x256xf32> to vector<8x256xf32>
    %451 = arith.addf %449, %450 : vector<8x256xf32>
    %452 = arith.maximumf %445, %451 : vector<8x256xf32>
    %453 = vector.extract_strided_slice %3 {offsets = [0, 64], sizes = [8, 1], strides = [1, 1]} : vector<8x256xf32> to vector<8x1xf32>
    %c64 = arith.constant 64 : index
    %c0_68 = arith.constant 0 : index
    %454 = vector.load %arg3[%c64, %c0_68] : memref<256x256xf32, #tpu.memory_space<vmem>>, vector<1x256xf32>
    %455 = vector.broadcast %453 : vector<8x1xf32> to vector<8x256xf32>
    %456 = arith.mulf %455, %2 : vector<8x256xf32>
    %457 = vector.broadcast %454 : vector<1x256xf32> to vector<8x256xf32>
    %458 = arith.addf %456, %457 : vector<8x256xf32>
    %459 = arith.maximumf %452, %458 : vector<8x256xf32>
    %460 = vector.extract_strided_slice %3 {offsets = [0, 65], sizes = [8, 1], strides = [1, 1]} : vector<8x256xf32> to vector<8x1xf32>
    %c65 = arith.constant 65 : index
    %c0_69 = arith.constant 0 : index
    %461 = vector.load %arg3[%c65, %c0_69] : memref<256x256xf32, #tpu.memory_space<vmem>>, vector<1x256xf32>
    %462 = vector.broadcast %460 : vector<8x1xf32> to vector<8x256xf32>
    %463 = arith.mulf %462, %2 : vector<8x256xf32>
    %464 = vector.broadcast %461 : vector<1x256xf32> to vector<8x256xf32>
    %465 = arith.addf %463, %464 : vector<8x256xf32>
    %466 = arith.maximumf %459, %465 : vector<8x256xf32>
    %467 = vector.extract_strided_slice %3 {offsets = [0, 66], sizes = [8, 1], strides = [1, 1]} : vector<8x256xf32> to vector<8x1xf32>
    %c66 = arith.constant 66 : index
    %c0_70 = arith.constant 0 : index
    %468 = vector.load %arg3[%c66, %c0_70] : memref<256x256xf32, #tpu.memory_space<vmem>>, vector<1x256xf32>
    %469 = vector.broadcast %467 : vector<8x1xf32> to vector<8x256xf32>
    %470 = arith.mulf %469, %2 : vector<8x256xf32>
    %471 = vector.broadcast %468 : vector<1x256xf32> to vector<8x256xf32>
    %472 = arith.addf %470, %471 : vector<8x256xf32>
    %473 = arith.maximumf %466, %472 : vector<8x256xf32>
    %474 = vector.extract_strided_slice %3 {offsets = [0, 67], sizes = [8, 1], strides = [1, 1]} : vector<8x256xf32> to vector<8x1xf32>
    %c67 = arith.constant 67 : index
    %c0_71 = arith.constant 0 : index
    %475 = vector.load %arg3[%c67, %c0_71] : memref<256x256xf32, #tpu.memory_space<vmem>>, vector<1x256xf32>
    %476 = vector.broadcast %474 : vector<8x1xf32> to vector<8x256xf32>
    %477 = arith.mulf %476, %2 : vector<8x256xf32>
    %478 = vector.broadcast %475 : vector<1x256xf32> to vector<8x256xf32>
    %479 = arith.addf %477, %478 : vector<8x256xf32>
    %480 = arith.maximumf %473, %479 : vector<8x256xf32>
    %481 = vector.extract_strided_slice %3 {offsets = [0, 68], sizes = [8, 1], strides = [1, 1]} : vector<8x256xf32> to vector<8x1xf32>
    %c68 = arith.constant 68 : index
    %c0_72 = arith.constant 0 : index
    %482 = vector.load %arg3[%c68, %c0_72] : memref<256x256xf32, #tpu.memory_space<vmem>>, vector<1x256xf32>
    %483 = vector.broadcast %481 : vector<8x1xf32> to vector<8x256xf32>
    %484 = arith.mulf %483, %2 : vector<8x256xf32>
    %485 = vector.broadcast %482 : vector<1x256xf32> to vector<8x256xf32>
    %486 = arith.addf %484, %485 : vector<8x256xf32>
    %487 = arith.maximumf %480, %486 : vector<8x256xf32>
    %488 = vector.extract_strided_slice %3 {offsets = [0, 69], sizes = [8, 1], strides = [1, 1]} : vector<8x256xf32> to vector<8x1xf32>
    %c69 = arith.constant 69 : index
    %c0_73 = arith.constant 0 : index
    %489 = vector.load %arg3[%c69, %c0_73] : memref<256x256xf32, #tpu.memory_space<vmem>>, vector<1x256xf32>
    %490 = vector.broadcast %488 : vector<8x1xf32> to vector<8x256xf32>
    %491 = arith.mulf %490, %2 : vector<8x256xf32>
    %492 = vector.broadcast %489 : vector<1x256xf32> to vector<8x256xf32>
    %493 = arith.addf %491, %492 : vector<8x256xf32>
    %494 = arith.maximumf %487, %493 : vector<8x256xf32>
    %495 = vector.extract_strided_slice %3 {offsets = [0, 70], sizes = [8, 1], strides = [1, 1]} : vector<8x256xf32> to vector<8x1xf32>
    %c70 = arith.constant 70 : index
    %c0_74 = arith.constant 0 : index
    %496 = vector.load %arg3[%c70, %c0_74] : memref<256x256xf32, #tpu.memory_space<vmem>>, vector<1x256xf32>
    %497 = vector.broadcast %495 : vector<8x1xf32> to vector<8x256xf32>
    %498 = arith.mulf %497, %2 : vector<8x256xf32>
    %499 = vector.broadcast %496 : vector<1x256xf32> to vector<8x256xf32>
    %500 = arith.addf %498, %499 : vector<8x256xf32>
    %501 = arith.maximumf %494, %500 : vector<8x256xf32>
    %502 = vector.extract_strided_slice %3 {offsets = [0, 71], sizes = [8, 1], strides = [1, 1]} : vector<8x256xf32> to vector<8x1xf32>
    %c71 = arith.constant 71 : index
    %c0_75 = arith.constant 0 : index
    %503 = vector.load %arg3[%c71, %c0_75] : memref<256x256xf32, #tpu.memory_space<vmem>>, vector<1x256xf32>
    %504 = vector.broadcast %502 : vector<8x1xf32> to vector<8x256xf32>
    %505 = arith.mulf %504, %2 : vector<8x256xf32>
    %506 = vector.broadcast %503 : vector<1x256xf32> to vector<8x256xf32>
    %507 = arith.addf %505, %506 : vector<8x256xf32>
    %508 = arith.maximumf %501, %507 : vector<8x256xf32>
    %509 = vector.extract_strided_slice %3 {offsets = [0, 72], sizes = [8, 1], strides = [1, 1]} : vector<8x256xf32> to vector<8x1xf32>
    %c72 = arith.constant 72 : index
    %c0_76 = arith.constant 0 : index
    %510 = vector.load %arg3[%c72, %c0_76] : memref<256x256xf32, #tpu.memory_space<vmem>>, vector<1x256xf32>
    %511 = vector.broadcast %509 : vector<8x1xf32> to vector<8x256xf32>
    %512 = arith.mulf %511, %2 : vector<8x256xf32>
    %513 = vector.broadcast %510 : vector<1x256xf32> to vector<8x256xf32>
    %514 = arith.addf %512, %513 : vector<8x256xf32>
    %515 = arith.maximumf %508, %514 : vector<8x256xf32>
    %516 = vector.extract_strided_slice %3 {offsets = [0, 73], sizes = [8, 1], strides = [1, 1]} : vector<8x256xf32> to vector<8x1xf32>
    %c73 = arith.constant 73 : index
    %c0_77 = arith.constant 0 : index
    %517 = vector.load %arg3[%c73, %c0_77] : memref<256x256xf32, #tpu.memory_space<vmem>>, vector<1x256xf32>
    %518 = vector.broadcast %516 : vector<8x1xf32> to vector<8x256xf32>
    %519 = arith.mulf %518, %2 : vector<8x256xf32>
    %520 = vector.broadcast %517 : vector<1x256xf32> to vector<8x256xf32>
    %521 = arith.addf %519, %520 : vector<8x256xf32>
    %522 = arith.maximumf %515, %521 : vector<8x256xf32>
    %523 = vector.extract_strided_slice %3 {offsets = [0, 74], sizes = [8, 1], strides = [1, 1]} : vector<8x256xf32> to vector<8x1xf32>
    %c74 = arith.constant 74 : index
    %c0_78 = arith.constant 0 : index
    %524 = vector.load %arg3[%c74, %c0_78] : memref<256x256xf32, #tpu.memory_space<vmem>>, vector<1x256xf32>
    %525 = vector.broadcast %523 : vector<8x1xf32> to vector<8x256xf32>
    %526 = arith.mulf %525, %2 : vector<8x256xf32>
    %527 = vector.broadcast %524 : vector<1x256xf32> to vector<8x256xf32>
    %528 = arith.addf %526, %527 : vector<8x256xf32>
    %529 = arith.maximumf %522, %528 : vector<8x256xf32>
    %530 = vector.extract_strided_slice %3 {offsets = [0, 75], sizes = [8, 1], strides = [1, 1]} : vector<8x256xf32> to vector<8x1xf32>
    %c75 = arith.constant 75 : index
    %c0_79 = arith.constant 0 : index
    %531 = vector.load %arg3[%c75, %c0_79] : memref<256x256xf32, #tpu.memory_space<vmem>>, vector<1x256xf32>
    %532 = vector.broadcast %530 : vector<8x1xf32> to vector<8x256xf32>
    %533 = arith.mulf %532, %2 : vector<8x256xf32>
    %534 = vector.broadcast %531 : vector<1x256xf32> to vector<8x256xf32>
    %535 = arith.addf %533, %534 : vector<8x256xf32>
    %536 = arith.maximumf %529, %535 : vector<8x256xf32>
    %537 = vector.extract_strided_slice %3 {offsets = [0, 76], sizes = [8, 1], strides = [1, 1]} : vector<8x256xf32> to vector<8x1xf32>
    %c76 = arith.constant 76 : index
    %c0_80 = arith.constant 0 : index
    %538 = vector.load %arg3[%c76, %c0_80] : memref<256x256xf32, #tpu.memory_space<vmem>>, vector<1x256xf32>
    %539 = vector.broadcast %537 : vector<8x1xf32> to vector<8x256xf32>
    %540 = arith.mulf %539, %2 : vector<8x256xf32>
    %541 = vector.broadcast %538 : vector<1x256xf32> to vector<8x256xf32>
    %542 = arith.addf %540, %541 : vector<8x256xf32>
    %543 = arith.maximumf %536, %542 : vector<8x256xf32>
    %544 = vector.extract_strided_slice %3 {offsets = [0, 77], sizes = [8, 1], strides = [1, 1]} : vector<8x256xf32> to vector<8x1xf32>
    %c77 = arith.constant 77 : index
    %c0_81 = arith.constant 0 : index
    %545 = vector.load %arg3[%c77, %c0_81] : memref<256x256xf32, #tpu.memory_space<vmem>>, vector<1x256xf32>
    %546 = vector.broadcast %544 : vector<8x1xf32> to vector<8x256xf32>
    %547 = arith.mulf %546, %2 : vector<8x256xf32>
    %548 = vector.broadcast %545 : vector<1x256xf32> to vector<8x256xf32>
    %549 = arith.addf %547, %548 : vector<8x256xf32>
    %550 = arith.maximumf %543, %549 : vector<8x256xf32>
    %551 = vector.extract_strided_slice %3 {offsets = [0, 78], sizes = [8, 1], strides = [1, 1]} : vector<8x256xf32> to vector<8x1xf32>
    %c78 = arith.constant 78 : index
    %c0_82 = arith.constant 0 : index
    %552 = vector.load %arg3[%c78, %c0_82] : memref<256x256xf32, #tpu.memory_space<vmem>>, vector<1x256xf32>
    %553 = vector.broadcast %551 : vector<8x1xf32> to vector<8x256xf32>
    %554 = arith.mulf %553, %2 : vector<8x256xf32>
    %555 = vector.broadcast %552 : vector<1x256xf32> to vector<8x256xf32>
    %556 = arith.addf %554, %555 : vector<8x256xf32>
    %557 = arith.maximumf %550, %556 : vector<8x256xf32>
    %558 = vector.extract_strided_slice %3 {offsets = [0, 79], sizes = [8, 1], strides = [1, 1]} : vector<8x256xf32> to vector<8x1xf32>
    %c79 = arith.constant 79 : index
    %c0_83 = arith.constant 0 : index
    %559 = vector.load %arg3[%c79, %c0_83] : memref<256x256xf32, #tpu.memory_space<vmem>>, vector<1x256xf32>
    %560 = vector.broadcast %558 : vector<8x1xf32> to vector<8x256xf32>
    %561 = arith.mulf %560, %2 : vector<8x256xf32>
    %562 = vector.broadcast %559 : vector<1x256xf32> to vector<8x256xf32>
    %563 = arith.addf %561, %562 : vector<8x256xf32>
    %564 = arith.maximumf %557, %563 : vector<8x256xf32>
    %565 = vector.extract_strided_slice %3 {offsets = [0, 80], sizes = [8, 1], strides = [1, 1]} : vector<8x256xf32> to vector<8x1xf32>
    %c80 = arith.constant 80 : index
    %c0_84 = arith.constant 0 : index
    %566 = vector.load %arg3[%c80, %c0_84] : memref<256x256xf32, #tpu.memory_space<vmem>>, vector<1x256xf32>
    %567 = vector.broadcast %565 : vector<8x1xf32> to vector<8x256xf32>
    %568 = arith.mulf %567, %2 : vector<8x256xf32>
    %569 = vector.broadcast %566 : vector<1x256xf32> to vector<8x256xf32>
    %570 = arith.addf %568, %569 : vector<8x256xf32>
    %571 = arith.maximumf %564, %570 : vector<8x256xf32>
    %572 = vector.extract_strided_slice %3 {offsets = [0, 81], sizes = [8, 1], strides = [1, 1]} : vector<8x256xf32> to vector<8x1xf32>
    %c81 = arith.constant 81 : index
    %c0_85 = arith.constant 0 : index
    %573 = vector.load %arg3[%c81, %c0_85] : memref<256x256xf32, #tpu.memory_space<vmem>>, vector<1x256xf32>
    %574 = vector.broadcast %572 : vector<8x1xf32> to vector<8x256xf32>
    %575 = arith.mulf %574, %2 : vector<8x256xf32>
    %576 = vector.broadcast %573 : vector<1x256xf32> to vector<8x256xf32>
    %577 = arith.addf %575, %576 : vector<8x256xf32>
    %578 = arith.maximumf %571, %577 : vector<8x256xf32>
    %579 = vector.extract_strided_slice %3 {offsets = [0, 82], sizes = [8, 1], strides = [1, 1]} : vector<8x256xf32> to vector<8x1xf32>
    %c82 = arith.constant 82 : index
    %c0_86 = arith.constant 0 : index
    %580 = vector.load %arg3[%c82, %c0_86] : memref<256x256xf32, #tpu.memory_space<vmem>>, vector<1x256xf32>
    %581 = vector.broadcast %579 : vector<8x1xf32> to vector<8x256xf32>
    %582 = arith.mulf %581, %2 : vector<8x256xf32>
    %583 = vector.broadcast %580 : vector<1x256xf32> to vector<8x256xf32>
    %584 = arith.addf %582, %583 : vector<8x256xf32>
    %585 = arith.maximumf %578, %584 : vector<8x256xf32>
    %586 = vector.extract_strided_slice %3 {offsets = [0, 83], sizes = [8, 1], strides = [1, 1]} : vector<8x256xf32> to vector<8x1xf32>
    %c83 = arith.constant 83 : index
    %c0_87 = arith.constant 0 : index
    %587 = vector.load %arg3[%c83, %c0_87] : memref<256x256xf32, #tpu.memory_space<vmem>>, vector<1x256xf32>
    %588 = vector.broadcast %586 : vector<8x1xf32> to vector<8x256xf32>
    %589 = arith.mulf %588, %2 : vector<8x256xf32>
    %590 = vector.broadcast %587 : vector<1x256xf32> to vector<8x256xf32>
    %591 = arith.addf %589, %590 : vector<8x256xf32>
    %592 = arith.maximumf %585, %591 : vector<8x256xf32>
    %593 = vector.extract_strided_slice %3 {offsets = [0, 84], sizes = [8, 1], strides = [1, 1]} : vector<8x256xf32> to vector<8x1xf32>
    %c84 = arith.constant 84 : index
    %c0_88 = arith.constant 0 : index
    %594 = vector.load %arg3[%c84, %c0_88] : memref<256x256xf32, #tpu.memory_space<vmem>>, vector<1x256xf32>
    %595 = vector.broadcast %593 : vector<8x1xf32> to vector<8x256xf32>
    %596 = arith.mulf %595, %2 : vector<8x256xf32>
    %597 = vector.broadcast %594 : vector<1x256xf32> to vector<8x256xf32>
    %598 = arith.addf %596, %597 : vector<8x256xf32>
    %599 = arith.maximumf %592, %598 : vector<8x256xf32>
    %600 = vector.extract_strided_slice %3 {offsets = [0, 85], sizes = [8, 1], strides = [1, 1]} : vector<8x256xf32> to vector<8x1xf32>
    %c85 = arith.constant 85 : index
    %c0_89 = arith.constant 0 : index
    %601 = vector.load %arg3[%c85, %c0_89] : memref<256x256xf32, #tpu.memory_space<vmem>>, vector<1x256xf32>
    %602 = vector.broadcast %600 : vector<8x1xf32> to vector<8x256xf32>
    %603 = arith.mulf %602, %2 : vector<8x256xf32>
    %604 = vector.broadcast %601 : vector<1x256xf32> to vector<8x256xf32>
    %605 = arith.addf %603, %604 : vector<8x256xf32>
    %606 = arith.maximumf %599, %605 : vector<8x256xf32>
    %607 = vector.extract_strided_slice %3 {offsets = [0, 86], sizes = [8, 1], strides = [1, 1]} : vector<8x256xf32> to vector<8x1xf32>
    %c86 = arith.constant 86 : index
    %c0_90 = arith.constant 0 : index
    %608 = vector.load %arg3[%c86, %c0_90] : memref<256x256xf32, #tpu.memory_space<vmem>>, vector<1x256xf32>
    %609 = vector.broadcast %607 : vector<8x1xf32> to vector<8x256xf32>
    %610 = arith.mulf %609, %2 : vector<8x256xf32>
    %611 = vector.broadcast %608 : vector<1x256xf32> to vector<8x256xf32>
    %612 = arith.addf %610, %611 : vector<8x256xf32>
    %613 = arith.maximumf %606, %612 : vector<8x256xf32>
    %614 = vector.extract_strided_slice %3 {offsets = [0, 87], sizes = [8, 1], strides = [1, 1]} : vector<8x256xf32> to vector<8x1xf32>
    %c87 = arith.constant 87 : index
    %c0_91 = arith.constant 0 : index
    %615 = vector.load %arg3[%c87, %c0_91] : memref<256x256xf32, #tpu.memory_space<vmem>>, vector<1x256xf32>
    %616 = vector.broadcast %614 : vector<8x1xf32> to vector<8x256xf32>
    %617 = arith.mulf %616, %2 : vector<8x256xf32>
    %618 = vector.broadcast %615 : vector<1x256xf32> to vector<8x256xf32>
    %619 = arith.addf %617, %618 : vector<8x256xf32>
    %620 = arith.maximumf %613, %619 : vector<8x256xf32>
    %621 = vector.extract_strided_slice %3 {offsets = [0, 88], sizes = [8, 1], strides = [1, 1]} : vector<8x256xf32> to vector<8x1xf32>
    %c88 = arith.constant 88 : index
    %c0_92 = arith.constant 0 : index
    %622 = vector.load %arg3[%c88, %c0_92] : memref<256x256xf32, #tpu.memory_space<vmem>>, vector<1x256xf32>
    %623 = vector.broadcast %621 : vector<8x1xf32> to vector<8x256xf32>
    %624 = arith.mulf %623, %2 : vector<8x256xf32>
    %625 = vector.broadcast %622 : vector<1x256xf32> to vector<8x256xf32>
    %626 = arith.addf %624, %625 : vector<8x256xf32>
    %627 = arith.maximumf %620, %626 : vector<8x256xf32>
    %628 = vector.extract_strided_slice %3 {offsets = [0, 89], sizes = [8, 1], strides = [1, 1]} : vector<8x256xf32> to vector<8x1xf32>
    %c89 = arith.constant 89 : index
    %c0_93 = arith.constant 0 : index
    %629 = vector.load %arg3[%c89, %c0_93] : memref<256x256xf32, #tpu.memory_space<vmem>>, vector<1x256xf32>
    %630 = vector.broadcast %628 : vector<8x1xf32> to vector<8x256xf32>
    %631 = arith.mulf %630, %2 : vector<8x256xf32>
    %632 = vector.broadcast %629 : vector<1x256xf32> to vector<8x256xf32>
    %633 = arith.addf %631, %632 : vector<8x256xf32>
    %634 = arith.maximumf %627, %633 : vector<8x256xf32>
    %635 = vector.extract_strided_slice %3 {offsets = [0, 90], sizes = [8, 1], strides = [1, 1]} : vector<8x256xf32> to vector<8x1xf32>
    %c90 = arith.constant 90 : index
    %c0_94 = arith.constant 0 : index
    %636 = vector.load %arg3[%c90, %c0_94] : memref<256x256xf32, #tpu.memory_space<vmem>>, vector<1x256xf32>
    %637 = vector.broadcast %635 : vector<8x1xf32> to vector<8x256xf32>
    %638 = arith.mulf %637, %2 : vector<8x256xf32>
    %639 = vector.broadcast %636 : vector<1x256xf32> to vector<8x256xf32>
    %640 = arith.addf %638, %639 : vector<8x256xf32>
    %641 = arith.maximumf %634, %640 : vector<8x256xf32>
    %642 = vector.extract_strided_slice %3 {offsets = [0, 91], sizes = [8, 1], strides = [1, 1]} : vector<8x256xf32> to vector<8x1xf32>
    %c91 = arith.constant 91 : index
    %c0_95 = arith.constant 0 : index
    %643 = vector.load %arg3[%c91, %c0_95] : memref<256x256xf32, #tpu.memory_space<vmem>>, vector<1x256xf32>
    %644 = vector.broadcast %642 : vector<8x1xf32> to vector<8x256xf32>
    %645 = arith.mulf %644, %2 : vector<8x256xf32>
    %646 = vector.broadcast %643 : vector<1x256xf32> to vector<8x256xf32>
    %647 = arith.addf %645, %646 : vector<8x256xf32>
    %648 = arith.maximumf %641, %647 : vector<8x256xf32>
    %649 = vector.extract_strided_slice %3 {offsets = [0, 92], sizes = [8, 1], strides = [1, 1]} : vector<8x256xf32> to vector<8x1xf32>
    %c92 = arith.constant 92 : index
    %c0_96 = arith.constant 0 : index
    %650 = vector.load %arg3[%c92, %c0_96] : memref<256x256xf32, #tpu.memory_space<vmem>>, vector<1x256xf32>
    %651 = vector.broadcast %649 : vector<8x1xf32> to vector<8x256xf32>
    %652 = arith.mulf %651, %2 : vector<8x256xf32>
    %653 = vector.broadcast %650 : vector<1x256xf32> to vector<8x256xf32>
    %654 = arith.addf %652, %653 : vector<8x256xf32>
    %655 = arith.maximumf %648, %654 : vector<8x256xf32>
    %656 = vector.extract_strided_slice %3 {offsets = [0, 93], sizes = [8, 1], strides = [1, 1]} : vector<8x256xf32> to vector<8x1xf32>
    %c93 = arith.constant 93 : index
    %c0_97 = arith.constant 0 : index
    %657 = vector.load %arg3[%c93, %c0_97] : memref<256x256xf32, #tpu.memory_space<vmem>>, vector<1x256xf32>
    %658 = vector.broadcast %656 : vector<8x1xf32> to vector<8x256xf32>
    %659 = arith.mulf %658, %2 : vector<8x256xf32>
    %660 = vector.broadcast %657 : vector<1x256xf32> to vector<8x256xf32>
    %661 = arith.addf %659, %660 : vector<8x256xf32>
    %662 = arith.maximumf %655, %661 : vector<8x256xf32>
    %663 = vector.extract_strided_slice %3 {offsets = [0, 94], sizes = [8, 1], strides = [1, 1]} : vector<8x256xf32> to vector<8x1xf32>
    %c94 = arith.constant 94 : index
    %c0_98 = arith.constant 0 : index
    %664 = vector.load %arg3[%c94, %c0_98] : memref<256x256xf32, #tpu.memory_space<vmem>>, vector<1x256xf32>
    %665 = vector.broadcast %663 : vector<8x1xf32> to vector<8x256xf32>
    %666 = arith.mulf %665, %2 : vector<8x256xf32>
    %667 = vector.broadcast %664 : vector<1x256xf32> to vector<8x256xf32>
    %668 = arith.addf %666, %667 : vector<8x256xf32>
    %669 = arith.maximumf %662, %668 : vector<8x256xf32>
    %670 = vector.extract_strided_slice %3 {offsets = [0, 95], sizes = [8, 1], strides = [1, 1]} : vector<8x256xf32> to vector<8x1xf32>
    %c95 = arith.constant 95 : index
    %c0_99 = arith.constant 0 : index
    %671 = vector.load %arg3[%c95, %c0_99] : memref<256x256xf32, #tpu.memory_space<vmem>>, vector<1x256xf32>
    %672 = vector.broadcast %670 : vector<8x1xf32> to vector<8x256xf32>
    %673 = arith.mulf %672, %2 : vector<8x256xf32>
    %674 = vector.broadcast %671 : vector<1x256xf32> to vector<8x256xf32>
    %675 = arith.addf %673, %674 : vector<8x256xf32>
    %676 = arith.maximumf %669, %675 : vector<8x256xf32>
    %677 = vector.extract_strided_slice %3 {offsets = [0, 96], sizes = [8, 1], strides = [1, 1]} : vector<8x256xf32> to vector<8x1xf32>
    %c96 = arith.constant 96 : index
    %c0_100 = arith.constant 0 : index
    %678 = vector.load %arg3[%c96, %c0_100] : memref<256x256xf32, #tpu.memory_space<vmem>>, vector<1x256xf32>
    %679 = vector.broadcast %677 : vector<8x1xf32> to vector<8x256xf32>
    %680 = arith.mulf %679, %2 : vector<8x256xf32>
    %681 = vector.broadcast %678 : vector<1x256xf32> to vector<8x256xf32>
    %682 = arith.addf %680, %681 : vector<8x256xf32>
    %683 = arith.maximumf %676, %682 : vector<8x256xf32>
    %684 = vector.extract_strided_slice %3 {offsets = [0, 97], sizes = [8, 1], strides = [1, 1]} : vector<8x256xf32> to vector<8x1xf32>
    %c97 = arith.constant 97 : index
    %c0_101 = arith.constant 0 : index
    %685 = vector.load %arg3[%c97, %c0_101] : memref<256x256xf32, #tpu.memory_space<vmem>>, vector<1x256xf32>
    %686 = vector.broadcast %684 : vector<8x1xf32> to vector<8x256xf32>
    %687 = arith.mulf %686, %2 : vector<8x256xf32>
    %688 = vector.broadcast %685 : vector<1x256xf32> to vector<8x256xf32>
    %689 = arith.addf %687, %688 : vector<8x256xf32>
    %690 = arith.maximumf %683, %689 : vector<8x256xf32>
    %691 = vector.extract_strided_slice %3 {offsets = [0, 98], sizes = [8, 1], strides = [1, 1]} : vector<8x256xf32> to vector<8x1xf32>
    %c98 = arith.constant 98 : index
    %c0_102 = arith.constant 0 : index
    %692 = vector.load %arg3[%c98, %c0_102] : memref<256x256xf32, #tpu.memory_space<vmem>>, vector<1x256xf32>
    %693 = vector.broadcast %691 : vector<8x1xf32> to vector<8x256xf32>
    %694 = arith.mulf %693, %2 : vector<8x256xf32>
    %695 = vector.broadcast %692 : vector<1x256xf32> to vector<8x256xf32>
    %696 = arith.addf %694, %695 : vector<8x256xf32>
    %697 = arith.maximumf %690, %696 : vector<8x256xf32>
    %698 = vector.extract_strided_slice %3 {offsets = [0, 99], sizes = [8, 1], strides = [1, 1]} : vector<8x256xf32> to vector<8x1xf32>
    %c99 = arith.constant 99 : index
    %c0_103 = arith.constant 0 : index
    %699 = vector.load %arg3[%c99, %c0_103] : memref<256x256xf32, #tpu.memory_space<vmem>>, vector<1x256xf32>
    %700 = vector.broadcast %698 : vector<8x1xf32> to vector<8x256xf32>
    %701 = arith.mulf %700, %2 : vector<8x256xf32>
    %702 = vector.broadcast %699 : vector<1x256xf32> to vector<8x256xf32>
    %703 = arith.addf %701, %702 : vector<8x256xf32>
    %704 = arith.maximumf %697, %703 : vector<8x256xf32>
    %705 = vector.extract_strided_slice %3 {offsets = [0, 100], sizes = [8, 1], strides = [1, 1]} : vector<8x256xf32> to vector<8x1xf32>
    %c100 = arith.constant 100 : index
    %c0_104 = arith.constant 0 : index
    %706 = vector.load %arg3[%c100, %c0_104] : memref<256x256xf32, #tpu.memory_space<vmem>>, vector<1x256xf32>
    %707 = vector.broadcast %705 : vector<8x1xf32> to vector<8x256xf32>
    %708 = arith.mulf %707, %2 : vector<8x256xf32>
    %709 = vector.broadcast %706 : vector<1x256xf32> to vector<8x256xf32>
    %710 = arith.addf %708, %709 : vector<8x256xf32>
    %711 = arith.maximumf %704, %710 : vector<8x256xf32>
    %712 = vector.extract_strided_slice %3 {offsets = [0, 101], sizes = [8, 1], strides = [1, 1]} : vector<8x256xf32> to vector<8x1xf32>
    %c101 = arith.constant 101 : index
    %c0_105 = arith.constant 0 : index
    %713 = vector.load %arg3[%c101, %c0_105] : memref<256x256xf32, #tpu.memory_space<vmem>>, vector<1x256xf32>
    %714 = vector.broadcast %712 : vector<8x1xf32> to vector<8x256xf32>
    %715 = arith.mulf %714, %2 : vector<8x256xf32>
    %716 = vector.broadcast %713 : vector<1x256xf32> to vector<8x256xf32>
    %717 = arith.addf %715, %716 : vector<8x256xf32>
    %718 = arith.maximumf %711, %717 : vector<8x256xf32>
    %719 = vector.extract_strided_slice %3 {offsets = [0, 102], sizes = [8, 1], strides = [1, 1]} : vector<8x256xf32> to vector<8x1xf32>
    %c102 = arith.constant 102 : index
    %c0_106 = arith.constant 0 : index
    %720 = vector.load %arg3[%c102, %c0_106] : memref<256x256xf32, #tpu.memory_space<vmem>>, vector<1x256xf32>
    %721 = vector.broadcast %719 : vector<8x1xf32> to vector<8x256xf32>
    %722 = arith.mulf %721, %2 : vector<8x256xf32>
    %723 = vector.broadcast %720 : vector<1x256xf32> to vector<8x256xf32>
    %724 = arith.addf %722, %723 : vector<8x256xf32>
    %725 = arith.maximumf %718, %724 : vector<8x256xf32>
    %726 = vector.extract_strided_slice %3 {offsets = [0, 103], sizes = [8, 1], strides = [1, 1]} : vector<8x256xf32> to vector<8x1xf32>
    %c103 = arith.constant 103 : index
    %c0_107 = arith.constant 0 : index
    %727 = vector.load %arg3[%c103, %c0_107] : memref<256x256xf32, #tpu.memory_space<vmem>>, vector<1x256xf32>
    %728 = vector.broadcast %726 : vector<8x1xf32> to vector<8x256xf32>
    %729 = arith.mulf %728, %2 : vector<8x256xf32>
    %730 = vector.broadcast %727 : vector<1x256xf32> to vector<8x256xf32>
    %731 = arith.addf %729, %730 : vector<8x256xf32>
    %732 = arith.maximumf %725, %731 : vector<8x256xf32>
    %733 = vector.extract_strided_slice %3 {offsets = [0, 104], sizes = [8, 1], strides = [1, 1]} : vector<8x256xf32> to vector<8x1xf32>
    %c104 = arith.constant 104 : index
    %c0_108 = arith.constant 0 : index
    %734 = vector.load %arg3[%c104, %c0_108] : memref<256x256xf32, #tpu.memory_space<vmem>>, vector<1x256xf32>
    %735 = vector.broadcast %733 : vector<8x1xf32> to vector<8x256xf32>
    %736 = arith.mulf %735, %2 : vector<8x256xf32>
    %737 = vector.broadcast %734 : vector<1x256xf32> to vector<8x256xf32>
    %738 = arith.addf %736, %737 : vector<8x256xf32>
    %739 = arith.maximumf %732, %738 : vector<8x256xf32>
    %740 = vector.extract_strided_slice %3 {offsets = [0, 105], sizes = [8, 1], strides = [1, 1]} : vector<8x256xf32> to vector<8x1xf32>
    %c105 = arith.constant 105 : index
    %c0_109 = arith.constant 0 : index
    %741 = vector.load %arg3[%c105, %c0_109] : memref<256x256xf32, #tpu.memory_space<vmem>>, vector<1x256xf32>
    %742 = vector.broadcast %740 : vector<8x1xf32> to vector<8x256xf32>
    %743 = arith.mulf %742, %2 : vector<8x256xf32>
    %744 = vector.broadcast %741 : vector<1x256xf32> to vector<8x256xf32>
    %745 = arith.addf %743, %744 : vector<8x256xf32>
    %746 = arith.maximumf %739, %745 : vector<8x256xf32>
    %747 = vector.extract_strided_slice %3 {offsets = [0, 106], sizes = [8, 1], strides = [1, 1]} : vector<8x256xf32> to vector<8x1xf32>
    %c106 = arith.constant 106 : index
    %c0_110 = arith.constant 0 : index
    %748 = vector.load %arg3[%c106, %c0_110] : memref<256x256xf32, #tpu.memory_space<vmem>>, vector<1x256xf32>
    %749 = vector.broadcast %747 : vector<8x1xf32> to vector<8x256xf32>
    %750 = arith.mulf %749, %2 : vector<8x256xf32>
    %751 = vector.broadcast %748 : vector<1x256xf32> to vector<8x256xf32>
    %752 = arith.addf %750, %751 : vector<8x256xf32>
    %753 = arith.maximumf %746, %752 : vector<8x256xf32>
    %754 = vector.extract_strided_slice %3 {offsets = [0, 107], sizes = [8, 1], strides = [1, 1]} : vector<8x256xf32> to vector<8x1xf32>
    %c107 = arith.constant 107 : index
    %c0_111 = arith.constant 0 : index
    %755 = vector.load %arg3[%c107, %c0_111] : memref<256x256xf32, #tpu.memory_space<vmem>>, vector<1x256xf32>
    %756 = vector.broadcast %754 : vector<8x1xf32> to vector<8x256xf32>
    %757 = arith.mulf %756, %2 : vector<8x256xf32>
    %758 = vector.broadcast %755 : vector<1x256xf32> to vector<8x256xf32>
    %759 = arith.addf %757, %758 : vector<8x256xf32>
    %760 = arith.maximumf %753, %759 : vector<8x256xf32>
    %761 = vector.extract_strided_slice %3 {offsets = [0, 108], sizes = [8, 1], strides = [1, 1]} : vector<8x256xf32> to vector<8x1xf32>
    %c108 = arith.constant 108 : index
    %c0_112 = arith.constant 0 : index
    %762 = vector.load %arg3[%c108, %c0_112] : memref<256x256xf32, #tpu.memory_space<vmem>>, vector<1x256xf32>
    %763 = vector.broadcast %761 : vector<8x1xf32> to vector<8x256xf32>
    %764 = arith.mulf %763, %2 : vector<8x256xf32>
    %765 = vector.broadcast %762 : vector<1x256xf32> to vector<8x256xf32>
    %766 = arith.addf %764, %765 : vector<8x256xf32>
    %767 = arith.maximumf %760, %766 : vector<8x256xf32>
    %768 = vector.extract_strided_slice %3 {offsets = [0, 109], sizes = [8, 1], strides = [1, 1]} : vector<8x256xf32> to vector<8x1xf32>
    %c109 = arith.constant 109 : index
    %c0_113 = arith.constant 0 : index
    %769 = vector.load %arg3[%c109, %c0_113] : memref<256x256xf32, #tpu.memory_space<vmem>>, vector<1x256xf32>
    %770 = vector.broadcast %768 : vector<8x1xf32> to vector<8x256xf32>
    %771 = arith.mulf %770, %2 : vector<8x256xf32>
    %772 = vector.broadcast %769 : vector<1x256xf32> to vector<8x256xf32>
    %773 = arith.addf %771, %772 : vector<8x256xf32>
    %774 = arith.maximumf %767, %773 : vector<8x256xf32>
    %775 = vector.extract_strided_slice %3 {offsets = [0, 110], sizes = [8, 1], strides = [1, 1]} : vector<8x256xf32> to vector<8x1xf32>
    %c110 = arith.constant 110 : index
    %c0_114 = arith.constant 0 : index
    %776 = vector.load %arg3[%c110, %c0_114] : memref<256x256xf32, #tpu.memory_space<vmem>>, vector<1x256xf32>
    %777 = vector.broadcast %775 : vector<8x1xf32> to vector<8x256xf32>
    %778 = arith.mulf %777, %2 : vector<8x256xf32>
    %779 = vector.broadcast %776 : vector<1x256xf32> to vector<8x256xf32>
    %780 = arith.addf %778, %779 : vector<8x256xf32>
    %781 = arith.maximumf %774, %780 : vector<8x256xf32>
    %782 = vector.extract_strided_slice %3 {offsets = [0, 111], sizes = [8, 1], strides = [1, 1]} : vector<8x256xf32> to vector<8x1xf32>
    %c111 = arith.constant 111 : index
    %c0_115 = arith.constant 0 : index
    %783 = vector.load %arg3[%c111, %c0_115] : memref<256x256xf32, #tpu.memory_space<vmem>>, vector<1x256xf32>
    %784 = vector.broadcast %782 : vector<8x1xf32> to vector<8x256xf32>
    %785 = arith.mulf %784, %2 : vector<8x256xf32>
    %786 = vector.broadcast %783 : vector<1x256xf32> to vector<8x256xf32>
    %787 = arith.addf %785, %786 : vector<8x256xf32>
    %788 = arith.maximumf %781, %787 : vector<8x256xf32>
    %789 = vector.extract_strided_slice %3 {offsets = [0, 112], sizes = [8, 1], strides = [1, 1]} : vector<8x256xf32> to vector<8x1xf32>
    %c112 = arith.constant 112 : index
    %c0_116 = arith.constant 0 : index
    %790 = vector.load %arg3[%c112, %c0_116] : memref<256x256xf32, #tpu.memory_space<vmem>>, vector<1x256xf32>
    %791 = vector.broadcast %789 : vector<8x1xf32> to vector<8x256xf32>
    %792 = arith.mulf %791, %2 : vector<8x256xf32>
    %793 = vector.broadcast %790 : vector<1x256xf32> to vector<8x256xf32>
    %794 = arith.addf %792, %793 : vector<8x256xf32>
    %795 = arith.maximumf %788, %794 : vector<8x256xf32>
    %796 = vector.extract_strided_slice %3 {offsets = [0, 113], sizes = [8, 1], strides = [1, 1]} : vector<8x256xf32> to vector<8x1xf32>
    %c113 = arith.constant 113 : index
    %c0_117 = arith.constant 0 : index
    %797 = vector.load %arg3[%c113, %c0_117] : memref<256x256xf32, #tpu.memory_space<vmem>>, vector<1x256xf32>
    %798 = vector.broadcast %796 : vector<8x1xf32> to vector<8x256xf32>
    %799 = arith.mulf %798, %2 : vector<8x256xf32>
    %800 = vector.broadcast %797 : vector<1x256xf32> to vector<8x256xf32>
    %801 = arith.addf %799, %800 : vector<8x256xf32>
    %802 = arith.maximumf %795, %801 : vector<8x256xf32>
    %803 = vector.extract_strided_slice %3 {offsets = [0, 114], sizes = [8, 1], strides = [1, 1]} : vector<8x256xf32> to vector<8x1xf32>
    %c114 = arith.constant 114 : index
    %c0_118 = arith.constant 0 : index
    %804 = vector.load %arg3[%c114, %c0_118] : memref<256x256xf32, #tpu.memory_space<vmem>>, vector<1x256xf32>
    %805 = vector.broadcast %803 : vector<8x1xf32> to vector<8x256xf32>
    %806 = arith.mulf %805, %2 : vector<8x256xf32>
    %807 = vector.broadcast %804 : vector<1x256xf32> to vector<8x256xf32>
    %808 = arith.addf %806, %807 : vector<8x256xf32>
    %809 = arith.maximumf %802, %808 : vector<8x256xf32>
    %810 = vector.extract_strided_slice %3 {offsets = [0, 115], sizes = [8, 1], strides = [1, 1]} : vector<8x256xf32> to vector<8x1xf32>
    %c115 = arith.constant 115 : index
    %c0_119 = arith.constant 0 : index
    %811 = vector.load %arg3[%c115, %c0_119] : memref<256x256xf32, #tpu.memory_space<vmem>>, vector<1x256xf32>
    %812 = vector.broadcast %810 : vector<8x1xf32> to vector<8x256xf32>
    %813 = arith.mulf %812, %2 : vector<8x256xf32>
    %814 = vector.broadcast %811 : vector<1x256xf32> to vector<8x256xf32>
    %815 = arith.addf %813, %814 : vector<8x256xf32>
    %816 = arith.maximumf %809, %815 : vector<8x256xf32>
    %817 = vector.extract_strided_slice %3 {offsets = [0, 116], sizes = [8, 1], strides = [1, 1]} : vector<8x256xf32> to vector<8x1xf32>
    %c116 = arith.constant 116 : index
    %c0_120 = arith.constant 0 : index
    %818 = vector.load %arg3[%c116, %c0_120] : memref<256x256xf32, #tpu.memory_space<vmem>>, vector<1x256xf32>
    %819 = vector.broadcast %817 : vector<8x1xf32> to vector<8x256xf32>
    %820 = arith.mulf %819, %2 : vector<8x256xf32>
    %821 = vector.broadcast %818 : vector<1x256xf32> to vector<8x256xf32>
    %822 = arith.addf %820, %821 : vector<8x256xf32>
    %823 = arith.maximumf %816, %822 : vector<8x256xf32>
    %824 = vector.extract_strided_slice %3 {offsets = [0, 117], sizes = [8, 1], strides = [1, 1]} : vector<8x256xf32> to vector<8x1xf32>
    %c117 = arith.constant 117 : index
    %c0_121 = arith.constant 0 : index
    %825 = vector.load %arg3[%c117, %c0_121] : memref<256x256xf32, #tpu.memory_space<vmem>>, vector<1x256xf32>
    %826 = vector.broadcast %824 : vector<8x1xf32> to vector<8x256xf32>
    %827 = arith.mulf %826, %2 : vector<8x256xf32>
    %828 = vector.broadcast %825 : vector<1x256xf32> to vector<8x256xf32>
    %829 = arith.addf %827, %828 : vector<8x256xf32>
    %830 = arith.maximumf %823, %829 : vector<8x256xf32>
    %831 = vector.extract_strided_slice %3 {offsets = [0, 118], sizes = [8, 1], strides = [1, 1]} : vector<8x256xf32> to vector<8x1xf32>
    %c118 = arith.constant 118 : index
    %c0_122 = arith.constant 0 : index
    %832 = vector.load %arg3[%c118, %c0_122] : memref<256x256xf32, #tpu.memory_space<vmem>>, vector<1x256xf32>
    %833 = vector.broadcast %831 : vector<8x1xf32> to vector<8x256xf32>
    %834 = arith.mulf %833, %2 : vector<8x256xf32>
    %835 = vector.broadcast %832 : vector<1x256xf32> to vector<8x256xf32>
    %836 = arith.addf %834, %835 : vector<8x256xf32>
    %837 = arith.maximumf %830, %836 : vector<8x256xf32>
    %838 = vector.extract_strided_slice %3 {offsets = [0, 119], sizes = [8, 1], strides = [1, 1]} : vector<8x256xf32> to vector<8x1xf32>
    %c119 = arith.constant 119 : index
    %c0_123 = arith.constant 0 : index
    %839 = vector.load %arg3[%c119, %c0_123] : memref<256x256xf32, #tpu.memory_space<vmem>>, vector<1x256xf32>
    %840 = vector.broadcast %838 : vector<8x1xf32> to vector<8x256xf32>
    %841 = arith.mulf %840, %2 : vector<8x256xf32>
    %842 = vector.broadcast %839 : vector<1x256xf32> to vector<8x256xf32>
    %843 = arith.addf %841, %842 : vector<8x256xf32>
    %844 = arith.maximumf %837, %843 : vector<8x256xf32>
    %845 = vector.extract_strided_slice %3 {offsets = [0, 120], sizes = [8, 1], strides = [1, 1]} : vector<8x256xf32> to vector<8x1xf32>
    %c120 = arith.constant 120 : index
    %c0_124 = arith.constant 0 : index
    %846 = vector.load %arg3[%c120, %c0_124] : memref<256x256xf32, #tpu.memory_space<vmem>>, vector<1x256xf32>
    %847 = vector.broadcast %845 : vector<8x1xf32> to vector<8x256xf32>
    %848 = arith.mulf %847, %2 : vector<8x256xf32>
    %849 = vector.broadcast %846 : vector<1x256xf32> to vector<8x256xf32>
    %850 = arith.addf %848, %849 : vector<8x256xf32>
    %851 = arith.maximumf %844, %850 : vector<8x256xf32>
    %852 = vector.extract_strided_slice %3 {offsets = [0, 121], sizes = [8, 1], strides = [1, 1]} : vector<8x256xf32> to vector<8x1xf32>
    %c121 = arith.constant 121 : index
    %c0_125 = arith.constant 0 : index
    %853 = vector.load %arg3[%c121, %c0_125] : memref<256x256xf32, #tpu.memory_space<vmem>>, vector<1x256xf32>
    %854 = vector.broadcast %852 : vector<8x1xf32> to vector<8x256xf32>
    %855 = arith.mulf %854, %2 : vector<8x256xf32>
    %856 = vector.broadcast %853 : vector<1x256xf32> to vector<8x256xf32>
    %857 = arith.addf %855, %856 : vector<8x256xf32>
    %858 = arith.maximumf %851, %857 : vector<8x256xf32>
    %859 = vector.extract_strided_slice %3 {offsets = [0, 122], sizes = [8, 1], strides = [1, 1]} : vector<8x256xf32> to vector<8x1xf32>
    %c122 = arith.constant 122 : index
    %c0_126 = arith.constant 0 : index
    %860 = vector.load %arg3[%c122, %c0_126] : memref<256x256xf32, #tpu.memory_space<vmem>>, vector<1x256xf32>
    %861 = vector.broadcast %859 : vector<8x1xf32> to vector<8x256xf32>
    %862 = arith.mulf %861, %2 : vector<8x256xf32>
    %863 = vector.broadcast %860 : vector<1x256xf32> to vector<8x256xf32>
    %864 = arith.addf %862, %863 : vector<8x256xf32>
    %865 = arith.maximumf %858, %864 : vector<8x256xf32>
    %866 = vector.extract_strided_slice %3 {offsets = [0, 123], sizes = [8, 1], strides = [1, 1]} : vector<8x256xf32> to vector<8x1xf32>
    %c123 = arith.constant 123 : index
    %c0_127 = arith.constant 0 : index
    %867 = vector.load %arg3[%c123, %c0_127] : memref<256x256xf32, #tpu.memory_space<vmem>>, vector<1x256xf32>
    %868 = vector.broadcast %866 : vector<8x1xf32> to vector<8x256xf32>
    %869 = arith.mulf %868, %2 : vector<8x256xf32>
    %870 = vector.broadcast %867 : vector<1x256xf32> to vector<8x256xf32>
    %871 = arith.addf %869, %870 : vector<8x256xf32>
    %872 = arith.maximumf %865, %871 : vector<8x256xf32>
    %873 = vector.extract_strided_slice %3 {offsets = [0, 124], sizes = [8, 1], strides = [1, 1]} : vector<8x256xf32> to vector<8x1xf32>
    %c124 = arith.constant 124 : index
    %c0_128 = arith.constant 0 : index
    %874 = vector.load %arg3[%c124, %c0_128] : memref<256x256xf32, #tpu.memory_space<vmem>>, vector<1x256xf32>
    %875 = vector.broadcast %873 : vector<8x1xf32> to vector<8x256xf32>
    %876 = arith.mulf %875, %2 : vector<8x256xf32>
    %877 = vector.broadcast %874 : vector<1x256xf32> to vector<8x256xf32>
    %878 = arith.addf %876, %877 : vector<8x256xf32>
    %879 = arith.maximumf %872, %878 : vector<8x256xf32>
    %880 = vector.extract_strided_slice %3 {offsets = [0, 125], sizes = [8, 1], strides = [1, 1]} : vector<8x256xf32> to vector<8x1xf32>
    %c125 = arith.constant 125 : index
    %c0_129 = arith.constant 0 : index
    %881 = vector.load %arg3[%c125, %c0_129] : memref<256x256xf32, #tpu.memory_space<vmem>>, vector<1x256xf32>
    %882 = vector.broadcast %880 : vector<8x1xf32> to vector<8x256xf32>
    %883 = arith.mulf %882, %2 : vector<8x256xf32>
    %884 = vector.broadcast %881 : vector<1x256xf32> to vector<8x256xf32>
    %885 = arith.addf %883, %884 : vector<8x256xf32>
    %886 = arith.maximumf %879, %885 : vector<8x256xf32>
    %887 = vector.extract_strided_slice %3 {offsets = [0, 126], sizes = [8, 1], strides = [1, 1]} : vector<8x256xf32> to vector<8x1xf32>
    %c126 = arith.constant 126 : index
    %c0_130 = arith.constant 0 : index
    %888 = vector.load %arg3[%c126, %c0_130] : memref<256x256xf32, #tpu.memory_space<vmem>>, vector<1x256xf32>
    %889 = vector.broadcast %887 : vector<8x1xf32> to vector<8x256xf32>
    %890 = arith.mulf %889, %2 : vector<8x256xf32>
    %891 = vector.broadcast %888 : vector<1x256xf32> to vector<8x256xf32>
    %892 = arith.addf %890, %891 : vector<8x256xf32>
    %893 = arith.maximumf %886, %892 : vector<8x256xf32>
    %894 = vector.extract_strided_slice %3 {offsets = [0, 127], sizes = [8, 1], strides = [1, 1]} : vector<8x256xf32> to vector<8x1xf32>
    %c127 = arith.constant 127 : index
    %c0_131 = arith.constant 0 : index
    %895 = vector.load %arg3[%c127, %c0_131] : memref<256x256xf32, #tpu.memory_space<vmem>>, vector<1x256xf32>
    %896 = vector.broadcast %894 : vector<8x1xf32> to vector<8x256xf32>
    %897 = arith.mulf %896, %2 : vector<8x256xf32>
    %898 = vector.broadcast %895 : vector<1x256xf32> to vector<8x256xf32>
    %899 = arith.addf %897, %898 : vector<8x256xf32>
    %900 = arith.maximumf %893, %899 : vector<8x256xf32>
    %901 = vector.extract_strided_slice %3 {offsets = [0, 128], sizes = [8, 1], strides = [1, 1]} : vector<8x256xf32> to vector<8x1xf32>
    %c128 = arith.constant 128 : index
    %c0_132 = arith.constant 0 : index
    %902 = vector.load %arg3[%c128, %c0_132] : memref<256x256xf32, #tpu.memory_space<vmem>>, vector<1x256xf32>
    %903 = vector.broadcast %901 : vector<8x1xf32> to vector<8x256xf32>
    %904 = arith.mulf %903, %2 : vector<8x256xf32>
    %905 = vector.broadcast %902 : vector<1x256xf32> to vector<8x256xf32>
    %906 = arith.addf %904, %905 : vector<8x256xf32>
    %907 = arith.maximumf %900, %906 : vector<8x256xf32>
    %908 = vector.extract_strided_slice %3 {offsets = [0, 129], sizes = [8, 1], strides = [1, 1]} : vector<8x256xf32> to vector<8x1xf32>
    %c129 = arith.constant 129 : index
    %c0_133 = arith.constant 0 : index
    %909 = vector.load %arg3[%c129, %c0_133] : memref<256x256xf32, #tpu.memory_space<vmem>>, vector<1x256xf32>
    %910 = vector.broadcast %908 : vector<8x1xf32> to vector<8x256xf32>
    %911 = arith.mulf %910, %2 : vector<8x256xf32>
    %912 = vector.broadcast %909 : vector<1x256xf32> to vector<8x256xf32>
    %913 = arith.addf %911, %912 : vector<8x256xf32>
    %914 = arith.maximumf %907, %913 : vector<8x256xf32>
    %915 = vector.extract_strided_slice %3 {offsets = [0, 130], sizes = [8, 1], strides = [1, 1]} : vector<8x256xf32> to vector<8x1xf32>
    %c130 = arith.constant 130 : index
    %c0_134 = arith.constant 0 : index
    %916 = vector.load %arg3[%c130, %c0_134] : memref<256x256xf32, #tpu.memory_space<vmem>>, vector<1x256xf32>
    %917 = vector.broadcast %915 : vector<8x1xf32> to vector<8x256xf32>
    %918 = arith.mulf %917, %2 : vector<8x256xf32>
    %919 = vector.broadcast %916 : vector<1x256xf32> to vector<8x256xf32>
    %920 = arith.addf %918, %919 : vector<8x256xf32>
    %921 = arith.maximumf %914, %920 : vector<8x256xf32>
    %922 = vector.extract_strided_slice %3 {offsets = [0, 131], sizes = [8, 1], strides = [1, 1]} : vector<8x256xf32> to vector<8x1xf32>
    %c131 = arith.constant 131 : index
    %c0_135 = arith.constant 0 : index
    %923 = vector.load %arg3[%c131, %c0_135] : memref<256x256xf32, #tpu.memory_space<vmem>>, vector<1x256xf32>
    %924 = vector.broadcast %922 : vector<8x1xf32> to vector<8x256xf32>
    %925 = arith.mulf %924, %2 : vector<8x256xf32>
    %926 = vector.broadcast %923 : vector<1x256xf32> to vector<8x256xf32>
    %927 = arith.addf %925, %926 : vector<8x256xf32>
    %928 = arith.maximumf %921, %927 : vector<8x256xf32>
    %929 = vector.extract_strided_slice %3 {offsets = [0, 132], sizes = [8, 1], strides = [1, 1]} : vector<8x256xf32> to vector<8x1xf32>
    %c132 = arith.constant 132 : index
    %c0_136 = arith.constant 0 : index
    %930 = vector.load %arg3[%c132, %c0_136] : memref<256x256xf32, #tpu.memory_space<vmem>>, vector<1x256xf32>
    %931 = vector.broadcast %929 : vector<8x1xf32> to vector<8x256xf32>
    %932 = arith.mulf %931, %2 : vector<8x256xf32>
    %933 = vector.broadcast %930 : vector<1x256xf32> to vector<8x256xf32>
    %934 = arith.addf %932, %933 : vector<8x256xf32>
    %935 = arith.maximumf %928, %934 : vector<8x256xf32>
    %936 = vector.extract_strided_slice %3 {offsets = [0, 133], sizes = [8, 1], strides = [1, 1]} : vector<8x256xf32> to vector<8x1xf32>
    %c133 = arith.constant 133 : index
    %c0_137 = arith.constant 0 : index
    %937 = vector.load %arg3[%c133, %c0_137] : memref<256x256xf32, #tpu.memory_space<vmem>>, vector<1x256xf32>
    %938 = vector.broadcast %936 : vector<8x1xf32> to vector<8x256xf32>
    %939 = arith.mulf %938, %2 : vector<8x256xf32>
    %940 = vector.broadcast %937 : vector<1x256xf32> to vector<8x256xf32>
    %941 = arith.addf %939, %940 : vector<8x256xf32>
    %942 = arith.maximumf %935, %941 : vector<8x256xf32>
    %943 = vector.extract_strided_slice %3 {offsets = [0, 134], sizes = [8, 1], strides = [1, 1]} : vector<8x256xf32> to vector<8x1xf32>
    %c134 = arith.constant 134 : index
    %c0_138 = arith.constant 0 : index
    %944 = vector.load %arg3[%c134, %c0_138] : memref<256x256xf32, #tpu.memory_space<vmem>>, vector<1x256xf32>
    %945 = vector.broadcast %943 : vector<8x1xf32> to vector<8x256xf32>
    %946 = arith.mulf %945, %2 : vector<8x256xf32>
    %947 = vector.broadcast %944 : vector<1x256xf32> to vector<8x256xf32>
    %948 = arith.addf %946, %947 : vector<8x256xf32>
    %949 = arith.maximumf %942, %948 : vector<8x256xf32>
    %950 = vector.extract_strided_slice %3 {offsets = [0, 135], sizes = [8, 1], strides = [1, 1]} : vector<8x256xf32> to vector<8x1xf32>
    %c135 = arith.constant 135 : index
    %c0_139 = arith.constant 0 : index
    %951 = vector.load %arg3[%c135, %c0_139] : memref<256x256xf32, #tpu.memory_space<vmem>>, vector<1x256xf32>
    %952 = vector.broadcast %950 : vector<8x1xf32> to vector<8x256xf32>
    %953 = arith.mulf %952, %2 : vector<8x256xf32>
    %954 = vector.broadcast %951 : vector<1x256xf32> to vector<8x256xf32>
    %955 = arith.addf %953, %954 : vector<8x256xf32>
    %956 = arith.maximumf %949, %955 : vector<8x256xf32>
    %957 = vector.extract_strided_slice %3 {offsets = [0, 136], sizes = [8, 1], strides = [1, 1]} : vector<8x256xf32> to vector<8x1xf32>
    %c136 = arith.constant 136 : index
    %c0_140 = arith.constant 0 : index
    %958 = vector.load %arg3[%c136, %c0_140] : memref<256x256xf32, #tpu.memory_space<vmem>>, vector<1x256xf32>
    %959 = vector.broadcast %957 : vector<8x1xf32> to vector<8x256xf32>
    %960 = arith.mulf %959, %2 : vector<8x256xf32>
    %961 = vector.broadcast %958 : vector<1x256xf32> to vector<8x256xf32>
    %962 = arith.addf %960, %961 : vector<8x256xf32>
    %963 = arith.maximumf %956, %962 : vector<8x256xf32>
    %964 = vector.extract_strided_slice %3 {offsets = [0, 137], sizes = [8, 1], strides = [1, 1]} : vector<8x256xf32> to vector<8x1xf32>
    %c137 = arith.constant 137 : index
    %c0_141 = arith.constant 0 : index
    %965 = vector.load %arg3[%c137, %c0_141] : memref<256x256xf32, #tpu.memory_space<vmem>>, vector<1x256xf32>
    %966 = vector.broadcast %964 : vector<8x1xf32> to vector<8x256xf32>
    %967 = arith.mulf %966, %2 : vector<8x256xf32>
    %968 = vector.broadcast %965 : vector<1x256xf32> to vector<8x256xf32>
    %969 = arith.addf %967, %968 : vector<8x256xf32>
    %970 = arith.maximumf %963, %969 : vector<8x256xf32>
    %971 = vector.extract_strided_slice %3 {offsets = [0, 138], sizes = [8, 1], strides = [1, 1]} : vector<8x256xf32> to vector<8x1xf32>
    %c138 = arith.constant 138 : index
    %c0_142 = arith.constant 0 : index
    %972 = vector.load %arg3[%c138, %c0_142] : memref<256x256xf32, #tpu.memory_space<vmem>>, vector<1x256xf32>
    %973 = vector.broadcast %971 : vector<8x1xf32> to vector<8x256xf32>
    %974 = arith.mulf %973, %2 : vector<8x256xf32>
    %975 = vector.broadcast %972 : vector<1x256xf32> to vector<8x256xf32>
    %976 = arith.addf %974, %975 : vector<8x256xf32>
    %977 = arith.maximumf %970, %976 : vector<8x256xf32>
    %978 = vector.extract_strided_slice %3 {offsets = [0, 139], sizes = [8, 1], strides = [1, 1]} : vector<8x256xf32> to vector<8x1xf32>
    %c139 = arith.constant 139 : index
    %c0_143 = arith.constant 0 : index
    %979 = vector.load %arg3[%c139, %c0_143] : memref<256x256xf32, #tpu.memory_space<vmem>>, vector<1x256xf32>
    %980 = vector.broadcast %978 : vector<8x1xf32> to vector<8x256xf32>
    %981 = arith.mulf %980, %2 : vector<8x256xf32>
    %982 = vector.broadcast %979 : vector<1x256xf32> to vector<8x256xf32>
    %983 = arith.addf %981, %982 : vector<8x256xf32>
    %984 = arith.maximumf %977, %983 : vector<8x256xf32>
    %985 = vector.extract_strided_slice %3 {offsets = [0, 140], sizes = [8, 1], strides = [1, 1]} : vector<8x256xf32> to vector<8x1xf32>
    %c140 = arith.constant 140 : index
    %c0_144 = arith.constant 0 : index
    %986 = vector.load %arg3[%c140, %c0_144] : memref<256x256xf32, #tpu.memory_space<vmem>>, vector<1x256xf32>
    %987 = vector.broadcast %985 : vector<8x1xf32> to vector<8x256xf32>
    %988 = arith.mulf %987, %2 : vector<8x256xf32>
    %989 = vector.broadcast %986 : vector<1x256xf32> to vector<8x256xf32>
    %990 = arith.addf %988, %989 : vector<8x256xf32>
    %991 = arith.maximumf %984, %990 : vector<8x256xf32>
    %992 = vector.extract_strided_slice %3 {offsets = [0, 141], sizes = [8, 1], strides = [1, 1]} : vector<8x256xf32> to vector<8x1xf32>
    %c141 = arith.constant 141 : index
    %c0_145 = arith.constant 0 : index
    %993 = vector.load %arg3[%c141, %c0_145] : memref<256x256xf32, #tpu.memory_space<vmem>>, vector<1x256xf32>
    %994 = vector.broadcast %992 : vector<8x1xf32> to vector<8x256xf32>
    %995 = arith.mulf %994, %2 : vector<8x256xf32>
    %996 = vector.broadcast %993 : vector<1x256xf32> to vector<8x256xf32>
    %997 = arith.addf %995, %996 : vector<8x256xf32>
    %998 = arith.maximumf %991, %997 : vector<8x256xf32>
    %999 = vector.extract_strided_slice %3 {offsets = [0, 142], sizes = [8, 1], strides = [1, 1]} : vector<8x256xf32> to vector<8x1xf32>
    %c142 = arith.constant 142 : index
    %c0_146 = arith.constant 0 : index
    %1000 = vector.load %arg3[%c142, %c0_146] : memref<256x256xf32, #tpu.memory_space<vmem>>, vector<1x256xf32>
    %1001 = vector.broadcast %999 : vector<8x1xf32> to vector<8x256xf32>
    %1002 = arith.mulf %1001, %2 : vector<8x256xf32>
    %1003 = vector.broadcast %1000 : vector<1x256xf32> to vector<8x256xf32>
    %1004 = arith.addf %1002, %1003 : vector<8x256xf32>
    %1005 = arith.maximumf %998, %1004 : vector<8x256xf32>
    %1006 = vector.extract_strided_slice %3 {offsets = [0, 143], sizes = [8, 1], strides = [1, 1]} : vector<8x256xf32> to vector<8x1xf32>
    %c143 = arith.constant 143 : index
    %c0_147 = arith.constant 0 : index
    %1007 = vector.load %arg3[%c143, %c0_147] : memref<256x256xf32, #tpu.memory_space<vmem>>, vector<1x256xf32>
    %1008 = vector.broadcast %1006 : vector<8x1xf32> to vector<8x256xf32>
    %1009 = arith.mulf %1008, %2 : vector<8x256xf32>
    %1010 = vector.broadcast %1007 : vector<1x256xf32> to vector<8x256xf32>
    %1011 = arith.addf %1009, %1010 : vector<8x256xf32>
    %1012 = arith.maximumf %1005, %1011 : vector<8x256xf32>
    %1013 = vector.extract_strided_slice %3 {offsets = [0, 144], sizes = [8, 1], strides = [1, 1]} : vector<8x256xf32> to vector<8x1xf32>
    %c144 = arith.constant 144 : index
    %c0_148 = arith.constant 0 : index
    %1014 = vector.load %arg3[%c144, %c0_148] : memref<256x256xf32, #tpu.memory_space<vmem>>, vector<1x256xf32>
    %1015 = vector.broadcast %1013 : vector<8x1xf32> to vector<8x256xf32>
    %1016 = arith.mulf %1015, %2 : vector<8x256xf32>
    %1017 = vector.broadcast %1014 : vector<1x256xf32> to vector<8x256xf32>
    %1018 = arith.addf %1016, %1017 : vector<8x256xf32>
    %1019 = arith.maximumf %1012, %1018 : vector<8x256xf32>
    %1020 = vector.extract_strided_slice %3 {offsets = [0, 145], sizes = [8, 1], strides = [1, 1]} : vector<8x256xf32> to vector<8x1xf32>
    %c145 = arith.constant 145 : index
    %c0_149 = arith.constant 0 : index
    %1021 = vector.load %arg3[%c145, %c0_149] : memref<256x256xf32, #tpu.memory_space<vmem>>, vector<1x256xf32>
    %1022 = vector.broadcast %1020 : vector<8x1xf32> to vector<8x256xf32>
    %1023 = arith.mulf %1022, %2 : vector<8x256xf32>
    %1024 = vector.broadcast %1021 : vector<1x256xf32> to vector<8x256xf32>
    %1025 = arith.addf %1023, %1024 : vector<8x256xf32>
    %1026 = arith.maximumf %1019, %1025 : vector<8x256xf32>
    %1027 = vector.extract_strided_slice %3 {offsets = [0, 146], sizes = [8, 1], strides = [1, 1]} : vector<8x256xf32> to vector<8x1xf32>
    %c146 = arith.constant 146 : index
    %c0_150 = arith.constant 0 : index
    %1028 = vector.load %arg3[%c146, %c0_150] : memref<256x256xf32, #tpu.memory_space<vmem>>, vector<1x256xf32>
    %1029 = vector.broadcast %1027 : vector<8x1xf32> to vector<8x256xf32>
    %1030 = arith.mulf %1029, %2 : vector<8x256xf32>
    %1031 = vector.broadcast %1028 : vector<1x256xf32> to vector<8x256xf32>
    %1032 = arith.addf %1030, %1031 : vector<8x256xf32>
    %1033 = arith.maximumf %1026, %1032 : vector<8x256xf32>
    %1034 = vector.extract_strided_slice %3 {offsets = [0, 147], sizes = [8, 1], strides = [1, 1]} : vector<8x256xf32> to vector<8x1xf32>
    %c147 = arith.constant 147 : index
    %c0_151 = arith.constant 0 : index
    %1035 = vector.load %arg3[%c147, %c0_151] : memref<256x256xf32, #tpu.memory_space<vmem>>, vector<1x256xf32>
    %1036 = vector.broadcast %1034 : vector<8x1xf32> to vector<8x256xf32>
    %1037 = arith.mulf %1036, %2 : vector<8x256xf32>
    %1038 = vector.broadcast %1035 : vector<1x256xf32> to vector<8x256xf32>
    %1039 = arith.addf %1037, %1038 : vector<8x256xf32>
    %1040 = arith.maximumf %1033, %1039 : vector<8x256xf32>
    %1041 = vector.extract_strided_slice %3 {offsets = [0, 148], sizes = [8, 1], strides = [1, 1]} : vector<8x256xf32> to vector<8x1xf32>
    %c148 = arith.constant 148 : index
    %c0_152 = arith.constant 0 : index
    %1042 = vector.load %arg3[%c148, %c0_152] : memref<256x256xf32, #tpu.memory_space<vmem>>, vector<1x256xf32>
    %1043 = vector.broadcast %1041 : vector<8x1xf32> to vector<8x256xf32>
    %1044 = arith.mulf %1043, %2 : vector<8x256xf32>
    %1045 = vector.broadcast %1042 : vector<1x256xf32> to vector<8x256xf32>
    %1046 = arith.addf %1044, %1045 : vector<8x256xf32>
    %1047 = arith.maximumf %1040, %1046 : vector<8x256xf32>
    %1048 = vector.extract_strided_slice %3 {offsets = [0, 149], sizes = [8, 1], strides = [1, 1]} : vector<8x256xf32> to vector<8x1xf32>
    %c149 = arith.constant 149 : index
    %c0_153 = arith.constant 0 : index
    %1049 = vector.load %arg3[%c149, %c0_153] : memref<256x256xf32, #tpu.memory_space<vmem>>, vector<1x256xf32>
    %1050 = vector.broadcast %1048 : vector<8x1xf32> to vector<8x256xf32>
    %1051 = arith.mulf %1050, %2 : vector<8x256xf32>
    %1052 = vector.broadcast %1049 : vector<1x256xf32> to vector<8x256xf32>
    %1053 = arith.addf %1051, %1052 : vector<8x256xf32>
    %1054 = arith.maximumf %1047, %1053 : vector<8x256xf32>
    %1055 = vector.extract_strided_slice %3 {offsets = [0, 150], sizes = [8, 1], strides = [1, 1]} : vector<8x256xf32> to vector<8x1xf32>
    %c150 = arith.constant 150 : index
    %c0_154 = arith.constant 0 : index
    %1056 = vector.load %arg3[%c150, %c0_154] : memref<256x256xf32, #tpu.memory_space<vmem>>, vector<1x256xf32>
    %1057 = vector.broadcast %1055 : vector<8x1xf32> to vector<8x256xf32>
    %1058 = arith.mulf %1057, %2 : vector<8x256xf32>
    %1059 = vector.broadcast %1056 : vector<1x256xf32> to vector<8x256xf32>
    %1060 = arith.addf %1058, %1059 : vector<8x256xf32>
    %1061 = arith.maximumf %1054, %1060 : vector<8x256xf32>
    %1062 = vector.extract_strided_slice %3 {offsets = [0, 151], sizes = [8, 1], strides = [1, 1]} : vector<8x256xf32> to vector<8x1xf32>
    %c151 = arith.constant 151 : index
    %c0_155 = arith.constant 0 : index
    %1063 = vector.load %arg3[%c151, %c0_155] : memref<256x256xf32, #tpu.memory_space<vmem>>, vector<1x256xf32>
    %1064 = vector.broadcast %1062 : vector<8x1xf32> to vector<8x256xf32>
    %1065 = arith.mulf %1064, %2 : vector<8x256xf32>
    %1066 = vector.broadcast %1063 : vector<1x256xf32> to vector<8x256xf32>
    %1067 = arith.addf %1065, %1066 : vector<8x256xf32>
    %1068 = arith.maximumf %1061, %1067 : vector<8x256xf32>
    %1069 = vector.extract_strided_slice %3 {offsets = [0, 152], sizes = [8, 1], strides = [1, 1]} : vector<8x256xf32> to vector<8x1xf32>
    %c152 = arith.constant 152 : index
    %c0_156 = arith.constant 0 : index
    %1070 = vector.load %arg3[%c152, %c0_156] : memref<256x256xf32, #tpu.memory_space<vmem>>, vector<1x256xf32>
    %1071 = vector.broadcast %1069 : vector<8x1xf32> to vector<8x256xf32>
    %1072 = arith.mulf %1071, %2 : vector<8x256xf32>
    %1073 = vector.broadcast %1070 : vector<1x256xf32> to vector<8x256xf32>
    %1074 = arith.addf %1072, %1073 : vector<8x256xf32>
    %1075 = arith.maximumf %1068, %1074 : vector<8x256xf32>
    %1076 = vector.extract_strided_slice %3 {offsets = [0, 153], sizes = [8, 1], strides = [1, 1]} : vector<8x256xf32> to vector<8x1xf32>
    %c153 = arith.constant 153 : index
    %c0_157 = arith.constant 0 : index
    %1077 = vector.load %arg3[%c153, %c0_157] : memref<256x256xf32, #tpu.memory_space<vmem>>, vector<1x256xf32>
    %1078 = vector.broadcast %1076 : vector<8x1xf32> to vector<8x256xf32>
    %1079 = arith.mulf %1078, %2 : vector<8x256xf32>
    %1080 = vector.broadcast %1077 : vector<1x256xf32> to vector<8x256xf32>
    %1081 = arith.addf %1079, %1080 : vector<8x256xf32>
    %1082 = arith.maximumf %1075, %1081 : vector<8x256xf32>
    %1083 = vector.extract_strided_slice %3 {offsets = [0, 154], sizes = [8, 1], strides = [1, 1]} : vector<8x256xf32> to vector<8x1xf32>
    %c154 = arith.constant 154 : index
    %c0_158 = arith.constant 0 : index
    %1084 = vector.load %arg3[%c154, %c0_158] : memref<256x256xf32, #tpu.memory_space<vmem>>, vector<1x256xf32>
    %1085 = vector.broadcast %1083 : vector<8x1xf32> to vector<8x256xf32>
    %1086 = arith.mulf %1085, %2 : vector<8x256xf32>
    %1087 = vector.broadcast %1084 : vector<1x256xf32> to vector<8x256xf32>
    %1088 = arith.addf %1086, %1087 : vector<8x256xf32>
    %1089 = arith.maximumf %1082, %1088 : vector<8x256xf32>
    %1090 = vector.extract_strided_slice %3 {offsets = [0, 155], sizes = [8, 1], strides = [1, 1]} : vector<8x256xf32> to vector<8x1xf32>
    %c155 = arith.constant 155 : index
    %c0_159 = arith.constant 0 : index
    %1091 = vector.load %arg3[%c155, %c0_159] : memref<256x256xf32, #tpu.memory_space<vmem>>, vector<1x256xf32>
    %1092 = vector.broadcast %1090 : vector<8x1xf32> to vector<8x256xf32>
    %1093 = arith.mulf %1092, %2 : vector<8x256xf32>
    %1094 = vector.broadcast %1091 : vector<1x256xf32> to vector<8x256xf32>
    %1095 = arith.addf %1093, %1094 : vector<8x256xf32>
    %1096 = arith.maximumf %1089, %1095 : vector<8x256xf32>
    %1097 = vector.extract_strided_slice %3 {offsets = [0, 156], sizes = [8, 1], strides = [1, 1]} : vector<8x256xf32> to vector<8x1xf32>
    %c156 = arith.constant 156 : index
    %c0_160 = arith.constant 0 : index
    %1098 = vector.load %arg3[%c156, %c0_160] : memref<256x256xf32, #tpu.memory_space<vmem>>, vector<1x256xf32>
    %1099 = vector.broadcast %1097 : vector<8x1xf32> to vector<8x256xf32>
    %1100 = arith.mulf %1099, %2 : vector<8x256xf32>
    %1101 = vector.broadcast %1098 : vector<1x256xf32> to vector<8x256xf32>
    %1102 = arith.addf %1100, %1101 : vector<8x256xf32>
    %1103 = arith.maximumf %1096, %1102 : vector<8x256xf32>
    %1104 = vector.extract_strided_slice %3 {offsets = [0, 157], sizes = [8, 1], strides = [1, 1]} : vector<8x256xf32> to vector<8x1xf32>
    %c157 = arith.constant 157 : index
    %c0_161 = arith.constant 0 : index
    %1105 = vector.load %arg3[%c157, %c0_161] : memref<256x256xf32, #tpu.memory_space<vmem>>, vector<1x256xf32>
    %1106 = vector.broadcast %1104 : vector<8x1xf32> to vector<8x256xf32>
    %1107 = arith.mulf %1106, %2 : vector<8x256xf32>
    %1108 = vector.broadcast %1105 : vector<1x256xf32> to vector<8x256xf32>
    %1109 = arith.addf %1107, %1108 : vector<8x256xf32>
    %1110 = arith.maximumf %1103, %1109 : vector<8x256xf32>
    %1111 = vector.extract_strided_slice %3 {offsets = [0, 158], sizes = [8, 1], strides = [1, 1]} : vector<8x256xf32> to vector<8x1xf32>
    %c158 = arith.constant 158 : index
    %c0_162 = arith.constant 0 : index
    %1112 = vector.load %arg3[%c158, %c0_162] : memref<256x256xf32, #tpu.memory_space<vmem>>, vector<1x256xf32>
    %1113 = vector.broadcast %1111 : vector<8x1xf32> to vector<8x256xf32>
    %1114 = arith.mulf %1113, %2 : vector<8x256xf32>
    %1115 = vector.broadcast %1112 : vector<1x256xf32> to vector<8x256xf32>
    %1116 = arith.addf %1114, %1115 : vector<8x256xf32>
    %1117 = arith.maximumf %1110, %1116 : vector<8x256xf32>
    %1118 = vector.extract_strided_slice %3 {offsets = [0, 159], sizes = [8, 1], strides = [1, 1]} : vector<8x256xf32> to vector<8x1xf32>
    %c159 = arith.constant 159 : index
    %c0_163 = arith.constant 0 : index
    %1119 = vector.load %arg3[%c159, %c0_163] : memref<256x256xf32, #tpu.memory_space<vmem>>, vector<1x256xf32>
    %1120 = vector.broadcast %1118 : vector<8x1xf32> to vector<8x256xf32>
    %1121 = arith.mulf %1120, %2 : vector<8x256xf32>
    %1122 = vector.broadcast %1119 : vector<1x256xf32> to vector<8x256xf32>
    %1123 = arith.addf %1121, %1122 : vector<8x256xf32>
    %1124 = arith.maximumf %1117, %1123 : vector<8x256xf32>
    %1125 = vector.extract_strided_slice %3 {offsets = [0, 160], sizes = [8, 1], strides = [1, 1]} : vector<8x256xf32> to vector<8x1xf32>
    %c160 = arith.constant 160 : index
    %c0_164 = arith.constant 0 : index
    %1126 = vector.load %arg3[%c160, %c0_164] : memref<256x256xf32, #tpu.memory_space<vmem>>, vector<1x256xf32>
    %1127 = vector.broadcast %1125 : vector<8x1xf32> to vector<8x256xf32>
    %1128 = arith.mulf %1127, %2 : vector<8x256xf32>
    %1129 = vector.broadcast %1126 : vector<1x256xf32> to vector<8x256xf32>
    %1130 = arith.addf %1128, %1129 : vector<8x256xf32>
    %1131 = arith.maximumf %1124, %1130 : vector<8x256xf32>
    %1132 = vector.extract_strided_slice %3 {offsets = [0, 161], sizes = [8, 1], strides = [1, 1]} : vector<8x256xf32> to vector<8x1xf32>
    %c161 = arith.constant 161 : index
    %c0_165 = arith.constant 0 : index
    %1133 = vector.load %arg3[%c161, %c0_165] : memref<256x256xf32, #tpu.memory_space<vmem>>, vector<1x256xf32>
    %1134 = vector.broadcast %1132 : vector<8x1xf32> to vector<8x256xf32>
    %1135 = arith.mulf %1134, %2 : vector<8x256xf32>
    %1136 = vector.broadcast %1133 : vector<1x256xf32> to vector<8x256xf32>
    %1137 = arith.addf %1135, %1136 : vector<8x256xf32>
    %1138 = arith.maximumf %1131, %1137 : vector<8x256xf32>
    %1139 = vector.extract_strided_slice %3 {offsets = [0, 162], sizes = [8, 1], strides = [1, 1]} : vector<8x256xf32> to vector<8x1xf32>
    %c162 = arith.constant 162 : index
    %c0_166 = arith.constant 0 : index
    %1140 = vector.load %arg3[%c162, %c0_166] : memref<256x256xf32, #tpu.memory_space<vmem>>, vector<1x256xf32>
    %1141 = vector.broadcast %1139 : vector<8x1xf32> to vector<8x256xf32>
    %1142 = arith.mulf %1141, %2 : vector<8x256xf32>
    %1143 = vector.broadcast %1140 : vector<1x256xf32> to vector<8x256xf32>
    %1144 = arith.addf %1142, %1143 : vector<8x256xf32>
    %1145 = arith.maximumf %1138, %1144 : vector<8x256xf32>
    %1146 = vector.extract_strided_slice %3 {offsets = [0, 163], sizes = [8, 1], strides = [1, 1]} : vector<8x256xf32> to vector<8x1xf32>
    %c163 = arith.constant 163 : index
    %c0_167 = arith.constant 0 : index
    %1147 = vector.load %arg3[%c163, %c0_167] : memref<256x256xf32, #tpu.memory_space<vmem>>, vector<1x256xf32>
    %1148 = vector.broadcast %1146 : vector<8x1xf32> to vector<8x256xf32>
    %1149 = arith.mulf %1148, %2 : vector<8x256xf32>
    %1150 = vector.broadcast %1147 : vector<1x256xf32> to vector<8x256xf32>
    %1151 = arith.addf %1149, %1150 : vector<8x256xf32>
    %1152 = arith.maximumf %1145, %1151 : vector<8x256xf32>
    %1153 = vector.extract_strided_slice %3 {offsets = [0, 164], sizes = [8, 1], strides = [1, 1]} : vector<8x256xf32> to vector<8x1xf32>
    %c164 = arith.constant 164 : index
    %c0_168 = arith.constant 0 : index
    %1154 = vector.load %arg3[%c164, %c0_168] : memref<256x256xf32, #tpu.memory_space<vmem>>, vector<1x256xf32>
    %1155 = vector.broadcast %1153 : vector<8x1xf32> to vector<8x256xf32>
    %1156 = arith.mulf %1155, %2 : vector<8x256xf32>
    %1157 = vector.broadcast %1154 : vector<1x256xf32> to vector<8x256xf32>
    %1158 = arith.addf %1156, %1157 : vector<8x256xf32>
    %1159 = arith.maximumf %1152, %1158 : vector<8x256xf32>
    %1160 = vector.extract_strided_slice %3 {offsets = [0, 165], sizes = [8, 1], strides = [1, 1]} : vector<8x256xf32> to vector<8x1xf32>
    %c165 = arith.constant 165 : index
    %c0_169 = arith.constant 0 : index
    %1161 = vector.load %arg3[%c165, %c0_169] : memref<256x256xf32, #tpu.memory_space<vmem>>, vector<1x256xf32>
    %1162 = vector.broadcast %1160 : vector<8x1xf32> to vector<8x256xf32>
    %1163 = arith.mulf %1162, %2 : vector<8x256xf32>
    %1164 = vector.broadcast %1161 : vector<1x256xf32> to vector<8x256xf32>
    %1165 = arith.addf %1163, %1164 : vector<8x256xf32>
    %1166 = arith.maximumf %1159, %1165 : vector<8x256xf32>
    %1167 = vector.extract_strided_slice %3 {offsets = [0, 166], sizes = [8, 1], strides = [1, 1]} : vector<8x256xf32> to vector<8x1xf32>
    %c166 = arith.constant 166 : index
    %c0_170 = arith.constant 0 : index
    %1168 = vector.load %arg3[%c166, %c0_170] : memref<256x256xf32, #tpu.memory_space<vmem>>, vector<1x256xf32>
    %1169 = vector.broadcast %1167 : vector<8x1xf32> to vector<8x256xf32>
    %1170 = arith.mulf %1169, %2 : vector<8x256xf32>
    %1171 = vector.broadcast %1168 : vector<1x256xf32> to vector<8x256xf32>
    %1172 = arith.addf %1170, %1171 : vector<8x256xf32>
    %1173 = arith.maximumf %1166, %1172 : vector<8x256xf32>
    %1174 = vector.extract_strided_slice %3 {offsets = [0, 167], sizes = [8, 1], strides = [1, 1]} : vector<8x256xf32> to vector<8x1xf32>
    %c167 = arith.constant 167 : index
    %c0_171 = arith.constant 0 : index
    %1175 = vector.load %arg3[%c167, %c0_171] : memref<256x256xf32, #tpu.memory_space<vmem>>, vector<1x256xf32>
    %1176 = vector.broadcast %1174 : vector<8x1xf32> to vector<8x256xf32>
    %1177 = arith.mulf %1176, %2 : vector<8x256xf32>
    %1178 = vector.broadcast %1175 : vector<1x256xf32> to vector<8x256xf32>
    %1179 = arith.addf %1177, %1178 : vector<8x256xf32>
    %1180 = arith.maximumf %1173, %1179 : vector<8x256xf32>
    %1181 = vector.extract_strided_slice %3 {offsets = [0, 168], sizes = [8, 1], strides = [1, 1]} : vector<8x256xf32> to vector<8x1xf32>
    %c168 = arith.constant 168 : index
    %c0_172 = arith.constant 0 : index
    %1182 = vector.load %arg3[%c168, %c0_172] : memref<256x256xf32, #tpu.memory_space<vmem>>, vector<1x256xf32>
    %1183 = vector.broadcast %1181 : vector<8x1xf32> to vector<8x256xf32>
    %1184 = arith.mulf %1183, %2 : vector<8x256xf32>
    %1185 = vector.broadcast %1182 : vector<1x256xf32> to vector<8x256xf32>
    %1186 = arith.addf %1184, %1185 : vector<8x256xf32>
    %1187 = arith.maximumf %1180, %1186 : vector<8x256xf32>
    %1188 = vector.extract_strided_slice %3 {offsets = [0, 169], sizes = [8, 1], strides = [1, 1]} : vector<8x256xf32> to vector<8x1xf32>
    %c169 = arith.constant 169 : index
    %c0_173 = arith.constant 0 : index
    %1189 = vector.load %arg3[%c169, %c0_173] : memref<256x256xf32, #tpu.memory_space<vmem>>, vector<1x256xf32>
    %1190 = vector.broadcast %1188 : vector<8x1xf32> to vector<8x256xf32>
    %1191 = arith.mulf %1190, %2 : vector<8x256xf32>
    %1192 = vector.broadcast %1189 : vector<1x256xf32> to vector<8x256xf32>
    %1193 = arith.addf %1191, %1192 : vector<8x256xf32>
    %1194 = arith.maximumf %1187, %1193 : vector<8x256xf32>
    %1195 = vector.extract_strided_slice %3 {offsets = [0, 170], sizes = [8, 1], strides = [1, 1]} : vector<8x256xf32> to vector<8x1xf32>
    %c170 = arith.constant 170 : index
    %c0_174 = arith.constant 0 : index
    %1196 = vector.load %arg3[%c170, %c0_174] : memref<256x256xf32, #tpu.memory_space<vmem>>, vector<1x256xf32>
    %1197 = vector.broadcast %1195 : vector<8x1xf32> to vector<8x256xf32>
    %1198 = arith.mulf %1197, %2 : vector<8x256xf32>
    %1199 = vector.broadcast %1196 : vector<1x256xf32> to vector<8x256xf32>
    %1200 = arith.addf %1198, %1199 : vector<8x256xf32>
    %1201 = arith.maximumf %1194, %1200 : vector<8x256xf32>
    %1202 = vector.extract_strided_slice %3 {offsets = [0, 171], sizes = [8, 1], strides = [1, 1]} : vector<8x256xf32> to vector<8x1xf32>
    %c171 = arith.constant 171 : index
    %c0_175 = arith.constant 0 : index
    %1203 = vector.load %arg3[%c171, %c0_175] : memref<256x256xf32, #tpu.memory_space<vmem>>, vector<1x256xf32>
    %1204 = vector.broadcast %1202 : vector<8x1xf32> to vector<8x256xf32>
    %1205 = arith.mulf %1204, %2 : vector<8x256xf32>
    %1206 = vector.broadcast %1203 : vector<1x256xf32> to vector<8x256xf32>
    %1207 = arith.addf %1205, %1206 : vector<8x256xf32>
    %1208 = arith.maximumf %1201, %1207 : vector<8x256xf32>
    %1209 = vector.extract_strided_slice %3 {offsets = [0, 172], sizes = [8, 1], strides = [1, 1]} : vector<8x256xf32> to vector<8x1xf32>
    %c172 = arith.constant 172 : index
    %c0_176 = arith.constant 0 : index
    %1210 = vector.load %arg3[%c172, %c0_176] : memref<256x256xf32, #tpu.memory_space<vmem>>, vector<1x256xf32>
    %1211 = vector.broadcast %1209 : vector<8x1xf32> to vector<8x256xf32>
    %1212 = arith.mulf %1211, %2 : vector<8x256xf32>
    %1213 = vector.broadcast %1210 : vector<1x256xf32> to vector<8x256xf32>
    %1214 = arith.addf %1212, %1213 : vector<8x256xf32>
    %1215 = arith.maximumf %1208, %1214 : vector<8x256xf32>
    %1216 = vector.extract_strided_slice %3 {offsets = [0, 173], sizes = [8, 1], strides = [1, 1]} : vector<8x256xf32> to vector<8x1xf32>
    %c173 = arith.constant 173 : index
    %c0_177 = arith.constant 0 : index
    %1217 = vector.load %arg3[%c173, %c0_177] : memref<256x256xf32, #tpu.memory_space<vmem>>, vector<1x256xf32>
    %1218 = vector.broadcast %1216 : vector<8x1xf32> to vector<8x256xf32>
    %1219 = arith.mulf %1218, %2 : vector<8x256xf32>
    %1220 = vector.broadcast %1217 : vector<1x256xf32> to vector<8x256xf32>
    %1221 = arith.addf %1219, %1220 : vector<8x256xf32>
    %1222 = arith.maximumf %1215, %1221 : vector<8x256xf32>
    %1223 = vector.extract_strided_slice %3 {offsets = [0, 174], sizes = [8, 1], strides = [1, 1]} : vector<8x256xf32> to vector<8x1xf32>
    %c174 = arith.constant 174 : index
    %c0_178 = arith.constant 0 : index
    %1224 = vector.load %arg3[%c174, %c0_178] : memref<256x256xf32, #tpu.memory_space<vmem>>, vector<1x256xf32>
    %1225 = vector.broadcast %1223 : vector<8x1xf32> to vector<8x256xf32>
    %1226 = arith.mulf %1225, %2 : vector<8x256xf32>
    %1227 = vector.broadcast %1224 : vector<1x256xf32> to vector<8x256xf32>
    %1228 = arith.addf %1226, %1227 : vector<8x256xf32>
    %1229 = arith.maximumf %1222, %1228 : vector<8x256xf32>
    %1230 = vector.extract_strided_slice %3 {offsets = [0, 175], sizes = [8, 1], strides = [1, 1]} : vector<8x256xf32> to vector<8x1xf32>
    %c175 = arith.constant 175 : index
    %c0_179 = arith.constant 0 : index
    %1231 = vector.load %arg3[%c175, %c0_179] : memref<256x256xf32, #tpu.memory_space<vmem>>, vector<1x256xf32>
    %1232 = vector.broadcast %1230 : vector<8x1xf32> to vector<8x256xf32>
    %1233 = arith.mulf %1232, %2 : vector<8x256xf32>
    %1234 = vector.broadcast %1231 : vector<1x256xf32> to vector<8x256xf32>
    %1235 = arith.addf %1233, %1234 : vector<8x256xf32>
    %1236 = arith.maximumf %1229, %1235 : vector<8x256xf32>
    %1237 = vector.extract_strided_slice %3 {offsets = [0, 176], sizes = [8, 1], strides = [1, 1]} : vector<8x256xf32> to vector<8x1xf32>
    %c176 = arith.constant 176 : index
    %c0_180 = arith.constant 0 : index
    %1238 = vector.load %arg3[%c176, %c0_180] : memref<256x256xf32, #tpu.memory_space<vmem>>, vector<1x256xf32>
    %1239 = vector.broadcast %1237 : vector<8x1xf32> to vector<8x256xf32>
    %1240 = arith.mulf %1239, %2 : vector<8x256xf32>
    %1241 = vector.broadcast %1238 : vector<1x256xf32> to vector<8x256xf32>
    %1242 = arith.addf %1240, %1241 : vector<8x256xf32>
    %1243 = arith.maximumf %1236, %1242 : vector<8x256xf32>
    %1244 = vector.extract_strided_slice %3 {offsets = [0, 177], sizes = [8, 1], strides = [1, 1]} : vector<8x256xf32> to vector<8x1xf32>
    %c177 = arith.constant 177 : index
    %c0_181 = arith.constant 0 : index
    %1245 = vector.load %arg3[%c177, %c0_181] : memref<256x256xf32, #tpu.memory_space<vmem>>, vector<1x256xf32>
    %1246 = vector.broadcast %1244 : vector<8x1xf32> to vector<8x256xf32>
    %1247 = arith.mulf %1246, %2 : vector<8x256xf32>
    %1248 = vector.broadcast %1245 : vector<1x256xf32> to vector<8x256xf32>
    %1249 = arith.addf %1247, %1248 : vector<8x256xf32>
    %1250 = arith.maximumf %1243, %1249 : vector<8x256xf32>
    %1251 = vector.extract_strided_slice %3 {offsets = [0, 178], sizes = [8, 1], strides = [1, 1]} : vector<8x256xf32> to vector<8x1xf32>
    %c178 = arith.constant 178 : index
    %c0_182 = arith.constant 0 : index
    %1252 = vector.load %arg3[%c178, %c0_182] : memref<256x256xf32, #tpu.memory_space<vmem>>, vector<1x256xf32>
    %1253 = vector.broadcast %1251 : vector<8x1xf32> to vector<8x256xf32>
    %1254 = arith.mulf %1253, %2 : vector<8x256xf32>
    %1255 = vector.broadcast %1252 : vector<1x256xf32> to vector<8x256xf32>
    %1256 = arith.addf %1254, %1255 : vector<8x256xf32>
    %1257 = arith.maximumf %1250, %1256 : vector<8x256xf32>
    %1258 = vector.extract_strided_slice %3 {offsets = [0, 179], sizes = [8, 1], strides = [1, 1]} : vector<8x256xf32> to vector<8x1xf32>
    %c179 = arith.constant 179 : index
    %c0_183 = arith.constant 0 : index
    %1259 = vector.load %arg3[%c179, %c0_183] : memref<256x256xf32, #tpu.memory_space<vmem>>, vector<1x256xf32>
    %1260 = vector.broadcast %1258 : vector<8x1xf32> to vector<8x256xf32>
    %1261 = arith.mulf %1260, %2 : vector<8x256xf32>
    %1262 = vector.broadcast %1259 : vector<1x256xf32> to vector<8x256xf32>
    %1263 = arith.addf %1261, %1262 : vector<8x256xf32>
    %1264 = arith.maximumf %1257, %1263 : vector<8x256xf32>
    %1265 = vector.extract_strided_slice %3 {offsets = [0, 180], sizes = [8, 1], strides = [1, 1]} : vector<8x256xf32> to vector<8x1xf32>
    %c180 = arith.constant 180 : index
    %c0_184 = arith.constant 0 : index
    %1266 = vector.load %arg3[%c180, %c0_184] : memref<256x256xf32, #tpu.memory_space<vmem>>, vector<1x256xf32>
    %1267 = vector.broadcast %1265 : vector<8x1xf32> to vector<8x256xf32>
    %1268 = arith.mulf %1267, %2 : vector<8x256xf32>
    %1269 = vector.broadcast %1266 : vector<1x256xf32> to vector<8x256xf32>
    %1270 = arith.addf %1268, %1269 : vector<8x256xf32>
    %1271 = arith.maximumf %1264, %1270 : vector<8x256xf32>
    %1272 = vector.extract_strided_slice %3 {offsets = [0, 181], sizes = [8, 1], strides = [1, 1]} : vector<8x256xf32> to vector<8x1xf32>
    %c181 = arith.constant 181 : index
    %c0_185 = arith.constant 0 : index
    %1273 = vector.load %arg3[%c181, %c0_185] : memref<256x256xf32, #tpu.memory_space<vmem>>, vector<1x256xf32>
    %1274 = vector.broadcast %1272 : vector<8x1xf32> to vector<8x256xf32>
    %1275 = arith.mulf %1274, %2 : vector<8x256xf32>
    %1276 = vector.broadcast %1273 : vector<1x256xf32> to vector<8x256xf32>
    %1277 = arith.addf %1275, %1276 : vector<8x256xf32>
    %1278 = arith.maximumf %1271, %1277 : vector<8x256xf32>
    %1279 = vector.extract_strided_slice %3 {offsets = [0, 182], sizes = [8, 1], strides = [1, 1]} : vector<8x256xf32> to vector<8x1xf32>
    %c182 = arith.constant 182 : index
    %c0_186 = arith.constant 0 : index
    %1280 = vector.load %arg3[%c182, %c0_186] : memref<256x256xf32, #tpu.memory_space<vmem>>, vector<1x256xf32>
    %1281 = vector.broadcast %1279 : vector<8x1xf32> to vector<8x256xf32>
    %1282 = arith.mulf %1281, %2 : vector<8x256xf32>
    %1283 = vector.broadcast %1280 : vector<1x256xf32> to vector<8x256xf32>
    %1284 = arith.addf %1282, %1283 : vector<8x256xf32>
    %1285 = arith.maximumf %1278, %1284 : vector<8x256xf32>
    %1286 = vector.extract_strided_slice %3 {offsets = [0, 183], sizes = [8, 1], strides = [1, 1]} : vector<8x256xf32> to vector<8x1xf32>
    %c183 = arith.constant 183 : index
    %c0_187 = arith.constant 0 : index
    %1287 = vector.load %arg3[%c183, %c0_187] : memref<256x256xf32, #tpu.memory_space<vmem>>, vector<1x256xf32>
    %1288 = vector.broadcast %1286 : vector<8x1xf32> to vector<8x256xf32>
    %1289 = arith.mulf %1288, %2 : vector<8x256xf32>
    %1290 = vector.broadcast %1287 : vector<1x256xf32> to vector<8x256xf32>
    %1291 = arith.addf %1289, %1290 : vector<8x256xf32>
    %1292 = arith.maximumf %1285, %1291 : vector<8x256xf32>
    %1293 = vector.extract_strided_slice %3 {offsets = [0, 184], sizes = [8, 1], strides = [1, 1]} : vector<8x256xf32> to vector<8x1xf32>
    %c184 = arith.constant 184 : index
    %c0_188 = arith.constant 0 : index
    %1294 = vector.load %arg3[%c184, %c0_188] : memref<256x256xf32, #tpu.memory_space<vmem>>, vector<1x256xf32>
    %1295 = vector.broadcast %1293 : vector<8x1xf32> to vector<8x256xf32>
    %1296 = arith.mulf %1295, %2 : vector<8x256xf32>
    %1297 = vector.broadcast %1294 : vector<1x256xf32> to vector<8x256xf32>
    %1298 = arith.addf %1296, %1297 : vector<8x256xf32>
    %1299 = arith.maximumf %1292, %1298 : vector<8x256xf32>
    %1300 = vector.extract_strided_slice %3 {offsets = [0, 185], sizes = [8, 1], strides = [1, 1]} : vector<8x256xf32> to vector<8x1xf32>
    %c185 = arith.constant 185 : index
    %c0_189 = arith.constant 0 : index
    %1301 = vector.load %arg3[%c185, %c0_189] : memref<256x256xf32, #tpu.memory_space<vmem>>, vector<1x256xf32>
    %1302 = vector.broadcast %1300 : vector<8x1xf32> to vector<8x256xf32>
    %1303 = arith.mulf %1302, %2 : vector<8x256xf32>
    %1304 = vector.broadcast %1301 : vector<1x256xf32> to vector<8x256xf32>
    %1305 = arith.addf %1303, %1304 : vector<8x256xf32>
    %1306 = arith.maximumf %1299, %1305 : vector<8x256xf32>
    %1307 = vector.extract_strided_slice %3 {offsets = [0, 186], sizes = [8, 1], strides = [1, 1]} : vector<8x256xf32> to vector<8x1xf32>
    %c186 = arith.constant 186 : index
    %c0_190 = arith.constant 0 : index
    %1308 = vector.load %arg3[%c186, %c0_190] : memref<256x256xf32, #tpu.memory_space<vmem>>, vector<1x256xf32>
    %1309 = vector.broadcast %1307 : vector<8x1xf32> to vector<8x256xf32>
    %1310 = arith.mulf %1309, %2 : vector<8x256xf32>
    %1311 = vector.broadcast %1308 : vector<1x256xf32> to vector<8x256xf32>
    %1312 = arith.addf %1310, %1311 : vector<8x256xf32>
    %1313 = arith.maximumf %1306, %1312 : vector<8x256xf32>
    %1314 = vector.extract_strided_slice %3 {offsets = [0, 187], sizes = [8, 1], strides = [1, 1]} : vector<8x256xf32> to vector<8x1xf32>
    %c187 = arith.constant 187 : index
    %c0_191 = arith.constant 0 : index
    %1315 = vector.load %arg3[%c187, %c0_191] : memref<256x256xf32, #tpu.memory_space<vmem>>, vector<1x256xf32>
    %1316 = vector.broadcast %1314 : vector<8x1xf32> to vector<8x256xf32>
    %1317 = arith.mulf %1316, %2 : vector<8x256xf32>
    %1318 = vector.broadcast %1315 : vector<1x256xf32> to vector<8x256xf32>
    %1319 = arith.addf %1317, %1318 : vector<8x256xf32>
    %1320 = arith.maximumf %1313, %1319 : vector<8x256xf32>
    %1321 = vector.extract_strided_slice %3 {offsets = [0, 188], sizes = [8, 1], strides = [1, 1]} : vector<8x256xf32> to vector<8x1xf32>
    %c188 = arith.constant 188 : index
    %c0_192 = arith.constant 0 : index
    %1322 = vector.load %arg3[%c188, %c0_192] : memref<256x256xf32, #tpu.memory_space<vmem>>, vector<1x256xf32>
    %1323 = vector.broadcast %1321 : vector<8x1xf32> to vector<8x256xf32>
    %1324 = arith.mulf %1323, %2 : vector<8x256xf32>
    %1325 = vector.broadcast %1322 : vector<1x256xf32> to vector<8x256xf32>
    %1326 = arith.addf %1324, %1325 : vector<8x256xf32>
    %1327 = arith.maximumf %1320, %1326 : vector<8x256xf32>
    %1328 = vector.extract_strided_slice %3 {offsets = [0, 189], sizes = [8, 1], strides = [1, 1]} : vector<8x256xf32> to vector<8x1xf32>
    %c189 = arith.constant 189 : index
    %c0_193 = arith.constant 0 : index
    %1329 = vector.load %arg3[%c189, %c0_193] : memref<256x256xf32, #tpu.memory_space<vmem>>, vector<1x256xf32>
    %1330 = vector.broadcast %1328 : vector<8x1xf32> to vector<8x256xf32>
    %1331 = arith.mulf %1330, %2 : vector<8x256xf32>
    %1332 = vector.broadcast %1329 : vector<1x256xf32> to vector<8x256xf32>
    %1333 = arith.addf %1331, %1332 : vector<8x256xf32>
    %1334 = arith.maximumf %1327, %1333 : vector<8x256xf32>
    %1335 = vector.extract_strided_slice %3 {offsets = [0, 190], sizes = [8, 1], strides = [1, 1]} : vector<8x256xf32> to vector<8x1xf32>
    %c190 = arith.constant 190 : index
    %c0_194 = arith.constant 0 : index
    %1336 = vector.load %arg3[%c190, %c0_194] : memref<256x256xf32, #tpu.memory_space<vmem>>, vector<1x256xf32>
    %1337 = vector.broadcast %1335 : vector<8x1xf32> to vector<8x256xf32>
    %1338 = arith.mulf %1337, %2 : vector<8x256xf32>
    %1339 = vector.broadcast %1336 : vector<1x256xf32> to vector<8x256xf32>
    %1340 = arith.addf %1338, %1339 : vector<8x256xf32>
    %1341 = arith.maximumf %1334, %1340 : vector<8x256xf32>
    %1342 = vector.extract_strided_slice %3 {offsets = [0, 191], sizes = [8, 1], strides = [1, 1]} : vector<8x256xf32> to vector<8x1xf32>
    %c191 = arith.constant 191 : index
    %c0_195 = arith.constant 0 : index
    %1343 = vector.load %arg3[%c191, %c0_195] : memref<256x256xf32, #tpu.memory_space<vmem>>, vector<1x256xf32>
    %1344 = vector.broadcast %1342 : vector<8x1xf32> to vector<8x256xf32>
    %1345 = arith.mulf %1344, %2 : vector<8x256xf32>
    %1346 = vector.broadcast %1343 : vector<1x256xf32> to vector<8x256xf32>
    %1347 = arith.addf %1345, %1346 : vector<8x256xf32>
    %1348 = arith.maximumf %1341, %1347 : vector<8x256xf32>
    %1349 = vector.extract_strided_slice %3 {offsets = [0, 192], sizes = [8, 1], strides = [1, 1]} : vector<8x256xf32> to vector<8x1xf32>
    %c192 = arith.constant 192 : index
    %c0_196 = arith.constant 0 : index
    %1350 = vector.load %arg3[%c192, %c0_196] : memref<256x256xf32, #tpu.memory_space<vmem>>, vector<1x256xf32>
    %1351 = vector.broadcast %1349 : vector<8x1xf32> to vector<8x256xf32>
    %1352 = arith.mulf %1351, %2 : vector<8x256xf32>
    %1353 = vector.broadcast %1350 : vector<1x256xf32> to vector<8x256xf32>
    %1354 = arith.addf %1352, %1353 : vector<8x256xf32>
    %1355 = arith.maximumf %1348, %1354 : vector<8x256xf32>
    %1356 = vector.extract_strided_slice %3 {offsets = [0, 193], sizes = [8, 1], strides = [1, 1]} : vector<8x256xf32> to vector<8x1xf32>
    %c193 = arith.constant 193 : index
    %c0_197 = arith.constant 0 : index
    %1357 = vector.load %arg3[%c193, %c0_197] : memref<256x256xf32, #tpu.memory_space<vmem>>, vector<1x256xf32>
    %1358 = vector.broadcast %1356 : vector<8x1xf32> to vector<8x256xf32>
    %1359 = arith.mulf %1358, %2 : vector<8x256xf32>
    %1360 = vector.broadcast %1357 : vector<1x256xf32> to vector<8x256xf32>
    %1361 = arith.addf %1359, %1360 : vector<8x256xf32>
    %1362 = arith.maximumf %1355, %1361 : vector<8x256xf32>
    %1363 = vector.extract_strided_slice %3 {offsets = [0, 194], sizes = [8, 1], strides = [1, 1]} : vector<8x256xf32> to vector<8x1xf32>
    %c194 = arith.constant 194 : index
    %c0_198 = arith.constant 0 : index
    %1364 = vector.load %arg3[%c194, %c0_198] : memref<256x256xf32, #tpu.memory_space<vmem>>, vector<1x256xf32>
    %1365 = vector.broadcast %1363 : vector<8x1xf32> to vector<8x256xf32>
    %1366 = arith.mulf %1365, %2 : vector<8x256xf32>
    %1367 = vector.broadcast %1364 : vector<1x256xf32> to vector<8x256xf32>
    %1368 = arith.addf %1366, %1367 : vector<8x256xf32>
    %1369 = arith.maximumf %1362, %1368 : vector<8x256xf32>
    %1370 = vector.extract_strided_slice %3 {offsets = [0, 195], sizes = [8, 1], strides = [1, 1]} : vector<8x256xf32> to vector<8x1xf32>
    %c195 = arith.constant 195 : index
    %c0_199 = arith.constant 0 : index
    %1371 = vector.load %arg3[%c195, %c0_199] : memref<256x256xf32, #tpu.memory_space<vmem>>, vector<1x256xf32>
    %1372 = vector.broadcast %1370 : vector<8x1xf32> to vector<8x256xf32>
    %1373 = arith.mulf %1372, %2 : vector<8x256xf32>
    %1374 = vector.broadcast %1371 : vector<1x256xf32> to vector<8x256xf32>
    %1375 = arith.addf %1373, %1374 : vector<8x256xf32>
    %1376 = arith.maximumf %1369, %1375 : vector<8x256xf32>
    %1377 = vector.extract_strided_slice %3 {offsets = [0, 196], sizes = [8, 1], strides = [1, 1]} : vector<8x256xf32> to vector<8x1xf32>
    %c196 = arith.constant 196 : index
    %c0_200 = arith.constant 0 : index
    %1378 = vector.load %arg3[%c196, %c0_200] : memref<256x256xf32, #tpu.memory_space<vmem>>, vector<1x256xf32>
    %1379 = vector.broadcast %1377 : vector<8x1xf32> to vector<8x256xf32>
    %1380 = arith.mulf %1379, %2 : vector<8x256xf32>
    %1381 = vector.broadcast %1378 : vector<1x256xf32> to vector<8x256xf32>
    %1382 = arith.addf %1380, %1381 : vector<8x256xf32>
    %1383 = arith.maximumf %1376, %1382 : vector<8x256xf32>
    %1384 = vector.extract_strided_slice %3 {offsets = [0, 197], sizes = [8, 1], strides = [1, 1]} : vector<8x256xf32> to vector<8x1xf32>
    %c197 = arith.constant 197 : index
    %c0_201 = arith.constant 0 : index
    %1385 = vector.load %arg3[%c197, %c0_201] : memref<256x256xf32, #tpu.memory_space<vmem>>, vector<1x256xf32>
    %1386 = vector.broadcast %1384 : vector<8x1xf32> to vector<8x256xf32>
    %1387 = arith.mulf %1386, %2 : vector<8x256xf32>
    %1388 = vector.broadcast %1385 : vector<1x256xf32> to vector<8x256xf32>
    %1389 = arith.addf %1387, %1388 : vector<8x256xf32>
    %1390 = arith.maximumf %1383, %1389 : vector<8x256xf32>
    %1391 = vector.extract_strided_slice %3 {offsets = [0, 198], sizes = [8, 1], strides = [1, 1]} : vector<8x256xf32> to vector<8x1xf32>
    %c198 = arith.constant 198 : index
    %c0_202 = arith.constant 0 : index
    %1392 = vector.load %arg3[%c198, %c0_202] : memref<256x256xf32, #tpu.memory_space<vmem>>, vector<1x256xf32>
    %1393 = vector.broadcast %1391 : vector<8x1xf32> to vector<8x256xf32>
    %1394 = arith.mulf %1393, %2 : vector<8x256xf32>
    %1395 = vector.broadcast %1392 : vector<1x256xf32> to vector<8x256xf32>
    %1396 = arith.addf %1394, %1395 : vector<8x256xf32>
    %1397 = arith.maximumf %1390, %1396 : vector<8x256xf32>
    %1398 = vector.extract_strided_slice %3 {offsets = [0, 199], sizes = [8, 1], strides = [1, 1]} : vector<8x256xf32> to vector<8x1xf32>
    %c199 = arith.constant 199 : index
    %c0_203 = arith.constant 0 : index
    %1399 = vector.load %arg3[%c199, %c0_203] : memref<256x256xf32, #tpu.memory_space<vmem>>, vector<1x256xf32>
    %1400 = vector.broadcast %1398 : vector<8x1xf32> to vector<8x256xf32>
    %1401 = arith.mulf %1400, %2 : vector<8x256xf32>
    %1402 = vector.broadcast %1399 : vector<1x256xf32> to vector<8x256xf32>
    %1403 = arith.addf %1401, %1402 : vector<8x256xf32>
    %1404 = arith.maximumf %1397, %1403 : vector<8x256xf32>
    %1405 = vector.extract_strided_slice %3 {offsets = [0, 200], sizes = [8, 1], strides = [1, 1]} : vector<8x256xf32> to vector<8x1xf32>
    %c200 = arith.constant 200 : index
    %c0_204 = arith.constant 0 : index
    %1406 = vector.load %arg3[%c200, %c0_204] : memref<256x256xf32, #tpu.memory_space<vmem>>, vector<1x256xf32>
    %1407 = vector.broadcast %1405 : vector<8x1xf32> to vector<8x256xf32>
    %1408 = arith.mulf %1407, %2 : vector<8x256xf32>
    %1409 = vector.broadcast %1406 : vector<1x256xf32> to vector<8x256xf32>
    %1410 = arith.addf %1408, %1409 : vector<8x256xf32>
    %1411 = arith.maximumf %1404, %1410 : vector<8x256xf32>
    %1412 = vector.extract_strided_slice %3 {offsets = [0, 201], sizes = [8, 1], strides = [1, 1]} : vector<8x256xf32> to vector<8x1xf32>
    %c201 = arith.constant 201 : index
    %c0_205 = arith.constant 0 : index
    %1413 = vector.load %arg3[%c201, %c0_205] : memref<256x256xf32, #tpu.memory_space<vmem>>, vector<1x256xf32>
    %1414 = vector.broadcast %1412 : vector<8x1xf32> to vector<8x256xf32>
    %1415 = arith.mulf %1414, %2 : vector<8x256xf32>
    %1416 = vector.broadcast %1413 : vector<1x256xf32> to vector<8x256xf32>
    %1417 = arith.addf %1415, %1416 : vector<8x256xf32>
    %1418 = arith.maximumf %1411, %1417 : vector<8x256xf32>
    %1419 = vector.extract_strided_slice %3 {offsets = [0, 202], sizes = [8, 1], strides = [1, 1]} : vector<8x256xf32> to vector<8x1xf32>
    %c202 = arith.constant 202 : index
    %c0_206 = arith.constant 0 : index
    %1420 = vector.load %arg3[%c202, %c0_206] : memref<256x256xf32, #tpu.memory_space<vmem>>, vector<1x256xf32>
    %1421 = vector.broadcast %1419 : vector<8x1xf32> to vector<8x256xf32>
    %1422 = arith.mulf %1421, %2 : vector<8x256xf32>
    %1423 = vector.broadcast %1420 : vector<1x256xf32> to vector<8x256xf32>
    %1424 = arith.addf %1422, %1423 : vector<8x256xf32>
    %1425 = arith.maximumf %1418, %1424 : vector<8x256xf32>
    %1426 = vector.extract_strided_slice %3 {offsets = [0, 203], sizes = [8, 1], strides = [1, 1]} : vector<8x256xf32> to vector<8x1xf32>
    %c203 = arith.constant 203 : index
    %c0_207 = arith.constant 0 : index
    %1427 = vector.load %arg3[%c203, %c0_207] : memref<256x256xf32, #tpu.memory_space<vmem>>, vector<1x256xf32>
    %1428 = vector.broadcast %1426 : vector<8x1xf32> to vector<8x256xf32>
    %1429 = arith.mulf %1428, %2 : vector<8x256xf32>
    %1430 = vector.broadcast %1427 : vector<1x256xf32> to vector<8x256xf32>
    %1431 = arith.addf %1429, %1430 : vector<8x256xf32>
    %1432 = arith.maximumf %1425, %1431 : vector<8x256xf32>
    %1433 = vector.extract_strided_slice %3 {offsets = [0, 204], sizes = [8, 1], strides = [1, 1]} : vector<8x256xf32> to vector<8x1xf32>
    %c204 = arith.constant 204 : index
    %c0_208 = arith.constant 0 : index
    %1434 = vector.load %arg3[%c204, %c0_208] : memref<256x256xf32, #tpu.memory_space<vmem>>, vector<1x256xf32>
    %1435 = vector.broadcast %1433 : vector<8x1xf32> to vector<8x256xf32>
    %1436 = arith.mulf %1435, %2 : vector<8x256xf32>
    %1437 = vector.broadcast %1434 : vector<1x256xf32> to vector<8x256xf32>
    %1438 = arith.addf %1436, %1437 : vector<8x256xf32>
    %1439 = arith.maximumf %1432, %1438 : vector<8x256xf32>
    %1440 = vector.extract_strided_slice %3 {offsets = [0, 205], sizes = [8, 1], strides = [1, 1]} : vector<8x256xf32> to vector<8x1xf32>
    %c205 = arith.constant 205 : index
    %c0_209 = arith.constant 0 : index
    %1441 = vector.load %arg3[%c205, %c0_209] : memref<256x256xf32, #tpu.memory_space<vmem>>, vector<1x256xf32>
    %1442 = vector.broadcast %1440 : vector<8x1xf32> to vector<8x256xf32>
    %1443 = arith.mulf %1442, %2 : vector<8x256xf32>
    %1444 = vector.broadcast %1441 : vector<1x256xf32> to vector<8x256xf32>
    %1445 = arith.addf %1443, %1444 : vector<8x256xf32>
    %1446 = arith.maximumf %1439, %1445 : vector<8x256xf32>
    %1447 = vector.extract_strided_slice %3 {offsets = [0, 206], sizes = [8, 1], strides = [1, 1]} : vector<8x256xf32> to vector<8x1xf32>
    %c206 = arith.constant 206 : index
    %c0_210 = arith.constant 0 : index
    %1448 = vector.load %arg3[%c206, %c0_210] : memref<256x256xf32, #tpu.memory_space<vmem>>, vector<1x256xf32>
    %1449 = vector.broadcast %1447 : vector<8x1xf32> to vector<8x256xf32>
    %1450 = arith.mulf %1449, %2 : vector<8x256xf32>
    %1451 = vector.broadcast %1448 : vector<1x256xf32> to vector<8x256xf32>
    %1452 = arith.addf %1450, %1451 : vector<8x256xf32>
    %1453 = arith.maximumf %1446, %1452 : vector<8x256xf32>
    %1454 = vector.extract_strided_slice %3 {offsets = [0, 207], sizes = [8, 1], strides = [1, 1]} : vector<8x256xf32> to vector<8x1xf32>
    %c207 = arith.constant 207 : index
    %c0_211 = arith.constant 0 : index
    %1455 = vector.load %arg3[%c207, %c0_211] : memref<256x256xf32, #tpu.memory_space<vmem>>, vector<1x256xf32>
    %1456 = vector.broadcast %1454 : vector<8x1xf32> to vector<8x256xf32>
    %1457 = arith.mulf %1456, %2 : vector<8x256xf32>
    %1458 = vector.broadcast %1455 : vector<1x256xf32> to vector<8x256xf32>
    %1459 = arith.addf %1457, %1458 : vector<8x256xf32>
    %1460 = arith.maximumf %1453, %1459 : vector<8x256xf32>
    %1461 = vector.extract_strided_slice %3 {offsets = [0, 208], sizes = [8, 1], strides = [1, 1]} : vector<8x256xf32> to vector<8x1xf32>
    %c208 = arith.constant 208 : index
    %c0_212 = arith.constant 0 : index
    %1462 = vector.load %arg3[%c208, %c0_212] : memref<256x256xf32, #tpu.memory_space<vmem>>, vector<1x256xf32>
    %1463 = vector.broadcast %1461 : vector<8x1xf32> to vector<8x256xf32>
    %1464 = arith.mulf %1463, %2 : vector<8x256xf32>
    %1465 = vector.broadcast %1462 : vector<1x256xf32> to vector<8x256xf32>
    %1466 = arith.addf %1464, %1465 : vector<8x256xf32>
    %1467 = arith.maximumf %1460, %1466 : vector<8x256xf32>
    %1468 = vector.extract_strided_slice %3 {offsets = [0, 209], sizes = [8, 1], strides = [1, 1]} : vector<8x256xf32> to vector<8x1xf32>
    %c209 = arith.constant 209 : index
    %c0_213 = arith.constant 0 : index
    %1469 = vector.load %arg3[%c209, %c0_213] : memref<256x256xf32, #tpu.memory_space<vmem>>, vector<1x256xf32>
    %1470 = vector.broadcast %1468 : vector<8x1xf32> to vector<8x256xf32>
    %1471 = arith.mulf %1470, %2 : vector<8x256xf32>
    %1472 = vector.broadcast %1469 : vector<1x256xf32> to vector<8x256xf32>
    %1473 = arith.addf %1471, %1472 : vector<8x256xf32>
    %1474 = arith.maximumf %1467, %1473 : vector<8x256xf32>
    %1475 = vector.extract_strided_slice %3 {offsets = [0, 210], sizes = [8, 1], strides = [1, 1]} : vector<8x256xf32> to vector<8x1xf32>
    %c210 = arith.constant 210 : index
    %c0_214 = arith.constant 0 : index
    %1476 = vector.load %arg3[%c210, %c0_214] : memref<256x256xf32, #tpu.memory_space<vmem>>, vector<1x256xf32>
    %1477 = vector.broadcast %1475 : vector<8x1xf32> to vector<8x256xf32>
    %1478 = arith.mulf %1477, %2 : vector<8x256xf32>
    %1479 = vector.broadcast %1476 : vector<1x256xf32> to vector<8x256xf32>
    %1480 = arith.addf %1478, %1479 : vector<8x256xf32>
    %1481 = arith.maximumf %1474, %1480 : vector<8x256xf32>
    %1482 = vector.extract_strided_slice %3 {offsets = [0, 211], sizes = [8, 1], strides = [1, 1]} : vector<8x256xf32> to vector<8x1xf32>
    %c211 = arith.constant 211 : index
    %c0_215 = arith.constant 0 : index
    %1483 = vector.load %arg3[%c211, %c0_215] : memref<256x256xf32, #tpu.memory_space<vmem>>, vector<1x256xf32>
    %1484 = vector.broadcast %1482 : vector<8x1xf32> to vector<8x256xf32>
    %1485 = arith.mulf %1484, %2 : vector<8x256xf32>
    %1486 = vector.broadcast %1483 : vector<1x256xf32> to vector<8x256xf32>
    %1487 = arith.addf %1485, %1486 : vector<8x256xf32>
    %1488 = arith.maximumf %1481, %1487 : vector<8x256xf32>
    %1489 = vector.extract_strided_slice %3 {offsets = [0, 212], sizes = [8, 1], strides = [1, 1]} : vector<8x256xf32> to vector<8x1xf32>
    %c212 = arith.constant 212 : index
    %c0_216 = arith.constant 0 : index
    %1490 = vector.load %arg3[%c212, %c0_216] : memref<256x256xf32, #tpu.memory_space<vmem>>, vector<1x256xf32>
    %1491 = vector.broadcast %1489 : vector<8x1xf32> to vector<8x256xf32>
    %1492 = arith.mulf %1491, %2 : vector<8x256xf32>
    %1493 = vector.broadcast %1490 : vector<1x256xf32> to vector<8x256xf32>
    %1494 = arith.addf %1492, %1493 : vector<8x256xf32>
    %1495 = arith.maximumf %1488, %1494 : vector<8x256xf32>
    %1496 = vector.extract_strided_slice %3 {offsets = [0, 213], sizes = [8, 1], strides = [1, 1]} : vector<8x256xf32> to vector<8x1xf32>
    %c213 = arith.constant 213 : index
    %c0_217 = arith.constant 0 : index
    %1497 = vector.load %arg3[%c213, %c0_217] : memref<256x256xf32, #tpu.memory_space<vmem>>, vector<1x256xf32>
    %1498 = vector.broadcast %1496 : vector<8x1xf32> to vector<8x256xf32>
    %1499 = arith.mulf %1498, %2 : vector<8x256xf32>
    %1500 = vector.broadcast %1497 : vector<1x256xf32> to vector<8x256xf32>
    %1501 = arith.addf %1499, %1500 : vector<8x256xf32>
    %1502 = arith.maximumf %1495, %1501 : vector<8x256xf32>
    %1503 = vector.extract_strided_slice %3 {offsets = [0, 214], sizes = [8, 1], strides = [1, 1]} : vector<8x256xf32> to vector<8x1xf32>
    %c214 = arith.constant 214 : index
    %c0_218 = arith.constant 0 : index
    %1504 = vector.load %arg3[%c214, %c0_218] : memref<256x256xf32, #tpu.memory_space<vmem>>, vector<1x256xf32>
    %1505 = vector.broadcast %1503 : vector<8x1xf32> to vector<8x256xf32>
    %1506 = arith.mulf %1505, %2 : vector<8x256xf32>
    %1507 = vector.broadcast %1504 : vector<1x256xf32> to vector<8x256xf32>
    %1508 = arith.addf %1506, %1507 : vector<8x256xf32>
    %1509 = arith.maximumf %1502, %1508 : vector<8x256xf32>
    %1510 = vector.extract_strided_slice %3 {offsets = [0, 215], sizes = [8, 1], strides = [1, 1]} : vector<8x256xf32> to vector<8x1xf32>
    %c215 = arith.constant 215 : index
    %c0_219 = arith.constant 0 : index
    %1511 = vector.load %arg3[%c215, %c0_219] : memref<256x256xf32, #tpu.memory_space<vmem>>, vector<1x256xf32>
    %1512 = vector.broadcast %1510 : vector<8x1xf32> to vector<8x256xf32>
    %1513 = arith.mulf %1512, %2 : vector<8x256xf32>
    %1514 = vector.broadcast %1511 : vector<1x256xf32> to vector<8x256xf32>
    %1515 = arith.addf %1513, %1514 : vector<8x256xf32>
    %1516 = arith.maximumf %1509, %1515 : vector<8x256xf32>
    %1517 = vector.extract_strided_slice %3 {offsets = [0, 216], sizes = [8, 1], strides = [1, 1]} : vector<8x256xf32> to vector<8x1xf32>
    %c216 = arith.constant 216 : index
    %c0_220 = arith.constant 0 : index
    %1518 = vector.load %arg3[%c216, %c0_220] : memref<256x256xf32, #tpu.memory_space<vmem>>, vector<1x256xf32>
    %1519 = vector.broadcast %1517 : vector<8x1xf32> to vector<8x256xf32>
    %1520 = arith.mulf %1519, %2 : vector<8x256xf32>
    %1521 = vector.broadcast %1518 : vector<1x256xf32> to vector<8x256xf32>
    %1522 = arith.addf %1520, %1521 : vector<8x256xf32>
    %1523 = arith.maximumf %1516, %1522 : vector<8x256xf32>
    %1524 = vector.extract_strided_slice %3 {offsets = [0, 217], sizes = [8, 1], strides = [1, 1]} : vector<8x256xf32> to vector<8x1xf32>
    %c217 = arith.constant 217 : index
    %c0_221 = arith.constant 0 : index
    %1525 = vector.load %arg3[%c217, %c0_221] : memref<256x256xf32, #tpu.memory_space<vmem>>, vector<1x256xf32>
    %1526 = vector.broadcast %1524 : vector<8x1xf32> to vector<8x256xf32>
    %1527 = arith.mulf %1526, %2 : vector<8x256xf32>
    %1528 = vector.broadcast %1525 : vector<1x256xf32> to vector<8x256xf32>
    %1529 = arith.addf %1527, %1528 : vector<8x256xf32>
    %1530 = arith.maximumf %1523, %1529 : vector<8x256xf32>
    %1531 = vector.extract_strided_slice %3 {offsets = [0, 218], sizes = [8, 1], strides = [1, 1]} : vector<8x256xf32> to vector<8x1xf32>
    %c218 = arith.constant 218 : index
    %c0_222 = arith.constant 0 : index
    %1532 = vector.load %arg3[%c218, %c0_222] : memref<256x256xf32, #tpu.memory_space<vmem>>, vector<1x256xf32>
    %1533 = vector.broadcast %1531 : vector<8x1xf32> to vector<8x256xf32>
    %1534 = arith.mulf %1533, %2 : vector<8x256xf32>
    %1535 = vector.broadcast %1532 : vector<1x256xf32> to vector<8x256xf32>
    %1536 = arith.addf %1534, %1535 : vector<8x256xf32>
    %1537 = arith.maximumf %1530, %1536 : vector<8x256xf32>
    %1538 = vector.extract_strided_slice %3 {offsets = [0, 219], sizes = [8, 1], strides = [1, 1]} : vector<8x256xf32> to vector<8x1xf32>
    %c219 = arith.constant 219 : index
    %c0_223 = arith.constant 0 : index
    %1539 = vector.load %arg3[%c219, %c0_223] : memref<256x256xf32, #tpu.memory_space<vmem>>, vector<1x256xf32>
    %1540 = vector.broadcast %1538 : vector<8x1xf32> to vector<8x256xf32>
    %1541 = arith.mulf %1540, %2 : vector<8x256xf32>
    %1542 = vector.broadcast %1539 : vector<1x256xf32> to vector<8x256xf32>
    %1543 = arith.addf %1541, %1542 : vector<8x256xf32>
    %1544 = arith.maximumf %1537, %1543 : vector<8x256xf32>
    %1545 = vector.extract_strided_slice %3 {offsets = [0, 220], sizes = [8, 1], strides = [1, 1]} : vector<8x256xf32> to vector<8x1xf32>
    %c220 = arith.constant 220 : index
    %c0_224 = arith.constant 0 : index
    %1546 = vector.load %arg3[%c220, %c0_224] : memref<256x256xf32, #tpu.memory_space<vmem>>, vector<1x256xf32>
    %1547 = vector.broadcast %1545 : vector<8x1xf32> to vector<8x256xf32>
    %1548 = arith.mulf %1547, %2 : vector<8x256xf32>
    %1549 = vector.broadcast %1546 : vector<1x256xf32> to vector<8x256xf32>
    %1550 = arith.addf %1548, %1549 : vector<8x256xf32>
    %1551 = arith.maximumf %1544, %1550 : vector<8x256xf32>
    %1552 = vector.extract_strided_slice %3 {offsets = [0, 221], sizes = [8, 1], strides = [1, 1]} : vector<8x256xf32> to vector<8x1xf32>
    %c221 = arith.constant 221 : index
    %c0_225 = arith.constant 0 : index
    %1553 = vector.load %arg3[%c221, %c0_225] : memref<256x256xf32, #tpu.memory_space<vmem>>, vector<1x256xf32>
    %1554 = vector.broadcast %1552 : vector<8x1xf32> to vector<8x256xf32>
    %1555 = arith.mulf %1554, %2 : vector<8x256xf32>
    %1556 = vector.broadcast %1553 : vector<1x256xf32> to vector<8x256xf32>
    %1557 = arith.addf %1555, %1556 : vector<8x256xf32>
    %1558 = arith.maximumf %1551, %1557 : vector<8x256xf32>
    %1559 = vector.extract_strided_slice %3 {offsets = [0, 222], sizes = [8, 1], strides = [1, 1]} : vector<8x256xf32> to vector<8x1xf32>
    %c222 = arith.constant 222 : index
    %c0_226 = arith.constant 0 : index
    %1560 = vector.load %arg3[%c222, %c0_226] : memref<256x256xf32, #tpu.memory_space<vmem>>, vector<1x256xf32>
    %1561 = vector.broadcast %1559 : vector<8x1xf32> to vector<8x256xf32>
    %1562 = arith.mulf %1561, %2 : vector<8x256xf32>
    %1563 = vector.broadcast %1560 : vector<1x256xf32> to vector<8x256xf32>
    %1564 = arith.addf %1562, %1563 : vector<8x256xf32>
    %1565 = arith.maximumf %1558, %1564 : vector<8x256xf32>
    %1566 = vector.extract_strided_slice %3 {offsets = [0, 223], sizes = [8, 1], strides = [1, 1]} : vector<8x256xf32> to vector<8x1xf32>
    %c223 = arith.constant 223 : index
    %c0_227 = arith.constant 0 : index
    %1567 = vector.load %arg3[%c223, %c0_227] : memref<256x256xf32, #tpu.memory_space<vmem>>, vector<1x256xf32>
    %1568 = vector.broadcast %1566 : vector<8x1xf32> to vector<8x256xf32>
    %1569 = arith.mulf %1568, %2 : vector<8x256xf32>
    %1570 = vector.broadcast %1567 : vector<1x256xf32> to vector<8x256xf32>
    %1571 = arith.addf %1569, %1570 : vector<8x256xf32>
    %1572 = arith.maximumf %1565, %1571 : vector<8x256xf32>
    %1573 = vector.extract_strided_slice %3 {offsets = [0, 224], sizes = [8, 1], strides = [1, 1]} : vector<8x256xf32> to vector<8x1xf32>
    %c224 = arith.constant 224 : index
    %c0_228 = arith.constant 0 : index
    %1574 = vector.load %arg3[%c224, %c0_228] : memref<256x256xf32, #tpu.memory_space<vmem>>, vector<1x256xf32>
    %1575 = vector.broadcast %1573 : vector<8x1xf32> to vector<8x256xf32>
    %1576 = arith.mulf %1575, %2 : vector<8x256xf32>
    %1577 = vector.broadcast %1574 : vector<1x256xf32> to vector<8x256xf32>
    %1578 = arith.addf %1576, %1577 : vector<8x256xf32>
    %1579 = arith.maximumf %1572, %1578 : vector<8x256xf32>
    %1580 = vector.extract_strided_slice %3 {offsets = [0, 225], sizes = [8, 1], strides = [1, 1]} : vector<8x256xf32> to vector<8x1xf32>
    %c225 = arith.constant 225 : index
    %c0_229 = arith.constant 0 : index
    %1581 = vector.load %arg3[%c225, %c0_229] : memref<256x256xf32, #tpu.memory_space<vmem>>, vector<1x256xf32>
    %1582 = vector.broadcast %1580 : vector<8x1xf32> to vector<8x256xf32>
    %1583 = arith.mulf %1582, %2 : vector<8x256xf32>
    %1584 = vector.broadcast %1581 : vector<1x256xf32> to vector<8x256xf32>
    %1585 = arith.addf %1583, %1584 : vector<8x256xf32>
    %1586 = arith.maximumf %1579, %1585 : vector<8x256xf32>
    %1587 = vector.extract_strided_slice %3 {offsets = [0, 226], sizes = [8, 1], strides = [1, 1]} : vector<8x256xf32> to vector<8x1xf32>
    %c226 = arith.constant 226 : index
    %c0_230 = arith.constant 0 : index
    %1588 = vector.load %arg3[%c226, %c0_230] : memref<256x256xf32, #tpu.memory_space<vmem>>, vector<1x256xf32>
    %1589 = vector.broadcast %1587 : vector<8x1xf32> to vector<8x256xf32>
    %1590 = arith.mulf %1589, %2 : vector<8x256xf32>
    %1591 = vector.broadcast %1588 : vector<1x256xf32> to vector<8x256xf32>
    %1592 = arith.addf %1590, %1591 : vector<8x256xf32>
    %1593 = arith.maximumf %1586, %1592 : vector<8x256xf32>
    %1594 = vector.extract_strided_slice %3 {offsets = [0, 227], sizes = [8, 1], strides = [1, 1]} : vector<8x256xf32> to vector<8x1xf32>
    %c227 = arith.constant 227 : index
    %c0_231 = arith.constant 0 : index
    %1595 = vector.load %arg3[%c227, %c0_231] : memref<256x256xf32, #tpu.memory_space<vmem>>, vector<1x256xf32>
    %1596 = vector.broadcast %1594 : vector<8x1xf32> to vector<8x256xf32>
    %1597 = arith.mulf %1596, %2 : vector<8x256xf32>
    %1598 = vector.broadcast %1595 : vector<1x256xf32> to vector<8x256xf32>
    %1599 = arith.addf %1597, %1598 : vector<8x256xf32>
    %1600 = arith.maximumf %1593, %1599 : vector<8x256xf32>
    %1601 = vector.extract_strided_slice %3 {offsets = [0, 228], sizes = [8, 1], strides = [1, 1]} : vector<8x256xf32> to vector<8x1xf32>
    %c228 = arith.constant 228 : index
    %c0_232 = arith.constant 0 : index
    %1602 = vector.load %arg3[%c228, %c0_232] : memref<256x256xf32, #tpu.memory_space<vmem>>, vector<1x256xf32>
    %1603 = vector.broadcast %1601 : vector<8x1xf32> to vector<8x256xf32>
    %1604 = arith.mulf %1603, %2 : vector<8x256xf32>
    %1605 = vector.broadcast %1602 : vector<1x256xf32> to vector<8x256xf32>
    %1606 = arith.addf %1604, %1605 : vector<8x256xf32>
    %1607 = arith.maximumf %1600, %1606 : vector<8x256xf32>
    %1608 = vector.extract_strided_slice %3 {offsets = [0, 229], sizes = [8, 1], strides = [1, 1]} : vector<8x256xf32> to vector<8x1xf32>
    %c229 = arith.constant 229 : index
    %c0_233 = arith.constant 0 : index
    %1609 = vector.load %arg3[%c229, %c0_233] : memref<256x256xf32, #tpu.memory_space<vmem>>, vector<1x256xf32>
    %1610 = vector.broadcast %1608 : vector<8x1xf32> to vector<8x256xf32>
    %1611 = arith.mulf %1610, %2 : vector<8x256xf32>
    %1612 = vector.broadcast %1609 : vector<1x256xf32> to vector<8x256xf32>
    %1613 = arith.addf %1611, %1612 : vector<8x256xf32>
    %1614 = arith.maximumf %1607, %1613 : vector<8x256xf32>
    %1615 = vector.extract_strided_slice %3 {offsets = [0, 230], sizes = [8, 1], strides = [1, 1]} : vector<8x256xf32> to vector<8x1xf32>
    %c230 = arith.constant 230 : index
    %c0_234 = arith.constant 0 : index
    %1616 = vector.load %arg3[%c230, %c0_234] : memref<256x256xf32, #tpu.memory_space<vmem>>, vector<1x256xf32>
    %1617 = vector.broadcast %1615 : vector<8x1xf32> to vector<8x256xf32>
    %1618 = arith.mulf %1617, %2 : vector<8x256xf32>
    %1619 = vector.broadcast %1616 : vector<1x256xf32> to vector<8x256xf32>
    %1620 = arith.addf %1618, %1619 : vector<8x256xf32>
    %1621 = arith.maximumf %1614, %1620 : vector<8x256xf32>
    %1622 = vector.extract_strided_slice %3 {offsets = [0, 231], sizes = [8, 1], strides = [1, 1]} : vector<8x256xf32> to vector<8x1xf32>
    %c231 = arith.constant 231 : index
    %c0_235 = arith.constant 0 : index
    %1623 = vector.load %arg3[%c231, %c0_235] : memref<256x256xf32, #tpu.memory_space<vmem>>, vector<1x256xf32>
    %1624 = vector.broadcast %1622 : vector<8x1xf32> to vector<8x256xf32>
    %1625 = arith.mulf %1624, %2 : vector<8x256xf32>
    %1626 = vector.broadcast %1623 : vector<1x256xf32> to vector<8x256xf32>
    %1627 = arith.addf %1625, %1626 : vector<8x256xf32>
    %1628 = arith.maximumf %1621, %1627 : vector<8x256xf32>
    %1629 = vector.extract_strided_slice %3 {offsets = [0, 232], sizes = [8, 1], strides = [1, 1]} : vector<8x256xf32> to vector<8x1xf32>
    %c232 = arith.constant 232 : index
    %c0_236 = arith.constant 0 : index
    %1630 = vector.load %arg3[%c232, %c0_236] : memref<256x256xf32, #tpu.memory_space<vmem>>, vector<1x256xf32>
    %1631 = vector.broadcast %1629 : vector<8x1xf32> to vector<8x256xf32>
    %1632 = arith.mulf %1631, %2 : vector<8x256xf32>
    %1633 = vector.broadcast %1630 : vector<1x256xf32> to vector<8x256xf32>
    %1634 = arith.addf %1632, %1633 : vector<8x256xf32>
    %1635 = arith.maximumf %1628, %1634 : vector<8x256xf32>
    %1636 = vector.extract_strided_slice %3 {offsets = [0, 233], sizes = [8, 1], strides = [1, 1]} : vector<8x256xf32> to vector<8x1xf32>
    %c233 = arith.constant 233 : index
    %c0_237 = arith.constant 0 : index
    %1637 = vector.load %arg3[%c233, %c0_237] : memref<256x256xf32, #tpu.memory_space<vmem>>, vector<1x256xf32>
    %1638 = vector.broadcast %1636 : vector<8x1xf32> to vector<8x256xf32>
    %1639 = arith.mulf %1638, %2 : vector<8x256xf32>
    %1640 = vector.broadcast %1637 : vector<1x256xf32> to vector<8x256xf32>
    %1641 = arith.addf %1639, %1640 : vector<8x256xf32>
    %1642 = arith.maximumf %1635, %1641 : vector<8x256xf32>
    %1643 = vector.extract_strided_slice %3 {offsets = [0, 234], sizes = [8, 1], strides = [1, 1]} : vector<8x256xf32> to vector<8x1xf32>
    %c234 = arith.constant 234 : index
    %c0_238 = arith.constant 0 : index
    %1644 = vector.load %arg3[%c234, %c0_238] : memref<256x256xf32, #tpu.memory_space<vmem>>, vector<1x256xf32>
    %1645 = vector.broadcast %1643 : vector<8x1xf32> to vector<8x256xf32>
    %1646 = arith.mulf %1645, %2 : vector<8x256xf32>
    %1647 = vector.broadcast %1644 : vector<1x256xf32> to vector<8x256xf32>
    %1648 = arith.addf %1646, %1647 : vector<8x256xf32>
    %1649 = arith.maximumf %1642, %1648 : vector<8x256xf32>
    %1650 = vector.extract_strided_slice %3 {offsets = [0, 235], sizes = [8, 1], strides = [1, 1]} : vector<8x256xf32> to vector<8x1xf32>
    %c235 = arith.constant 235 : index
    %c0_239 = arith.constant 0 : index
    %1651 = vector.load %arg3[%c235, %c0_239] : memref<256x256xf32, #tpu.memory_space<vmem>>, vector<1x256xf32>
    %1652 = vector.broadcast %1650 : vector<8x1xf32> to vector<8x256xf32>
    %1653 = arith.mulf %1652, %2 : vector<8x256xf32>
    %1654 = vector.broadcast %1651 : vector<1x256xf32> to vector<8x256xf32>
    %1655 = arith.addf %1653, %1654 : vector<8x256xf32>
    %1656 = arith.maximumf %1649, %1655 : vector<8x256xf32>
    %1657 = vector.extract_strided_slice %3 {offsets = [0, 236], sizes = [8, 1], strides = [1, 1]} : vector<8x256xf32> to vector<8x1xf32>
    %c236 = arith.constant 236 : index
    %c0_240 = arith.constant 0 : index
    %1658 = vector.load %arg3[%c236, %c0_240] : memref<256x256xf32, #tpu.memory_space<vmem>>, vector<1x256xf32>
    %1659 = vector.broadcast %1657 : vector<8x1xf32> to vector<8x256xf32>
    %1660 = arith.mulf %1659, %2 : vector<8x256xf32>
    %1661 = vector.broadcast %1658 : vector<1x256xf32> to vector<8x256xf32>
    %1662 = arith.addf %1660, %1661 : vector<8x256xf32>
    %1663 = arith.maximumf %1656, %1662 : vector<8x256xf32>
    %1664 = vector.extract_strided_slice %3 {offsets = [0, 237], sizes = [8, 1], strides = [1, 1]} : vector<8x256xf32> to vector<8x1xf32>
    %c237 = arith.constant 237 : index
    %c0_241 = arith.constant 0 : index
    %1665 = vector.load %arg3[%c237, %c0_241] : memref<256x256xf32, #tpu.memory_space<vmem>>, vector<1x256xf32>
    %1666 = vector.broadcast %1664 : vector<8x1xf32> to vector<8x256xf32>
    %1667 = arith.mulf %1666, %2 : vector<8x256xf32>
    %1668 = vector.broadcast %1665 : vector<1x256xf32> to vector<8x256xf32>
    %1669 = arith.addf %1667, %1668 : vector<8x256xf32>
    %1670 = arith.maximumf %1663, %1669 : vector<8x256xf32>
    %1671 = vector.extract_strided_slice %3 {offsets = [0, 238], sizes = [8, 1], strides = [1, 1]} : vector<8x256xf32> to vector<8x1xf32>
    %c238 = arith.constant 238 : index
    %c0_242 = arith.constant 0 : index
    %1672 = vector.load %arg3[%c238, %c0_242] : memref<256x256xf32, #tpu.memory_space<vmem>>, vector<1x256xf32>
    %1673 = vector.broadcast %1671 : vector<8x1xf32> to vector<8x256xf32>
    %1674 = arith.mulf %1673, %2 : vector<8x256xf32>
    %1675 = vector.broadcast %1672 : vector<1x256xf32> to vector<8x256xf32>
    %1676 = arith.addf %1674, %1675 : vector<8x256xf32>
    %1677 = arith.maximumf %1670, %1676 : vector<8x256xf32>
    %1678 = vector.extract_strided_slice %3 {offsets = [0, 239], sizes = [8, 1], strides = [1, 1]} : vector<8x256xf32> to vector<8x1xf32>
    %c239 = arith.constant 239 : index
    %c0_243 = arith.constant 0 : index
    %1679 = vector.load %arg3[%c239, %c0_243] : memref<256x256xf32, #tpu.memory_space<vmem>>, vector<1x256xf32>
    %1680 = vector.broadcast %1678 : vector<8x1xf32> to vector<8x256xf32>
    %1681 = arith.mulf %1680, %2 : vector<8x256xf32>
    %1682 = vector.broadcast %1679 : vector<1x256xf32> to vector<8x256xf32>
    %1683 = arith.addf %1681, %1682 : vector<8x256xf32>
    %1684 = arith.maximumf %1677, %1683 : vector<8x256xf32>
    %1685 = vector.extract_strided_slice %3 {offsets = [0, 240], sizes = [8, 1], strides = [1, 1]} : vector<8x256xf32> to vector<8x1xf32>
    %c240 = arith.constant 240 : index
    %c0_244 = arith.constant 0 : index
    %1686 = vector.load %arg3[%c240, %c0_244] : memref<256x256xf32, #tpu.memory_space<vmem>>, vector<1x256xf32>
    %1687 = vector.broadcast %1685 : vector<8x1xf32> to vector<8x256xf32>
    %1688 = arith.mulf %1687, %2 : vector<8x256xf32>
    %1689 = vector.broadcast %1686 : vector<1x256xf32> to vector<8x256xf32>
    %1690 = arith.addf %1688, %1689 : vector<8x256xf32>
    %1691 = arith.maximumf %1684, %1690 : vector<8x256xf32>
    %1692 = vector.extract_strided_slice %3 {offsets = [0, 241], sizes = [8, 1], strides = [1, 1]} : vector<8x256xf32> to vector<8x1xf32>
    %c241 = arith.constant 241 : index
    %c0_245 = arith.constant 0 : index
    %1693 = vector.load %arg3[%c241, %c0_245] : memref<256x256xf32, #tpu.memory_space<vmem>>, vector<1x256xf32>
    %1694 = vector.broadcast %1692 : vector<8x1xf32> to vector<8x256xf32>
    %1695 = arith.mulf %1694, %2 : vector<8x256xf32>
    %1696 = vector.broadcast %1693 : vector<1x256xf32> to vector<8x256xf32>
    %1697 = arith.addf %1695, %1696 : vector<8x256xf32>
    %1698 = arith.maximumf %1691, %1697 : vector<8x256xf32>
    %1699 = vector.extract_strided_slice %3 {offsets = [0, 242], sizes = [8, 1], strides = [1, 1]} : vector<8x256xf32> to vector<8x1xf32>
    %c242 = arith.constant 242 : index
    %c0_246 = arith.constant 0 : index
    %1700 = vector.load %arg3[%c242, %c0_246] : memref<256x256xf32, #tpu.memory_space<vmem>>, vector<1x256xf32>
    %1701 = vector.broadcast %1699 : vector<8x1xf32> to vector<8x256xf32>
    %1702 = arith.mulf %1701, %2 : vector<8x256xf32>
    %1703 = vector.broadcast %1700 : vector<1x256xf32> to vector<8x256xf32>
    %1704 = arith.addf %1702, %1703 : vector<8x256xf32>
    %1705 = arith.maximumf %1698, %1704 : vector<8x256xf32>
    %1706 = vector.extract_strided_slice %3 {offsets = [0, 243], sizes = [8, 1], strides = [1, 1]} : vector<8x256xf32> to vector<8x1xf32>
    %c243 = arith.constant 243 : index
    %c0_247 = arith.constant 0 : index
    %1707 = vector.load %arg3[%c243, %c0_247] : memref<256x256xf32, #tpu.memory_space<vmem>>, vector<1x256xf32>
    %1708 = vector.broadcast %1706 : vector<8x1xf32> to vector<8x256xf32>
    %1709 = arith.mulf %1708, %2 : vector<8x256xf32>
    %1710 = vector.broadcast %1707 : vector<1x256xf32> to vector<8x256xf32>
    %1711 = arith.addf %1709, %1710 : vector<8x256xf32>
    %1712 = arith.maximumf %1705, %1711 : vector<8x256xf32>
    %1713 = vector.extract_strided_slice %3 {offsets = [0, 244], sizes = [8, 1], strides = [1, 1]} : vector<8x256xf32> to vector<8x1xf32>
    %c244 = arith.constant 244 : index
    %c0_248 = arith.constant 0 : index
    %1714 = vector.load %arg3[%c244, %c0_248] : memref<256x256xf32, #tpu.memory_space<vmem>>, vector<1x256xf32>
    %1715 = vector.broadcast %1713 : vector<8x1xf32> to vector<8x256xf32>
    %1716 = arith.mulf %1715, %2 : vector<8x256xf32>
    %1717 = vector.broadcast %1714 : vector<1x256xf32> to vector<8x256xf32>
    %1718 = arith.addf %1716, %1717 : vector<8x256xf32>
    %1719 = arith.maximumf %1712, %1718 : vector<8x256xf32>
    %1720 = vector.extract_strided_slice %3 {offsets = [0, 245], sizes = [8, 1], strides = [1, 1]} : vector<8x256xf32> to vector<8x1xf32>
    %c245 = arith.constant 245 : index
    %c0_249 = arith.constant 0 : index
    %1721 = vector.load %arg3[%c245, %c0_249] : memref<256x256xf32, #tpu.memory_space<vmem>>, vector<1x256xf32>
    %1722 = vector.broadcast %1720 : vector<8x1xf32> to vector<8x256xf32>
    %1723 = arith.mulf %1722, %2 : vector<8x256xf32>
    %1724 = vector.broadcast %1721 : vector<1x256xf32> to vector<8x256xf32>
    %1725 = arith.addf %1723, %1724 : vector<8x256xf32>
    %1726 = arith.maximumf %1719, %1725 : vector<8x256xf32>
    %1727 = vector.extract_strided_slice %3 {offsets = [0, 246], sizes = [8, 1], strides = [1, 1]} : vector<8x256xf32> to vector<8x1xf32>
    %c246 = arith.constant 246 : index
    %c0_250 = arith.constant 0 : index
    %1728 = vector.load %arg3[%c246, %c0_250] : memref<256x256xf32, #tpu.memory_space<vmem>>, vector<1x256xf32>
    %1729 = vector.broadcast %1727 : vector<8x1xf32> to vector<8x256xf32>
    %1730 = arith.mulf %1729, %2 : vector<8x256xf32>
    %1731 = vector.broadcast %1728 : vector<1x256xf32> to vector<8x256xf32>
    %1732 = arith.addf %1730, %1731 : vector<8x256xf32>
    %1733 = arith.maximumf %1726, %1732 : vector<8x256xf32>
    %1734 = vector.extract_strided_slice %3 {offsets = [0, 247], sizes = [8, 1], strides = [1, 1]} : vector<8x256xf32> to vector<8x1xf32>
    %c247 = arith.constant 247 : index
    %c0_251 = arith.constant 0 : index
    %1735 = vector.load %arg3[%c247, %c0_251] : memref<256x256xf32, #tpu.memory_space<vmem>>, vector<1x256xf32>
    %1736 = vector.broadcast %1734 : vector<8x1xf32> to vector<8x256xf32>
    %1737 = arith.mulf %1736, %2 : vector<8x256xf32>
    %1738 = vector.broadcast %1735 : vector<1x256xf32> to vector<8x256xf32>
    %1739 = arith.addf %1737, %1738 : vector<8x256xf32>
    %1740 = arith.maximumf %1733, %1739 : vector<8x256xf32>
    %1741 = vector.extract_strided_slice %3 {offsets = [0, 248], sizes = [8, 1], strides = [1, 1]} : vector<8x256xf32> to vector<8x1xf32>
    %c248 = arith.constant 248 : index
    %c0_252 = arith.constant 0 : index
    %1742 = vector.load %arg3[%c248, %c0_252] : memref<256x256xf32, #tpu.memory_space<vmem>>, vector<1x256xf32>
    %1743 = vector.broadcast %1741 : vector<8x1xf32> to vector<8x256xf32>
    %1744 = arith.mulf %1743, %2 : vector<8x256xf32>
    %1745 = vector.broadcast %1742 : vector<1x256xf32> to vector<8x256xf32>
    %1746 = arith.addf %1744, %1745 : vector<8x256xf32>
    %1747 = arith.maximumf %1740, %1746 : vector<8x256xf32>
    %1748 = vector.extract_strided_slice %3 {offsets = [0, 249], sizes = [8, 1], strides = [1, 1]} : vector<8x256xf32> to vector<8x1xf32>
    %c249 = arith.constant 249 : index
    %c0_253 = arith.constant 0 : index
    %1749 = vector.load %arg3[%c249, %c0_253] : memref<256x256xf32, #tpu.memory_space<vmem>>, vector<1x256xf32>
    %1750 = vector.broadcast %1748 : vector<8x1xf32> to vector<8x256xf32>
    %1751 = arith.mulf %1750, %2 : vector<8x256xf32>
    %1752 = vector.broadcast %1749 : vector<1x256xf32> to vector<8x256xf32>
    %1753 = arith.addf %1751, %1752 : vector<8x256xf32>
    %1754 = arith.maximumf %1747, %1753 : vector<8x256xf32>
    %1755 = vector.extract_strided_slice %3 {offsets = [0, 250], sizes = [8, 1], strides = [1, 1]} : vector<8x256xf32> to vector<8x1xf32>
    %c250 = arith.constant 250 : index
    %c0_254 = arith.constant 0 : index
    %1756 = vector.load %arg3[%c250, %c0_254] : memref<256x256xf32, #tpu.memory_space<vmem>>, vector<1x256xf32>
    %1757 = vector.broadcast %1755 : vector<8x1xf32> to vector<8x256xf32>
    %1758 = arith.mulf %1757, %2 : vector<8x256xf32>
    %1759 = vector.broadcast %1756 : vector<1x256xf32> to vector<8x256xf32>
    %1760 = arith.addf %1758, %1759 : vector<8x256xf32>
    %1761 = arith.maximumf %1754, %1760 : vector<8x256xf32>
    %1762 = vector.extract_strided_slice %3 {offsets = [0, 251], sizes = [8, 1], strides = [1, 1]} : vector<8x256xf32> to vector<8x1xf32>
    %c251 = arith.constant 251 : index
    %c0_255 = arith.constant 0 : index
    %1763 = vector.load %arg3[%c251, %c0_255] : memref<256x256xf32, #tpu.memory_space<vmem>>, vector<1x256xf32>
    %1764 = vector.broadcast %1762 : vector<8x1xf32> to vector<8x256xf32>
    %1765 = arith.mulf %1764, %2 : vector<8x256xf32>
    %1766 = vector.broadcast %1763 : vector<1x256xf32> to vector<8x256xf32>
    %1767 = arith.addf %1765, %1766 : vector<8x256xf32>
    %1768 = arith.maximumf %1761, %1767 : vector<8x256xf32>
    %1769 = vector.extract_strided_slice %3 {offsets = [0, 252], sizes = [8, 1], strides = [1, 1]} : vector<8x256xf32> to vector<8x1xf32>
    %c252 = arith.constant 252 : index
    %c0_256 = arith.constant 0 : index
    %1770 = vector.load %arg3[%c252, %c0_256] : memref<256x256xf32, #tpu.memory_space<vmem>>, vector<1x256xf32>
    %1771 = vector.broadcast %1769 : vector<8x1xf32> to vector<8x256xf32>
    %1772 = arith.mulf %1771, %2 : vector<8x256xf32>
    %1773 = vector.broadcast %1770 : vector<1x256xf32> to vector<8x256xf32>
    %1774 = arith.addf %1772, %1773 : vector<8x256xf32>
    %1775 = arith.maximumf %1768, %1774 : vector<8x256xf32>
    %1776 = vector.extract_strided_slice %3 {offsets = [0, 253], sizes = [8, 1], strides = [1, 1]} : vector<8x256xf32> to vector<8x1xf32>
    %c253 = arith.constant 253 : index
    %c0_257 = arith.constant 0 : index
    %1777 = vector.load %arg3[%c253, %c0_257] : memref<256x256xf32, #tpu.memory_space<vmem>>, vector<1x256xf32>
    %1778 = vector.broadcast %1776 : vector<8x1xf32> to vector<8x256xf32>
    %1779 = arith.mulf %1778, %2 : vector<8x256xf32>
    %1780 = vector.broadcast %1777 : vector<1x256xf32> to vector<8x256xf32>
    %1781 = arith.addf %1779, %1780 : vector<8x256xf32>
    %1782 = arith.maximumf %1775, %1781 : vector<8x256xf32>
    %1783 = vector.extract_strided_slice %3 {offsets = [0, 254], sizes = [8, 1], strides = [1, 1]} : vector<8x256xf32> to vector<8x1xf32>
    %c254 = arith.constant 254 : index
    %c0_258 = arith.constant 0 : index
    %1784 = vector.load %arg3[%c254, %c0_258] : memref<256x256xf32, #tpu.memory_space<vmem>>, vector<1x256xf32>
    %1785 = vector.broadcast %1783 : vector<8x1xf32> to vector<8x256xf32>
    %1786 = arith.mulf %1785, %2 : vector<8x256xf32>
    %1787 = vector.broadcast %1784 : vector<1x256xf32> to vector<8x256xf32>
    %1788 = arith.addf %1786, %1787 : vector<8x256xf32>
    %1789 = arith.maximumf %1782, %1788 : vector<8x256xf32>
    %1790 = vector.extract_strided_slice %3 {offsets = [0, 255], sizes = [8, 1], strides = [1, 1]} : vector<8x256xf32> to vector<8x1xf32>
    %c255 = arith.constant 255 : index
    %c0_259 = arith.constant 0 : index
    %1791 = vector.load %arg3[%c255, %c0_259] : memref<256x256xf32, #tpu.memory_space<vmem>>, vector<1x256xf32>
    %1792 = vector.broadcast %1790 : vector<8x1xf32> to vector<8x256xf32>
    %1793 = arith.mulf %1792, %2 : vector<8x256xf32>
    %1794 = vector.broadcast %1791 : vector<1x256xf32> to vector<8x256xf32>
    %1795 = arith.addf %1793, %1794 : vector<8x256xf32>
    %1796 = arith.maximumf %1789, %1795 : vector<8x256xf32>
    %c0_260 = arith.constant 0 : index
    %c0_261 = arith.constant 0 : index
    %1797 = vector.load %arg5[%c0_260, %c0_261] : memref<8x256xf32, #tpu.memory_space<vmem>>, vector<8x256xf32>
    tpu.vector_store %arg5[%c0_260, %c0_261], %1796 {strides = array<i32>} : memref<8x256xf32, #tpu.memory_space<vmem>>, vector<8x256xf32>,
    return
  }
  func.func @transform_0(%arg0: i32, %arg1: i32) -> (i32, i32) {
    %c0_i32 = arith.constant 0 : i32
    %c0_i32_0 = arith.constant 0 : i32
    return %arg0, %c0_i32 : i32, i32
  }
  func.func @transform_1(%arg0: i32, %arg1: i32) -> (i32, i32) {
    %c0_i32 = arith.constant 0 : i32
    %c0_i32_0 = arith.constant 0 : i32
    return %c0_i32, %arg1 : i32, i32
  }
  func.func @transform_2(%arg0: i32, %arg1: i32) -> (i32, i32) {
    %c0_i32 = arith.constant 0 : i32
    %c0_i32_0 = arith.constant 0 : i32
    return %c0_i32, %arg1 : i32, i32
  }
  func.func @transform_3(%arg0: i32, %arg1: i32) -> (i32, i32) {
    %c0_i32 = arith.constant 0 : i32
    return %arg0, %arg1 : i32, i32
  }
}

</mosaic_0001>

<bundles_post_ra>
// kernel: scaled_maxplus.1
= control target key start
LH: loop header
LB: loop body
LE: loop exit
PB: predicated region body
PF: predicated region fallthrough
CT: control target
= control target key end

     0   :  { %v6602_v1 = vmov 2   ;;  %v6603_v2 = vmov 0   ;;  %s9116_s0 = inlined_call_operand.vmem [shape: f32[8,256], index: 0, kind: input, shape index: {}]   ;;  %s9117_s1 = inlined_call_operand.vmem [shape: f32[256,256], index: 1, kind: input, shape index: {}]   ;;  %s9118_s2 = inlined_call_operand.vmem [shape: f32[1,256], index: 2, kind: input, shape index: {}]   ;;  %s9119_s3 = inlined_call_operand.hbm [shape: f32[8,256], index: 3, kind: output, shape index: {}]  }
   0x1   :  { %v6754_v0 = vld [vmem:[%s9116_s0] sm:$0xff]  ;;  %6318 = vset.pattern.permute.xlu1 %v6602_v1  ;;  %6316 = vset.pattern.permute.xlu0 %v6603_v2 }
   0x2   :  { %76 = vperm.xlu1 %6318, %v6754_v0   ;;  %32 = vperm.xlu0 %6316, %v6754_v0  }
   0x3   :  { %8 = vsyncpa [#allocation3], 0  ;;  %v6604_v3 = vmov 3   ;;  %v6605_v4 = vmov 1   ;;  %v6606_v5 = vmov 4   ;;  %v6607_v6 = vmov 5  }
   0x4   :  { %v6608_v7 = vmov 6   ;;  %v9181_v8 = vmov 8   ;;  %v9184_v9 = vmov 7   ;;  %v9175_v10 = vmov 11   ;;  %v15_v54 = vld [vmem:[%s9118_s2] sm:$0x3] }
   0x5   :  { %v6612_v11 = vmov 9   ;;  %v9169_v12 = vmov 14   ;;  %v9178_v13 = vmov 10   ;;  %v9163_v14 = vmov 17  }
   0x6   :  { %6319 = vset.pattern.permute.xlu1 %v6604_v3  ;;  %6317 = vset.pattern.permute.xlu0 %v6605_v4  ;;  %v6616_v15 = vmov 12   ;;  %v9147_v16 = vmov 20   ;;  %v9172_v17 = vmov 13   ;;  %v9145_v18 = vmov 23  }
   0x7   :  { %99 = vperm.xlu1 %6319, %v6754_v0   ;;  %53 = vperm.xlu0 %6317, %v6754_v0   ;;  %v6620_v19 = vmov 15   ;;  %v9142_v20 = vmov 26   ;;  %v9166_v21 = vmov 16   ;;  %v9140_v22 = vmov 29  }
   0x8   :  { %v6624_v23 = vmov 18   ;;  %v9138_v24 = vmov 32   ;;  %v9160_v25 = vmov 19   ;;  %v9136_v26 = vmov 35  }
   0x9   :  { %v6628_v27 = vmov 21   ;;  %v9134_v28 = vmov 38   ;;  %v9146_v29 = vmov 22   ;;  %v9132_v30 = vmov 41  }
   0xa   :  { %v6632_v31 = vmov 24   ;;  %v9131_v32 = vmov 44   ;;  %v9143_v33 = vmov 25   ;;  %v9130_v34 = vmov 47  }
   0xb   :  { %6320 = vset.pattern.permute.xlu1 %v6606_v5  ;;  %6321 = vset.pattern.permute.xlu0 %v6607_v6  ;;  %v6636_v35 = vmov 27   ;;  %v9129_v36 = vmov 50   ;;  %v9141_v37 = vmov 28   ;;  %v9127_v38 = vmov 53  }
   0xc   :  { %122 = vperm.xlu1 %6320, %v6754_v0   ;;  %145 = vperm.xlu0 %6321, %v6754_v0   ;;  %v6640_v39 = vmov 30   ;;  %v9126_v40 = vmov 56   ;;  %v9139_v41 = vmov 31   ;;  %v9125_v42 = vmov 59  }
   0xd   :  { %v6644_v43 = vmov 33   ;;  %v9124_v44 = vmov 62   ;;  %v9137_v45 = vmov 34   ;;  %v9123_v46 = vmov 65  }
   0xe   :  { %v6648_v47 = vmov 36   ;;  %v17_v48 = vlaneseq  ;;  %v9122_v49 = vmov 68   ;;  %v9135_v51 = vmov 37   ;;  %v29_v58 = vld [vmem:[%s9117_s1] ss:$8 sm:$0x3] }
   0xf   :  { %v9121_v52 = vmov 71   ;;  %v6652_v56 = vmov 39   ;;  %v9120_v57 = vmov 74   ;;  %v5933_v63 = vld [vmem:[%s9117_s1 + $0x2] ss:$8 sm:$0x3] }
  0x10   :  { %6322 = vset.pattern.permute.xlu1 %v6608_v7  ;;  %6324 = vset.pattern.permute.xlu0 %v9181_v8  ;;  %v18_v50 = vshrl.u32 %v17_v48, 7  ;;  %v5977_v8 = vld [vmem:[%s9117_s1 + $0x56] ss:$8 sm:$0x3] }
  0x11   :  { %168 = vperm.xlu1 %6322, %v6754_v0   ;;  %214 = vperm.xlu0 %6324, %v6754_v0  }
  0x12   :  { %v6856_v53 = vsub.s32 0, %v18_v50  ;;  %v6861_v55 = vsub.s32 1, %v18_v50 }
  0x14   :  { %v6871_v59 = vrot.slane %v15_v54, %v6856_v53  ;;  %v6874_v61 = vrot.slane %v15_v54, %v6861_v55  ;;  %v41_v50 = vrot.slane %v29_v58, %v6856_v53  ;;  %v9128_v54 = vmov 77  }
  0x15   :  { %6323 = vset.pattern.permute.xlu1 %v9184_v9  ;;  %6327 = vset.pattern.permute.xlu0 %v9175_v10  ;;  %v5971_v10 = vld [vmem:[%s9117_s1 + $0x50] ss:$8 sm:$0x3]  ;;  %v5980_v9 = vld [vmem:[%s9117_s1 + $0x61] ss:$8 sm:$0x3] }
  0x16   :  { %191 = vperm.xlu1 %6323, %v6754_v0   ;;  %283 = vperm.xlu0 %6327, %v6754_v0  }
  0x1a   :  { %6325 = vset.pattern.permute.xlu1 %v6612_v11  ;;  %6330 = vset.pattern.permute.xlu0 %v9169_v12  ;;  %v5965_v12 = vld [vmem:[%s9117_s1 + $0x42] ss:$8 sm:$0x3] }
  0x1b   :  { %237 = vperm.xlu1 %6325, %v6754_v0   ;;  %352 = vperm.xlu0 %6330, %v6754_v0  }
  0x1f   :  { %6326 = vset.pattern.permute.xlu1 %v9178_v13  ;;  %6333 = vset.pattern.permute.xlu0 %v9163_v14  ;;  %v5959_v14 = vld [vmem:[%s9117_s1 + $0x34] ss:$8 sm:$0x3]  ;;  %v5974_v13 = vld [vmem:[%s9117_s1 + $0x53] ss:$8 sm:$0x3] }
  0x20   :  { %260 = vperm.xlu1 %6326, %v6754_v0   ;;  %421 = vperm.xlu0 %6333, %v6754_v0  }
  0x24   :  { %6328 = vset.pattern.permute.xlu1 %v6616_v15  ;;  %6336 = vset.pattern.permute.xlu0 %v9147_v16 }
  0x25   :  { %306 = vperm.xlu1 %6328, %v6754_v0   ;;  %490 = vperm.xlu0 %6336, %v6754_v0  }
  0x29   :  { %6329 = vset.pattern.permute.xlu1 %v9172_v17  ;;  %6339 = vset.pattern.permute.xlu0 %v9145_v18  ;;  %v5968_v17 = vld [vmem:[%s9117_s1 + $0x45] ss:$8 sm:$0x3] }
  0x2a   :  { %329 = vperm.xlu1 %6329, %v6754_v0   ;;  %559 = vperm.xlu0 %6339, %v6754_v0  }
  0x2e   :  { %6331 = vset.pattern.permute.xlu1 %v6620_v19  ;;  %6342 = vset.pattern.permute.xlu0 %v9142_v20 }
  0x2f   :  { %375 = vperm.xlu1 %6331, %v6754_v0   ;;  %628 = vperm.xlu0 %6342, %v6754_v0  }
  0x33   :  { %6332 = vset.pattern.permute.xlu1 %v9166_v21  ;;  %6345 = vset.pattern.permute.xlu0 %v9140_v22  ;;  %v5962_v21 = vld [vmem:[%s9117_s1 + $0x37] ss:$8 sm:$0x3] }
  0x34   :  { %398 = vperm.xlu1 %6332, %v6754_v0   ;;  %697 = vperm.xlu0 %6345, %v6754_v0  }
  0x38   :  { %6334 = vset.pattern.permute.xlu1 %v6624_v23  ;;  %6348 = vset.pattern.permute.xlu0 %v9138_v24 }
  0x39   :  { %444 = vperm.xlu1 %6334, %v6754_v0   ;;  %766 = vperm.xlu0 %6348, %v6754_v0  }
  0x3d   :  { %6335 = vset.pattern.permute.xlu1 %v9160_v25  ;;  %6351 = vset.pattern.permute.xlu0 %v9136_v26  ;;  %v5956_v25 = vld [vmem:[%s9117_s1 + $0x31] ss:$8 sm:$0x3] }
  0x3e   :  { %467 = vperm.xlu1 %6335, %v6754_v0   ;;  %835 = vperm.xlu0 %6351, %v6754_v0  }
  0x42   :  { %6337 = vset.pattern.permute.xlu1 %v6628_v27  ;;  %6354 = vset.pattern.permute.xlu0 %v9134_v28 }
  0x43   :  { %513 = vperm.xlu1 %6337, %v6754_v0   ;;  %904 = vperm.xlu0 %6354, %v6754_v0  }
  0x47   :  { %6338 = vset.pattern.permute.xlu1 %v9146_v29  ;;  %6357 = vset.pattern.permute.xlu0 %v9132_v30  ;;  %v5935_v30 = vld [vmem:[%s9117_s1 + $0x4] ss:$8 sm:$0x3] }
  0x48   :  { %536 = vperm.xlu1 %6338, %v6754_v0   ;;  %973 = vperm.xlu0 %6357, %v6754_v0  }
  0x4c   :  { %6340 = vset.pattern.permute.xlu1 %v6632_v31  ;;  %6360 = vset.pattern.permute.xlu0 %v9131_v32 }
  0x4d   :  { %582 = vperm.xlu1 %6340, %v6754_v0   ;;  %1042 = vperm.xlu0 %6360, %v6754_v0  }
  0x51   :  { %6341 = vset.pattern.permute.xlu1 %v9143_v33  ;;  %6363 = vset.pattern.permute.xlu0 %v9130_v34 }
  0x52   :  { %605 = vperm.xlu1 %6341, %v6754_v0   ;;  %1111 = vperm.xlu0 %6363, %v6754_v0  }
  0x56   :  { %6343 = vset.pattern.permute.xlu1 %v6636_v35  ;;  %6366 = vset.pattern.permute.xlu0 %v9129_v36 }
  0x57   :  { %651 = vperm.xlu1 %6343, %v6754_v0   ;;  %1180 = vperm.xlu0 %6366, %v6754_v0  }
  0x5b   :  { %6344 = vset.pattern.permute.xlu1 %v9141_v37  ;;  %6369 = vset.pattern.permute.xlu0 %v9127_v38 }
  0x5c   :  { %674 = vperm.xlu1 %6344, %v6754_v0   ;;  %1249 = vperm.xlu0 %6369, %v6754_v0  }
  0x60   :  { %6346 = vset.pattern.permute.xlu1 %v6640_v39  ;;  %6372 = vset.pattern.permute.xlu0 %v9126_v40 }
  0x61   :  { %720 = vperm.xlu1 %6346, %v6754_v0   ;;  %1318 = vperm.xlu0 %6372, %v6754_v0  }
  0x65   :  { %6347 = vset.pattern.permute.xlu1 %v9139_v41  ;;  %6375 = vset.pattern.permute.xlu0 %v9125_v42  ;;  %v5934_v42 = vld [vmem:[%s9117_s1 + $0x3] ss:$8 sm:$0x3] }
  0x66   :  { %743 = vperm.xlu1 %6347, %v6754_v0   ;;  %1387 = vperm.xlu0 %6375, %v6754_v0  }
  0x6a   :  { %6349 = vset.pattern.permute.xlu1 %v6644_v43  ;;  %6378 = vset.pattern.permute.xlu0 %v9124_v44  ;;  %v85_v44 = vrot.slane %v5933_v63, %v6856_v53 }
  0x6b   :  { %789 = vperm.xlu1 %6349, %v6754_v0   ;;  %1456 = vperm.xlu0 %6378, %v6754_v0  }
  0x6f   :  { %6350 = vset.pattern.permute.xlu1 %v9137_v45  ;;  %6381 = vset.pattern.permute.xlu0 %v9123_v46  ;;  %v9133_v46 = vmov 40   ;;  %v135_v45 = vrot.slane %v5935_v30, %v6861_v55 }
  0x70   :  { %812 = vperm.xlu1 %6350, %v6754_v0   ;;  %1525 = vperm.xlu0 %6381, %v6754_v0  }
  0x74   :  { %6352 = vset.pattern.permute.xlu1 %v6648_v47  ;;  %6384 = vset.pattern.permute.xlu0 %v9122_v49  ;;  %v45_v49 = vrot.slane %v29_v58, %v6861_v55 }
  0x75   :  { %858 = vperm.xlu1 %6352, %v6754_v0   ;;  %1594 = vperm.xlu0 %6384, %v6754_v0  }
  0x79   :  { %6353 = vset.pattern.permute.xlu1 %v9135_v51  ;;  %6387 = vset.pattern.permute.xlu0 %v9121_v52  ;;  %v5936_v51 = vld [vmem:[%s9117_s1 + $0x5] ss:$8 sm:$0x3] }
  0x7a   :  { %881 = vperm.xlu1 %6353, %v6754_v0   ;;  %1663 = vperm.xlu0 %6387, %v6754_v0   ;;  %v154_v24 = vrot.slane %v5936_v51, %v6856_v53  ;;  %v158_v41 = vrot.slane %v5936_v51, %v6861_v55  ;;  %v5937_v51 = vld [vmem:[%s9117_s1 + $0x6] ss:$8 sm:$0x3] }
  0x7b   :  { %v181_v16 = vrot.slane %v5937_v51, %v6861_v55 }
  0x7e   :  { %6355 = vset.pattern.permute.xlu1 %v6652_v56  ;;  %6390 = vset.pattern.permute.xlu0 %v9120_v57  ;;  %v5932_v57 = vld [vmem:[%s9117_s1 + $0x1] ss:$8 sm:$0x3] }
  0x7f   :  { %927 = vperm.xlu1 %6355, %v6754_v0   ;;  %1732 = vperm.xlu0 %6390, %v6754_v0   ;;  %v62_v40 = vrot.slane %v5932_v57, %v6856_v53 }
  0x81   :  { %v77_v60 = vpop.permute.xlu1 %76  ;;  %v33_v62 = vpop.permute.xlu0 %32 }
  0x82   :  { %v35_v48 = vmul.f32 %v33_v62, %v6871_v59  ;;  %v36_v52 = vmul.f32 %v33_v62, %v6874_v61  ;;  %v66_v62 = vrot.slane %v5932_v57, %v6861_v55  ;;  %v79_v58 = vmul.f32 %v77_v60, %v6871_v59 }
  0x83   :  { %6356 = vset.pattern.permute.xlu1 %v9133_v46  ;;  %6393 = vset.pattern.permute.xlu0 %v9128_v54  ;;  %v80_v38 = vmul.f32 %v77_v60, %v6874_v61  ;;  %v89_v54 = vrot.slane %v5933_v63, %v6861_v55  ;;  %v108_v60 = vrot.slane %v5934_v42, %v6856_v53 }
  0x84   :  { %950 = vperm.xlu1 %6356, %v6754_v0   ;;  %1801 = vperm.xlu0 %6393, %v6754_v0   ;;  %v48_v36 = vadd.f32 %v41_v50, %v35_v48  ;;  %v49_v46 = vadd.f32 %v45_v49, %v36_v52  ;;  %v112_v63 = vrot.slane %v5934_v42, %v6861_v55  ;;  %v6656_v48 = vmov 42  }
  0x85   :  { %v9144_v42 = vmov 80   ;;  %v92_v22 = vadd.f32 %v85_v44, %v79_v58  ;;  %v93_v37 = vadd.f32 %v89_v54, %v80_v38  ;;  %v9157_v54 = vmov 43  }
  0x86   :  { %v100_v34 = vpop.permute.xlu1 %99  ;;  %v54_v32 = vpop.permute.xlu0 %53 }
  0x87   :  { %v56_v28 = vmul.f32 %v54_v32, %v6871_v59  ;;  %v57_v57 = vmul.f32 %v54_v32, %v6874_v61  ;;  %v102_v50 = vmul.f32 %v100_v34, %v6871_v59  ;;  %v103_v26 = vmul.f32 %v100_v34, %v6874_v61 }
  0x88   :  { %6358 = vset.pattern.permute.xlu1 %v6656_v48  ;;  %v131_v32 = vrot.slane %v5935_v30, %v6856_v53  ;;  %6396 = vset.pattern.permute.xlu0 %v9144_v42  ;;  %v177_v42 = vrot.slane %v5937_v51, %v6856_v53 }
  0x89   :  { %v69_v49 = vadd.f32 %v62_v40, %v56_v28  ;;  %v70_v52 = vadd.f32 %v66_v62, %v57_v57  ;;  %996 = vperm.xlu1 %6358, %v6754_v0   ;;  %1870 = vperm.xlu0 %6396, %v6754_v0   ;;  %v115_v44 = vadd.f32 %v108_v60, %v102_v50  ;;  %v6660_v60 = vmov 45  }
  0x8a   :  { %v116_v38 = vadd.f32 %v112_v63, %v103_v26 }
  0x8b   :  { %v71_v20 = vmax.f32 %v48_v36, %v69_v49  ;;  %v72_v33 = vmax.f32 %v49_v46, %v70_v52  ;;  %v123_v34 = vpop.permute.xlu1 %122  ;;  %v146_v28 = vpop.permute.xlu0 %145 }
  0x8c   :  { %v125_v40 = vmul.f32 %v123_v34, %v6871_v59  ;;  %v126_v62 = vmul.f32 %v123_v34, %v6874_v61  ;;  %v148_v30 = vmul.f32 %v146_v28, %v6871_v59  ;;  %v149_v57 = vmul.f32 %v146_v28, %v6874_v61 }
  0x8d   :  { %v94_v36 = vmax.f32 %v71_v20, %v92_v22  ;;  %v95_v46 = vmax.f32 %v72_v33, %v93_v37  ;;  %6359 = vset.pattern.permute.xlu1 %v9157_v54  ;;  %v5938_v20 = vld [vmem:[%s9117_s1 + $0x7] ss:$8 sm:$0x3]  ;;  %v5953_v54 = vld [vmem:[%s9117_s1 + $0x26] ss:$8 sm:$0x3] }
  0x8e   :  { %v138_v58 = vadd.f32 %v131_v32, %v125_v40  ;;  %v139_v49 = vadd.f32 %v135_v45, %v126_v62  ;;  %1019 = vperm.xlu1 %6359, %v6754_v0   ;;  %v161_v28 = vadd.f32 %v154_v24, %v148_v30  ;;  %v162_v18 = vadd.f32 %v158_v41, %v149_v57  ;;  %v5939_v24 = vld [vmem:[%s9117_s1 + $0x10] ss:$8 sm:$0x3] }
  0x8f   :  { %v117_v52 = vmax.f32 %v94_v36, %v115_v44  ;;  %v118_v34 = vmax.f32 %v95_v46, %v116_v38  ;;  %v9150_v45 = vmov 83   ;;  %v200_v41 = vrot.slane %v5938_v20, %v6856_v53 }
  0x90   :  { %v169_v29 = vpop.permute.xlu1 %168  ;;  %6399 = vset.pattern.permute.xlu0 %v9150_v45  ;;  %v204_v63 = vrot.slane %v5938_v20, %v6861_v55  ;;  %v215_v50 = vpop.permute.xlu0 %214  ;;  %v223_v57 = vrot.slane %v5939_v24, %v6856_v53  ;;  %v227_v51 = vrot.slane %v5939_v24, %v6861_v55  ;;  %v5941_v24 = vld [vmem:[%s9117_s1 + $0x12] ss:$8 sm:$0x3] }
  0x91   :  { %v140_v22 = vmax.f32 %v117_v52, %v138_v58  ;;  %v141_v26 = vmax.f32 %v118_v34, %v139_v49  ;;  %v171_v33 = vmul.f32 %v169_v29, %v6871_v59  ;;  %v172_v37 = vmul.f32 %v169_v29, %v6874_v61  ;;  %1939 = vperm.xlu0 %6399, %v6754_v0   ;;  %v5940_v58 = vld [vmem:[%s9117_s1 + $0x11] ss:$8 sm:$0x3] }
  0x92   :  { %6361 = vset.pattern.permute.xlu1 %v6660_v60  ;;  %v217_v36 = vmul.f32 %v215_v50, %v6871_v59  ;;  %v218_v46 = vmul.f32 %v215_v50, %v6874_v61  ;;  %v246_v34 = vrot.slane %v5940_v58, %v6856_v53 }
  0x93   :  { %1065 = vperm.xlu1 %6361, %v6754_v0   ;;  %v163_v29 = vmax.f32 %v140_v22, %v161_v28  ;;  %v164_v32 = vmax.f32 %v141_v26, %v162_v18  ;;  %v184_v40 = vadd.f32 %v177_v42, %v171_v33  ;;  %v185_v62 = vadd.f32 %v181_v16, %v172_v37 }
  0x94   :  { %v9154_v18 = vmov 46   ;;  %v250_v28 = vrot.slane %v5940_v58, %v6861_v55  ;;  %v230_v26 = vadd.f32 %v223_v57, %v217_v36  ;;  %v231_v33 = vadd.f32 %v227_v51, %v218_v46 }
  0x95   :  { %v192_v30 = vpop.permute.xlu1 %191  ;;  %v186_v16 = vmax.f32 %v163_v29, %v184_v40  ;;  %v187_v42 = vmax.f32 %v164_v32, %v185_v62  ;;  %v5942_v29 = vld [vmem:[%s9117_s1 + $0x13] ss:$8 sm:$0x3]  ;;  %v269_v32 = vrot.slane %v5941_v24, %v6856_v53  ;;  %v273_v40 = vrot.slane %v5941_v24, %v6861_v55  ;;  %v284_v62 = vpop.permute.xlu0 %283 }
  0x96   :  { %v194_v44 = vmul.f32 %v192_v30, %v6871_v59  ;;  %v195_v38 = vmul.f32 %v192_v30, %v6874_v61  ;;  %v292_v46 = vrot.slane %v5942_v29, %v6856_v53  ;;  %v296_v58 = vrot.slane %v5942_v29, %v6861_v55 }
  0x97   :  { %6362 = vset.pattern.permute.xlu1 %v9154_v18  ;;  %v5950_v18 = vld [vmem:[%s9117_s1 + $0x23] ss:$8 sm:$0x3] }
  0x98   :  { %v207_v49 = vadd.f32 %v200_v41, %v194_v44  ;;  %v208_v52 = vadd.f32 %v204_v63, %v195_v38  ;;  %1088 = vperm.xlu1 %6362, %v6754_v0   ;;  %v6662_v63 = vmov 48   ;;  %v9148_v38 = vmov 86  }
  0x99   :  { %6402 = vset.pattern.permute.xlu0 %v9148_v38  ;;  %v5944_v38 = vld [vmem:[%s9117_s1 + $0x15] ss:$8 sm:$0x3] }
  0x9a   :  { %v209_v20 = vmax.f32 %v186_v16, %v207_v49  ;;  %v210_v22 = vmax.f32 %v187_v42, %v208_v52  ;;  %v238_v37 = vpop.permute.xlu1 %237  ;;  %2008 = vperm.xlu0 %6402, %v6754_v0   ;;  %v286_v49 = vmul.f32 %v284_v62, %v6871_v59  ;;  %v287_v52 = vmul.f32 %v284_v62, %v6874_v61 }
  0x9b   :  { %v240_v50 = vmul.f32 %v238_v37, %v6871_v59  ;;  %v241_v41 = vmul.f32 %v238_v37, %v6874_v61 }
  0x9c   :  { %6364 = vset.pattern.permute.xlu1 %v6662_v63  ;;  %v232_v30 = vmax.f32 %v209_v20, %v230_v26  ;;  %v233_v57 = vmax.f32 %v210_v22, %v231_v33  ;;  %v299_v29 = vadd.f32 %v292_v46, %v286_v49  ;;  %v300_v62 = vadd.f32 %v296_v58, %v287_v52  ;;  %v353_v46 = vpop.permute.xlu0 %352 }
  0x9d   :  { %1134 = vperm.xlu1 %6364, %v6754_v0   ;;  %v253_v51 = vadd.f32 %v246_v34, %v240_v50  ;;  %v254_v44 = vadd.f32 %v250_v28, %v241_v41  ;;  %v5943_v34 = vld [vmem:[%s9117_s1 + $0x14] ss:$8 sm:$0x3]  ;;  %v9151_v28 = vmov 49   ;;  %v9149_v52 = vmov 89  }
  0x9e   :  { %v315_v37 = vrot.slane %v5943_v34, %v6856_v53  ;;  %v319_v24 = vrot.slane %v5943_v34, %v6861_v55  ;;  %6405 = vset.pattern.permute.xlu0 %v9149_v52 }
  0x9f   :  { %v261_v36 = vpop.permute.xlu1 %260  ;;  %v255_v20 = vmax.f32 %v232_v30, %v253_v51  ;;  %v256_v22 = vmax.f32 %v233_v57, %v254_v44  ;;  %v5945_v57 = vld [vmem:[%s9117_s1 + $0x16] ss:$8 sm:$0x3]  ;;  %v338_v51 = vrot.slane %v5944_v38, %v6856_v53  ;;  %v342_v44 = vrot.slane %v5944_v38, %v6861_v55  ;;  %2077 = vperm.xlu0 %6405, %v6754_v0  }
  0xa0   :  { %v263_v16 = vmul.f32 %v261_v36, %v6871_v59  ;;  %v264_v42 = vmul.f32 %v261_v36, %v6874_v61  ;;  %v355_v38 = vmul.f32 %v353_v46, %v6871_v59 }
  0xa1   :  { %6365 = vset.pattern.permute.xlu1 %v9151_v28  ;;  %v5947_v28 = vld [vmem:[%s9117_s1 + $0x20] ss:$8 sm:$0x3] }
  0xa2   :  { %v276_v26 = vadd.f32 %v269_v32, %v263_v16  ;;  %v277_v33 = vadd.f32 %v273_v40, %v264_v42  ;;  %1157 = vperm.xlu1 %6365, %v6754_v0   ;;  %v6665_v40 = vmov 51  }
  0xa4   :  { %v278_v50 = vmax.f32 %v255_v20, %v276_v26  ;;  %v279_v41 = vmax.f32 %v256_v22, %v277_v33  ;;  %v307_v36 = vpop.permute.xlu1 %306  ;;  %v361_v20 = vrot.slane %v5945_v57, %v6856_v53  ;;  %v365_v22 = vrot.slane %v5945_v57, %v6861_v55 }
  0xa5   :  { %v309_v30 = vmul.f32 %v307_v36, %v6871_v59  ;;  %v310_v32 = vmul.f32 %v307_v36, %v6874_v61 }
  0xa6   :  { %6367 = vset.pattern.permute.xlu1 %v6665_v40  ;;  %v301_v58 = vmax.f32 %v278_v50, %v299_v29  ;;  %v302_v16 = vmax.f32 %v279_v41, %v300_v62  ;;  %v356_v50 = vmul.f32 %v353_v46, %v6874_v61  ;;  %v368_v46 = vadd.f32 %v361_v20, %v355_v38  ;;  %v422_v20 = vpop.permute.xlu0 %421 }
  0xa7   :  { %1203 = vperm.xlu1 %6367, %v6754_v0   ;;  %v322_v42 = vadd.f32 %v315_v37, %v309_v30  ;;  %v323_v49 = vadd.f32 %v319_v24, %v310_v32  ;;  %v5946_v37 = vld [vmem:[%s9117_s1 + $0x17] ss:$8 sm:$0x3]  ;;  %v9153_v24 = vmov 52  }
  0xa8   :  { %v384_v30 = vrot.slane %v5946_v37, %v6856_v53  ;;  %v388_v32 = vrot.slane %v5946_v37, %v6861_v55  ;;  %v369_v52 = vadd.f32 %v365_v22, %v356_v50  ;;  %v9152_v50 = vmov 92  }
  0xa9   :  { %v330_v34 = vpop.permute.xlu1 %329  ;;  %v324_v41 = vmax.f32 %v301_v58, %v322_v42  ;;  %v325_v29 = vmax.f32 %v302_v16, %v323_v49  ;;  %v5948_v16 = vld [vmem:[%s9117_s1 + $0x21] ss:$8 sm:$0x3]  ;;  %v407_v42 = vrot.slane %v5947_v28, %v6856_v53  ;;  %v411_v49 = vrot.slane %v5947_v28, %v6861_v55  ;;  %6408 = vset.pattern.permute.xlu0 %v9152_v50 }
  0xaa   :  { %v332_v26 = vmul.f32 %v330_v34, %v6871_v59  ;;  %v333_v33 = vmul.f32 %v330_v34, %v6874_v61  ;;  %v430_v37 = vrot.slane %v5948_v16, %v6856_v53  ;;  %2146 = vperm.xlu0 %6408, %v6754_v0   ;;  %v424_v28 = vmul.f32 %v422_v20, %v6871_v59 }
  0xab   :  { %6368 = vset.pattern.permute.xlu1 %v9153_v24 }
  0xac   :  { %v345_v62 = vadd.f32 %v338_v51, %v332_v26  ;;  %v346_v36 = vadd.f32 %v342_v44, %v333_v33  ;;  %1226 = vperm.xlu1 %6368, %v6754_v0   ;;  %v6668_v44 = vmov 54  }
  0xae   :  { %v347_v57 = vmax.f32 %v324_v41, %v345_v62  ;;  %v348_v34 = vmax.f32 %v325_v29, %v346_v36  ;;  %v376_v45 = vpop.permute.xlu1 %375  ;;  %v434_v41 = vrot.slane %v5948_v16, %v6861_v55  ;;  %v5949_v36 = vld [vmem:[%s9117_s1 + $0x22] ss:$8 sm:$0x3] }
  0xaf   :  { %v378_v58 = vmul.f32 %v376_v45, %v6871_v59  ;;  %v379_v51 = vmul.f32 %v376_v45, %v6874_v61 }
  0xb0   :  { %6370 = vset.pattern.permute.xlu1 %v6668_v44  ;;  %v370_v22 = vmax.f32 %v347_v57, %v368_v46  ;;  %v371_v26 = vmax.f32 %v348_v34, %v369_v52  ;;  %v425_v52 = vmul.f32 %v422_v20, %v6874_v61  ;;  %v437_v20 = vadd.f32 %v430_v37, %v424_v28  ;;  %v491_v37 = vpop.permute.xlu0 %490 }
  0xb1   :  { %1272 = vperm.xlu1 %6370, %v6754_v0   ;;  %v391_v33 = vadd.f32 %v384_v30, %v378_v58  ;;  %v392_v38 = vadd.f32 %v388_v32, %v379_v51  ;;  %v9156_v30 = vmov 55   ;;  %v453_v58 = vrot.slane %v5949_v36, %v6856_v53 }
  0xb2   :  { %v457_v51 = vrot.slane %v5949_v36, %v6861_v55  ;;  %v438_v50 = vadd.f32 %v434_v41, %v425_v52  ;;  %v9155_v52 = vmov 95  }
  0xb3   :  { %v399_v45 = vpop.permute.xlu1 %398  ;;  %v393_v32 = vmax.f32 %v370_v22, %v391_v33  ;;  %v394_v57 = vmax.f32 %v371_v26, %v392_v38  ;;  %v5951_v26 = vld [vmem:[%s9117_s1 + $0x24] ss:$8 sm:$0x3]  ;;  %v476_v33 = vrot.slane %v5950_v18, %v6856_v53  ;;  %v480_v38 = vrot.slane %v5950_v18, %v6861_v55  ;;  %6411 = vset.pattern.permute.xlu0 %v9155_v52 }
  0xb4   :  { %v401_v29 = vmul.f32 %v399_v45, %v6871_v59  ;;  %v402_v62 = vmul.f32 %v399_v45, %v6874_v61  ;;  %v499_v36 = vrot.slane %v5951_v26, %v6856_v53  ;;  %2215 = vperm.xlu0 %6411, %v6754_v0   ;;  %v493_v18 = vmul.f32 %v491_v37, %v6871_v59 }
  0xb5   :  { %6371 = vset.pattern.permute.xlu1 %v9156_v30 }
  0xb6   :  { %v414_v34 = vadd.f32 %v407_v42, %v401_v29  ;;  %v415_v46 = vadd.f32 %v411_v49, %v402_v62  ;;  %1295 = vperm.xlu1 %6371, %v6754_v0   ;;  %v6671_v49 = vmov 57  }
  0xb8   :  { %v416_v16 = vmax.f32 %v393_v32, %v414_v34  ;;  %v417_v45 = vmax.f32 %v394_v57, %v415_v46  ;;  %v445_v24 = vpop.permute.xlu1 %444  ;;  %v503_v32 = vrot.slane %v5951_v26, %v6861_v55  ;;  %v5952_v46 = vld [vmem:[%s9117_s1 + $0x25] ss:$8 sm:$0x3] }
  0xb9   :  { %v447_v22 = vmul.f32 %v445_v24, %v6871_v59  ;;  %v448_v42 = vmul.f32 %v445_v24, %v6874_v61 }
  0xba   :  { %6373 = vset.pattern.permute.xlu1 %v6671_v49  ;;  %v439_v41 = vmax.f32 %v416_v16, %v437_v20  ;;  %v440_v29 = vmax.f32 %v417_v45, %v438_v50  ;;  %v494_v50 = vmul.f32 %v491_v37, %v6874_v61  ;;  %v506_v37 = vadd.f32 %v499_v36, %v493_v18  ;;  %v560_v36 = vpop.permute.xlu0 %559 }
  0xbb   :  { %1341 = vperm.xlu1 %6373, %v6754_v0   ;;  %v460_v62 = vadd.f32 %v453_v58, %v447_v22  ;;  %v461_v28 = vadd.f32 %v457_v51, %v448_v42  ;;  %v9159_v58 = vmov 58   ;;  %v522_v22 = vrot.slane %v5952_v46, %v6856_v53 }
  0xbc   :  { %v526_v42 = vrot.slane %v5952_v46, %v6861_v55  ;;  %v507_v52 = vadd.f32 %v503_v32, %v494_v50  ;;  %v9158_v50 = vmov 98  }
  0xbd   :  { %v468_v24 = vpop.permute.xlu1 %467  ;;  %v462_v51 = vmax.f32 %v439_v41, %v460_v62  ;;  %v463_v16 = vmax.f32 %v440_v29, %v461_v28  ;;  %v5954_v29 = vld [vmem:[%s9117_s1 + $0x27] ss:$8 sm:$0x3]  ;;  %v545_v62 = vrot.slane %v5953_v54, %v6856_v53  ;;  %v549_v28 = vrot.slane %v5953_v54, %v6861_v55  ;;  %6414 = vset.pattern.permute.xlu0 %v9158_v50 }
  0xbe   :  { %v470_v57 = vmul.f32 %v468_v24, %v6871_v59  ;;  %v471_v34 = vmul.f32 %v468_v24, %v6874_v61  ;;  %v568_v46 = vrot.slane %v5954_v29, %v6856_v53  ;;  %2284 = vperm.xlu0 %6414, %v6754_v0   ;;  %v562_v54 = vmul.f32 %v560_v36, %v6871_v59 }
  0xbf   :  { %6374 = vset.pattern.permute.xlu1 %v9159_v58 }
  0xc0   :  { %v483_v45 = vadd.f32 %v476_v33, %v470_v57  ;;  %v484_v20 = vadd.f32 %v480_v38, %v471_v34  ;;  %1364 = vperm.xlu1 %6374, %v6754_v0   ;;  %v6674_v38 = vmov 60  }
  0xc2   :  { %v485_v26 = vmax.f32 %v462_v51, %v483_v45  ;;  %v486_v24 = vmax.f32 %v463_v16, %v484_v20  ;;  %v514_v30 = vpop.permute.xlu1 %513  ;;  %v572_v51 = vrot.slane %v5954_v29, %v6861_v55  ;;  %v5955_v20 = vld [vmem:[%s9117_s1 + $0x30] ss:$8 sm:$0x3] }
  0xc3   :  { %v516_v41 = vmul.f32 %v514_v30, %v6871_v59  ;;  %v517_v33 = vmul.f32 %v514_v30, %v6874_v61 }
  0xc4   :  { %6376 = vset.pattern.permute.xlu1 %v6674_v38  ;;  %v508_v32 = vmax.f32 %v485_v26, %v506_v37  ;;  %v509_v57 = vmax.f32 %v486_v24, %v507_v52  ;;  %v563_v52 = vmul.f32 %v560_v36, %v6874_v61  ;;  %v575_v36 = vadd.f32 %v568_v46, %v562_v54  ;;  %v629_v46 = vpop.permute.xlu0 %628 }
  0xc5   :  { %1410 = vperm.xlu1 %6376, %v6754_v0   ;;  %v529_v34 = vadd.f32 %v522_v22, %v516_v41  ;;  %v530_v18 = vadd.f32 %v526_v42, %v517_v33  ;;  %v9162_v22 = vmov 61   ;;  %v591_v41 = vrot.slane %v5955_v20, %v6856_v53 }
  0xc6   :  { %v595_v33 = vrot.slane %v5955_v20, %v6861_v55  ;;  %v576_v50 = vadd.f32 %v572_v51, %v563_v52  ;;  %v9161_v52 = vmov 101  }
  0xc7   :  { %v537_v30 = vpop.permute.xlu1 %536  ;;  %v531_v42 = vmax.f32 %v508_v32, %v529_v34  ;;  %v532_v26 = vmax.f32 %v509_v57, %v530_v18  ;;  %v5957_v57 = vld [vmem:[%s9117_s1 + $0x32] ss:$8 sm:$0x3]  ;;  %v614_v34 = vrot.slane %v5956_v25, %v6856_v53  ;;  %v618_v18 = vrot.slane %v5956_v25, %v6861_v55  ;;  %6417 = vset.pattern.permute.xlu0 %v9161_v52 }
  0xc8   :  { %v539_v16 = vmul.f32 %v537_v30, %v6871_v59  ;;  %v540_v45 = vmul.f32 %v537_v30, %v6874_v61  ;;  %v637_v20 = vrot.slane %v5957_v57, %v6856_v53  ;;  %2353 = vperm.xlu0 %6417, %v6754_v0   ;;  %v631_v25 = vmul.f32 %v629_v46, %v6871_v59 }
  0xc9   :  { %6377 = vset.pattern.permute.xlu1 %v9162_v22 }
  0xca   :  { %v552_v24 = vadd.f32 %v545_v62, %v539_v16  ;;  %v553_v37 = vadd.f32 %v549_v28, %v540_v45  ;;  %1433 = vperm.xlu1 %6377, %v6754_v0   ;;  %v6677_v28 = vmov 63  }
  0xcc   :  { %v554_v29 = vmax.f32 %v531_v42, %v552_v24  ;;  %v555_v30 = vmax.f32 %v532_v26, %v553_v37  ;;  %v583_v58 = vpop.permute.xlu1 %582  ;;  %v641_v42 = vrot.slane %v5957_v57, %v6861_v55  ;;  %v5958_v37 = vld [vmem:[%s9117_s1 + $0x33] ss:$8 sm:$0x3] }
  0xcd   :  { %v585_v32 = vmul.f32 %v583_v58, %v6871_v59  ;;  %v586_v62 = vmul.f32 %v583_v58, %v6874_v61 }
  0xce   :  { %6379 = vset.pattern.permute.xlu1 %v6677_v28  ;;  %v577_v51 = vmax.f32 %v554_v29, %v575_v36  ;;  %v578_v16 = vmax.f32 %v555_v30, %v576_v50  ;;  %v632_v50 = vmul.f32 %v629_v46, %v6874_v61  ;;  %v644_v46 = vadd.f32 %v637_v20, %v631_v25  ;;  %v698_v20 = vpop.permute.xlu0 %697 }
  0xcf   :  { %1479 = vperm.xlu1 %6379, %v6754_v0   ;;  %v598_v45 = vadd.f32 %v591_v41, %v585_v32  ;;  %v599_v54 = vadd.f32 %v595_v33, %v586_v62  ;;  %v9165_v41 = vmov 64   ;;  %v660_v32 = vrot.slane %v5958_v37, %v6856_v53 }
  0xd0   :  { %v664_v62 = vrot.slane %v5958_v37, %v6861_v55  ;;  %v645_v52 = vadd.f32 %v641_v42, %v632_v50  ;;  %v9164_v25 = vmov 104  }
  0xd1   :  { %v606_v58 = vpop.permute.xlu1 %605  ;;  %v600_v33 = vmax.f32 %v577_v51, %v598_v45  ;;  %v601_v29 = vmax.f32 %v578_v16, %v599_v54  ;;  %v7131_v16 = vld [vmem:[%s9116_s0] sm:$0xff]  ;;  %v683_v45 = vrot.slane %v5959_v14, %v6856_v53  ;;  %v687_v54 = vrot.slane %v5959_v14, %v6861_v55  ;;  %6420 = vset.pattern.permute.xlu0 %v9164_v25 }
  0xd2   :  { %v608_v26 = vmul.f32 %v606_v58, %v6871_v59  ;;  %v609_v24 = vmul.f32 %v606_v58, %v6874_v61  ;;  %2422 = vperm.xlu0 %6420, %v7131_v16   ;;  %v700_v14 = vmul.f32 %v698_v20, %v6871_v59 }
  0xd3   :  { %6380 = vset.pattern.permute.xlu1 %v9165_v41 }
  0xd4   :  { %v621_v30 = vadd.f32 %v614_v34, %v608_v26  ;;  %v622_v36 = vadd.f32 %v618_v18, %v609_v24  ;;  %1502 = vperm.xlu1 %6380, %v6754_v0   ;;  %v6680_v18 = vmov 66   ;;  %v5960_v0 = vld [vmem:[%s9117_s1 + $0x35] ss:$8 sm:$0x3] }
  0xd5   :  { %v706_v37 = vrot.slane %v5960_v0, %v6856_v53 }
  0xd6   :  { %v623_v57 = vmax.f32 %v600_v33, %v621_v30  ;;  %v624_v58 = vmax.f32 %v601_v29, %v622_v36  ;;  %v652_v22 = vpop.permute.xlu1 %651  ;;  %v710_v33 = vrot.slane %v5960_v0, %v6861_v55  ;;  %v5961_v36 = vld [vmem:[%s9117_s1 + $0x36] ss:$8 sm:$0x3] }
  0xd7   :  { %v654_v51 = vmul.f32 %v652_v22, %v6871_v59  ;;  %v655_v34 = vmul.f32 %v652_v22, %v6874_v61 }
  0xd8   :  { %6382 = vset.pattern.permute.xlu1 %v6680_v18  ;;  %v646_v22 = vmax.f32 %v623_v57, %v644_v46  ;;  %v647_v42 = vmax.f32 %v624_v58, %v645_v52  ;;  %v701_v52 = vmul.f32 %v698_v20, %v6874_v61  ;;  %v713_v20 = vadd.f32 %v706_v37, %v700_v14  ;;  %v767_v37 = vpop.permute.xlu0 %766 }
  0xd9   :  { %1548 = vperm.xlu1 %6382, %v7131_v16   ;;  %v667_v26 = vadd.f32 %v660_v32, %v654_v51  ;;  %v668_v24 = vadd.f32 %v664_v62, %v655_v34  ;;  %v9168_v32 = vmov 67   ;;  %v729_v51 = vrot.slane %v5961_v36, %v6856_v53 }
  0xda   :  { %v733_v34 = vrot.slane %v5961_v36, %v6861_v55  ;;  %v714_v25 = vadd.f32 %v710_v33, %v701_v52  ;;  %v9167_v52 = vmov 107  }
  0xdb   :  { %v675_v50 = vpop.permute.xlu1 %674  ;;  %v669_v62 = vmax.f32 %v646_v22, %v667_v26  ;;  %v670_v57 = vmax.f32 %v647_v42, %v668_v24  ;;  %v5963_v42 = vld [vmem:[%s9117_s1 + $0x40] ss:$8 sm:$0x3]  ;;  %v752_v26 = vrot.slane %v5962_v21, %v6856_v53  ;;  %v756_v24 = vrot.slane %v5962_v21, %v6861_v55  ;;  %6423 = vset.pattern.permute.xlu0 %v9167_v52 }
  0xdc   :  { %v677_v29 = vmul.f32 %v675_v50, %v6871_v59  ;;  %v678_v30 = vmul.f32 %v675_v50, %v6874_v61  ;;  %v775_v36 = vrot.slane %v5963_v42, %v6856_v53  ;;  %2491 = vperm.xlu0 %6423, %v7131_v16   ;;  %v769_v21 = vmul.f32 %v767_v37, %v6871_v59 }
  0xdd   :  { %6383 = vset.pattern.permute.xlu1 %v9168_v32 }
  0xde   :  { %v690_v58 = vadd.f32 %v683_v45, %v677_v29  ;;  %v691_v46 = vadd.f32 %v687_v54, %v678_v30  ;;  %1571 = vperm.xlu1 %6383, %v7131_v16   ;;  %v6683_v54 = vmov 69  }
  0xe0   :  { %v692_v0 = vmax.f32 %v669_v62, %v690_v58  ;;  %v693_v50 = vmax.f32 %v670_v57, %v691_v46  ;;  %v721_v41 = vpop.permute.xlu1 %720  ;;  %v779_v62 = vrot.slane %v5963_v42, %v6861_v55  ;;  %v5964_v46 = vld [vmem:[%s9117_s1 + $0x41] ss:$8 sm:$0x3] }
  0xe1   :  { %v723_v22 = vmul.f32 %v721_v41, %v6871_v59  ;;  %v724_v45 = vmul.f32 %v721_v41, %v6874_v61 }
  0xe2   :  { %6385 = vset.pattern.permute.xlu1 %v6683_v54  ;;  %v715_v33 = vmax.f32 %v692_v0, %v713_v20  ;;  %v716_v29 = vmax.f32 %v693_v50, %v714_v25  ;;  %v770_v25 = vmul.f32 %v767_v37, %v6874_v61  ;;  %v782_v37 = vadd.f32 %v775_v36, %v769_v21  ;;  %v836_v36 = vpop.permute.xlu0 %835 }
  0xe3   :  { %1617 = vperm.xlu1 %6385, %v7131_v16   ;;  %v736_v30 = vadd.f32 %v729_v51, %v723_v22  ;;  %v737_v14 = vadd.f32 %v733_v34, %v724_v45  ;;  %v9171_v51 = vmov 70   ;;  %v798_v22 = vrot.slane %v5964_v46, %v6856_v53 }
  0xe4   :  { %v802_v45 = vrot.slane %v5964_v46, %v6861_v55  ;;  %v783_v52 = vadd.f32 %v779_v62, %v770_v25  ;;  %v9170_v25 = vmov 110  }
  0xe5   :  { %v744_v41 = vpop.permute.xlu1 %743  ;;  %v738_v34 = vmax.f32 %v715_v33, %v736_v30  ;;  %v739_v0 = vmax.f32 %v716_v29, %v737_v14  ;;  %v5966_v29 = vld [vmem:[%s9117_s1 + $0x43] ss:$8 sm:$0x3]  ;;  %v821_v30 = vrot.slane %v5965_v12, %v6856_v53  ;;  %v825_v14 = vrot.slane %v5965_v12, %v6861_v55  ;;  %6426 = vset.pattern.permute.xlu0 %v9170_v25 }
  0xe6   :  { %v746_v57 = vmul.f32 %v744_v41, %v6871_v59  ;;  %v747_v58 = vmul.f32 %v744_v41, %v6874_v61  ;;  %v844_v46 = vrot.slane %v5966_v29, %v6856_v53  ;;  %2560 = vperm.xlu0 %6426, %v7131_v16   ;;  %v838_v12 = vmul.f32 %v836_v36, %v6871_v59 }
  0xe7   :  { %6386 = vset.pattern.permute.xlu1 %v9171_v51 }
  0xe8   :  { %v759_v50 = vadd.f32 %v752_v26, %v746_v57  ;;  %v760_v20 = vadd.f32 %v756_v24, %v747_v58  ;;  %1640 = vperm.xlu1 %6386, %v7131_v16   ;;  %v6686_v24 = vmov 72  }
  0xea   :  { %v761_v42 = vmax.f32 %v738_v34, %v759_v50  ;;  %v762_v41 = vmax.f32 %v739_v0, %v760_v20  ;;  %v790_v32 = vpop.permute.xlu1 %789  ;;  %v848_v34 = vrot.slane %v5966_v29, %v6861_v55  ;;  %v5967_v20 = vld [vmem:[%s9117_s1 + $0x44] ss:$8 sm:$0x3] }
  0xeb   :  { %v792_v33 = vmul.f32 %v790_v32, %v6871_v59  ;;  %v793_v26 = vmul.f32 %v790_v32, %v6874_v61 }
  0xec   :  { %6388 = vset.pattern.permute.xlu1 %v6686_v24  ;;  %v784_v62 = vmax.f32 %v761_v42, %v782_v37  ;;  %v785_v57 = vmax.f32 %v762_v41, %v783_v52  ;;  %v839_v52 = vmul.f32 %v836_v36, %v6874_v61  ;;  %v851_v36 = vadd.f32 %v844_v46, %v838_v12  ;;  %v905_v46 = vpop.permute.xlu0 %904 }
  0xed   :  { %1686 = vperm.xlu1 %6388, %v7131_v16   ;;  %v805_v58 = vadd.f32 %v798_v22, %v792_v33  ;;  %v806_v21 = vadd.f32 %v802_v45, %v793_v26  ;;  %v9174_v22 = vmov 73   ;;  %v867_v33 = vrot.slane %v5967_v20, %v6856_v53 }
  0xee   :  { %v871_v26 = vrot.slane %v5967_v20, %v6861_v55  ;;  %v852_v25 = vadd.f32 %v848_v34, %v839_v52  ;;  %v9173_v52 = vmov 113  }
  0xef   :  { %v813_v32 = vpop.permute.xlu1 %812  ;;  %v807_v45 = vmax.f32 %v784_v62, %v805_v58  ;;  %v808_v42 = vmax.f32 %v785_v57, %v806_v21  ;;  %v5969_v57 = vld [vmem:[%s9117_s1 + $0x46] ss:$8 sm:$0x3]  ;;  %v890_v58 = vrot.slane %v5968_v17, %v6856_v53  ;;  %v894_v21 = vrot.slane %v5968_v17, %v6861_v55  ;;  %6429 = vset.pattern.permute.xlu0 %v9173_v52 }
  0xf0   :  { %v815_v0 = vmul.f32 %v813_v32, %v6871_v59  ;;  %v816_v50 = vmul.f32 %v813_v32, %v6874_v61  ;;  %v913_v20 = vrot.slane %v5969_v57, %v6856_v53  ;;  %2629 = vperm.xlu0 %6429, %v7131_v16   ;;  %v907_v17 = vmul.f32 %v905_v46, %v6871_v59 }
  0xf1   :  { %6389 = vset.pattern.permute.xlu1 %v9174_v22 }
  0xf2   :  { %v828_v41 = vadd.f32 %v821_v30, %v815_v0  ;;  %v829_v37 = vadd.f32 %v825_v14, %v816_v50  ;;  %1709 = vperm.xlu1 %6389, %v7131_v16   ;;  %v6689_v14 = vmov 75  }
  0xf4   :  { %v830_v29 = vmax.f32 %v807_v45, %v828_v41  ;;  %v831_v32 = vmax.f32 %v808_v42, %v829_v37  ;;  %v859_v51 = vpop.permute.xlu1 %858  ;;  %v917_v45 = vrot.slane %v5969_v57, %v6861_v55  ;;  %v5970_v37 = vld [vmem:[%s9117_s1 + $0x47] ss:$8 sm:$0x3] }
  0xf5   :  { %v861_v62 = vmul.f32 %v859_v51, %v6871_v59  ;;  %v862_v30 = vmul.f32 %v859_v51, %v6874_v61 }
  0xf6   :  { %6391 = vset.pattern.permute.xlu1 %v6689_v14  ;;  %v853_v34 = vmax.f32 %v830_v29, %v851_v36  ;;  %v854_v0 = vmax.f32 %v831_v32, %v852_v25  ;;  %v908_v25 = vmul.f32 %v905_v46, %v6874_v61  ;;  %v920_v46 = vadd.f32 %v913_v20, %v907_v17  ;;  %v974_v20 = vpop.permute.xlu0 %973 }
  0xf7   :  { %1755 = vperm.xlu1 %6391, %v7131_v16   ;;  %v874_v50 = vadd.f32 %v867_v33, %v861_v62  ;;  %v875_v12 = vadd.f32 %v871_v26, %v862_v30  ;;  %v9177_v33 = vmov 76   ;;  %v936_v62 = vrot.slane %v5970_v37, %v6856_v53 }
  0xf8   :  { %v940_v30 = vrot.slane %v5970_v37, %v6861_v55  ;;  %v921_v52 = vadd.f32 %v917_v45, %v908_v25  ;;  %v9176_v25 = vmov 116  }
  0xf9   :  { %v882_v51 = vpop.permute.xlu1 %881  ;;  %v876_v26 = vmax.f32 %v853_v34, %v874_v50  ;;  %v877_v29 = vmax.f32 %v854_v0, %v875_v12  ;;  %v5972_v0 = vld [vmem:[%s9117_s1 + $0x51] ss:$8 sm:$0x3]  ;;  %v959_v50 = vrot.slane %v5971_v10, %v6856_v53  ;;  %v963_v12 = vrot.slane %v5971_v10, %v6861_v55  ;;  %6432 = vset.pattern.permute.xlu0 %v9176_v25 }
  0xfa   :  { %v884_v42 = vmul.f32 %v882_v51, %v6871_v59  ;;  %v885_v41 = vmul.f32 %v882_v51, %v6874_v61  ;;  %v982_v37 = vrot.slane %v5972_v0, %v6856_v53  ;;  %2698 = vperm.xlu0 %6432, %v7131_v16   ;;  %v976_v10 = vmul.f32 %v974_v20, %v6871_v59 }
  0xfb   :  { %6392 = vset.pattern.permute.xlu1 %v9177_v33 }
  0xfc   :  { %v897_v32 = vadd.f32 %v890_v58, %v884_v42  ;;  %v898_v36 = vadd.f32 %v894_v21, %v885_v41  ;;  %1778 = vperm.xlu1 %6392, %v7131_v16   ;;  %v6692_v21 = vmov 78  }
  0xfe   :  { %v899_v57 = vmax.f32 %v876_v26, %v897_v32  ;;  %v900_v51 = vmax.f32 %v877_v29, %v898_v36  ;;  %v928_v22 = vpop.permute.xlu1 %927  ;;  %v986_v26 = vrot.slane %v5972_v0, %v6861_v55  ;;  %v5973_v36 = vld [vmem:[%s9117_s1 + $0x52] ss:$8 sm:$0x3] }
  0xff   :  { %v930_v34 = vmul.f32 %v928_v22, %v6871_v59  ;;  %v931_v58 = vmul.f32 %v928_v22, %v6874_v61 }
 0x100   :  { %6394 = vset.pattern.permute.xlu1 %v6692_v21  ;;  %v922_v45 = vmax.f32 %v899_v57, %v920_v46  ;;  %v923_v42 = vmax.f32 %v900_v51, %v921_v52  ;;  %v977_v52 = vmul.f32 %v974_v20, %v6874_v61  ;;  %v989_v20 = vadd.f32 %v982_v37, %v976_v10 }
 0x101   :  { %1824 = vperm.xlu1 %6394, %v7131_v16   ;;  %v943_v41 = vadd.f32 %v936_v62, %v930_v34  ;;  %v944_v17 = vadd.f32 %v940_v30, %v931_v58  ;;  %v9180_v62 = vmov 79   ;;  %v1005_v34 = vrot.slane %v5973_v36, %v6856_v53 }
 0x102   :  { %v1009_v58 = vrot.slane %v5973_v36, %v6861_v55  ;;  %v990_v25 = vadd.f32 %v986_v26, %v977_v52  ;;  %v1032_v37 = vrot.slane %v5974_v13, %v6861_v55  ;;  %v1043_v26 = vpop.permute.xlu0 %1042 }
 0x103   :  { %v951_v22 = vpop.permute.xlu1 %950  ;;  %v945_v30 = vmax.f32 %v922_v45, %v943_v41  ;;  %v946_v57 = vmax.f32 %v923_v42, %v944_v17  ;;  %v5975_v42 = vld [vmem:[%s9117_s1 + $0x54] ss:$8 sm:$0x3]  ;;  %v9179_v41 = vmov 119   ;;  %v1028_v17 = vrot.slane %v5974_v13, %v6856_v53 }
 0x104   :  { %v953_v29 = vmul.f32 %v951_v22, %v6871_v59  ;;  %v954_v32 = vmul.f32 %v951_v22, %v6874_v61  ;;  %6435 = vset.pattern.permute.xlu0 %v9179_v41  ;;  %v1051_v36 = vrot.slane %v5975_v42, %v6856_v53  ;;  %v1046_v13 = vmul.f32 %v1043_v26, %v6874_v61 }
 0x105   :  { %6395 = vset.pattern.permute.xlu1 %v9180_v62  ;;  %2767 = vperm.xlu0 %6435, %v7131_v16  }
 0x106   :  { %v966_v51 = vadd.f32 %v959_v50, %v953_v29  ;;  %v967_v46 = vadd.f32 %v963_v12, %v954_v32  ;;  %1847 = vperm.xlu1 %6395, %v7131_v16   ;;  %v6695_v12 = vmov 81  }
 0x108   :  { %v968_v0 = vmax.f32 %v945_v30, %v966_v51  ;;  %v969_v22 = vmax.f32 %v946_v57, %v967_v46  ;;  %v997_v33 = vpop.permute.xlu1 %996  ;;  %v1055_v30 = vrot.slane %v5975_v42, %v6861_v55  ;;  %v1045_v46 = vmul.f32 %v1043_v26, %v6871_v59 }
 0x109   :  { %v999_v45 = vmul.f32 %v997_v33, %v6871_v59  ;;  %v1000_v50 = vmul.f32 %v997_v33, %v6874_v61 }
 0x10a   :  { %6397 = vset.pattern.permute.xlu1 %v6695_v12  ;;  %v991_v29 = vmax.f32 %v968_v0, %v989_v20  ;;  %v992_v32 = vmax.f32 %v969_v22, %v990_v25  ;;  %v5976_v25 = vld [vmem:[%s9117_s1 + $0x55] ss:$8 sm:$0x3]  ;;  %v1058_v26 = vadd.f32 %v1051_v36, %v1045_v46  ;;  %v1059_v41 = vadd.f32 %v1055_v30, %v1046_v13  ;;  %v1112_v36 = vpop.permute.xlu0 %1111 }
 0x10b   :  { %1893 = vperm.xlu1 %6397, %v7131_v16   ;;  %v1012_v33 = vadd.f32 %v1005_v34, %v999_v45  ;;  %v1013_v10 = vadd.f32 %v1009_v58, %v1000_v50  ;;  %v9183_v34 = vmov 82   ;;  %v1074_v45 = vrot.slane %v5976_v25, %v6856_v53 }
 0x10c   :  { %v1078_v50 = vrot.slane %v5976_v25, %v6861_v55  ;;  %v9182_v13 = vmov 122  }
 0x10d   :  { %v1020_v52 = vpop.permute.xlu1 %1019  ;;  %v1014_v58 = vmax.f32 %v991_v29, %v1012_v33  ;;  %v1015_v0 = vmax.f32 %v992_v32, %v1013_v10  ;;  %v5978_v32 = vld [vmem:[%s9117_s1 + $0x57] ss:$8 sm:$0x3]  ;;  %v1097_v33 = vrot.slane %v5977_v8, %v6856_v53  ;;  %v1101_v10 = vrot.slane %v5977_v8, %v6861_v55  ;;  %6438 = vset.pattern.permute.xlu0 %v9182_v13 }
 0x10e   :  { %v1022_v57 = vmul.f32 %v1020_v52, %v6871_v59  ;;  %v1023_v51 = vmul.f32 %v1020_v52, %v6874_v61  ;;  %v1120_v25 = vrot.slane %v5978_v32, %v6856_v53  ;;  %2836 = vperm.xlu0 %6438, %v7131_v16   ;;  %v1114_v8 = vmul.f32 %v1112_v36, %v6871_v59 }
 0x10f   :  { %6398 = vset.pattern.permute.xlu1 %v9183_v34 }
 0x110   :  { %v1035_v22 = vadd.f32 %v1028_v17, %v1022_v57  ;;  %v1036_v20 = vadd.f32 %v1032_v37, %v1023_v51  ;;  %1916 = vperm.xlu1 %6398, %v7131_v16   ;;  %v6698_v37 = vmov 84  }
 0x112   :  { %v1037_v42 = vmax.f32 %v1014_v58, %v1035_v22  ;;  %v1038_v52 = vmax.f32 %v1015_v0, %v1036_v20  ;;  %v1066_v62 = vpop.permute.xlu1 %1065  ;;  %v1124_v58 = vrot.slane %v5978_v32, %v6861_v55  ;;  %v5979_v20 = vld [vmem:[%s9117_s1 + $0x60] ss:$8 sm:$0x3] }
 0x113   :  { %v1068_v29 = vmul.f32 %v1066_v62, %v6871_v59  ;;  %v1069_v17 = vmul.f32 %v1066_v62, %v6874_v61 }
 0x114   :  { %6400 = vset.pattern.permute.xlu1 %v6698_v37  ;;  %v1060_v30 = vmax.f32 %v1037_v42, %v1058_v26  ;;  %v1061_v57 = vmax.f32 %v1038_v52, %v1059_v41  ;;  %v1115_v41 = vmul.f32 %v1112_v36, %v6874_v61  ;;  %v1127_v36 = vadd.f32 %v1120_v25, %v1114_v8 }
 0x115   :  { %1962 = vperm.xlu1 %6400, %v7131_v16   ;;  %v1081_v51 = vadd.f32 %v1074_v45, %v1068_v29  ;;  %v1082_v46 = vadd.f32 %v1078_v50, %v1069_v17  ;;  %v9186_v45 = vmov 85   ;;  %v1143_v29 = vrot.slane %v5979_v20, %v6856_v53 }
 0x116   :  { %v1147_v17 = vrot.slane %v5979_v20, %v6861_v55  ;;  %v1128_v13 = vadd.f32 %v1124_v58, %v1115_v41  ;;  %v1170_v25 = vrot.slane %v5980_v9, %v6861_v55  ;;  %v1181_v58 = vpop.permute.xlu0 %1180 }
 0x117   :  { %v1089_v62 = vpop.permute.xlu1 %1088  ;;  %v1083_v50 = vmax.f32 %v1060_v30, %v1081_v51  ;;  %v1084_v42 = vmax.f32 %v1061_v57, %v1082_v46  ;;  %v5981_v57 = vld [vmem:[%s9117_s1 + $0x62] ss:$8 sm:$0x3]  ;;  %v9185_v51 = vmov 125   ;;  %v1166_v46 = vrot.slane %v5980_v9, %v6856_v53 }
 0x118   :  { %v1091_v0 = vmul.f32 %v1089_v62, %v6871_v59  ;;  %v1092_v22 = vmul.f32 %v1089_v62, %v6874_v61  ;;  %6441 = vset.pattern.permute.xlu0 %v9185_v51  ;;  %v1189_v20 = vrot.slane %v5981_v57, %v6856_v53  ;;  %v1184_v9 = vmul.f32 %v1181_v58, %v6874_v61 }
 0x119   :  { %6401 = vset.pattern.permute.xlu1 %v9186_v45  ;;  %2905 = vperm.xlu0 %6441, %v7131_v16  }
 0x11a   :  { %v1104_v52 = vadd.f32 %v1097_v33, %v1091_v0  ;;  %v1105_v26 = vadd.f32 %v1101_v10, %v1092_v22  ;;  %1985 = vperm.xlu1 %6401, %v7131_v16   ;;  %v6701_v10 = vmov 87  }
 0x11c   :  { %v1106_v32 = vmax.f32 %v1083_v50, %v1104_v52  ;;  %v1107_v62 = vmax.f32 %v1084_v42, %v1105_v26  ;;  %v1135_v34 = vpop.permute.xlu1 %1134  ;;  %v1193_v50 = vrot.slane %v5981_v57, %v6861_v55  ;;  %v1183_v26 = vmul.f32 %v1181_v58, %v6871_v59 }
 0x11d   :  { %v1137_v30 = vmul.f32 %v1135_v34, %v6871_v59  ;;  %v1138_v33 = vmul.f32 %v1135_v34, %v6874_v61  ;;  %6444 = vset.pattern.permute.xlu0 %v6603_v2  ;;  %v5984_v2 = vld [vmem:[%s9117_s1 + $0x65] ss:$8 sm:$0x3] }
 0x11e   :  { %6403 = vset.pattern.permute.xlu1 %v6701_v10  ;;  %v1129_v0 = vmax.f32 %v1106_v32, %v1127_v36  ;;  %v1130_v22 = vmax.f32 %v1107_v62, %v1128_v13  ;;  %v5982_v13 = vld [vmem:[%s9117_s1 + $0x63] ss:$8 sm:$0x3]  ;;  %v1197_v51 = vadd.f32 %v1193_v50, %v1184_v9 }
 0x11f   :  { %2031 = vperm.xlu1 %6403, %v7131_v16   ;;  %v1150_v34 = vadd.f32 %v1143_v29, %v1137_v30  ;;  %v1151_v8 = vadd.f32 %v1147_v17, %v1138_v33  ;;  %v9187_v29 = vmov 88   ;;  %v1212_v30 = vrot.slane %v5982_v13, %v6856_v53 }
 0x120   :  { %v1216_v33 = vrot.slane %v5982_v13, %v6861_v55  ;;  %v1258_v13 = vrot.slane %v5984_v2, %v6856_v53 }
 0x121   :  { %v1158_v41 = vpop.permute.xlu1 %1157  ;;  %v1152_v17 = vmax.f32 %v1129_v0, %v1150_v34  ;;  %v1153_v32 = vmax.f32 %v1130_v22, %v1151_v8  ;;  %v5983_v0 = vld [vmem:[%s9117_s1 + $0x64] ss:$8 sm:$0x3]  ;;  %v6704_v34 = vmov 90  }
 0x122   :  { %v1160_v42 = vmul.f32 %v1158_v41, %v6871_v59  ;;  %v1161_v52 = vmul.f32 %v1158_v41, %v6874_v61  ;;  %v1196_v41 = vadd.f32 %v1189_v20, %v1183_v26  ;;  %v7349_v22 = vld [vmem:[%s9116_s0 + $0x8] sm:$0xff]  ;;  %v1235_v8 = vrot.slane %v5983_v0, %v6856_v53  ;;  %v1250_v20 = vpop.permute.xlu0 %1249 }
 0x123   :  { %6404 = vset.pattern.permute.xlu1 %v9187_v29  ;;  %2975 = vperm.xlu0 %6444, %v7349_v22   ;;  %v1253_v29 = vmul.f32 %v1250_v20, %v6874_v61 }
 0x124   :  { %v1173_v62 = vadd.f32 %v1166_v46, %v1160_v42  ;;  %v1174_v36 = vadd.f32 %v1170_v25, %v1161_v52  ;;  %2054 = vperm.xlu1 %6404, %v7131_v16  }
 0x126   :  { %v1175_v57 = vmax.f32 %v1152_v17, %v1173_v62  ;;  %v1176_v58 = vmax.f32 %v1153_v32, %v1174_v36  ;;  %v1204_v45 = vpop.permute.xlu1 %1203  ;;  %v1262_v17 = vrot.slane %v5984_v2, %v6861_v55  ;;  %v1252_v36 = vmul.f32 %v1250_v20, %v6871_v59 }
 0x127   :  { %v1206_v46 = vmul.f32 %v1204_v45, %v6871_v59  ;;  %v1207_v25 = vmul.f32 %v1204_v45, %v6874_v61  ;;  %v1239_v45 = vrot.slane %v5983_v0, %v6861_v55  ;;  %6447 = vset.pattern.permute.xlu0 %v6604_v3 }
 0x128   :  { %6406 = vset.pattern.permute.xlu1 %v6704_v34  ;;  %v1198_v50 = vmax.f32 %v1175_v57, %v1196_v41  ;;  %v1199_v42 = vmax.f32 %v1176_v58, %v1197_v51  ;;  %v5985_v57 = vld [vmem:[%s9117_s1 + $0x66] ss:$8 sm:$0x3]  ;;  %v9188_v51 = vmov 91   ;;  %3044 = vperm.xlu0 %6447, %v7349_v22   ;;  %v1265_v20 = vadd.f32 %v1258_v13, %v1252_v36 }
 0x129   :  { %2100 = vperm.xlu1 %6406, %v7131_v16   ;;  %v1219_v52 = vadd.f32 %v1212_v30, %v1206_v46  ;;  %v1220_v26 = vadd.f32 %v1216_v33, %v1207_v25  ;;  %v1281_v0 = vrot.slane %v5985_v57, %v6856_v53  ;;  %v1285_v46 = vrot.slane %v5985_v57, %v6861_v55 }
 0x12b   :  { %v1227_v9 = vpop.permute.xlu1 %1226  ;;  %v1221_v30 = vmax.f32 %v1198_v50, %v1219_v52  ;;  %v1222_v33 = vmax.f32 %v1199_v42, %v1220_v26  ;;  %v5987_v42 = vld [vmem:[%s9117_s1 + $0x70] ss:$8 sm:$0x3]  ;;  %v1319_v26 = vpop.permute.xlu0 %1318 }
 0x12c   :  { %v1229_v32 = vmul.f32 %v1227_v9, %v6871_v59  ;;  %v1230_v62 = vmul.f32 %v1227_v9, %v6874_v61  ;;  %v1266_v9 = vadd.f32 %v1262_v17, %v1253_v29  ;;  %6450 = vset.pattern.permute.xlu0 %v6608_v7  ;;  %v1327_v36 = vrot.slane %v5987_v42, %v6856_v53 }
 0x12d   :  { %6407 = vset.pattern.permute.xlu1 %v9188_v51  ;;  %v5986_v51 = vld [vmem:[%s9117_s1 + $0x67] ss:$8 sm:$0x3]  ;;  %3113 = vperm.xlu0 %6450, %v7349_v22   ;;  %v1331_v57 = vrot.slane %v5987_v42, %v6861_v55 }
 0x12e   :  { %v1242_v58 = vadd.f32 %v1235_v8, %v1229_v32  ;;  %v1243_v41 = vadd.f32 %v1239_v45, %v1230_v62  ;;  %2123 = vperm.xlu1 %6407, %v7131_v16   ;;  %v6706_v45 = vmov 93   ;;  %v1304_v29 = vrot.slane %v5986_v51, %v6856_v53 }
 0x12f   :  { %v1308_v52 = vrot.slane %v5986_v51, %v6861_v55  ;;  %v5988_v51 = vld [vmem:[%s9117_s1 + $0x71] ss:$8 sm:$0x3] }
 0x130   :  { %v1244_v25 = vmax.f32 %v1221_v30, %v1242_v58  ;;  %v1245_v2 = vmax.f32 %v1222_v33, %v1243_v41  ;;  %v1273_v3 = vpop.permute.xlu1 %1272  ;;  %v1321_v58 = vmul.f32 %v1319_v26, %v6871_v59  ;;  %v1322_v41 = vmul.f32 %v1319_v26, %v6874_v61 }
 0x131   :  { %v1275_v50 = vmul.f32 %v1273_v3, %v6871_v59  ;;  %v1276_v8 = vmul.f32 %v1273_v3, %v6874_v61  ;;  %6453 = vset.pattern.permute.xlu0 %v6612_v11  ;;  %v1354_v3 = vrot.slane %v5988_v51, %v6861_v55 }
 0x132   :  { %6409 = vset.pattern.permute.xlu1 %v6706_v45  ;;  %v1267_v13 = vmax.f32 %v1244_v25, %v1265_v20  ;;  %v1268_v17 = vmax.f32 %v1245_v2, %v1266_v9  ;;  %3182 = vperm.xlu0 %6453, %v7349_v22   ;;  %v1350_v9 = vrot.slane %v5988_v51, %v6856_v53 }
 0x133   :  { %2169 = vperm.xlu1 %6409, %v7131_v16   ;;  %v1288_v32 = vadd.f32 %v1281_v0, %v1275_v50  ;;  %v1289_v7 = vadd.f32 %v1285_v46, %v1276_v8  ;;  %v6707_v0 = vmov 94   ;;  %v1334_v42 = vadd.f32 %v1327_v36, %v1321_v58  ;;  %v1388_v36 = vpop.permute.xlu0 %1387 }
 0x134   :  { %v1335_v26 = vadd.f32 %v1331_v57, %v1322_v41 }
 0x135   :  { %v1296_v62 = vpop.permute.xlu1 %1295  ;;  %v1290_v46 = vmax.f32 %v1267_v13, %v1288_v32  ;;  %v1291_v25 = vmax.f32 %v1268_v17, %v1289_v7  ;;  %v5990_v17 = vld [vmem:[%s9117_s1 + $0x73] ss:$8 sm:$0x3] }
 0x136   :  { %v1298_v30 = vmul.f32 %v1296_v62, %v6871_v59  ;;  %v1299_v33 = vmul.f32 %v1296_v62, %v6874_v61  ;;  %v5989_v62 = vld [vmem:[%s9117_s1 + $0x72] ss:$8 sm:$0x3]  ;;  %6456 = vset.pattern.permute.xlu0 %v6616_v15  ;;  %v1396_v41 = vrot.slane %v5990_v17, %v6856_v53  ;;  %v1400_v51 = vrot.slane %v5990_v17, %v6861_v55 }
 0x137   :  { %6410 = vset.pattern.permute.xlu1 %v6707_v0  ;;  %3251 = vperm.xlu0 %6456, %v7349_v22   ;;  %v1373_v32 = vrot.slane %v5989_v62, %v6856_v53  ;;  %v1377_v7 = vrot.slane %v5989_v62, %v6861_v55 }
 0x138   :  { %v1311_v2 = vadd.f32 %v1304_v29, %v1298_v30  ;;  %v1312_v20 = vadd.f32 %v1308_v52, %v1299_v33  ;;  %2192 = vperm.xlu1 %6410, %v7131_v16   ;;  %v6708_v52 = vmov 96  }
 0x13a   :  { %v1313_v50 = vmax.f32 %v1290_v46, %v1311_v2  ;;  %v1314_v8 = vmax.f32 %v1291_v25, %v1312_v20  ;;  %v1342_v11 = vpop.permute.xlu1 %1341  ;;  %v1390_v2 = vmul.f32 %v1388_v36, %v6871_v59  ;;  %v1391_v20 = vmul.f32 %v1388_v36, %v6874_v61 }
 0x13b   :  { %v1344_v13 = vmul.f32 %v1342_v11, %v6871_v59  ;;  %v1345_v29 = vmul.f32 %v1342_v11, %v6874_v61  ;;  %6459 = vset.pattern.permute.xlu0 %v6620_v19 }
 0x13c   :  { %6412 = vset.pattern.permute.xlu1 %v6708_v52  ;;  %v1336_v57 = vmax.f32 %v1313_v50, %v1334_v42  ;;  %v1337_v30 = vmax.f32 %v1314_v8, %v1335_v26  ;;  %v5991_v50 = vld [vmem:[%s9117_s1 + $0x74] ss:$8 sm:$0x3]  ;;  %3320 = vperm.xlu0 %6459, %v7349_v22   ;;  %v1403_v17 = vadd.f32 %v1396_v41, %v1390_v2  ;;  %v1457_v41 = vpop.permute.xlu0 %1456 }
 0x13d   :  { %2238 = vperm.xlu1 %6412, %v7131_v16   ;;  %v1357_v33 = vadd.f32 %v1350_v9, %v1344_v13  ;;  %v1358_v15 = vadd.f32 %v1354_v3, %v1345_v29  ;;  %v6709_v9 = vmov 97   ;;  %v1419_v11 = vrot.slane %v5991_v50, %v6856_v53 }
 0x13e   :  { %v1423_v62 = vrot.slane %v5991_v50, %v6861_v55  ;;  %v1404_v36 = vadd.f32 %v1400_v51, %v1391_v20 }
 0x13f   :  { %v1365_v58 = vpop.permute.xlu1 %1364  ;;  %v1359_v3 = vmax.f32 %v1336_v57, %v1357_v33  ;;  %v1360_v8 = vmax.f32 %v1337_v30, %v1358_v15  ;;  %v5993_v30 = vld [vmem:[%s9117_s1 + $0x76] ss:$8 sm:$0x3] }
 0x140   :  { %v1367_v46 = vmul.f32 %v1365_v58, %v6871_v59  ;;  %v1368_v25 = vmul.f32 %v1365_v58, %v6874_v61  ;;  %v5992_v58 = vld [vmem:[%s9117_s1 + $0x75] ss:$8 sm:$0x3]  ;;  %6462 = vset.pattern.permute.xlu0 %v6624_v23  ;;  %v1465_v20 = vrot.slane %v5993_v30, %v6856_v53  ;;  %v1469_v50 = vrot.slane %v5993_v30, %v6861_v55 }
 0x141   :  { %6413 = vset.pattern.permute.xlu1 %v6709_v9  ;;  %3389 = vperm.xlu0 %6462, %v7349_v22   ;;  %v1442_v33 = vrot.slane %v5992_v58, %v6856_v53  ;;  %v1446_v15 = vrot.slane %v5992_v58, %v6861_v55 }
 0x142   :  { %v1380_v42 = vadd.f32 %v1373_v32, %v1367_v46  ;;  %v1381_v26 = vadd.f32 %v1377_v7, %v1368_v25  ;;  %2261 = vperm.xlu1 %6413, %v7131_v16   ;;  %v6710_v7 = vmov 99  }
 0x144   :  { %v1382_v13 = vmax.f32 %v1359_v3, %v1380_v42  ;;  %v1383_v29 = vmax.f32 %v1360_v8, %v1381_v26  ;;  %v1411_v19 = vpop.permute.xlu1 %1410  ;;  %v1459_v42 = vmul.f32 %v1457_v41, %v6871_v59  ;;  %v1460_v26 = vmul.f32 %v1457_v41, %v6874_v61 }
 0x145   :  { %v1413_v57 = vmul.f32 %v1411_v19, %v6871_v59  ;;  %v1414_v32 = vmul.f32 %v1411_v19, %v6874_v61  ;;  %6465 = vset.pattern.permute.xlu0 %v6628_v27 }
 0x146   :  { %6415 = vset.pattern.permute.xlu1 %v6710_v7  ;;  %v1405_v51 = vmax.f32 %v1382_v13, %v1403_v17  ;;  %v1406_v46 = vmax.f32 %v1383_v29, %v1404_v36  ;;  %v5994_v13 = vld [vmem:[%s9117_s1 + $0x77] ss:$8 sm:$0x3]  ;;  %3458 = vperm.xlu0 %6465, %v7349_v22   ;;  %v1472_v30 = vadd.f32 %v1465_v20, %v1459_v42  ;;  %v1526_v20 = vpop.permute.xlu0 %1525 }
 0x147   :  { %2307 = vperm.xlu1 %6415, %v7131_v16   ;;  %v1426_v25 = vadd.f32 %v1419_v11, %v1413_v57  ;;  %v1427_v23 = vadd.f32 %v1423_v62, %v1414_v32  ;;  %v6711_v11 = vmov 100   ;;  %v1488_v19 = vrot.slane %v5994_v13, %v6856_v53 }
 0x148   :  { %v1492_v58 = vrot.slane %v5994_v13, %v6861_v55  ;;  %v1473_v41 = vadd.f32 %v1469_v50, %v1460_v26 }
 0x149   :  { %v1434_v2 = vpop.permute.xlu1 %1433  ;;  %v1428_v62 = vmax.f32 %v1405_v51, %v1426_v25  ;;  %v1429_v29 = vmax.f32 %v1406_v46, %v1427_v23  ;;  %v5996_v46 = vld [vmem:[%s9117_s1 + $0x81] ss:$8 sm:$0x3] }
 0x14a   :  { %v1436_v3 = vmul.f32 %v1434_v2, %v6871_v59  ;;  %v1437_v8 = vmul.f32 %v1434_v2, %v6874_v61  ;;  %v5995_v2 = vld [vmem:[%s9117_s1 + $0x80] ss:$8 sm:$0x3]  ;;  %6468 = vset.pattern.permute.xlu0 %v6632_v31  ;;  %v1534_v26 = vrot.slane %v5996_v46, %v6856_v53  ;;  %v1538_v13 = vrot.slane %v5996_v46, %v6861_v55 }
 0x14b   :  { %6416 = vset.pattern.permute.xlu1 %v6711_v11  ;;  %3527 = vperm.xlu0 %6468, %v7349_v22   ;;  %v1511_v25 = vrot.slane %v5995_v2, %v6856_v53  ;;  %v1515_v23 = vrot.slane %v5995_v2, %v6861_v55 }
 0x14c   :  { %v1449_v17 = vadd.f32 %v1442_v33, %v1436_v3  ;;  %v1450_v36 = vadd.f32 %v1446_v15, %v1437_v8  ;;  %2330 = vperm.xlu1 %6416, %v7131_v16   ;;  %v6712_v15 = vmov 102  }
 0x14e   :  { %v1451_v57 = vmax.f32 %v1428_v62, %v1449_v17  ;;  %v1452_v32 = vmax.f32 %v1429_v29, %v1450_v36  ;;  %v1480_v27 = vpop.permute.xlu1 %1479  ;;  %v1528_v17 = vmul.f32 %v1526_v20, %v6871_v59  ;;  %v1529_v36 = vmul.f32 %v1526_v20, %v6874_v61 }
 0x14f   :  { %v1482_v51 = vmul.f32 %v1480_v27, %v6871_v59  ;;  %v1483_v33 = vmul.f32 %v1480_v27, %v6874_v61  ;;  %6471 = vset.pattern.permute.xlu0 %v6636_v35 }
 0x150   :  { %6418 = vset.pattern.permute.xlu1 %v6712_v15  ;;  %v1474_v50 = vmax.f32 %v1451_v57, %v1472_v30  ;;  %v1475_v3 = vmax.f32 %v1452_v32, %v1473_v41  ;;  %v5997_v57 = vld [vmem:[%s9117_s1 + $0x82] ss:$8 sm:$0x3]  ;;  %3596 = vperm.xlu0 %6471, %v7349_v22   ;;  %v1541_v46 = vadd.f32 %v1534_v26, %v1528_v17 }
 0x151   :  { %2376 = vperm.xlu1 %6418, %v7131_v16   ;;  %v1495_v8 = vadd.f32 %v1488_v19, %v1482_v51  ;;  %v1496_v31 = vadd.f32 %v1492_v58, %v1483_v33  ;;  %v6713_v19 = vmov 103   ;;  %v1557_v27 = vrot.slane %v5997_v57, %v6856_v53 }
 0x152   :  { %v1561_v2 = vrot.slane %v5997_v57, %v6861_v55  ;;  %v1542_v20 = vadd.f32 %v1538_v13, %v1529_v36 }
 0x153   :  { %v1503_v42 = vpop.permute.xlu1 %1502  ;;  %v1497_v58 = vmax.f32 %v1474_v50, %v1495_v8  ;;  %v1498_v32 = vmax.f32 %v1475_v3, %v1496_v31  ;;  %v7504_v3 = vld [vmem:[%s9116_s0] sm:$0xff]  ;;  %v1595_v31 = vpop.permute.xlu0 %1594 }
 0x154   :  { %v1505_v62 = vmul.f32 %v1503_v42, %v6871_v59  ;;  %v1506_v29 = vmul.f32 %v1503_v42, %v6874_v61  ;;  %v5998_v42 = vld [vmem:[%s9117_s1 + $0x83] ss:$8 sm:$0x3]  ;;  %6474 = vset.pattern.permute.xlu0 %v6640_v39 }
 0x155   :  { %6419 = vset.pattern.permute.xlu1 %v6713_v19  ;;  %3665 = vperm.xlu0 %6474, %v7349_v22   ;;  %v1580_v8 = vrot.slane %v5998_v42, %v6856_v53  ;;  %v1584_v39 = vrot.slane %v5998_v42, %v6861_v55 }
 0x156   :  { %v1518_v30 = vadd.f32 %v1511_v25, %v1505_v62  ;;  %v1519_v41 = vadd.f32 %v1515_v23, %v1506_v29  ;;  %2399 = vperm.xlu1 %6419, %v7131_v16   ;;  %v6714_v16 = vmov 105   ;;  %v5999_v23 = vld [vmem:[%s9117_s1 + $0x84] ss:$8 sm:$0x3] }
 0x157   :  { %v1603_v36 = vrot.slane %v5999_v23, %v6856_v53  ;;  %v1607_v57 = vrot.slane %v5999_v23, %v6861_v55 }
 0x158   :  { %v1520_v51 = vmax.f32 %v1497_v58, %v1518_v30  ;;  %v1521_v33 = vmax.f32 %v1498_v32, %v1519_v41  ;;  %v1549_v35 = vpop.permute.xlu1 %1548  ;;  %v1597_v30 = vmul.f32 %v1595_v31, %v6871_v59  ;;  %v1598_v41 = vmul.f32 %v1595_v31, %v6874_v61 }
 0x159   :  { %v1551_v50 = vmul.f32 %v1549_v35, %v6871_v59  ;;  %v1552_v25 = vmul.f32 %v1549_v35, %v6874_v61  ;;  %6477 = vset.pattern.permute.xlu0 %v6644_v43 }
 0x15a   :  { %6421 = vset.pattern.permute.xlu1 %v6714_v16  ;;  %v1543_v26 = vmax.f32 %v1520_v51, %v1541_v46  ;;  %v1544_v13 = vmax.f32 %v1521_v33, %v1542_v20  ;;  %v6000_v51 = vld [vmem:[%s9117_s1 + $0x85] ss:$8 sm:$0x3]  ;;  %3734 = vperm.xlu0 %6477, %v7349_v22   ;;  %v1610_v23 = vadd.f32 %v1603_v36, %v1597_v30  ;;  %v1664_v36 = vpop.permute.xlu0 %1663 }
 0x15b   :  { %2445 = vperm.xlu1 %6421, %v7504_v3   ;;  %v1564_v62 = vadd.f32 %v1557_v27, %v1551_v50  ;;  %v1565_v29 = vadd.f32 %v1561_v2, %v1552_v25  ;;  %v6715_v27 = vmov 106   ;;  %v1626_v35 = vrot.slane %v6000_v51, %v6856_v53 }
 0x15c   :  { %v1630_v42 = vrot.slane %v6000_v51, %v6861_v55  ;;  %v1611_v31 = vadd.f32 %v1607_v57, %v1598_v41 }
 0x15d   :  { %v1572_v17 = vpop.permute.xlu1 %1571  ;;  %v1566_v2 = vmax.f32 %v1543_v26, %v1564_v62  ;;  %v1567_v33 = vmax.f32 %v1544_v13, %v1565_v29  ;;  %v6002_v13 = vld [vmem:[%s9117_s1 + $0x87] ss:$8 sm:$0x3] }
 0x15e   :  { %v1574_v58 = vmul.f32 %v1572_v17, %v6871_v59  ;;  %v1575_v32 = vmul.f32 %v1572_v17, %v6874_v61  ;;  %v6001_v17 = vld [vmem:[%s9117_s1 + $0x86] ss:$8 sm:$0x3]  ;;  %6480 = vset.pattern.permute.xlu0 %v6648_v47  ;;  %v1672_v41 = vrot.slane %v6002_v13, %v6856_v53  ;;  %v1676_v51 = vrot.slane %v6002_v13, %v6861_v55 }
 0x15f   :  { %6422 = vset.pattern.permute.xlu1 %v6715_v27  ;;  %3803 = vperm.xlu0 %6480, %v7349_v22   ;;  %v1649_v62 = vrot.slane %v6001_v17, %v6856_v53  ;;  %v1653_v29 = vrot.slane %v6001_v17, %v6861_v55 }
 0x160   :  { %v1587_v46 = vadd.f32 %v1580_v8, %v1574_v58  ;;  %v1588_v20 = vadd.f32 %v1584_v39, %v1575_v32  ;;  %2468 = vperm.xlu1 %6422, %v7504_v3   ;;  %v6716_v39 = vmov 108  }
 0x162   :  { %v1589_v50 = vmax.f32 %v1566_v2, %v1587_v46  ;;  %v1590_v25 = vmax.f32 %v1567_v33, %v1588_v20  ;;  %v1618_v43 = vpop.permute.xlu1 %1617  ;;  %v1666_v46 = vmul.f32 %v1664_v36, %v6871_v59  ;;  %v1667_v20 = vmul.f32 %v1664_v36, %v6874_v61 }
 0x163   :  { %v1620_v26 = vmul.f32 %v1618_v43, %v6871_v59  ;;  %v1621_v8 = vmul.f32 %v1618_v43, %v6874_v61  ;;  %6483 = vset.pattern.permute.xlu0 %v6652_v56 }
 0x164   :  { %6424 = vset.pattern.permute.xlu1 %v6716_v39  ;;  %v1612_v57 = vmax.f32 %v1589_v50, %v1610_v23  ;;  %v1613_v58 = vmax.f32 %v1590_v25, %v1611_v31  ;;  %v6003_v50 = vld [vmem:[%s9117_s1 + $0x90] ss:$8 sm:$0x3]  ;;  %3872 = vperm.xlu0 %6483, %v7349_v22   ;;  %v1679_v13 = vadd.f32 %v1672_v41, %v1666_v46  ;;  %v1733_v41 = vpop.permute.xlu0 %1732 }
 0x165   :  { %2514 = vperm.xlu1 %6424, %v7504_v3   ;;  %v1633_v32 = vadd.f32 %v1626_v35, %v1620_v26  ;;  %v1634_v47 = vadd.f32 %v1630_v42, %v1621_v8  ;;  %v6717_v35 = vmov 109   ;;  %v1695_v43 = vrot.slane %v6003_v50, %v6856_v53 }
 0x166   :  { %v1699_v17 = vrot.slane %v6003_v50, %v6861_v55  ;;  %v1680_v36 = vadd.f32 %v1676_v51, %v1667_v20 }
 0x167   :  { %v1641_v30 = vpop.permute.xlu1 %1640  ;;  %v1635_v42 = vmax.f32 %v1612_v57, %v1633_v32  ;;  %v1636_v25 = vmax.f32 %v1613_v58, %v1634_v47  ;;  %v6005_v58 = vld [vmem:[%s9117_s1 + $0x92] ss:$8 sm:$0x3] }
 0x168   :  { %v1643_v2 = vmul.f32 %v1641_v30, %v6871_v59  ;;  %v1644_v33 = vmul.f32 %v1641_v30, %v6874_v61  ;;  %v6004_v30 = vld [vmem:[%s9117_s1 + $0x91] ss:$8 sm:$0x3]  ;;  %6486 = vset.pattern.permute.xlu0 %v6656_v48  ;;  %v1741_v20 = vrot.slane %v6005_v58, %v6856_v53  ;;  %v1745_v50 = vrot.slane %v6005_v58, %v6861_v55 }
 0x169   :  { %6425 = vset.pattern.permute.xlu1 %v6717_v35  ;;  %3941 = vperm.xlu0 %6486, %v7349_v22   ;;  %v1718_v32 = vrot.slane %v6004_v30, %v6856_v53  ;;  %v1722_v47 = vrot.slane %v6004_v30, %v6861_v55 }
 0x16a   :  { %v1656_v23 = vadd.f32 %v1649_v62, %v1643_v2  ;;  %v1657_v31 = vadd.f32 %v1653_v29, %v1644_v33  ;;  %2537 = vperm.xlu1 %6425, %v7504_v3   ;;  %v6718_v29 = vmov 111  }
 0x16c   :  { %v1658_v26 = vmax.f32 %v1635_v42, %v1656_v23  ;;  %v1659_v8 = vmax.f32 %v1636_v25, %v1657_v31  ;;  %v1687_v56 = vpop.permute.xlu1 %1686  ;;  %v1735_v23 = vmul.f32 %v1733_v41, %v6871_v59  ;;  %v1736_v31 = vmul.f32 %v1733_v41, %v6874_v61 }
 0x16d   :  { %v1689_v57 = vmul.f32 %v1687_v56, %v6871_v59  ;;  %v1690_v62 = vmul.f32 %v1687_v56, %v6874_v61  ;;  %6489 = vset.pattern.permute.xlu0 %v6660_v60 }
 0x16e   :  { %6427 = vset.pattern.permute.xlu1 %v6718_v29  ;;  %v1681_v51 = vmax.f32 %v1658_v26, %v1679_v13  ;;  %v1682_v2 = vmax.f32 %v1659_v8, %v1680_v36  ;;  %v6006_v26 = vld [vmem:[%s9117_s1 + $0x93] ss:$8 sm:$0x3]  ;;  %4010 = vperm.xlu0 %6489, %v7349_v22   ;;  %v1748_v58 = vadd.f32 %v1741_v20, %v1735_v23  ;;  %v1802_v20 = vpop.permute.xlu0 %1801 }
 0x16f   :  { %2583 = vperm.xlu1 %6427, %v7504_v3   ;;  %v1702_v33 = vadd.f32 %v1695_v43, %v1689_v57  ;;  %v1703_v48 = vadd.f32 %v1699_v17, %v1690_v62  ;;  %v6719_v43 = vmov 112   ;;  %v1764_v56 = vrot.slane %v6006_v26, %v6856_v53 }
 0x170   :  { %v1768_v30 = vrot.slane %v6006_v26, %v6861_v55  ;;  %v1749_v41 = vadd.f32 %v1745_v50, %v1736_v31 }
 0x171   :  { %v1710_v46 = vpop.permute.xlu1 %1709  ;;  %v1704_v17 = vmax.f32 %v1681_v51, %v1702_v33  ;;  %v1705_v8 = vmax.f32 %v1682_v2, %v1703_v48  ;;  %v6008_v2 = vld [vmem:[%s9117_s1 + $0x95] ss:$8 sm:$0x3] }
 0x172   :  { %v1712_v42 = vmul.f32 %v1710_v46, %v6871_v59  ;;  %v1713_v25 = vmul.f32 %v1710_v46, %v6874_v61  ;;  %v6007_v46 = vld [vmem:[%s9117_s1 + $0x94] ss:$8 sm:$0x3]  ;;  %6492 = vset.pattern.permute.xlu0 %v6662_v63  ;;  %v1810_v31 = vrot.slane %v6008_v2, %v6856_v53  ;;  %v1814_v26 = vrot.slane %v6008_v2, %v6861_v55 }
 0x173   :  { %6428 = vset.pattern.permute.xlu1 %v6719_v43  ;;  %4079 = vperm.xlu0 %6492, %v7349_v22   ;;  %v1787_v33 = vrot.slane %v6007_v46, %v6856_v53  ;;  %v1791_v48 = vrot.slane %v6007_v46, %v6861_v55 }
 0x174   :  { %v1725_v13 = vadd.f32 %v1718_v32, %v1712_v42  ;;  %v1726_v36 = vadd.f32 %v1722_v47, %v1713_v25  ;;  %2606 = vperm.xlu1 %6428, %v7504_v3   ;;  %v6720_v47 = vmov 114  }
 0x176   :  { %v1727_v57 = vmax.f32 %v1704_v17, %v1725_v13  ;;  %v1728_v62 = vmax.f32 %v1705_v8, %v1726_v36  ;;  %v1756_v60 = vpop.permute.xlu1 %1755  ;;  %v1804_v13 = vmul.f32 %v1802_v20, %v6871_v59  ;;  %v1805_v36 = vmul.f32 %v1802_v20, %v6874_v61 }
 0x177   :  { %v1758_v51 = vmul.f32 %v1756_v60, %v6871_v59  ;;  %v1759_v32 = vmul.f32 %v1756_v60, %v6874_v61  ;;  %6495 = vset.pattern.permute.xlu0 %v6665_v40 }
 0x178   :  { %6430 = vset.pattern.permute.xlu1 %v6720_v47  ;;  %v1750_v50 = vmax.f32 %v1727_v57, %v1748_v58  ;;  %v1751_v42 = vmax.f32 %v1728_v62, %v1749_v41  ;;  %v6009_v57 = vld [vmem:[%s9117_s1 + $0x96] ss:$8 sm:$0x3]  ;;  %4148 = vperm.xlu0 %6495, %v7349_v22   ;;  %v1817_v2 = vadd.f32 %v1810_v31, %v1804_v13  ;;  %v1871_v31 = vpop.permute.xlu0 %1870 }
 0x179   :  { %2652 = vperm.xlu1 %6430, %v7504_v3   ;;  %v1771_v25 = vadd.f32 %v1764_v56, %v1758_v51  ;;  %v1772_v63 = vadd.f32 %v1768_v30, %v1759_v32  ;;  %v6721_v56 = vmov 115   ;;  %v1833_v60 = vrot.slane %v6009_v57, %v6856_v53 }
 0x17a   :  { %v1837_v46 = vrot.slane %v6009_v57, %v6861_v55  ;;  %v1818_v20 = vadd.f32 %v1814_v26, %v1805_v36 }
 0x17b   :  { %v1779_v23 = vpop.permute.xlu1 %1778  ;;  %v1773_v30 = vmax.f32 %v1750_v50, %v1771_v25  ;;  %v1774_v62 = vmax.f32 %v1751_v42, %v1772_v63  ;;  %v6011_v42 = vld [vmem:[%s9117_s1 + $0xa0] ss:$8 sm:$0x3] }
 0x17c   :  { %v1781_v17 = vmul.f32 %v1779_v23, %v6871_v59  ;;  %v1782_v8 = vmul.f32 %v1779_v23, %v6874_v61  ;;  %v6010_v23 = vld [vmem:[%s9117_s1 + $0x97] ss:$8 sm:$0x3]  ;;  %6498 = vset.pattern.permute.xlu0 %v6668_v44  ;;  %v1879_v36 = vrot.slane %v6011_v42, %v6856_v53  ;;  %v1883_v57 = vrot.slane %v6011_v42, %v6861_v55 }
 0x17d   :  { %6431 = vset.pattern.permute.xlu1 %v6721_v56  ;;  %4217 = vperm.xlu0 %6498, %v7349_v22   ;;  %v1856_v25 = vrot.slane %v6010_v23, %v6856_v53  ;;  %v1860_v63 = vrot.slane %v6010_v23, %v6861_v55 }
 0x17e   :  { %v1794_v58 = vadd.f32 %v1787_v33, %v1781_v17  ;;  %v1795_v41 = vadd.f32 %v1791_v48, %v1782_v8  ;;  %2675 = vperm.xlu1 %6431, %v7504_v3   ;;  %v6722_v48 = vmov 117  }
 0x180   :  { %v1796_v51 = vmax.f32 %v1773_v30, %v1794_v58  ;;  %v1797_v32 = vmax.f32 %v1774_v62, %v1795_v41  ;;  %v1825_v40 = vpop.permute.xlu1 %1824  ;;  %v1873_v58 = vmul.f32 %v1871_v31, %v6871_v59  ;;  %v1874_v41 = vmul.f32 %v1871_v31, %v6874_v61 }
 0x181   :  { %v1827_v50 = vmul.f32 %v1825_v40, %v6871_v59  ;;  %v1828_v33 = vmul.f32 %v1825_v40, %v6874_v61  ;;  %6501 = vset.pattern.permute.xlu0 %v6671_v49 }
 0x182   :  { %6433 = vset.pattern.permute.xlu1 %v6722_v48  ;;  %v1819_v26 = vmax.f32 %v1796_v51, %v1817_v2  ;;  %v1820_v17 = vmax.f32 %v1797_v32, %v1818_v20  ;;  %v6012_v51 = vld [vmem:[%s9117_s1 + $0xa1] ss:$8 sm:$0x3]  ;;  %4286 = vperm.xlu0 %6501, %v7349_v22   ;;  %v1886_v42 = vadd.f32 %v1879_v36, %v1873_v58 }
 0x183   :  { %2721 = vperm.xlu1 %6433, %v7504_v3   ;;  %v1840_v8 = vadd.f32 %v1833_v60, %v1827_v50  ;;  %v1841_v44 = vadd.f32 %v1837_v46, %v1828_v33  ;;  %v6723_v60 = vmov 118   ;;  %v1902_v40 = vrot.slane %v6012_v51, %v6856_v53 }
 0x184   :  { %v1906_v23 = vrot.slane %v6012_v51, %v6861_v55  ;;  %v1887_v31 = vadd.f32 %v1883_v57, %v1874_v41 }
 0x185   :  { %v1848_v13 = vpop.permute.xlu1 %1847  ;;  %v1842_v46 = vmax.f32 %v1819_v26, %v1840_v8  ;;  %v1843_v32 = vmax.f32 %v1820_v17, %v1841_v44  ;;  %v6014_v17 = vld [vmem:[%s9117_s1 + $0xa3] ss:$8 sm:$0x3]  ;;  %v1940_v8 = vpop.permute.xlu0 %1939 }
 0x186   :  { %v1850_v30 = vmul.f32 %v1848_v13, %v6871_v59  ;;  %v1851_v62 = vmul.f32 %v1848_v13, %v6874_v61  ;;  %v6013_v13 = vld [vmem:[%s9117_s1 + $0xa2] ss:$8 sm:$0x3]  ;;  %6504 = vset.pattern.permute.xlu0 %v6674_v38  ;;  %v1942_v41 = vmul.f32 %v1940_v8, %v6871_v59  ;;  %v1943_v51 = vmul.f32 %v1940_v8, %v6874_v61 }
 0x187   :  { %6434 = vset.pattern.permute.xlu1 %v6723_v60  ;;  %v1925_v44 = vrot.slane %v6013_v13, %v6856_v53  ;;  %v1929_v36 = vrot.slane %v6013_v13, %v6861_v55  ;;  %4355 = vperm.xlu0 %6504, %v7349_v22  }
 0x188   :  { %v1863_v2 = vadd.f32 %v1856_v25, %v1850_v30  ;;  %v1864_v20 = vadd.f32 %v1860_v63, %v1851_v62  ;;  %2744 = vperm.xlu1 %6434, %v7504_v3   ;;  %v6724_v63 = vmov 120  }
 0x18a   :  { %v1865_v50 = vmax.f32 %v1842_v46, %v1863_v2  ;;  %v1866_v33 = vmax.f32 %v1843_v32, %v1864_v20  ;;  %v1894_v49 = vpop.permute.xlu1 %1893  ;;  %v1948_v46 = vrot.slane %v6014_v17, %v6856_v53  ;;  %v1952_v32 = vrot.slane %v6014_v17, %v6861_v55 }
 0x18b   :  { %v1896_v26 = vmul.f32 %v1894_v49, %v6871_v59  ;;  %v1897_v25 = vmul.f32 %v1894_v49, %v6874_v61  ;;  %v6725_v49 = vmov 121   ;;  %6507 = vset.pattern.permute.xlu0 %v6677_v28  ;;  %v6017_v28 = vld [vmem:[%s9117_s1 + $0xa6] ss:$8 sm:$0x3] }
 0x18c   :  { %6436 = vset.pattern.permute.xlu1 %v6724_v63  ;;  %v1888_v57 = vmax.f32 %v1865_v50, %v1886_v42  ;;  %v1889_v30 = vmax.f32 %v1866_v33, %v1887_v31  ;;  %v1955_v31 = vadd.f32 %v1948_v46, %v1942_v41  ;;  %v1956_v13 = vadd.f32 %v1952_v32, %v1943_v51  ;;  %v2009_v41 = vpop.permute.xlu0 %2008 }
 0x18d   :  { %2790 = vperm.xlu1 %6436, %v7504_v3   ;;  %v1909_v62 = vadd.f32 %v1902_v40, %v1896_v26  ;;  %v1910_v58 = vadd.f32 %v1906_v23, %v1897_v25  ;;  %v6015_v40 = vld [vmem:[%s9117_s1 + $0xa4] ss:$8 sm:$0x3]  ;;  %4424 = vperm.xlu0 %6507, %v7349_v22  }
 0x18e   :  { %v1971_v8 = vrot.slane %v6015_v40, %v6856_v53 }
 0x18f   :  { %v1917_v38 = vpop.permute.xlu1 %1916  ;;  %v1911_v23 = vmax.f32 %v1888_v57, %v1909_v62  ;;  %v1912_v50 = vmax.f32 %v1889_v30, %v1910_v58  ;;  %v6016_v57 = vld [vmem:[%s9117_s1 + $0xa5] ss:$8 sm:$0x3]  ;;  %v6726_v30 = vmov 123  }
 0x190   :  { %v1919_v2 = vmul.f32 %v1917_v38, %v6871_v59  ;;  %v1920_v20 = vmul.f32 %v1917_v38, %v6874_v61  ;;  %v1975_v38 = vrot.slane %v6015_v40, %v6861_v55  ;;  %v1994_v62 = vrot.slane %v6016_v57, %v6856_v53 }
 0x191   :  { %6437 = vset.pattern.permute.xlu1 %v6725_v49  ;;  %v1998_v58 = vrot.slane %v6016_v57, %v6861_v55  ;;  %6510 = vset.pattern.permute.xlu0 %v6680_v18  ;;  %v2017_v40 = vrot.slane %v6017_v28, %v6856_v53  ;;  %v6727_v18 = vmov 124  }
 0x192   :  { %v1932_v33 = vadd.f32 %v1925_v44, %v1919_v2  ;;  %v1933_v42 = vadd.f32 %v1929_v36, %v1920_v20  ;;  %2813 = vperm.xlu1 %6437, %v7504_v3   ;;  %4493 = vperm.xlu0 %6510, %v7349_v22  }
 0x194   :  { %v1934_v26 = vmax.f32 %v1911_v23, %v1932_v33  ;;  %v1935_v25 = vmax.f32 %v1912_v50, %v1933_v42  ;;  %v1963_v17 = vpop.permute.xlu1 %1962  ;;  %v2021_v23 = vrot.slane %v6017_v28, %v6861_v55  ;;  %v2011_v42 = vmul.f32 %v2009_v41, %v6871_v59 }
 0x195   :  { %v1965_v44 = vmul.f32 %v1963_v17, %v6871_v59  ;;  %v1966_v36 = vmul.f32 %v1963_v17, %v6874_v61 }
 0x196   :  { %6439 = vset.pattern.permute.xlu1 %v6726_v30  ;;  %v1957_v51 = vmax.f32 %v1934_v26, %v1955_v31  ;;  %v1958_v46 = vmax.f32 %v1935_v25, %v1956_v13  ;;  %v2012_v31 = vmul.f32 %v2009_v41, %v6874_v61  ;;  %v6018_v13 = vld [vmem:[%s9117_s1 + $0xa7] ss:$8 sm:$0x3]  ;;  %6513 = vset.pattern.permute.xlu0 %v6683_v54  ;;  %v6020_v54 = vld [vmem:[%s9117_s1 + $0xb1] ss:$8 sm:$0x3] }
 0x197   :  { %2859 = vperm.xlu1 %6439, %v7504_v3   ;;  %v1978_v32 = vadd.f32 %v1971_v8, %v1965_v44  ;;  %v1979_v2 = vadd.f32 %v1975_v38, %v1966_v36  ;;  %v2040_v38 = vrot.slane %v6018_v13, %v6856_v53  ;;  %v2044_v57 = vrot.slane %v6018_v13, %v6861_v55 }
 0x198   :  { %v2024_v28 = vadd.f32 %v2017_v40, %v2011_v42  ;;  %v2025_v41 = vadd.f32 %v2021_v23, %v2012_v31  ;;  %4562 = vperm.xlu0 %6513, %v7349_v22   ;;  %v2078_v40 = vpop.permute.xlu0 %2077  ;;  %v2086_v13 = vrot.slane %v6020_v54, %v6856_v53 }
 0x199   :  { %v1986_v20 = vpop.permute.xlu1 %1985  ;;  %v1980_v26 = vmax.f32 %v1957_v51, %v1978_v32  ;;  %v1981_v25 = vmax.f32 %v1958_v46, %v1979_v2  ;;  %v6019_v51 = vld [vmem:[%s9117_s1 + $0xb0] ss:$8 sm:$0x3]  ;;  %v6728_v46 = vmov 126  }
 0x19a   :  { %v1988_v50 = vmul.f32 %v1986_v20, %v6871_v59  ;;  %v1989_v33 = vmul.f32 %v1986_v20, %v6874_v61  ;;  %v2063_v32 = vrot.slane %v6019_v51, %v6856_v53  ;;  %v2067_v2 = vrot.slane %v6019_v51, %v6861_v55 }
 0x19b   :  { %6440 = vset.pattern.permute.xlu1 %v6727_v18 }
 0x19c   :  { %v2001_v17 = vadd.f32 %v1994_v62, %v1988_v50  ;;  %v2002_v8 = vadd.f32 %v1998_v58, %v1989_v33  ;;  %2882 = vperm.xlu1 %6440, %v7504_v3   ;;  %6516 = vset.pattern.permute.xlu0 %v6686_v24  ;;  %v6729_v24 = vmov 127  }
 0x19d   :  { %4631 = vperm.xlu0 %6516, %v7349_v22  }
 0x19e   :  { %v2003_v44 = vmax.f32 %v1980_v26, %v2001_v17  ;;  %v2004_v36 = vmax.f32 %v1981_v25, %v2002_v8  ;;  %v2032_v20 = vpop.permute.xlu1 %2031  ;;  %v2090_v26 = vrot.slane %v6020_v54, %v6861_v55  ;;  %v2080_v8 = vmul.f32 %v2078_v40, %v6871_v59 }
 0x19f   :  { %v2034_v62 = vmul.f32 %v2032_v20, %v6871_v59  ;;  %v2035_v58 = vmul.f32 %v2032_v20, %v6874_v61 }
 0x1a0   :  { %6442 = vset.pattern.permute.xlu1 %v6728_v46  ;;  %v2026_v23 = vmax.f32 %v2003_v44, %v2024_v28  ;;  %v2027_v50 = vmax.f32 %v2004_v36, %v2025_v41  ;;  %v2081_v44 = vmul.f32 %v2078_v40, %v6874_v61 }
 0x1a1   :  { %2928 = vperm.xlu1 %6442, %v7504_v3   ;;  %v2047_v33 = vadd.f32 %v2040_v38, %v2034_v62  ;;  %v2048_v42 = vadd.f32 %v2044_v57, %v2035_v58  ;;  %v6021_v38 = vld [vmem:[%s9117_s1 + $0xb2] ss:$8 sm:$0x3]  ;;  %6519 = vset.pattern.permute.xlu0 %v6689_v14  ;;  %v2093_v58 = vadd.f32 %v2086_v13, %v2080_v8 }
 0x1a2   :  { %v2109_v22 = vrot.slane %v6021_v38, %v6856_v53  ;;  %v2113_v20 = vrot.slane %v6021_v38, %v6861_v55  ;;  %v2094_v54 = vadd.f32 %v2090_v26, %v2081_v44 }
 0x1a3   :  { %v2055_v31 = vpop.permute.xlu1 %2054  ;;  %v2049_v57 = vmax.f32 %v2026_v23, %v2047_v33  ;;  %v2050_v36 = vmax.f32 %v2027_v50, %v2048_v42  ;;  %v6022_v23 = vld [vmem:[%s9117_s1 + $0xb3] ss:$8 sm:$0x3]  ;;  %v2147_v42 = vpop.permute.xlu0 %2146 }
 0x1a4   :  { %v2057_v25 = vmul.f32 %v2055_v31, %v6871_v59  ;;  %v2058_v17 = vmul.f32 %v2055_v31, %v6874_v61  ;;  %v2132_v50 = vrot.slane %v6022_v23, %v6856_v53  ;;  %v2136_v33 = vrot.slane %v6022_v23, %v6861_v55 }
 0x1a5   :  { %6443 = vset.pattern.permute.xlu1 %v6729_v24 }
 0x1a6   :  { %v2070_v28 = vadd.f32 %v2063_v32, %v2057_v25  ;;  %v2071_v41 = vadd.f32 %v2067_v2, %v2058_v17  ;;  %2951 = vperm.xlu1 %6443, %v7504_v3   ;;  %v7732_v32 = vld [vmem:[%s9116_s0 + $0x8] sm:$0xff]  ;;  %v6023_v2 = vld [vmem:[%s9117_s1 + $0xb4] ss:$8 sm:$0x3] }
 0x1a7   :  { %4700 = vperm.xlu0 %6519, %v7732_v32   ;;  %v2159_v8 = vrot.slane %v6023_v2, %v6861_v55 }
 0x1a8   :  { %v2072_v51 = vmax.f32 %v2049_v57, %v2070_v28  ;;  %v2073_v62 = vmax.f32 %v2050_v36, %v2071_v41  ;;  %v2101_v40 = vpop.permute.xlu1 %2100  ;;  %v2149_v57 = vmul.f32 %v2147_v42, %v6871_v59  ;;  %v2150_v36 = vmul.f32 %v2147_v42, %v6874_v61  ;;  %v6024_v28 = vld [vmem:[%s9117_s1 + $0xb5] ss:$8 sm:$0x3]  ;;  %v2216_v42 = vpop.permute.xlu0 %2215 }
 0x1a9   :  { %v2103_v3 = vmul.f32 %v2101_v40, %v6871_v59  ;;  %v2104_v14 = vmul.f32 %v2101_v40, %v6874_v61 }
 0x1aa   :  { %6445 = vset.pattern.permute.xlu1 %v6605_v4  ;;  %v2095_v31 = vmax.f32 %v2072_v51, %v2093_v58  ;;  %v2096_v13 = vmax.f32 %v2073_v62, %v2094_v54  ;;  %v2155_v4 = vrot.slane %v6023_v2, %v6856_v53  ;;  %v2178_v51 = vrot.slane %v6024_v28, %v6856_v53 }
 0x1ab   :  { %2998 = vperm.xlu1 %6445, %v7732_v32   ;;  %v2116_v26 = vadd.f32 %v2109_v22, %v2103_v3  ;;  %v2117_v25 = vadd.f32 %v2113_v20, %v2104_v14  ;;  %6522 = vset.pattern.permute.xlu0 %v6692_v21  ;;  %v2182_v62 = vrot.slane %v6024_v28, %v6861_v55 }
 0x1ac   :  { %4769 = vperm.xlu0 %6522, %v7732_v32   ;;  %v2162_v40 = vadd.f32 %v2155_v4, %v2149_v57  ;;  %v2163_v23 = vadd.f32 %v2159_v8, %v2150_v36  ;;  %v2219_v57 = vmul.f32 %v2216_v42, %v6874_v61  ;;  %v6027_v36 = vld [vmem:[%s9117_s1 + $0xc0] ss:$8 sm:$0x3] }
 0x1ad   :  { %v2124_v17 = vpop.permute.xlu1 %2123  ;;  %v2118_v21 = vmax.f32 %v2095_v31, %v2116_v26  ;;  %v2119_v41 = vmax.f32 %v2096_v13, %v2117_v25 }
 0x1ae   :  { %v2126_v44 = vmul.f32 %v2124_v17, %v6871_v59  ;;  %v2127_v38 = vmul.f32 %v2124_v17, %v6874_v61 }
 0x1af   :  { %6446 = vset.pattern.permute.xlu1 %v6602_v1  ;;  %v6025_v1 = vld [vmem:[%s9117_s1 + $0xb6] ss:$8 sm:$0x3] }
 0x1b0   :  { %v2139_v22 = vadd.f32 %v2132_v50, %v2126_v44  ;;  %v2140_v20 = vadd.f32 %v2136_v33, %v2127_v38  ;;  %3021 = vperm.xlu1 %6446, %v7732_v32   ;;  %6525 = vset.pattern.permute.xlu0 %v6695_v12  ;;  %v6026_v12 = vld [vmem:[%s9117_s1 + $0xb7] ss:$8 sm:$0x3]  ;;  %v2201_v50 = vrot.slane %v6025_v1, %v6856_v53 }
 0x1b1   :  { %4838 = vperm.xlu0 %6525, %v7732_v32   ;;  %v2205_v33 = vrot.slane %v6025_v1, %v6861_v55  ;;  %v2228_v4 = vrot.slane %v6026_v12, %v6861_v55  ;;  %v2218_v38 = vmul.f32 %v2216_v42, %v6871_v59  ;;  %v9189_v1 = vmov 7  }
 0x1b2   :  { %v2141_v58 = vmax.f32 %v2118_v21, %v2139_v22  ;;  %v2142_v54 = vmax.f32 %v2119_v41, %v2140_v20  ;;  %v2170_v3 = vpop.permute.xlu1 %2169  ;;  %v2247_v22 = vrot.slane %v6027_v36, %v6856_v53  ;;  %v2251_v20 = vrot.slane %v6027_v36, %v6861_v55 }
 0x1b3   :  { %v2172_v14 = vmul.f32 %v2170_v3, %v6871_v59  ;;  %v2173_v2 = vmul.f32 %v2170_v3, %v6874_v61 }
 0x1b4   :  { %6448 = vset.pattern.permute.xlu1 %v6606_v5  ;;  %v2164_v31 = vmax.f32 %v2141_v58, %v2162_v40  ;;  %v2165_v13 = vmax.f32 %v2142_v54, %v2163_v23  ;;  %v2224_v5 = vrot.slane %v6026_v12, %v6856_v53  ;;  %v2232_v54 = vadd.f32 %v2228_v4, %v2219_v57  ;;  %v2285_v12 = vpop.permute.xlu0 %2284 }
 0x1b5   :  { %3067 = vperm.xlu1 %6448, %v7732_v32   ;;  %v2185_v26 = vadd.f32 %v2178_v51, %v2172_v14  ;;  %v2186_v25 = vadd.f32 %v2182_v62, %v2173_v2  ;;  %6528 = vset.pattern.permute.xlu0 %v6698_v37  ;;  %v2287_v4 = vmul.f32 %v2285_v12, %v6871_v59 }
 0x1b6   :  { %4907 = vperm.xlu0 %6528, %v7732_v32   ;;  %v2231_v58 = vadd.f32 %v2224_v5, %v2218_v38 }
 0x1b7   :  { %v2193_v17 = vpop.permute.xlu1 %2192  ;;  %v2187_v37 = vmax.f32 %v2164_v31, %v2185_v26  ;;  %v2188_v28 = vmax.f32 %v2165_v13, %v2186_v25 }
 0x1b8   :  { %v2195_v8 = vmul.f32 %v2193_v17, %v6871_v59  ;;  %v2196_v44 = vmul.f32 %v2193_v17, %v6874_v61 }
 0x1b9   :  { %6449 = vset.pattern.permute.xlu1 %v6607_v6  ;;  %v6028_v6 = vld [vmem:[%s9117_s1 + $0xc1] ss:$8 sm:$0x3] }
 0x1ba   :  { %v2208_v21 = vadd.f32 %v2201_v50, %v2195_v8  ;;  %v2209_v41 = vadd.f32 %v2205_v33, %v2196_v44  ;;  %3090 = vperm.xlu1 %6449, %v7732_v32   ;;  %6531 = vset.pattern.permute.xlu0 %v6701_v10  ;;  %v6029_v10 = vld [vmem:[%s9117_s1 + $0xc2] ss:$8 sm:$0x3]  ;;  %v2270_v14 = vrot.slane %v6028_v6, %v6856_v53  ;;  %v6030_v44 = vld [vmem:[%s9117_s1 + $0xc3] ss:$8 sm:$0x3] }
 0x1bb   :  { %4976 = vperm.xlu0 %6531, %v7732_v32   ;;  %v2274_v2 = vrot.slane %v6028_v6, %v6861_v55  ;;  %v2293_v26 = vrot.slane %v6029_v10, %v6856_v53  ;;  %v2297_v25 = vrot.slane %v6029_v10, %v6861_v55  ;;  %v2288_v8 = vmul.f32 %v2285_v12, %v6874_v61 }
 0x1bc   :  { %v2210_v51 = vmax.f32 %v2187_v37, %v2208_v21  ;;  %v2211_v62 = vmax.f32 %v2188_v28, %v2209_v41  ;;  %v2239_v40 = vpop.permute.xlu1 %2238  ;;  %v2316_v28 = vrot.slane %v6030_v44, %v6856_v53  ;;  %v2320_v21 = vrot.slane %v6030_v44, %v6861_v55 }
 0x1bd   :  { %v2241_v23 = vmul.f32 %v2239_v40, %v6871_v59  ;;  %v2242_v3 = vmul.f32 %v2239_v40, %v6874_v61  ;;  %v9191_v6 = vmov 10  }
 0x1be   :  { %6451 = vset.pattern.permute.xlu1 %v9189_v1  ;;  %v2233_v50 = vmax.f32 %v2210_v51, %v2231_v58  ;;  %v2234_v33 = vmax.f32 %v2211_v62, %v2232_v54  ;;  %v2301_v51 = vadd.f32 %v2297_v25, %v2288_v8  ;;  %v6031_v58 = vld [vmem:[%s9117_s1 + $0xc4] ss:$8 sm:$0x3]  ;;  %v2354_v1 = vpop.permute.xlu0 %2353 }
 0x1bf   :  { %3136 = vperm.xlu1 %6451, %v7732_v32   ;;  %v2254_v42 = vadd.f32 %v2247_v22, %v2241_v23  ;;  %v2255_v31 = vadd.f32 %v2251_v20, %v2242_v3  ;;  %6534 = vset.pattern.permute.xlu0 %v6704_v34  ;;  %v9190_v34 = vmov 8   ;;  %v2300_v20 = vadd.f32 %v2293_v26, %v2287_v4 }
 0x1c0   :  { %5045 = vperm.xlu0 %6534, %v7732_v32   ;;  %v2339_v23 = vrot.slane %v6031_v58, %v6856_v53  ;;  %v2343_v3 = vrot.slane %v6031_v58, %v6861_v55  ;;  %v2356_v26 = vmul.f32 %v2354_v1, %v6871_v59  ;;  %v2357_v25 = vmul.f32 %v2354_v1, %v6874_v61 }
 0x1c1   :  { %v2262_v13 = vpop.permute.xlu1 %2261  ;;  %v2256_v38 = vmax.f32 %v2233_v50, %v2254_v42  ;;  %v2257_v57 = vmax.f32 %v2234_v33, %v2255_v31 }
 0x1c2   :  { %v2264_v17 = vmul.f32 %v2262_v13, %v6871_v59  ;;  %v2265_v5 = vmul.f32 %v2262_v13, %v6874_v61 }
 0x1c3   :  { %6452 = vset.pattern.permute.xlu1 %v9190_v34 }
 0x1c4   :  { %v2277_v36 = vadd.f32 %v2270_v14, %v2264_v17  ;;  %v2278_v37 = vadd.f32 %v2274_v2, %v2265_v5  ;;  %3159 = vperm.xlu1 %6452, %v7732_v32   ;;  %6537 = vset.pattern.permute.xlu0 %v6706_v45  ;;  %v6032_v45 = vld [vmem:[%s9117_s1 + $0xc5] ss:$8 sm:$0x3]  ;;  %v6033_v17 = vld [vmem:[%s9117_s1 + $0xc6] ss:$8 sm:$0x3] }
 0x1c5   :  { %5114 = vperm.xlu0 %6537, %v7732_v32   ;;  %v2362_v33 = vrot.slane %v6032_v45, %v6856_v53  ;;  %v2366_v42 = vrot.slane %v6032_v45, %v6861_v55  ;;  %v2385_v34 = vrot.slane %v6033_v17, %v6856_v53 }
 0x1c6   :  { %v2279_v41 = vmax.f32 %v2256_v38, %v2277_v36  ;;  %v2280_v22 = vmax.f32 %v2257_v57, %v2278_v37  ;;  %v2308_v62 = vpop.permute.xlu1 %2307  ;;  %v2389_v38 = vrot.slane %v6033_v17, %v6861_v55 }
 0x1c7   :  { %v2310_v54 = vmul.f32 %v2308_v62, %v6871_v59  ;;  %v2311_v40 = vmul.f32 %v2308_v62, %v6874_v61  ;;  %v2369_v37 = vadd.f32 %v2362_v33, %v2356_v26  ;;  %v6036_v33 = vld [vmem:[%s9117_s1 + $0xd1] ss:$8 sm:$0x3] }
 0x1c8   :  { %6454 = vset.pattern.permute.xlu1 %v9191_v6  ;;  %v2302_v10 = vmax.f32 %v2279_v41, %v2300_v20  ;;  %v2303_v14 = vmax.f32 %v2280_v22, %v2301_v51  ;;  %v6034_v41 = vld [vmem:[%s9117_s1 + $0xc7] ss:$8 sm:$0x3]  ;;  %v9193_v51 = vmov 13   ;;  %v2458_v17 = vrot.slane %v6036_v33, %v6861_v55 }
 0x1c9   :  { %3205 = vperm.xlu1 %6454, %v7732_v32   ;;  %v2323_v2 = vadd.f32 %v2316_v28, %v2310_v54  ;;  %v2324_v12 = vadd.f32 %v2320_v21, %v2311_v40  ;;  %6540 = vset.pattern.permute.xlu0 %v6708_v52  ;;  %v9192_v52 = vmov 11   ;;  %v2370_v28 = vadd.f32 %v2366_v42, %v2357_v25  ;;  %v2423_v54 = vpop.permute.xlu0 %2422 }
 0x1ca   :  { %5183 = vperm.xlu0 %6540, %v7732_v32   ;;  %v2408_v62 = vrot.slane %v6034_v41, %v6856_v53  ;;  %v2412_v58 = vrot.slane %v6034_v41, %v6861_v55  ;;  %v2454_v25 = vrot.slane %v6036_v33, %v6856_v53 }
 0x1cb   :  { %v2331_v50 = vpop.permute.xlu1 %2330  ;;  %v2325_v5 = vmax.f32 %v2302_v10, %v2323_v2  ;;  %v2326_v4 = vmax.f32 %v2303_v14, %v2324_v12  ;;  %v2425_v12 = vmul.f32 %v2423_v54, %v6871_v59 }
 0x1cc   :  { %v2333_v31 = vmul.f32 %v2331_v50, %v6871_v59  ;;  %v2334_v13 = vmul.f32 %v2331_v50, %v6874_v61  ;;  %v2426_v50 = vmul.f32 %v2423_v54, %v6874_v61 }
 0x1cd   :  { %6455 = vset.pattern.permute.xlu1 %v9192_v52 }
 0x1ce   :  { %v2346_v8 = vadd.f32 %v2339_v23, %v2333_v31  ;;  %v2347_v44 = vadd.f32 %v2343_v3, %v2334_v13  ;;  %3228 = vperm.xlu1 %6455, %v7732_v32   ;;  %6543 = vset.pattern.permute.xlu0 %v6710_v7  ;;  %v6035_v7 = vld [vmem:[%s9117_s1 + $0xd0] ss:$8 sm:$0x3] }
 0x1cf   :  { %5252 = vperm.xlu0 %6543, %v7732_v32   ;;  %v2431_v1 = vrot.slane %v6035_v7, %v6856_v53  ;;  %v2435_v10 = vrot.slane %v6035_v7, %v6861_v55 }
 0x1d0   :  { %v2348_v57 = vmax.f32 %v2325_v5, %v2346_v8  ;;  %v2349_v36 = vmax.f32 %v2326_v4, %v2347_v44  ;;  %v2377_v21 = vpop.permute.xlu1 %2376 }
 0x1d1   :  { %v2379_v22 = vmul.f32 %v2377_v21, %v6871_v59  ;;  %v2380_v20 = vmul.f32 %v2377_v21, %v6874_v61  ;;  %v2438_v4 = vadd.f32 %v2431_v1, %v2425_v12  ;;  %v2439_v8 = vadd.f32 %v2435_v10, %v2426_v50  ;;  %v2492_v21 = vpop.permute.xlu0 %2491 }
 0x1d2   :  { %6457 = vset.pattern.permute.xlu1 %v9193_v51  ;;  %v2371_v40 = vmax.f32 %v2348_v57, %v2369_v37  ;;  %v2372_v6 = vmax.f32 %v2349_v36, %v2370_v28  ;;  %v9195_v36 = vmov 16  }
 0x1d3   :  { %3274 = vperm.xlu1 %6457, %v7732_v32   ;;  %v2392_v45 = vadd.f32 %v2385_v34, %v2379_v22  ;;  %v2393_v23 = vadd.f32 %v2389_v38, %v2380_v20  ;;  %6546 = vset.pattern.permute.xlu0 %v6712_v15  ;;  %v9194_v15 = vmov 14   ;;  %v6037_v34 = vld [vmem:[%s9117_s1 + $0xd2] ss:$8 sm:$0x3] }
 0x1d4   :  { %5321 = vperm.xlu0 %6546, %v7732_v32   ;;  %v2477_v37 = vrot.slane %v6037_v34, %v6856_v53  ;;  %v2481_v28 = vrot.slane %v6037_v34, %v6861_v55 }
 0x1d5   :  { %v2400_v3 = vpop.permute.xlu1 %2399  ;;  %v2394_v42 = vmax.f32 %v2371_v40, %v2392_v45  ;;  %v2395_v31 = vmax.f32 %v2372_v6, %v2393_v23  ;;  %v2494_v6 = vmul.f32 %v2492_v21, %v6871_v59  ;;  %v2495_v45 = vmul.f32 %v2492_v21, %v6874_v61  ;;  %v6039_v23 = vld [vmem:[%s9117_s1 + $0xd4] ss:$8 sm:$0x3] }
 0x1d6   :  { %v2402_v14 = vmul.f32 %v2400_v3, %v6871_v59  ;;  %v2403_v2 = vmul.f32 %v2400_v3, %v6874_v61  ;;  %v2527_v12 = vrot.slane %v6039_v23, %v6861_v55 }
 0x1d7   :  { %6458 = vset.pattern.permute.xlu1 %v9194_v15 }
 0x1d8   :  { %v2415_v13 = vadd.f32 %v2408_v62, %v2402_v14  ;;  %v2416_v26 = vadd.f32 %v2412_v58, %v2403_v2  ;;  %3297 = vperm.xlu1 %6458, %v7732_v32   ;;  %6549 = vset.pattern.permute.xlu0 %v6714_v16  ;;  %v6038_v16 = vld [vmem:[%s9117_s1 + $0xd3] ss:$8 sm:$0x3]  ;;  %v2523_v2 = vrot.slane %v6039_v23, %v6856_v53 }
 0x1d9   :  { %5390 = vperm.xlu0 %6549, %v7732_v32   ;;  %v2500_v62 = vrot.slane %v6038_v16, %v6856_v53  ;;  %v2504_v58 = vrot.slane %v6038_v16, %v6861_v55 }
 0x1da   :  { %v2417_v52 = vmax.f32 %v2394_v42, %v2415_v13  ;;  %v2418_v5 = vmax.f32 %v2395_v31, %v2416_v26  ;;  %v2446_v44 = vpop.permute.xlu1 %2445  ;;  %v6040_v13 = vld [vmem:[%s9117_s1 + $0xd5] ss:$8 sm:$0x3] }
 0x1db   :  { %v2448_v38 = vmul.f32 %v2446_v44, %v6871_v59  ;;  %v2449_v57 = vmul.f32 %v2446_v44, %v6874_v61  ;;  %v2507_v15 = vadd.f32 %v2500_v62, %v2494_v6  ;;  %v2508_v42 = vadd.f32 %v2504_v58, %v2495_v45 }
 0x1dc   :  { %6460 = vset.pattern.permute.xlu1 %v9195_v36  ;;  %v2440_v41 = vmax.f32 %v2417_v52, %v2438_v4  ;;  %v2441_v22 = vmax.f32 %v2418_v5, %v2439_v8  ;;  %v2546_v52 = vrot.slane %v6040_v13, %v6856_v53  ;;  %v2550_v5 = vrot.slane %v6040_v13, %v6861_v55  ;;  %v2561_v4 = vpop.permute.xlu0 %2560 }
 0x1dd   :  { %3343 = vperm.xlu1 %6460, %v7732_v32   ;;  %v2461_v20 = vadd.f32 %v2454_v25, %v2448_v38  ;;  %v2462_v51 = vadd.f32 %v2458_v17, %v2449_v57  ;;  %6552 = vset.pattern.permute.xlu0 %v6716_v39  ;;  %v9196_v39 = vmov 17   ;;  %v9197_v17 = vmov 19  }
 0x1de   :  { %5459 = vperm.xlu0 %6552, %v7732_v32   ;;  %v2563_v21 = vmul.f32 %v2561_v4, %v6871_v59 }
 0x1df   :  { %v2469_v7 = vpop.permute.xlu1 %2468  ;;  %v2463_v3 = vmax.f32 %v2440_v41, %v2461_v20  ;;  %v2464_v1 = vmax.f32 %v2441_v22, %v2462_v51  ;;  %v2564_v41 = vmul.f32 %v2561_v4, %v6874_v61  ;;  %v6042_v22 = vld [vmem:[%s9117_s1 + $0xd7] ss:$8 sm:$0x3]  ;;  %v6045_v4 = vld [vmem:[%s9117_s1 + $0xe2] ss:$8 sm:$0x3] }
 0x1e0   :  { %v2471_v54 = vmul.f32 %v2469_v7, %v6871_v59  ;;  %v2472_v40 = vmul.f32 %v2469_v7, %v6874_v61  ;;  %v2592_v58 = vrot.slane %v6042_v22, %v6856_v53 }
 0x1e1   :  { %6461 = vset.pattern.permute.xlu1 %v9196_v39 }
 0x1e2   :  { %v2484_v10 = vadd.f32 %v2477_v37, %v2471_v54  ;;  %v2485_v14 = vadd.f32 %v2481_v28, %v2472_v40  ;;  %3366 = vperm.xlu1 %6461, %v7732_v32   ;;  %6555 = vset.pattern.permute.xlu0 %v6718_v29  ;;  %v6041_v29 = vld [vmem:[%s9117_s1 + $0xd6] ss:$8 sm:$0x3]  ;;  %v2596_v54 = vrot.slane %v6042_v22, %v6861_v55  ;;  %v6046_v22 = vld [vmem:[%s9117_s1 + $0xe3] ss:$8 sm:$0x3] }
 0x1e3   :  { %5528 = vperm.xlu0 %6555, %v7732_v32   ;;  %v2569_v36 = vrot.slane %v6041_v29, %v6856_v53  ;;  %v2573_v16 = vrot.slane %v6041_v29, %v6861_v55 }
 0x1e4   :  { %v2486_v50 = vmax.f32 %v2463_v3, %v2484_v10  ;;  %v2487_v33 = vmax.f32 %v2464_v1, %v2485_v14  ;;  %v2515_v31 = vpop.permute.xlu1 %2514  ;;  %v6043_v3 = vld [vmem:[%s9117_s1 + $0xe0] ss:$8 sm:$0x3]  ;;  %v9199_v14 = vmov 22  }
 0x1e5   :  { %v2517_v26 = vmul.f32 %v2515_v31, %v6871_v59  ;;  %v2518_v25 = vmul.f32 %v2515_v31, %v6874_v61  ;;  %v2576_v45 = vadd.f32 %v2569_v36, %v2563_v21  ;;  %v2577_v23 = vadd.f32 %v2573_v16, %v2564_v41 }
 0x1e6   :  { %6463 = vset.pattern.permute.xlu1 %v9197_v17  ;;  %v2509_v8 = vmax.f32 %v2486_v50, %v2507_v15  ;;  %v2510_v44 = vmax.f32 %v2487_v33, %v2508_v42  ;;  %v2630_v50 = vpop.permute.xlu0 %2629  ;;  %v2665_v36 = vrot.slane %v6045_v4, %v6861_v55 }
 0x1e7   :  { %3412 = vperm.xlu1 %6463, %v7732_v32   ;;  %v2530_v34 = vadd.f32 %v2523_v2, %v2517_v26  ;;  %v2531_v38 = vadd.f32 %v2527_v12, %v2518_v25  ;;  %6558 = vset.pattern.permute.xlu0 %v6720_v47  ;;  %v9198_v47 = vmov 20   ;;  %v2615_v2 = vrot.slane %v6043_v3, %v6856_v53 }
 0x1e8   :  { %5597 = vperm.xlu0 %6558, %v7732_v32   ;;  %v2619_v12 = vrot.slane %v6043_v3, %v6861_v55 }
 0x1e9   :  { %v2538_v57 = vpop.permute.xlu1 %2537  ;;  %v2532_v20 = vmax.f32 %v2509_v8, %v2530_v34  ;;  %v2533_v51 = vmax.f32 %v2510_v44, %v2531_v38 }
 0x1ea   :  { %v2540_v37 = vmul.f32 %v2538_v57, %v6871_v59  ;;  %v2541_v28 = vmul.f32 %v2538_v57, %v6874_v61  ;;  %v2661_v57 = vrot.slane %v6045_v4, %v6856_v53 }
 0x1eb   :  { %6464 = vset.pattern.permute.xlu1 %v9198_v47 }
 0x1ec   :  { %v2553_v7 = vadd.f32 %v2546_v52, %v2540_v37  ;;  %v2554_v62 = vadd.f32 %v2550_v5, %v2541_v28  ;;  %3435 = vperm.xlu1 %6464, %v7732_v32   ;;  %6561 = vset.pattern.permute.xlu0 %v6722_v48  ;;  %v6044_v48 = vld [vmem:[%s9117_s1 + $0xe1] ss:$8 sm:$0x3]  ;;  %v2632_v52 = vmul.f32 %v2630_v50, %v6871_v59 }
 0x1ed   :  { %5666 = vperm.xlu0 %6561, %v7732_v32   ;;  %v2638_v26 = vrot.slane %v6044_v48, %v6856_v53  ;;  %v2642_v25 = vrot.slane %v6044_v48, %v6861_v55  ;;  %v2633_v5 = vmul.f32 %v2630_v50, %v6874_v61 }
 0x1ee   :  { %v2555_v40 = vmax.f32 %v2532_v20, %v2553_v7  ;;  %v2556_v6 = vmax.f32 %v2533_v51, %v2554_v62  ;;  %v2584_v39 = vpop.permute.xlu1 %2583  ;;  %v9201_v51 = vmov 25   ;;  %v2684_v7 = vrot.slane %v6046_v22, %v6856_v53 }
 0x1ef   :  { %v2586_v1 = vmul.f32 %v2584_v39, %v6871_v59  ;;  %v2587_v10 = vmul.f32 %v2584_v39, %v6874_v61  ;;  %v2645_v28 = vadd.f32 %v2638_v26, %v2632_v52  ;;  %v2646_v21 = vadd.f32 %v2642_v25, %v2633_v5  ;;  %v6049_v52 = vld [vmem:[%s9117_s1 + $0xe6] ss:$8 sm:$0x3] }
 0x1f0   :  { %6466 = vset.pattern.permute.xlu1 %v9199_v14  ;;  %v2578_v33 = vmax.f32 %v2555_v40, %v2576_v45  ;;  %v2579_v15 = vmax.f32 %v2556_v6, %v2577_v23  ;;  %v2688_v62 = vrot.slane %v6046_v22, %v6861_v55 }
 0x1f1   :  { %3481 = vperm.xlu1 %6466, %v7732_v32   ;;  %v2599_v42 = vadd.f32 %v2592_v58, %v2586_v1  ;;  %v2600_v31 = vadd.f32 %v2596_v54, %v2587_v10  ;;  %6564 = vset.pattern.permute.xlu0 %v6724_v63  ;;  %v9200_v63 = vmov 23   ;;  %v2699_v58 = vpop.permute.xlu0 %2698 }
 0x1f2   :  { %5735 = vperm.xlu0 %6564, %v7732_v32   ;;  %v2701_v14 = vmul.f32 %v2699_v58, %v6871_v59  ;;  %v2702_v48 = vmul.f32 %v2699_v58, %v6874_v61 }
 0x1f3   :  { %v2607_v13 = vpop.permute.xlu1 %2606  ;;  %v2601_v8 = vmax.f32 %v2578_v33, %v2599_v42  ;;  %v2602_v44 = vmax.f32 %v2579_v15, %v2600_v31 }
 0x1f4   :  { %v2609_v17 = vmul.f32 %v2607_v13, %v6871_v59  ;;  %v2610_v29 = vmul.f32 %v2607_v13, %v6874_v61 }
 0x1f5   :  { %6467 = vset.pattern.permute.xlu1 %v9200_v63  ;;  %v9203_v63 = vmov 28  }
 0x1f6   :  { %v2622_v34 = vadd.f32 %v2615_v2, %v2609_v17  ;;  %v2623_v38 = vadd.f32 %v2619_v12, %v2610_v29  ;;  %3504 = vperm.xlu1 %6467, %v7732_v32   ;;  %6567 = vset.pattern.permute.xlu0 %v6726_v30  ;;  %v6047_v30 = vld [vmem:[%s9117_s1 + $0xe4] ss:$8 sm:$0x3]  ;;  %v6048_v2 = vld [vmem:[%s9117_s1 + $0xe5] ss:$8 sm:$0x3] }
 0x1f7   :  { %5804 = vperm.xlu0 %6567, %v7732_v32   ;;  %v2707_v39 = vrot.slane %v6047_v30, %v6856_v53  ;;  %v2711_v3 = vrot.slane %v6047_v30, %v6861_v55  ;;  %v2730_v42 = vrot.slane %v6048_v2, %v6856_v53  ;;  %v2734_v31 = vrot.slane %v6048_v2, %v6861_v55  ;;  %v6051_v30 = vld [vmem:[%s9117_s1 + $0xf0] ss:$8 sm:$0x3] }
 0x1f8   :  { %v2624_v16 = vmax.f32 %v2601_v8, %v2622_v34  ;;  %v2625_v37 = vmax.f32 %v2602_v44, %v2623_v38  ;;  %v2653_v41 = vpop.permute.xlu1 %2652  ;;  %v6050_v8 = vld [vmem:[%s9117_s1 + $0xe7] ss:$8 sm:$0x3]  ;;  %v2753_v44 = vrot.slane %v6049_v52, %v6856_v53  ;;  %v2757_v34 = vrot.slane %v6049_v52, %v6861_v55  ;;  %v2768_v38 = vpop.permute.xlu0 %2767 }
 0x1f9   :  { %v2655_v47 = vmul.f32 %v2653_v41, %v6871_v59  ;;  %v2656_v20 = vmul.f32 %v2653_v41, %v6874_v61  ;;  %v2714_v25 = vadd.f32 %v2707_v39, %v2701_v14  ;;  %v2715_v17 = vadd.f32 %v2711_v3, %v2702_v48  ;;  %v6052_v14 = vld [vmem:[%s9117_s1 + $0xf1] ss:$8 sm:$0x3] }
 0x1fa   :  { %6469 = vset.pattern.permute.xlu1 %v9201_v51  ;;  %v2647_v54 = vmax.f32 %v2624_v16, %v2645_v28  ;;  %v2648_v40 = vmax.f32 %v2625_v37, %v2646_v21  ;;  %v2776_v21 = vrot.slane %v6050_v8, %v6856_v53  ;;  %v2780_v41 = vrot.slane %v6050_v8, %v6861_v55  ;;  %v6054_v8 = vld [vmem:[%s9117_s1 + $0xf3] ss:$8 sm:$0x3] }
 0x1fb   :  { %3550 = vperm.xlu1 %6469, %v7732_v32   ;;  %v2668_v6 = vadd.f32 %v2661_v57, %v2655_v47  ;;  %v2669_v45 = vadd.f32 %v2665_v36, %v2656_v20  ;;  %6570 = vset.pattern.permute.xlu0 %v6728_v46  ;;  %v9202_v46 = vmov 26   ;;  %v2770_v20 = vmul.f32 %v2768_v38, %v6871_v59 }
 0x1fc   :  { %5873 = vperm.xlu0 %6570, %v7732_v32   ;;  %v2771_v51 = vmul.f32 %v2768_v38, %v6874_v61 }
 0x1fd   :  { %v2676_v23 = vpop.permute.xlu1 %2675  ;;  %v2670_v12 = vmax.f32 %v2647_v54, %v2668_v6  ;;  %v2671_v50 = vmax.f32 %v2648_v40, %v2669_v45  ;;  %v2799_v6 = vrot.slane %v6051_v30, %v6856_v53  ;;  %v2803_v45 = vrot.slane %v6051_v30, %v6861_v55 }
 0x1fe   :  { %v2678_v1 = vmul.f32 %v2676_v23, %v6871_v59  ;;  %v2679_v10 = vmul.f32 %v2676_v23, %v6874_v61  ;;  %v2783_v3 = vadd.f32 %v2776_v21, %v2770_v20  ;;  %v6055_v20 = vld [vmem:[%s9117_s1 + $0xf4] ss:$8 sm:$0x3] }
 0x1ff   :  { %6470 = vset.pattern.permute.xlu1 %v9202_v46  ;;  %v9205_v46 = vmov 31  }
 0x200   :  { %v2691_v33 = vadd.f32 %v2684_v7, %v2678_v1  ;;  %v2692_v15 = vadd.f32 %v2688_v62, %v2679_v10  ;;  %3573 = vperm.xlu1 %6470, %v7732_v32   ;;  %6572 = vset.pattern.permute.xlu0 %v6729_v24  ;;  %v9204_v7 = vmov 29   ;;  %v2784_v1 = vadd.f32 %v2780_v41, %v2771_v51 }
 0x202   :  { %v2693_v13 = vmax.f32 %v2670_v12, %v2691_v33  ;;  %v2694_v26 = vmax.f32 %v2671_v50, %v2692_v15  ;;  %v2722_v29 = vpop.permute.xlu1 %2721  ;;  %v6053_v12 = vld [vmem:[%s9117_s1 + $0xf2] ss:$8 sm:$0x3]  ;;  %v2822_v50 = vrot.slane %v6052_v14, %v6856_v53  ;;  %v2826_v33 = vrot.slane %v6052_v14, %v6861_v55  ;;  %v2837_v15 = vpop.permute.xlu0 %2836 }
 0x203   :  { %v2724_v5 = vmul.f32 %v2722_v29, %v6871_v59  ;;  %v2725_v4 = vmul.f32 %v2722_v29, %v6874_v61  ;;  %v2849_v29 = vrot.slane %v6053_v12, %v6861_v55 }
 0x204   :  { %6472 = vset.pattern.permute.xlu1 %v9203_v63  ;;  %v2716_v57 = vmax.f32 %v2693_v13, %v2714_v25  ;;  %v2717_v36 = vmax.f32 %v2694_v26, %v2715_v17  ;;  %v2845_v17 = vrot.slane %v6053_v12, %v6856_v53  ;;  %v2840_v63 = vmul.f32 %v2837_v15, %v6874_v61  ;;  %v6057_v12 = vld [vmem:[%s9117_s1 + $0xf6] ss:$8 sm:$0x3] }
 0x205   :  { %3619 = vperm.xlu1 %6472, %v7732_v32   ;;  %v2737_v16 = vadd.f32 %v2730_v42, %v2724_v5  ;;  %v2738_v37 = vadd.f32 %v2734_v31, %v2725_v4  ;;  %v2839_v4 = vmul.f32 %v2837_v15, %v6871_v59 }
 0x207   :  { %v2745_v28 = vpop.permute.xlu1 %2744  ;;  %v2739_v62 = vmax.f32 %v2716_v57, %v2737_v16  ;;  %v2740_v58 = vmax.f32 %v2717_v36, %v2738_v37  ;;  %v2868_v16 = vrot.slane %v6054_v8, %v6856_v53  ;;  %v2872_v37 = vrot.slane %v6054_v8, %v6861_v55 }
 0x208   :  { %v2747_v22 = vmul.f32 %v2745_v28, %v6871_v59  ;;  %v2748_v47 = vmul.f32 %v2745_v28, %v6874_v61  ;;  %v2852_v41 = vadd.f32 %v2845_v17, %v2839_v4  ;;  %v6058_v4 = vld [vmem:[%s9117_s1 + $0xf7] ss:$8 sm:$0x3] }
 0x209   :  { %6473 = vset.pattern.permute.xlu1 %v9204_v7  ;;  %v9207_v7 = vmov 34  }
 0x20a   :  { %v2760_v54 = vadd.f32 %v2753_v44, %v2747_v22  ;;  %v2761_v40 = vadd.f32 %v2757_v34, %v2748_v47  ;;  %3642 = vperm.xlu1 %6473, %v7732_v32   ;;  %v9206_v44 = vmov 32   ;;  %v2853_v22 = vadd.f32 %v2849_v29, %v2840_v63 }
 0x20c   :  { %v2762_v23 = vmax.f32 %v2739_v62, %v2760_v54  ;;  %v2763_v39 = vmax.f32 %v2740_v58, %v2761_v40  ;;  %v2791_v10 = vpop.permute.xlu1 %2790  ;;  %v6056_v62 = vld [vmem:[%s9117_s1 + $0xf5] ss:$8 sm:$0x3]  ;;  %v2891_v58 = vrot.slane %v6055_v20, %v6856_v53  ;;  %v2895_v54 = vrot.slane %v6055_v20, %v6861_v55  ;;  %v2906_v40 = vpop.permute.xlu0 %2905 }
 0x20d   :  { %v2793_v48 = vmul.f32 %v2791_v10, %v6871_v59  ;;  %v2794_v2 = vmul.f32 %v2791_v10, %v6874_v61  ;;  %v2918_v10 = vrot.slane %v6056_v62, %v6861_v55 }
 0x20e   :  { %6475 = vset.pattern.permute.xlu1 %v9205_v46  ;;  %v2785_v42 = vmax.f32 %v2762_v23, %v2783_v3  ;;  %v2786_v31 = vmax.f32 %v2763_v39, %v2784_v1  ;;  %v2914_v1 = vrot.slane %v6056_v62, %v6856_v53  ;;  %v2909_v46 = vmul.f32 %v2906_v40, %v6874_v61 }
 0x20f   :  { %3688 = vperm.xlu1 %6475, %v7732_v32   ;;  %v2806_v13 = vadd.f32 %v2799_v6, %v2793_v48  ;;  %v2807_v26 = vadd.f32 %v2803_v45, %v2794_v2  ;;  %v2908_v2 = vmul.f32 %v2906_v40, %v6871_v59  ;;  %v9210_v62 = vmov 38  }
 0x211   :  { %v2814_v25 = vpop.permute.xlu1 %2813  ;;  %v2808_v34 = vmax.f32 %v2785_v42, %v2806_v13  ;;  %v2809_v38 = vmax.f32 %v2786_v31, %v2807_v26  ;;  %v2937_v13 = vrot.slane %v6057_v12, %v6856_v53  ;;  %v2941_v26 = vrot.slane %v6057_v12, %v6861_v55 }
 0x212   :  { %v2816_v52 = vmul.f32 %v2814_v25, %v6871_v59  ;;  %v2817_v5 = vmul.f32 %v2814_v25, %v6874_v61  ;;  %v2921_v29 = vadd.f32 %v2914_v1, %v2908_v2  ;;  %v6061_v2 = vld [vmem:[%s9117_s1 + $0x102] ss:$8 sm:$0x3] }
 0x213   :  { %6476 = vset.pattern.permute.xlu1 %v9206_v44  ;;  %v9209_v44 = vmov 37  }
 0x214   :  { %v2829_v57 = vadd.f32 %v2822_v50, %v2816_v52  ;;  %v2830_v36 = vadd.f32 %v2826_v33, %v2817_v5  ;;  %3711 = vperm.xlu1 %6476, %v7732_v32   ;;  %v9208_v50 = vmov 35   ;;  %v2922_v52 = vadd.f32 %v2918_v10, %v2909_v46 }
 0x216   :  { %v2831_v28 = vmax.f32 %v2808_v34, %v2829_v57  ;;  %v2832_v21 = vmax.f32 %v2809_v38, %v2830_v36  ;;  %v2860_v47 = vpop.permute.xlu1 %2859  ;;  %v6059_v34 = vld [vmem:[%s9117_s1 + $0x100] ss:$8 sm:$0x3]  ;;  %v2976_v38 = vpop.permute.xlu0 %2975  ;;  %v2960_v57 = vrot.slane %v6058_v4, %v6856_v53  ;;  %v2964_v36 = vrot.slane %v6058_v4, %v6861_v55 }
 0x217   :  { %v2862_v51 = vmul.f32 %v2860_v47, %v6871_v59  ;;  %v2863_v30 = vmul.f32 %v2860_v47, %v6874_v61  ;;  %v2979_v47 = vmul.f32 %v2976_v38, %v6874_v61  ;;  %v2984_v20 = vrot.slane %v6059_v34, %v6856_v53 }
 0x218   :  { %6478 = vset.pattern.permute.xlu1 %v9207_v7  ;;  %v2854_v6 = vmax.f32 %v2831_v28, %v2852_v41  ;;  %v2855_v45 = vmax.f32 %v2832_v21, %v2853_v22  ;;  %v2978_v22 = vmul.f32 %v2976_v38, %v6871_v59  ;;  %v6063_v38 = vld [vmem:[%s9117_s1 + $0x104] ss:$8 sm:$0x3] }
 0x219   :  { %3757 = vperm.xlu1 %6478, %v7732_v32   ;;  %v2875_v23 = vadd.f32 %v2868_v16, %v2862_v51  ;;  %v2876_v39 = vadd.f32 %v2872_v37, %v2863_v30  ;;  %v2988_v51 = vrot.slane %v6059_v34, %v6861_v55  ;;  %v9212_v34 = vmov 41  }
 0x21b   :  { %v2883_v3 = vpop.permute.xlu1 %2882  ;;  %v2877_v33 = vmax.f32 %v2854_v6, %v2875_v23  ;;  %v2878_v15 = vmax.f32 %v2855_v45, %v2876_v39  ;;  %v2991_v23 = vadd.f32 %v2984_v20, %v2978_v22  ;;  %v2992_v39 = vadd.f32 %v2988_v51, %v2979_v47 }
 0x21c   :  { %v2885_v14 = vmul.f32 %v2883_v3, %v6871_v59  ;;  %v2886_v48 = vmul.f32 %v2883_v3, %v6874_v61  ;;  %v3076_v20 = vrot.slane %v6063_v38, %v6856_v53  ;;  %v3080_v51 = vrot.slane %v6063_v38, %v6861_v55 }
 0x21d   :  { %6479 = vset.pattern.permute.xlu1 %v9208_v50  ;;  %v9211_v50 = vmov 40   ;;  %v9215_v38 = vmov 46  }
 0x21e   :  { %v2898_v42 = vadd.f32 %v2891_v58, %v2885_v14  ;;  %v2899_v31 = vadd.f32 %v2895_v54, %v2886_v48  ;;  %3780 = vperm.xlu1 %6479, %v7732_v32   ;;  %v6060_v58 = vld [vmem:[%s9117_s1 + $0x101] ss:$8 sm:$0x3] }
 0x21f   :  { %v3007_v14 = vrot.slane %v6060_v58, %v6856_v53  ;;  %v3011_v48 = vrot.slane %v6060_v58, %v6861_v55  ;;  %v9213_v58 = vmov 43  }
 0x220   :  { %v2900_v25 = vmax.f32 %v2877_v33, %v2898_v42  ;;  %v2901_v17 = vmax.f32 %v2878_v15, %v2899_v31  ;;  %v2929_v5 = vpop.permute.xlu1 %2928  ;;  %v6062_v33 = vld [vmem:[%s9117_s1 + $0x103] ss:$8 sm:$0x3]  ;;  %v3045_v15 = vpop.permute.xlu0 %3044  ;;  %v3030_v42 = vrot.slane %v6061_v2, %v6856_v53  ;;  %v3034_v31 = vrot.slane %v6061_v2, %v6861_v55 }
 0x221   :  { %v2931_v63 = vmul.f32 %v2929_v5, %v6871_v59  ;;  %v2932_v8 = vmul.f32 %v2929_v5, %v6874_v61  ;;  %v3048_v5 = vmul.f32 %v3045_v15, %v6874_v61  ;;  %v3053_v4 = vrot.slane %v6062_v33, %v6856_v53 }
 0x222   :  { %6481 = vset.pattern.permute.xlu1 %v9209_v44  ;;  %v2923_v16 = vmax.f32 %v2900_v25, %v2921_v29  ;;  %v2924_v37 = vmax.f32 %v2901_v17, %v2922_v52  ;;  %v3047_v52 = vmul.f32 %v3045_v15, %v6871_v59  ;;  %v6066_v15 = vld [vmem:[%s9117_s1 + $0x107] ss:$8 sm:$0x3] }
 0x223   :  { %3826 = vperm.xlu1 %6481, %v7732_v32   ;;  %v2944_v28 = vadd.f32 %v2937_v13, %v2931_v63  ;;  %v2945_v21 = vadd.f32 %v2941_v26, %v2932_v8  ;;  %v3057_v63 = vrot.slane %v6062_v33, %v6861_v55  ;;  %v9214_v33 = vmov 44  }
 0x225   :  { %v2952_v41 = vpop.permute.xlu1 %2951  ;;  %v2946_v54 = vmax.f32 %v2923_v16, %v2944_v28  ;;  %v2947_v40 = vmax.f32 %v2924_v37, %v2945_v21  ;;  %v3060_v28 = vadd.f32 %v3053_v4, %v3047_v52  ;;  %v3061_v21 = vadd.f32 %v3057_v63, %v3048_v5 }
 0x226   :  { %v2954_v30 = vmul.f32 %v2952_v41, %v6871_v59  ;;  %v2955_v7 = vmul.f32 %v2952_v41, %v6874_v61  ;;  %v3145_v4 = vrot.slane %v6066_v15, %v6856_v53  ;;  %v3149_v63 = vrot.slane %v6066_v15, %v6861_v55 }
 0x227   :  { %6482 = vset.pattern.permute.xlu1 %v9210_v62  ;;  %v9217_v15 = vmov 49  }
 0x228   :  { %v2967_v6 = vadd.f32 %v2960_v57, %v2954_v30  ;;  %v2968_v45 = vadd.f32 %v2964_v36, %v2955_v7  ;;  %3849 = vperm.xlu1 %6482, %v7732_v32   ;;  %v6064_v30 = vld [vmem:[%s9117_s1 + $0x105] ss:$8 sm:$0x3] }
 0x22a   :  { %v2969_v3 = vmax.f32 %v2946_v54, %v2967_v6  ;;  %v2970_v1 = vmax.f32 %v2947_v40, %v2968_v45  ;;  %v2999_v10 = vpop.permute.xlu1 %2998  ;;  %v3114_v54 = vpop.permute.xlu0 %3113  ;;  %v8129_v40 = vld [vmem:[%s9116_s0 + $0x8] sm:$0xff]  ;;  %v3099_v6 = vrot.slane %v6064_v30, %v6856_v53  ;;  %v3103_v45 = vrot.slane %v6064_v30, %v6861_v55 }
 0x22b   :  { %v3001_v46 = vmul.f32 %v2999_v10, %v6871_v59  ;;  %v3002_v12 = vmul.f32 %v2999_v10, %v6874_v61 }
 0x22c   :  { %6484 = vset.pattern.permute.xlu1 %v9211_v50  ;;  %v2993_v13 = vmax.f32 %v2969_v3, %v2991_v23  ;;  %v2994_v26 = vmax.f32 %v2970_v1, %v2992_v39 }
 0x22d   :  { %3895 = vperm.xlu1 %6484, %v7732_v32   ;;  %v3014_v25 = vadd.f32 %v3007_v14, %v3001_v46  ;;  %v3015_v17 = vadd.f32 %v3011_v48, %v3002_v12  ;;  %v3116_v14 = vmul.f32 %v3114_v54, %v6871_v59  ;;  %v3117_v48 = vmul.f32 %v3114_v54, %v6874_v61  ;;  %v6069_v54 = vld [vmem:[%s9117_s1 + $0x112] ss:$8 sm:$0x3] }
 0x22f   :  { %v3022_v29 = vpop.permute.xlu1 %3021  ;;  %v3016_v57 = vmax.f32 %v2993_v13, %v3014_v25  ;;  %v3017_v36 = vmax.f32 %v2994_v26, %v3015_v17 }
 0x230   :  { %v3024_v8 = vmul.f32 %v3022_v29, %v6871_v59  ;;  %v3025_v44 = vmul.f32 %v3022_v29, %v6874_v61 }
 0x231   :  { %6485 = vset.pattern.permute.xlu1 %v9212_v34 }
 0x232   :  { %v3037_v16 = vadd.f32 %v3030_v42, %v3024_v8  ;;  %v3038_v37 = vadd.f32 %v3034_v31, %v3025_v44  ;;  %3918 = vperm.xlu1 %6485, %v7732_v32   ;;  %v6065_v32 = vld [vmem:[%s9117_s1 + $0x106] ss:$8 sm:$0x3]  ;;  %v6067_v8 = vld [vmem:[%s9117_s1 + $0x110] ss:$8 sm:$0x3] }
 0x233   :  { %v3122_v2 = vrot.slane %v6065_v32, %v6856_v53  ;;  %v3126_v46 = vrot.slane %v6065_v32, %v6861_v55  ;;  %v9216_v32 = vmov 47  }
 0x234   :  { %v3039_v41 = vmax.f32 %v3016_v57, %v3037_v16  ;;  %v3040_v22 = vmax.f32 %v3017_v36, %v3038_v37  ;;  %v3068_v47 = vpop.permute.xlu1 %3067  ;;  %v6068_v57 = vld [vmem:[%s9117_s1 + $0x111] ss:$8 sm:$0x3]  ;;  %v3183_v36 = vpop.permute.xlu0 %3182  ;;  %v3168_v16 = vrot.slane %v6067_v8, %v6856_v53  ;;  %v3172_v37 = vrot.slane %v6067_v8, %v6861_v55 }
 0x235   :  { %v3070_v7 = vmul.f32 %v3068_v47, %v6871_v59  ;;  %v3071_v62 = vmul.f32 %v3068_v47, %v6874_v61  ;;  %v3129_v25 = vadd.f32 %v3122_v2, %v3116_v14  ;;  %v3130_v17 = vadd.f32 %v3126_v46, %v3117_v48 }
 0x236   :  { %6487 = vset.pattern.permute.xlu1 %v9213_v58  ;;  %v3062_v23 = vmax.f32 %v3039_v41, %v3060_v28  ;;  %v3063_v39 = vmax.f32 %v3040_v22, %v3061_v21  ;;  %v3191_v30 = vrot.slane %v6068_v57, %v6856_v53  ;;  %v3214_v2 = vrot.slane %v6069_v54, %v6856_v53 }
 0x237   :  { %3964 = vperm.xlu1 %6487, %v8129_v40   ;;  %v3083_v3 = vadd.f32 %v3076_v20, %v3070_v7  ;;  %v3084_v1 = vadd.f32 %v3080_v51, %v3071_v62  ;;  %v3185_v20 = vmul.f32 %v3183_v36, %v6871_v59  ;;  %v3186_v51 = vmul.f32 %v3183_v36, %v6874_v61  ;;  %v6072_v36 = vld [vmem:[%s9117_s1 + $0x115] ss:$8 sm:$0x3] }
 0x238   :  { %v3195_v7 = vrot.slane %v6068_v57, %v6861_v55  ;;  %v3218_v46 = vrot.slane %v6069_v54, %v6861_v55  ;;  %v9218_v57 = vmov 50   ;;  %v9219_v54 = vmov 52  }
 0x239   :  { %v3091_v10 = vpop.permute.xlu1 %3090  ;;  %v3085_v42 = vmax.f32 %v3062_v23, %v3083_v3  ;;  %v3086_v31 = vmax.f32 %v3063_v39, %v3084_v1  ;;  %v3198_v3 = vadd.f32 %v3191_v30, %v3185_v20  ;;  %v3283_v30 = vrot.slane %v6072_v36, %v6856_v53 }
 0x23a   :  { %v3093_v12 = vmul.f32 %v3091_v10, %v6871_v59  ;;  %v3094_v50 = vmul.f32 %v3091_v10, %v6874_v61  ;;  %v3199_v1 = vadd.f32 %v3195_v7, %v3186_v51  ;;  %v3287_v7 = vrot.slane %v6072_v36, %v6861_v55 }
 0x23b   :  { %6488 = vset.pattern.permute.xlu1 %v9214_v33  ;;  %v9221_v36 = vmov 55  }
 0x23c   :  { %v3106_v13 = vadd.f32 %v3099_v6, %v3093_v12  ;;  %v3107_v26 = vadd.f32 %v3103_v45, %v3094_v50  ;;  %3987 = vperm.xlu1 %6488, %v8129_v40   ;;  %v6070_v12 = vld [vmem:[%s9117_s1 + $0x113] ss:$8 sm:$0x3] }
 0x23e   :  { %v3108_v29 = vmax.f32 %v3085_v42, %v3106_v13  ;;  %v3109_v52 = vmax.f32 %v3086_v31, %v3107_v26  ;;  %v3137_v5 = vpop.permute.xlu1 %3136  ;;  %v6071_v42 = vld [vmem:[%s9117_s1 + $0x114] ss:$8 sm:$0x3]  ;;  %v3252_v31 = vpop.permute.xlu0 %3251  ;;  %v3237_v13 = vrot.slane %v6070_v12, %v6856_v53  ;;  %v3241_v26 = vrot.slane %v6070_v12, %v6861_v55 }
 0x23f   :  { %v3139_v44 = vmul.f32 %v3137_v5, %v6871_v59  ;;  %v3140_v34 = vmul.f32 %v3137_v5, %v6874_v61  ;;  %v3260_v8 = vrot.slane %v6071_v42, %v6856_v53 }
 0x240   :  { %6490 = vset.pattern.permute.xlu1 %v9215_v38  ;;  %v3131_v28 = vmax.f32 %v3108_v29, %v3129_v25  ;;  %v3132_v21 = vmax.f32 %v3109_v52, %v3130_v17 }
 0x241   :  { %4033 = vperm.xlu1 %6490, %v8129_v40   ;;  %v3152_v41 = vadd.f32 %v3145_v4, %v3139_v44  ;;  %v3153_v22 = vadd.f32 %v3149_v63, %v3140_v34  ;;  %v3254_v4 = vmul.f32 %v3252_v31, %v6871_v59  ;;  %v3255_v63 = vmul.f32 %v3252_v31, %v6874_v61  ;;  %v6075_v31 = vld [vmem:[%s9117_s1 + $0x120] ss:$8 sm:$0x3] }
 0x242   :  { %v3264_v44 = vrot.slane %v6071_v42, %v6861_v55  ;;  %v9220_v42 = vmov 53  }
 0x243   :  { %v3160_v47 = vpop.permute.xlu1 %3159  ;;  %v3154_v6 = vmax.f32 %v3131_v28, %v3152_v41  ;;  %v3155_v45 = vmax.f32 %v3132_v21, %v3153_v22  ;;  %v3267_v41 = vadd.f32 %v3260_v8, %v3254_v4  ;;  %v3352_v8 = vrot.slane %v6075_v31, %v6856_v53 }
 0x244   :  { %v3162_v62 = vmul.f32 %v3160_v47, %v6871_v59  ;;  %v3163_v58 = vmul.f32 %v3160_v47, %v6874_v61  ;;  %v3268_v22 = vadd.f32 %v3264_v44, %v3255_v63  ;;  %v3356_v44 = vrot.slane %v6075_v31, %v6861_v55 }
 0x245   :  { %6491 = vset.pattern.permute.xlu1 %v9216_v32  ;;  %v9223_v31 = vmov 58  }
 0x246   :  { %v3175_v23 = vadd.f32 %v3168_v16, %v3162_v62  ;;  %v3176_v39 = vadd.f32 %v3172_v37, %v3163_v58  ;;  %4056 = vperm.xlu1 %6491, %v8129_v40   ;;  %v6073_v62 = vld [vmem:[%s9117_s1 + $0x116] ss:$8 sm:$0x3] }
 0x248   :  { %v3177_v10 = vmax.f32 %v3154_v6, %v3175_v23  ;;  %v3178_v14 = vmax.f32 %v3155_v45, %v3176_v39  ;;  %v3206_v48 = vpop.permute.xlu1 %3205  ;;  %v6074_v6 = vld [vmem:[%s9117_s1 + $0x117] ss:$8 sm:$0x3]  ;;  %v3321_v45 = vpop.permute.xlu0 %3320  ;;  %v3306_v23 = vrot.slane %v6073_v62, %v6856_v53  ;;  %v3310_v39 = vrot.slane %v6073_v62, %v6861_v55 }
 0x249   :  { %v3208_v50 = vmul.f32 %v3206_v48, %v6871_v59  ;;  %v3209_v33 = vmul.f32 %v3206_v48, %v6874_v61  ;;  %v3329_v12 = vrot.slane %v6074_v6, %v6856_v53 }
 0x24a   :  { %6493 = vset.pattern.permute.xlu1 %v9217_v15  ;;  %v3200_v25 = vmax.f32 %v3177_v10, %v3198_v3  ;;  %v3201_v17 = vmax.f32 %v3178_v14, %v3199_v1 }
 0x24b   :  { %4102 = vperm.xlu1 %6493, %v8129_v40   ;;  %v3221_v29 = vadd.f32 %v3214_v2, %v3208_v50  ;;  %v3222_v52 = vadd.f32 %v3218_v46, %v3209_v33  ;;  %v3323_v2 = vmul.f32 %v3321_v45, %v6871_v59  ;;  %v3324_v46 = vmul.f32 %v3321_v45, %v6874_v61  ;;  %v6078_v45 = vld [vmem:[%s9117_s1 + $0x123] ss:$8 sm:$0x3] }
 0x24c   :  { %v3333_v50 = vrot.slane %v6074_v6, %v6861_v55  ;;  %v9222_v6 = vmov 56  }
 0x24d   :  { %v3229_v5 = vpop.permute.xlu1 %3228  ;;  %v3223_v16 = vmax.f32 %v3200_v25, %v3221_v29  ;;  %v3224_v37 = vmax.f32 %v3201_v17, %v3222_v52  ;;  %v3336_v29 = vadd.f32 %v3329_v12, %v3323_v2  ;;  %v3421_v12 = vrot.slane %v6078_v45, %v6856_v53 }
 0x24e   :  { %v3231_v34 = vmul.f32 %v3229_v5, %v6871_v59  ;;  %v3232_v38 = vmul.f32 %v3229_v5, %v6874_v61  ;;  %v3337_v52 = vadd.f32 %v3333_v50, %v3324_v46  ;;  %v3425_v50 = vrot.slane %v6078_v45, %v6861_v55 }
 0x24f   :  { %6494 = vset.pattern.permute.xlu1 %v9218_v57  ;;  %v9225_v45 = vmov 61  }
 0x250   :  { %v3244_v28 = vadd.f32 %v3237_v13, %v3231_v34  ;;  %v3245_v21 = vadd.f32 %v3241_v26, %v3232_v38  ;;  %4125 = vperm.xlu1 %6494, %v8129_v40   ;;  %v6076_v34 = vld [vmem:[%s9117_s1 + $0x121] ss:$8 sm:$0x3] }
 0x252   :  { %v3246_v47 = vmax.f32 %v3223_v16, %v3244_v28  ;;  %v3247_v20 = vmax.f32 %v3224_v37, %v3245_v21  ;;  %v3275_v51 = vpop.permute.xlu1 %3274  ;;  %v6077_v16 = vld [vmem:[%s9117_s1 + $0x122] ss:$8 sm:$0x3]  ;;  %v3390_v37 = vpop.permute.xlu0 %3389  ;;  %v3375_v28 = vrot.slane %v6076_v34, %v6856_v53  ;;  %v3379_v21 = vrot.slane %v6076_v34, %v6861_v55 }
 0x253   :  { %v3277_v58 = vmul.f32 %v3275_v51, %v6871_v59  ;;  %v3278_v32 = vmul.f32 %v3275_v51, %v6874_v61  ;;  %v3398_v62 = vrot.slane %v6077_v16, %v6856_v53 }
 0x254   :  { %6496 = vset.pattern.permute.xlu1 %v9219_v54  ;;  %v3269_v3 = vmax.f32 %v3246_v47, %v3267_v41  ;;  %v3270_v1 = vmax.f32 %v3247_v20, %v3268_v22 }
 0x255   :  { %4171 = vperm.xlu1 %6496, %v8129_v40   ;;  %v3290_v10 = vadd.f32 %v3283_v30, %v3277_v58  ;;  %v3291_v14 = vadd.f32 %v3287_v7, %v3278_v32  ;;  %v3392_v30 = vmul.f32 %v3390_v37, %v6871_v59  ;;  %v3393_v7 = vmul.f32 %v3390_v37, %v6874_v61  ;;  %v6081_v37 = vld [vmem:[%s9117_s1 + $0x126] ss:$8 sm:$0x3] }
 0x256   :  { %v3402_v58 = vrot.slane %v6077_v16, %v6861_v55  ;;  %v9224_v16 = vmov 59  }
 0x257   :  { %v3298_v48 = vpop.permute.xlu1 %3297  ;;  %v3292_v13 = vmax.f32 %v3269_v3, %v3290_v10  ;;  %v3293_v26 = vmax.f32 %v3270_v1, %v3291_v14  ;;  %v3405_v10 = vadd.f32 %v3398_v62, %v3392_v30  ;;  %v3490_v62 = vrot.slane %v6081_v37, %v6856_v53 }
 0x258   :  { %v3300_v33 = vmul.f32 %v3298_v48, %v6871_v59  ;;  %v3301_v15 = vmul.f32 %v3298_v48, %v6874_v61  ;;  %v3406_v14 = vadd.f32 %v3402_v58, %v3393_v7  ;;  %v3494_v58 = vrot.slane %v6081_v37, %v6861_v55 }
 0x259   :  { %6497 = vset.pattern.permute.xlu1 %v9220_v42 }
 0x25a   :  { %v3313_v25 = vadd.f32 %v3306_v23, %v3300_v33  ;;  %v3314_v17 = vadd.f32 %v3310_v39, %v3301_v15  ;;  %4194 = vperm.xlu1 %6497, %v8129_v40   ;;  %v6079_v33 = vld [vmem:[%s9117_s1 + $0x124] ss:$8 sm:$0x3] }
 0x25c   :  { %v3315_v5 = vmax.f32 %v3292_v13, %v3313_v25  ;;  %v3316_v4 = vmax.f32 %v3293_v26, %v3314_v17  ;;  %v3344_v63 = vpop.permute.xlu1 %3343  ;;  %v6080_v13 = vld [vmem:[%s9117_s1 + $0x125] ss:$8 sm:$0x3]  ;;  %v3459_v26 = vpop.permute.xlu0 %3458  ;;  %v3444_v25 = vrot.slane %v6079_v33, %v6856_v53  ;;  %v3448_v17 = vrot.slane %v6079_v33, %v6861_v55 }
 0x25d   :  { %v3346_v38 = vmul.f32 %v3344_v63, %v6871_v59  ;;  %v3347_v57 = vmul.f32 %v3344_v63, %v6874_v61  ;;  %v3467_v34 = vrot.slane %v6080_v13, %v6856_v53 }
 0x25e   :  { %6499 = vset.pattern.permute.xlu1 %v9221_v36  ;;  %v3338_v41 = vmax.f32 %v3315_v5, %v3336_v29  ;;  %v3339_v22 = vmax.f32 %v3316_v4, %v3337_v52 }
 0x25f   :  { %4240 = vperm.xlu1 %6499, %v8129_v40   ;;  %v3359_v47 = vadd.f32 %v3352_v8, %v3346_v38  ;;  %v3360_v20 = vadd.f32 %v3356_v44, %v3347_v57  ;;  %v3461_v8 = vmul.f32 %v3459_v26, %v6871_v59  ;;  %v3462_v44 = vmul.f32 %v3459_v26, %v6874_v61  ;;  %v6084_v26 = vld [vmem:[%s9117_s1 + $0x131] ss:$8 sm:$0x3] }
 0x260   :  { %v3471_v38 = vrot.slane %v6080_v13, %v6861_v55  ;;  %v9226_v13 = vmov 62  }
 0x261   :  { %v3367_v51 = vpop.permute.xlu1 %3366  ;;  %v3361_v23 = vmax.f32 %v3338_v41, %v3359_v47  ;;  %v3362_v39 = vmax.f32 %v3339_v22, %v3360_v20  ;;  %v3474_v47 = vadd.f32 %v3467_v34, %v3461_v8 }
 0x262   :  { %v3369_v32 = vmul.f32 %v3367_v51, %v6871_v59  ;;  %v3370_v54 = vmul.f32 %v3367_v51, %v6874_v61  ;;  %v3475_v20 = vadd.f32 %v3471_v38, %v3462_v44  ;;  %v3559_v38 = vrot.slane %v6084_v26, %v6856_v53 }
 0x263   :  { %6500 = vset.pattern.permute.xlu1 %v9222_v6 }
 0x264   :  { %v3382_v3 = vadd.f32 %v3375_v28, %v3369_v32  ;;  %v3383_v1 = vadd.f32 %v3379_v21, %v3370_v54  ;;  %4263 = vperm.xlu1 %6500, %v8129_v40   ;;  %v6082_v32 = vld [vmem:[%s9117_s1 + $0x127] ss:$8 sm:$0x3] }
 0x266   :  { %v3384_v48 = vmax.f32 %v3361_v23, %v3382_v3  ;;  %v3385_v2 = vmax.f32 %v3362_v39, %v3383_v1  ;;  %v3413_v46 = vpop.permute.xlu1 %3412  ;;  %v6083_v23 = vld [vmem:[%s9117_s1 + $0x130] ss:$8 sm:$0x3]  ;;  %v3528_v39 = vpop.permute.xlu0 %3527  ;;  %v3513_v3 = vrot.slane %v6082_v32, %v6856_v53  ;;  %v3517_v1 = vrot.slane %v6082_v32, %v6861_v55 }
 0x267   :  { %v3415_v15 = vmul.f32 %v3413_v46, %v6871_v59  ;;  %v3416_v42 = vmul.f32 %v3413_v46, %v6874_v61  ;;  %v3536_v33 = vrot.slane %v6083_v23, %v6856_v53 }
 0x268   :  { %6502 = vset.pattern.permute.xlu1 %v9223_v31  ;;  %v3407_v29 = vmax.f32 %v3384_v48, %v3405_v10  ;;  %v3408_v52 = vmax.f32 %v3385_v2, %v3406_v14 }
 0x269   :  { %4309 = vperm.xlu1 %6502, %v8129_v40   ;;  %v3428_v5 = vadd.f32 %v3421_v12, %v3415_v15  ;;  %v3429_v4 = vadd.f32 %v3425_v50, %v3416_v42  ;;  %v3530_v12 = vmul.f32 %v3528_v39, %v6871_v59  ;;  %v3531_v50 = vmul.f32 %v3528_v39, %v6874_v61 }
 0x26a   :  { %v3540_v15 = vrot.slane %v6083_v23, %v6861_v55  ;;  %v6087_v23 = vld [vmem:[%s9117_s1 + $0x134] ss:$8 sm:$0x3]  ;;  %v9228_v39 = vmov 65  }
 0x26b   :  { %v3436_v63 = vpop.permute.xlu1 %3435  ;;  %v3430_v28 = vmax.f32 %v3407_v29, %v3428_v5  ;;  %v3431_v21 = vmax.f32 %v3408_v52, %v3429_v4  ;;  %v3543_v5 = vadd.f32 %v3536_v33, %v3530_v12  ;;  %v3632_v12 = vrot.slane %v6087_v23, %v6861_v55 }
 0x26c   :  { %v3438_v57 = vmul.f32 %v3436_v63, %v6871_v59  ;;  %v3439_v36 = vmul.f32 %v3436_v63, %v6874_v61  ;;  %v3544_v4 = vadd.f32 %v3540_v15, %v3531_v50  ;;  %v6085_v63 = vld [vmem:[%s9117_s1 + $0x132] ss:$8 sm:$0x3] }
 0x26d   :  { %6503 = vset.pattern.permute.xlu1 %v9224_v16  ;;  %v3597_v16 = vpop.permute.xlu0 %3596 }
 0x26e   :  { %v3451_v41 = vadd.f32 %v3444_v25, %v3438_v57  ;;  %v3452_v22 = vadd.f32 %v3448_v17, %v3439_v36  ;;  %4332 = vperm.xlu1 %6503, %v8129_v40   ;;  %v3563_v57 = vrot.slane %v6084_v26, %v6861_v55  ;;  %v6086_v36 = vld [vmem:[%s9117_s1 + $0x133] ss:$8 sm:$0x3]  ;;  %v6089_v26 = vld [vmem:[%s9117_s1 + $0x136] ss:$8 sm:$0x3] }
 0x270   :  { %v3453_v51 = vmax.f32 %v3430_v28, %v3451_v41  ;;  %v3454_v30 = vmax.f32 %v3431_v21, %v3452_v22  ;;  %v3482_v7 = vpop.permute.xlu1 %3481  ;;  %v9227_v21 = vmov 64   ;;  %v3582_v41 = vrot.slane %v6085_v63, %v6856_v53 }
 0x271   :  { %v3484_v54 = vmul.f32 %v3482_v7, %v6871_v59  ;;  %v3485_v6 = vmul.f32 %v3482_v7, %v6874_v61  ;;  %v3586_v22 = vrot.slane %v6085_v63, %v6861_v55 }
 0x272   :  { %6505 = vset.pattern.permute.xlu1 %v9225_v45  ;;  %v3476_v10 = vmax.f32 %v3453_v51, %v3474_v47  ;;  %v3477_v14 = vmax.f32 %v3454_v30, %v3475_v20  ;;  %v3599_v47 = vmul.f32 %v3597_v16, %v6871_v59  ;;  %v3600_v20 = vmul.f32 %v3597_v16, %v6874_v61 }
 0x273   :  { %4378 = vperm.xlu1 %6505, %v8129_v40   ;;  %v3497_v48 = vadd.f32 %v3490_v62, %v3484_v54  ;;  %v3498_v2 = vadd.f32 %v3494_v58, %v3485_v6  ;;  %v3605_v51 = vrot.slane %v6086_v36, %v6856_v53  ;;  %v3609_v30 = vrot.slane %v6086_v36, %v6861_v55 }
 0x275   :  { %v3505_v46 = vpop.permute.xlu1 %3504  ;;  %v3499_v25 = vmax.f32 %v3476_v10, %v3497_v48  ;;  %v3500_v17 = vmax.f32 %v3477_v14, %v3498_v2 }
 0x276   :  { %v3507_v42 = vmul.f32 %v3505_v46, %v6871_v59  ;;  %v3508_v31 = vmul.f32 %v3505_v46, %v6874_v61  ;;  %v3628_v46 = vrot.slane %v6087_v23, %v6856_v53  ;;  %v6091_v23 = vld [vmem:[%s9117_s1 + $0x140] ss:$8 sm:$0x3] }
 0x277   :  { %6506 = vset.pattern.permute.xlu1 %v9226_v13 }
 0x278   :  { %v3520_v29 = vadd.f32 %v3513_v3, %v3507_v42  ;;  %v3521_v52 = vadd.f32 %v3517_v1, %v3508_v31  ;;  %4401 = vperm.xlu1 %6506, %v8129_v40   ;;  %v3612_v3 = vadd.f32 %v3605_v51, %v3599_v47  ;;  %v3613_v1 = vadd.f32 %v3609_v30, %v3600_v20  ;;  %v6088_v42 = vld [vmem:[%s9117_s1 + $0x135] ss:$8 sm:$0x3] }
 0x279   :  { %v3651_v63 = vrot.slane %v6088_v42, %v6856_v53 }
 0x27a   :  { %v3522_v8 = vmax.f32 %v3499_v25, %v3520_v29  ;;  %v3523_v44 = vmax.f32 %v3500_v17, %v3521_v52  ;;  %v3551_v34 = vpop.permute.xlu1 %3550  ;;  %v3666_v25 = vpop.permute.xlu0 %3665  ;;  %v9229_v52 = vmov 67  }
 0x27b   :  { %v3553_v37 = vmul.f32 %v3551_v34, %v6871_v59  ;;  %v3554_v28 = vmul.f32 %v3551_v34, %v6874_v61  ;;  %v3669_v34 = vmul.f32 %v3666_v25, %v6874_v61 }
 0x27c   :  { %6508 = vset.pattern.permute.xlu1 %v9227_v21  ;;  %v3545_v7 = vmax.f32 %v3522_v8, %v3543_v5  ;;  %v3546_v62 = vmax.f32 %v3523_v44, %v3544_v4  ;;  %v3655_v8 = vrot.slane %v6088_v42, %v6861_v55  ;;  %v3668_v44 = vmul.f32 %v3666_v25, %v6871_v59 }
 0x27d   :  { %4447 = vperm.xlu1 %6508, %v8129_v40   ;;  %v3566_v58 = vadd.f32 %v3559_v38, %v3553_v37  ;;  %v3567_v32 = vadd.f32 %v3563_v57, %v3554_v28  ;;  %v3674_v38 = vrot.slane %v6089_v26, %v6856_v53  ;;  %v3678_v57 = vrot.slane %v6089_v26, %v6861_v55 }
 0x27f   :  { %v3574_v54 = vpop.permute.xlu1 %3573  ;;  %v3568_v10 = vmax.f32 %v3545_v7, %v3566_v58  ;;  %v3569_v14 = vmax.f32 %v3546_v62, %v3567_v32  ;;  %v3681_v51 = vadd.f32 %v3674_v38, %v3668_v44  ;;  %v3682_v30 = vadd.f32 %v3678_v57, %v3669_v34 }
 0x280   :  { %v3576_v6 = vmul.f32 %v3574_v54, %v6871_v59  ;;  %v3577_v45 = vmul.f32 %v3574_v54, %v6874_v61 }
 0x281   :  { %6509 = vset.pattern.permute.xlu1 %v9228_v39  ;;  %v3735_v39 = vpop.permute.xlu0 %3734 }
 0x282   :  { %v3589_v48 = vadd.f32 %v3582_v41, %v3576_v6  ;;  %v3590_v2 = vadd.f32 %v3586_v22, %v3577_v45  ;;  %4470 = vperm.xlu1 %6509, %v8129_v40   ;;  %v6090_v41 = vld [vmem:[%s9117_s1 + $0x137] ss:$8 sm:$0x3]  ;;  %v9230_v22 = vmov 68  }
 0x283   :  { %v3697_v7 = vrot.slane %v6090_v41, %v6856_v53  ;;  %v3701_v62 = vrot.slane %v6090_v41, %v6861_v55  ;;  %v6095_v41 = vld [vmem:[%s9117_s1 + $0x144] ss:$8 sm:$0x3] }
 0x284   :  { %v3591_v50 = vmax.f32 %v3568_v10, %v3589_v48  ;;  %v3592_v33 = vmax.f32 %v3569_v14, %v3590_v2  ;;  %v3620_v15 = vpop.permute.xlu1 %3619  ;;  %v9231_v10 = vmov 70   ;;  %v6092_v14 = vld [vmem:[%s9117_s1 + $0x141] ss:$8 sm:$0x3] }
 0x285   :  { %v3622_v31 = vmul.f32 %v3620_v15, %v6871_v59  ;;  %v3623_v13 = vmul.f32 %v3620_v15, %v6874_v61  ;;  %v3747_v26 = vrot.slane %v6092_v14, %v6861_v55 }
 0x286   :  { %v3614_v17 = vmax.f32 %v3591_v50, %v3612_v3  ;;  %v3615_v29 = vmax.f32 %v3592_v33, %v3613_v1  ;;  %6511 = vset.pattern.permute.xlu1 %v9229_v52  ;;  %v3737_v50 = vmul.f32 %v3735_v39, %v6871_v59  ;;  %v3738_v33 = vmul.f32 %v3735_v39, %v6874_v61  ;;  %v6093_v52 = vld [vmem:[%s9117_s1 + $0x142] ss:$8 sm:$0x3] }
 0x287   :  { %v3635_v5 = vadd.f32 %v3628_v46, %v3622_v31  ;;  %v3636_v4 = vadd.f32 %v3632_v12, %v3623_v13  ;;  %4516 = vperm.xlu1 %6511, %v8129_v40   ;;  %v3720_v46 = vrot.slane %v6091_v23, %v6856_v53  ;;  %v3724_v12 = vrot.slane %v6091_v23, %v6861_v55 }
 0x288   :  { %v3743_v13 = vrot.slane %v6092_v14, %v6856_v53  ;;  %v3766_v57 = vrot.slane %v6093_v52, %v6856_v53 }
 0x289   :  { %v3637_v36 = vmax.f32 %v3614_v17, %v3635_v5  ;;  %v3638_v16 = vmax.f32 %v3615_v29, %v3636_v4  ;;  %v3643_v37 = vpop.permute.xlu1 %3642  ;;  %v9232_v29 = vmov 71  }
 0x28a   :  { %v3645_v28 = vmul.f32 %v3643_v37, %v6871_v59  ;;  %v3646_v21 = vmul.f32 %v3643_v37, %v6874_v61 }
 0x28b   :  { %6512 = vset.pattern.permute.xlu1 %v9230_v22  ;;  %v3804_v22 = vpop.permute.xlu0 %3803 }
 0x28c   :  { %v3658_v47 = vadd.f32 %v3651_v63, %v3645_v28  ;;  %v3659_v20 = vadd.f32 %v3655_v8, %v3646_v21  ;;  %4539 = vperm.xlu1 %6512, %v8129_v40   ;;  %v3750_v63 = vadd.f32 %v3743_v13, %v3737_v50  ;;  %v3751_v8 = vadd.f32 %v3747_v26, %v3738_v33  ;;  %v6097_v13 = vld [vmem:[%s9117_s1 + $0x146] ss:$8 sm:$0x3] }
 0x28d   :  { %v9233_v21 = vmov 73  }
 0x28e   :  { %v3660_v58 = vmax.f32 %v3637_v36, %v3658_v47  ;;  %v3661_v32 = vmax.f32 %v3638_v16, %v3659_v20  ;;  %v3689_v54 = vpop.permute.xlu1 %3688  ;;  %v3770_v36 = vrot.slane %v6093_v52, %v6861_v55  ;;  %v6094_v16 = vld [vmem:[%s9117_s1 + $0x143] ss:$8 sm:$0x3] }
 0x28f   :  { %v3691_v6 = vmul.f32 %v3689_v54, %v6871_v59  ;;  %v3692_v45 = vmul.f32 %v3689_v54, %v6874_v61  ;;  %v3789_v47 = vrot.slane %v6094_v16, %v6856_v53  ;;  %v3793_v20 = vrot.slane %v6094_v16, %v6861_v55  ;;  %v3873_v52 = vpop.permute.xlu0 %3872 }
 0x290   :  { %v3683_v3 = vmax.f32 %v3660_v58, %v3681_v51  ;;  %v3684_v1 = vmax.f32 %v3661_v32, %v3682_v30  ;;  %6514 = vset.pattern.permute.xlu1 %v9231_v10  ;;  %v3806_v32 = vmul.f32 %v3804_v22, %v6871_v59  ;;  %v3807_v54 = vmul.f32 %v3804_v22, %v6874_v61  ;;  %v6099_v22 = vld [vmem:[%s9117_s1 + $0x150] ss:$8 sm:$0x3] }
 0x291   :  { %v3704_v48 = vadd.f32 %v3697_v7, %v3691_v6  ;;  %v3705_v2 = vadd.f32 %v3701_v62, %v3692_v45  ;;  %4585 = vperm.xlu1 %6514, %v8129_v40   ;;  %v3812_v6 = vrot.slane %v6095_v41, %v6856_v53  ;;  %v3816_v45 = vrot.slane %v6095_v41, %v6861_v55 }
 0x292   :  { %v9236_v41 = vmov 77  }
 0x293   :  { %v3706_v15 = vmax.f32 %v3683_v3, %v3704_v48  ;;  %v3707_v42 = vmax.f32 %v3684_v1, %v3705_v2  ;;  %v3712_v31 = vpop.permute.xlu1 %3711  ;;  %v9234_v3 = vmov 74   ;;  %v6096_v1 = vld [vmem:[%s9117_s1 + $0x145] ss:$8 sm:$0x3] }
 0x294   :  { %v3714_v25 = vmul.f32 %v3712_v31, %v6871_v59  ;;  %v3715_v17 = vmul.f32 %v3712_v31, %v6874_v61  ;;  %v3839_v31 = vrot.slane %v6096_v1, %v6861_v55 }
 0x295   :  { %6515 = vset.pattern.permute.xlu1 %v9232_v29  ;;  %v6098_v29 = vld [vmem:[%s9117_s1 + $0x147] ss:$8 sm:$0x3] }
 0x296   :  { %v3727_v5 = vadd.f32 %v3720_v46, %v3714_v25  ;;  %v3728_v4 = vadd.f32 %v3724_v12, %v3715_v17  ;;  %4608 = vperm.xlu1 %6515, %v8129_v40   ;;  %v3819_v46 = vadd.f32 %v3812_v6, %v3806_v32  ;;  %v3820_v12 = vadd.f32 %v3816_v45, %v3807_v54 }
 0x297   :  { %v9235_v17 = vmov 76   ;;  %v3881_v16 = vrot.slane %v6098_v29, %v6856_v53  ;;  %v3904_v6 = vrot.slane %v6099_v22, %v6856_v53  ;;  %v3908_v45 = vrot.slane %v6099_v22, %v6861_v55 }
 0x298   :  { %v3729_v44 = vmax.f32 %v3706_v15, %v3727_v5  ;;  %v3730_v34 = vmax.f32 %v3707_v42, %v3728_v4  ;;  %v3758_v38 = vpop.permute.xlu1 %3757  ;;  %v3835_v42 = vrot.slane %v6096_v1, %v6856_v53  ;;  %v3858_v5 = vrot.slane %v6097_v13, %v6856_v53 }
 0x299   :  { %v3760_v37 = vmul.f32 %v3758_v38, %v6871_v59  ;;  %v3761_v28 = vmul.f32 %v3758_v38, %v6874_v61  ;;  %v3862_v4 = vrot.slane %v6097_v13, %v6861_v55  ;;  %v9237_v1 = vmov 79  }
 0x29a   :  { %6517 = vset.pattern.permute.xlu1 %v9233_v21  ;;  %v3752_v51 = vmax.f32 %v3729_v44, %v3750_v63  ;;  %v3753_v30 = vmax.f32 %v3730_v34, %v3751_v8  ;;  %v9239_v22 = vmov 82  }
 0x29b   :  { %4654 = vperm.xlu1 %6517, %v8129_v40   ;;  %v3773_v7 = vadd.f32 %v3766_v57, %v3760_v37  ;;  %v3774_v62 = vadd.f32 %v3770_v36, %v3761_v28  ;;  %v3875_v57 = vmul.f32 %v3873_v52, %v6871_v59  ;;  %v3876_v36 = vmul.f32 %v3873_v52, %v6874_v61  ;;  %v6102_v52 = vld [vmem:[%s9117_s1 + $0x153] ss:$8 sm:$0x3] }
 0x29c   :  { %v3885_v37 = vrot.slane %v6098_v29, %v6861_v55  ;;  %v9238_v29 = vmov 80  }
 0x29d   :  { %v3781_v58 = vpop.permute.xlu1 %3780  ;;  %v3775_v10 = vmax.f32 %v3752_v51, %v3773_v7  ;;  %v3776_v14 = vmax.f32 %v3753_v30, %v3774_v62  ;;  %v3888_v7 = vadd.f32 %v3881_v16, %v3875_v57  ;;  %v3973_v16 = vrot.slane %v6102_v52, %v6856_v53 }
 0x29e   :  { %v3783_v23 = vmul.f32 %v3781_v58, %v6871_v59  ;;  %v3784_v39 = vmul.f32 %v3781_v58, %v6874_v61  ;;  %v3889_v62 = vadd.f32 %v3885_v37, %v3876_v36  ;;  %v3977_v37 = vrot.slane %v6102_v52, %v6861_v55 }
 0x29f   :  { %6518 = vset.pattern.permute.xlu1 %v9234_v3  ;;  %v9241_v52 = vmov 85  }
 0x2a0   :  { %v3796_v48 = vadd.f32 %v3789_v47, %v3783_v23  ;;  %v3797_v2 = vadd.f32 %v3793_v20, %v3784_v39  ;;  %4677 = vperm.xlu1 %6518, %v8129_v40   ;;  %v6100_v23 = vld [vmem:[%s9117_s1 + $0x151] ss:$8 sm:$0x3] }
 0x2a2   :  { %v3798_v50 = vmax.f32 %v3775_v10, %v3796_v48  ;;  %v3799_v33 = vmax.f32 %v3776_v14, %v3797_v2  ;;  %v3827_v15 = vpop.permute.xlu1 %3826  ;;  %v6101_v10 = vld [vmem:[%s9117_s1 + $0x152] ss:$8 sm:$0x3]  ;;  %v3942_v14 = vpop.permute.xlu0 %3941  ;;  %v3927_v48 = vrot.slane %v6100_v23, %v6856_v53  ;;  %v3931_v2 = vrot.slane %v6100_v23, %v6861_v55 }
 0x2a3   :  { %v3829_v26 = vmul.f32 %v3827_v15, %v6871_v59  ;;  %v3830_v25 = vmul.f32 %v3827_v15, %v6874_v61  ;;  %v3950_v13 = vrot.slane %v6101_v10, %v6856_v53 }
 0x2a4   :  { %6520 = vset.pattern.permute.xlu1 %v9235_v17  ;;  %v3821_v63 = vmax.f32 %v3798_v50, %v3819_v46  ;;  %v3822_v8 = vmax.f32 %v3799_v33, %v3820_v12 }
 0x2a5   :  { %4723 = vperm.xlu1 %6520, %v8129_v40   ;;  %v3842_v44 = vadd.f32 %v3835_v42, %v3829_v26  ;;  %v3843_v34 = vadd.f32 %v3839_v31, %v3830_v25  ;;  %v3944_v42 = vmul.f32 %v3942_v14, %v6871_v59  ;;  %v3945_v31 = vmul.f32 %v3942_v14, %v6874_v61  ;;  %v6105_v14 = vld [vmem:[%s9117_s1 + $0x156] ss:$8 sm:$0x3] }
 0x2a6   :  { %v3954_v26 = vrot.slane %v6101_v10, %v6861_v55  ;;  %v9240_v10 = vmov 83  }
 0x2a7   :  { %v3850_v38 = vpop.permute.xlu1 %3849  ;;  %v3844_v47 = vmax.f32 %v3821_v63, %v3842_v44  ;;  %v3845_v20 = vmax.f32 %v3822_v8, %v3843_v34  ;;  %v3957_v44 = vadd.f32 %v3950_v13, %v3944_v42  ;;  %v4042_v13 = vrot.slane %v6105_v14, %v6856_v53 }
 0x2a8   :  { %v3852_v28 = vmul.f32 %v3850_v38, %v6871_v59  ;;  %v3853_v21 = vmul.f32 %v3850_v38, %v6874_v61  ;;  %v3958_v34 = vadd.f32 %v3954_v26, %v3945_v31  ;;  %v4046_v26 = vrot.slane %v6105_v14, %v6861_v55 }
 0x2a9   :  { %6521 = vset.pattern.permute.xlu1 %v9236_v41  ;;  %v9243_v14 = vmov 88  }
 0x2aa   :  { %v3865_v51 = vadd.f32 %v3858_v5, %v3852_v28  ;;  %v3866_v30 = vadd.f32 %v3862_v4, %v3853_v21  ;;  %4746 = vperm.xlu1 %6521, %v8129_v40   ;;  %v6103_v28 = vld [vmem:[%s9117_s1 + $0x154] ss:$8 sm:$0x3] }
 0x2ac   :  { %v3867_v58 = vmax.f32 %v3844_v47, %v3865_v51  ;;  %v3868_v32 = vmax.f32 %v3845_v20, %v3866_v30  ;;  %v3896_v54 = vpop.permute.xlu1 %3895  ;;  %v6104_v47 = vld [vmem:[%s9117_s1 + $0x155] ss:$8 sm:$0x3]  ;;  %v4011_v20 = vpop.permute.xlu0 %4010  ;;  %v3996_v51 = vrot.slane %v6103_v28, %v6856_v53  ;;  %v4000_v30 = vrot.slane %v6103_v28, %v6861_v55 }
 0x2ad   :  { %v3898_v39 = vmul.f32 %v3896_v54, %v6871_v59  ;;  %v3899_v3 = vmul.f32 %v3896_v54, %v6874_v61  ;;  %v4019_v23 = vrot.slane %v6104_v47, %v6856_v53 }
 0x2ae   :  { %6523 = vset.pattern.permute.xlu1 %v9237_v1  ;;  %v3890_v46 = vmax.f32 %v3867_v58, %v3888_v7  ;;  %v3891_v12 = vmax.f32 %v3868_v32, %v3889_v62 }
 0x2af   :  { %4792 = vperm.xlu1 %6523, %v8129_v40   ;;  %v3911_v50 = vadd.f32 %v3904_v6, %v3898_v39  ;;  %v3912_v33 = vadd.f32 %v3908_v45, %v3899_v3  ;;  %v4013_v6 = vmul.f32 %v4011_v20, %v6871_v59  ;;  %v4014_v45 = vmul.f32 %v4011_v20, %v6874_v61  ;;  %v6108_v20 = vld [vmem:[%s9117_s1 + $0x161] ss:$8 sm:$0x3] }
 0x2b0   :  { %v4023_v39 = vrot.slane %v6104_v47, %v6861_v55  ;;  %v9242_v47 = vmov 86  }
 0x2b1   :  { %v3919_v15 = vpop.permute.xlu1 %3918  ;;  %v3913_v5 = vmax.f32 %v3890_v46, %v3911_v50  ;;  %v3914_v4 = vmax.f32 %v3891_v12, %v3912_v33  ;;  %v4026_v50 = vadd.f32 %v4019_v23, %v4013_v6  ;;  %v4111_v23 = vrot.slane %v6108_v20, %v6856_v53 }
 0x2b2   :  { %v3921_v25 = vmul.f32 %v3919_v15, %v6871_v59  ;;  %v3922_v17 = vmul.f32 %v3919_v15, %v6874_v61  ;;  %v4027_v33 = vadd.f32 %v4023_v39, %v4014_v45  ;;  %v4115_v39 = vrot.slane %v6108_v20, %v6861_v55 }
 0x2b3   :  { %6524 = vset.pattern.permute.xlu1 %v9238_v29  ;;  %v9245_v20 = vmov 91  }
 0x2b4   :  { %v3934_v63 = vadd.f32 %v3927_v48, %v3921_v25  ;;  %v3935_v8 = vadd.f32 %v3931_v2, %v3922_v17  ;;  %4815 = vperm.xlu1 %6524, %v8129_v40   ;;  %v6106_v25 = vld [vmem:[%s9117_s1 + $0x157] ss:$8 sm:$0x3] }
 0x2b6   :  { %v3936_v38 = vmax.f32 %v3913_v5, %v3934_v63  ;;  %v3937_v57 = vmax.f32 %v3914_v4, %v3935_v8  ;;  %v3965_v36 = vpop.permute.xlu1 %3964  ;;  %v6107_v5 = vld [vmem:[%s9117_s1 + $0x160] ss:$8 sm:$0x3]  ;;  %v4080_v4 = vpop.permute.xlu0 %4079  ;;  %v4065_v63 = vrot.slane %v6106_v25, %v6856_v53  ;;  %v4069_v8 = vrot.slane %v6106_v25, %v6861_v55 }
 0x2b7   :  { %v3967_v21 = vmul.f32 %v3965_v36, %v6871_v59  ;;  %v3968_v41 = vmul.f32 %v3965_v36, %v6874_v61  ;;  %v4088_v28 = vrot.slane %v6107_v5, %v6856_v53 }
 0x2b8   :  { %6526 = vset.pattern.permute.xlu1 %v9239_v22  ;;  %v3959_v7 = vmax.f32 %v3936_v38, %v3957_v44  ;;  %v3960_v62 = vmax.f32 %v3937_v57, %v3958_v34 }
 0x2b9   :  { %4861 = vperm.xlu1 %6526, %v8129_v40   ;;  %v3980_v58 = vadd.f32 %v3973_v16, %v3967_v21  ;;  %v3981_v32 = vadd.f32 %v3977_v37, %v3968_v41  ;;  %v4082_v16 = vmul.f32 %v4080_v4, %v6871_v59  ;;  %v4083_v37 = vmul.f32 %v4080_v4, %v6874_v61 }
 0x2ba   :  { %v4092_v21 = vrot.slane %v6107_v5, %v6861_v55  ;;  %v6111_v5 = vld [vmem:[%s9117_s1 + $0x164] ss:$8 sm:$0x3] }
 0x2bb   :  { %v3988_v54 = vpop.permute.xlu1 %3987  ;;  %v3982_v48 = vmax.f32 %v3959_v7, %v3980_v58  ;;  %v3983_v2 = vmax.f32 %v3960_v62, %v3981_v32  ;;  %v4095_v58 = vadd.f32 %v4088_v28, %v4082_v16  ;;  %v4180_v28 = vrot.slane %v6111_v5, %v6856_v53 }
 0x2bc   :  { %v3990_v3 = vmul.f32 %v3988_v54, %v6871_v59  ;;  %v3991_v1 = vmul.f32 %v3988_v54, %v6874_v61  ;;  %v4096_v32 = vadd.f32 %v4092_v21, %v4083_v37  ;;  %v4184_v21 = vrot.slane %v6111_v5, %v6861_v55  ;;  %v6116_v5 = vld [vmem:[%s9117_s1 + $0x171] ss:$8 sm:$0x3] }
 0x2bd   :  { %6527 = vset.pattern.permute.xlu1 %v9240_v10 }
 0x2be   :  { %v4003_v46 = vadd.f32 %v3996_v51, %v3990_v3  ;;  %v4004_v12 = vadd.f32 %v4000_v30, %v3991_v1  ;;  %4884 = vperm.xlu1 %6527, %v8129_v40   ;;  %v6109_v3 = vld [vmem:[%s9117_s1 + $0x162] ss:$8 sm:$0x3] }
 0x2c0   :  { %v4005_v15 = vmax.f32 %v3982_v48, %v4003_v46  ;;  %v4006_v42 = vmax.f32 %v3983_v2, %v4004_v12  ;;  %v4034_v31 = vpop.permute.xlu1 %4033  ;;  %v6110_v48 = vld [vmem:[%s9117_s1 + $0x163] ss:$8 sm:$0x3]  ;;  %v4149_v2 = vpop.permute.xlu0 %4148  ;;  %v4134_v46 = vrot.slane %v6109_v3, %v6856_v53  ;;  %v4138_v12 = vrot.slane %v6109_v3, %v6861_v55 }
 0x2c1   :  { %v4036_v17 = vmul.f32 %v4034_v31, %v6871_v59  ;;  %v4037_v29 = vmul.f32 %v4034_v31, %v6874_v61  ;;  %v4157_v25 = vrot.slane %v6110_v48, %v6856_v53 }
 0x2c2   :  { %6529 = vset.pattern.permute.xlu1 %v9241_v52  ;;  %v4028_v44 = vmax.f32 %v4005_v15, %v4026_v50  ;;  %v4029_v34 = vmax.f32 %v4006_v42, %v4027_v33  ;;  %v9244_v52 = vmov 89  }
 0x2c3   :  { %4930 = vperm.xlu1 %6529, %v8129_v40   ;;  %v4049_v38 = vadd.f32 %v4042_v13, %v4036_v17  ;;  %v4050_v57 = vadd.f32 %v4046_v26, %v4037_v29  ;;  %v4151_v13 = vmul.f32 %v4149_v2, %v6871_v59  ;;  %v4152_v26 = vmul.f32 %v4149_v2, %v6874_v61  ;;  %v6114_v2 = vld [vmem:[%s9117_s1 + $0x167] ss:$8 sm:$0x3] }
 0x2c4   :  { %v4161_v17 = vrot.slane %v6110_v48, %v6861_v55  ;;  %v9246_v48 = vmov 92  }
 0x2c5   :  { %v4057_v36 = vpop.permute.xlu1 %4056  ;;  %v4051_v51 = vmax.f32 %v4028_v44, %v4049_v38  ;;  %v4052_v30 = vmax.f32 %v4029_v34, %v4050_v57  ;;  %v8522_v34 = vld [vmem:[%s9116_s0 + $0x8] sm:$0xff]  ;;  %v4164_v38 = vadd.f32 %v4157_v25, %v4151_v13  ;;  %v4249_v25 = vrot.slane %v6114_v2, %v6856_v53 }
 0x2c6   :  { %v4059_v41 = vmul.f32 %v4057_v36, %v6871_v59  ;;  %v4060_v22 = vmul.f32 %v4057_v36, %v6874_v61  ;;  %v4165_v57 = vadd.f32 %v4161_v17, %v4152_v26  ;;  %v4253_v17 = vrot.slane %v6114_v2, %v6861_v55 }
 0x2c7   :  { %6530 = vset.pattern.permute.xlu1 %v9242_v47 }
 0x2c8   :  { %v4072_v7 = vadd.f32 %v4065_v63, %v4059_v41  ;;  %v4073_v62 = vadd.f32 %v4069_v8, %v4060_v22  ;;  %4953 = vperm.xlu1 %6530, %v8129_v40   ;;  %v6112_v41 = vld [vmem:[%s9117_s1 + $0x165] ss:$8 sm:$0x3] }
 0x2ca   :  { %v4074_v54 = vmax.f32 %v4051_v51, %v4072_v7  ;;  %v4075_v6 = vmax.f32 %v4052_v30, %v4073_v62  ;;  %v4103_v45 = vpop.permute.xlu1 %4102  ;;  %v6113_v51 = vld [vmem:[%s9117_s1 + $0x166] ss:$8 sm:$0x3]  ;;  %v4218_v30 = vpop.permute.xlu0 %4217  ;;  %v4203_v7 = vrot.slane %v6112_v41, %v6856_v53  ;;  %v4207_v62 = vrot.slane %v6112_v41, %v6861_v55 }
 0x2cb   :  { %v4105_v1 = vmul.f32 %v4103_v45, %v6871_v59  ;;  %v4106_v10 = vmul.f32 %v4103_v45, %v6874_v61  ;;  %v4226_v3 = vrot.slane %v6113_v51, %v6856_v53 }
 0x2cc   :  { %6532 = vset.pattern.permute.xlu1 %v9243_v14  ;;  %v4097_v50 = vmax.f32 %v4074_v54, %v4095_v58  ;;  %v4098_v33 = vmax.f32 %v4075_v6, %v4096_v32 }
 0x2cd   :  { %4999 = vperm.xlu1 %6532, %v8129_v40   ;;  %v4118_v15 = vadd.f32 %v4111_v23, %v4105_v1  ;;  %v4119_v42 = vadd.f32 %v4115_v39, %v4106_v10  ;;  %v4220_v23 = vmul.f32 %v4218_v30, %v6871_v59  ;;  %v4221_v39 = vmul.f32 %v4218_v30, %v6874_v61 }
 0x2ce   :  { %v4230_v1 = vrot.slane %v6113_v51, %v6861_v55 }
 0x2cf   :  { %v4126_v31 = vpop.permute.xlu1 %4125  ;;  %v4120_v4 = vmax.f32 %v4097_v50, %v4118_v15  ;;  %v4121_v63 = vmax.f32 %v4098_v33, %v4119_v42  ;;  %v4233_v15 = vadd.f32 %v4226_v3, %v4220_v23  ;;  %v6118_v3 = vld [vmem:[%s9117_s1 + $0x173] ss:$8 sm:$0x3] }
 0x2d0   :  { %v4128_v29 = vmul.f32 %v4126_v31, %v6871_v59  ;;  %v4129_v40 = vmul.f32 %v4126_v31, %v6874_v61  ;;  %v4234_v42 = vadd.f32 %v4230_v1, %v4221_v39  ;;  %v4341_v2 = vrot.slane %v6118_v3, %v6856_v53 }
 0x2d1   :  { %6533 = vset.pattern.permute.xlu1 %v9244_v52 }
 0x2d2   :  { %v4141_v8 = vadd.f32 %v4134_v46, %v4128_v29  ;;  %v4142_v44 = vadd.f32 %v4138_v12, %v4129_v40  ;;  %5022 = vperm.xlu1 %6533, %v8522_v34   ;;  %v6115_v29 = vld [vmem:[%s9117_s1 + $0x170] ss:$8 sm:$0x3] }
 0x2d4   :  { %v4143_v36 = vmax.f32 %v4120_v4, %v4141_v8  ;;  %v4144_v16 = vmax.f32 %v4121_v63, %v4142_v44  ;;  %v4172_v37 = vpop.permute.xlu1 %4171  ;;  %v4287_v4 = vpop.permute.xlu0 %4286  ;;  %v4272_v63 = vrot.slane %v6115_v29, %v6856_v53  ;;  %v4276_v8 = vrot.slane %v6115_v29, %v6861_v55 }
 0x2d5   :  { %v4174_v22 = vmul.f32 %v4172_v37, %v6871_v59  ;;  %v4175_v47 = vmul.f32 %v4172_v37, %v6874_v61  ;;  %v4289_v37 = vmul.f32 %v4287_v4, %v6871_v59  ;;  %v9248_v29 = vmov 98  }
 0x2d6   :  { %6535 = vset.pattern.permute.xlu1 %v9245_v20  ;;  %v4166_v58 = vmax.f32 %v4143_v36, %v4164_v38  ;;  %v4167_v32 = vmax.f32 %v4144_v16, %v4165_v57  ;;  %v6117_v20 = vld [vmem:[%s9117_s1 + $0x172] ss:$8 sm:$0x3] }
 0x2d7   :  { %5068 = vperm.xlu1 %6535, %v8522_v34   ;;  %v4187_v54 = vadd.f32 %v4180_v28, %v4174_v22  ;;  %v4188_v6 = vadd.f32 %v4184_v21, %v4175_v47  ;;  %v4295_v28 = vrot.slane %v6116_v5, %v6856_v53  ;;  %v4299_v21 = vrot.slane %v6116_v5, %v6861_v55 }
 0x2d8   :  { %v9247_v47 = vmov 95   ;;  %v4318_v23 = vrot.slane %v6117_v20, %v6856_v53  ;;  %v4322_v39 = vrot.slane %v6117_v20, %v6861_v55 }
 0x2d9   :  { %v4195_v45 = vpop.permute.xlu1 %4194  ;;  %v4189_v46 = vmax.f32 %v4166_v58, %v4187_v54  ;;  %v4190_v12 = vmax.f32 %v4167_v32, %v4188_v6  ;;  %v4302_v58 = vadd.f32 %v4295_v28, %v4289_v37 }
 0x2da   :  { %v4197_v10 = vmul.f32 %v4195_v45, %v6871_v59  ;;  %v4198_v14 = vmul.f32 %v4195_v45, %v6874_v61 }
 0x2db   :  { %6536 = vset.pattern.permute.xlu1 %v9246_v48  ;;  %v4356_v48 = vpop.permute.xlu0 %4355 }
 0x2dc   :  { %v4210_v50 = vadd.f32 %v4203_v7, %v4197_v10  ;;  %v4211_v33 = vadd.f32 %v4207_v62, %v4198_v14  ;;  %5091 = vperm.xlu1 %6536, %v8522_v34   ;;  %v6119_v14 = vld [vmem:[%s9117_s1 + $0x174] ss:$8 sm:$0x3] }
 0x2de   :  { %v4212_v31 = vmax.f32 %v4189_v46, %v4210_v50  ;;  %v4213_v13 = vmax.f32 %v4190_v12, %v4211_v33  ;;  %v4241_v26 = vpop.permute.xlu1 %4240  ;;  %v4345_v46 = vrot.slane %v6118_v3, %v6861_v55  ;;  %v6123_v3 = vld [vmem:[%s9117_s1 + $0x180] ss:$8 sm:$0x3] }
 0x2df   :  { %v4243_v40 = vmul.f32 %v4241_v26, %v6871_v59  ;;  %v4244_v52 = vmul.f32 %v4241_v26, %v6874_v61  ;;  %v4368_v26 = vrot.slane %v6119_v14, %v6861_v55 }
 0x2e0   :  { %6538 = vset.pattern.permute.xlu1 %v6707_v0  ;;  %v4235_v44 = vmax.f32 %v4212_v31, %v4233_v15  ;;  %v4236_v38 = vmax.f32 %v4213_v13, %v4234_v42  ;;  %v4290_v0 = vmul.f32 %v4287_v4, %v6874_v61  ;;  %v4358_v31 = vmul.f32 %v4356_v48, %v6871_v59 }
 0x2e1   :  { %5137 = vperm.xlu1 %6538, %v8522_v34   ;;  %v4256_v57 = vadd.f32 %v4249_v25, %v4243_v40  ;;  %v4257_v36 = vadd.f32 %v4253_v17, %v4244_v52  ;;  %v4364_v13 = vrot.slane %v6119_v14, %v6856_v53  ;;  %v6120_v40 = vld [vmem:[%s9117_s1 + $0x175] ss:$8 sm:$0x3] }
 0x2e2   :  { %v4303_v32 = vadd.f32 %v4299_v21, %v4290_v0  ;;  %v4391_v37 = vrot.slane %v6120_v40, %v6861_v55  ;;  %v6121_v0 = vld [vmem:[%s9117_s1 + $0x176] ss:$8 sm:$0x3] }
 0x2e3   :  { %v4264_v16 = vpop.permute.xlu1 %4263  ;;  %v4258_v51 = vmax.f32 %v4235_v44, %v4256_v57  ;;  %v4259_v30 = vmax.f32 %v4236_v38, %v4257_v36  ;;  %v4414_v20 = vrot.slane %v6121_v0, %v6861_v55 }
 0x2e4   :  { %v4266_v41 = vmul.f32 %v4264_v16, %v6871_v59  ;;  %v4267_v22 = vmul.f32 %v4264_v16, %v6874_v61  ;;  %v4387_v16 = vrot.slane %v6120_v40, %v6856_v53 }
 0x2e5   :  { %6539 = vset.pattern.permute.xlu1 %v9247_v47  ;;  %v4410_v47 = vrot.slane %v6121_v0, %v6856_v53 }
 0x2e6   :  { %v4279_v7 = vadd.f32 %v4272_v63, %v4266_v41  ;;  %v4280_v62 = vadd.f32 %v4276_v8, %v4267_v22  ;;  %5160 = vperm.xlu1 %6539, %v8522_v34   ;;  %v4371_v8 = vadd.f32 %v4364_v13, %v4358_v31  ;;  %v6122_v41 = vld [vmem:[%s9117_s1 + $0x177] ss:$8 sm:$0x3]  ;;  %v4425_v22 = vpop.permute.xlu0 %4424  ;;  %v6124_v31 = vld [vmem:[%s9117_s1 + $0x181] ss:$8 sm:$0x3] }
 0x2e8   :  { %v4281_v54 = vmax.f32 %v4258_v51, %v4279_v7  ;;  %v4282_v6 = vmax.f32 %v4259_v30, %v4280_v62  ;;  %v4310_v45 = vpop.permute.xlu1 %4309 }
 0x2e9   :  { %v4312_v1 = vmul.f32 %v4310_v45, %v6871_v59  ;;  %v4313_v10 = vmul.f32 %v4310_v45, %v6874_v61 }
 0x2ea   :  { %6541 = vset.pattern.permute.xlu1 %v6709_v9  ;;  %v4304_v12 = vmax.f32 %v4281_v54, %v4302_v58  ;;  %v4305_v50 = vmax.f32 %v4282_v6, %v4303_v32  ;;  %v4359_v9 = vmul.f32 %v4356_v48, %v6874_v61  ;;  %v4427_v32 = vmul.f32 %v4425_v22, %v6871_v59 }
 0x2eb   :  { %5206 = vperm.xlu1 %6541, %v8522_v34   ;;  %v4325_v33 = vadd.f32 %v4318_v23, %v4312_v1  ;;  %v4326_v15 = vadd.f32 %v4322_v39, %v4313_v10  ;;  %v4433_v54 = vrot.slane %v6122_v41, %v6856_v53  ;;  %v4437_v6 = vrot.slane %v6122_v41, %v6861_v55 }
 0x2ec   :  { %v4372_v44 = vadd.f32 %v4368_v26, %v4359_v9  ;;  %v9249_v39 = vmov 101   ;;  %v6125_v26 = vld [vmem:[%s9117_s1 + $0x182] ss:$8 sm:$0x3] }
 0x2ed   :  { %v4333_v42 = vpop.permute.xlu1 %4332  ;;  %v4327_v52 = vmax.f32 %v4304_v12, %v4325_v33  ;;  %v4328_v5 = vmax.f32 %v4305_v50, %v4326_v15  ;;  %v4456_v15 = vrot.slane %v6123_v3, %v6856_v53 }
 0x2ee   :  { %v4335_v25 = vmul.f32 %v4333_v42, %v6871_v59  ;;  %v4336_v17 = vmul.f32 %v4333_v42, %v6874_v61  ;;  %v4460_v42 = vrot.slane %v6123_v3, %v6861_v55 }
 0x2ef   :  { %6542 = vset.pattern.permute.xlu1 %v9248_v29  ;;  %v4483_v29 = vrot.slane %v6124_v31, %v6861_v55 }
 0x2f0   :  { %v4348_v4 = vadd.f32 %v4341_v2, %v4335_v25  ;;  %v4349_v63 = vadd.f32 %v4345_v46, %v4336_v17  ;;  %5229 = vperm.xlu1 %6542, %v8522_v34   ;;  %v4440_v2 = vadd.f32 %v4433_v54, %v4427_v32  ;;  %v4494_v25 = vpop.permute.xlu0 %4493  ;;  %v4479_v17 = vrot.slane %v6124_v31, %v6856_v53  ;;  %v6128_v54 = vld [vmem:[%s9117_s1 + $0x185] ss:$8 sm:$0x3] }
 0x2f2   :  { %v4350_v38 = vmax.f32 %v4327_v52, %v4348_v4  ;;  %v4351_v57 = vmax.f32 %v4328_v5, %v4349_v63  ;;  %v4379_v36 = vpop.permute.xlu1 %4378 }
 0x2f3   :  { %v4381_v28 = vmul.f32 %v4379_v36, %v6871_v59  ;;  %v4382_v21 = vmul.f32 %v4379_v36, %v6874_v61 }
 0x2f4   :  { %6544 = vset.pattern.permute.xlu1 %v6711_v11  ;;  %v4373_v51 = vmax.f32 %v4350_v38, %v4371_v8  ;;  %v4374_v30 = vmax.f32 %v4351_v57, %v4372_v44  ;;  %v4428_v11 = vmul.f32 %v4425_v22, %v6874_v61  ;;  %v4496_v8 = vmul.f32 %v4494_v25, %v6871_v59 }
 0x2f5   :  { %5275 = vperm.xlu1 %6544, %v8522_v34   ;;  %v4394_v7 = vadd.f32 %v4387_v16, %v4381_v28  ;;  %v4395_v62 = vadd.f32 %v4391_v37, %v4382_v21  ;;  %v4502_v44 = vrot.slane %v6125_v26, %v6856_v53  ;;  %v4506_v38 = vrot.slane %v6125_v26, %v6861_v55  ;;  %v6126_v37 = vld [vmem:[%s9117_s1 + $0x183] ss:$8 sm:$0x3] }
 0x2f6   :  { %v4441_v46 = vadd.f32 %v4437_v6, %v4428_v11  ;;  %v9250_v16 = vmov 104   ;;  %v4563_v6 = vpop.permute.xlu0 %4562 }
 0x2f7   :  { %v4402_v58 = vpop.permute.xlu1 %4401  ;;  %v4396_v1 = vmax.f32 %v4373_v51, %v4394_v7  ;;  %v4397_v10 = vmax.f32 %v4374_v30, %v4395_v62  ;;  %v4509_v22 = vadd.f32 %v4502_v44, %v4496_v8  ;;  %v4525_v7 = vrot.slane %v6126_v37, %v6856_v53 }
 0x2f8   :  { %v4404_v45 = vmul.f32 %v4402_v58, %v6871_v59  ;;  %v4405_v23 = vmul.f32 %v4402_v58, %v6874_v61  ;;  %v4529_v62 = vrot.slane %v6126_v37, %v6861_v55  ;;  %v6127_v58 = vld [vmem:[%s9117_s1 + $0x184] ss:$8 sm:$0x3] }
 0x2f9   :  { %6545 = vset.pattern.permute.xlu1 %v9249_v39 }
 0x2fa   :  { %v4417_v14 = vadd.f32 %v4410_v47, %v4404_v45  ;;  %v4418_v48 = vadd.f32 %v4414_v20, %v4405_v23  ;;  %5298 = vperm.xlu1 %6545, %v8522_v34   ;;  %v4548_v45 = vrot.slane %v6127_v58, %v6856_v53  ;;  %v4552_v23 = vrot.slane %v6127_v58, %v6861_v55  ;;  %v4632_v44 = vpop.permute.xlu0 %4631 }
 0x2fc   :  { %v4419_v12 = vmax.f32 %v4396_v1, %v4417_v14  ;;  %v4420_v50 = vmax.f32 %v4397_v10, %v4418_v48  ;;  %v4448_v33 = vpop.permute.xlu1 %4447  ;;  %v4565_v48 = vmul.f32 %v4563_v6, %v6871_v59 }
 0x2fd   :  { %v4450_v9 = vmul.f32 %v4448_v33, %v6871_v59  ;;  %v4451_v13 = vmul.f32 %v4448_v33, %v6874_v61  ;;  %v9251_v33 = vmov 107  }
 0x2fe   :  { %6547 = vset.pattern.permute.xlu1 %v6713_v19  ;;  %v4442_v40 = vmax.f32 %v4419_v12, %v4440_v2  ;;  %v4443_v52 = vmax.f32 %v4420_v50, %v4441_v46  ;;  %v4497_v19 = vmul.f32 %v4494_v25, %v6874_v61  ;;  %v4571_v2 = vrot.slane %v6128_v54, %v6856_v53 }
 0x2ff   :  { %5344 = vperm.xlu1 %6547, %v8522_v34   ;;  %v4463_v5 = vadd.f32 %v4456_v15, %v4450_v9  ;;  %v4464_v4 = vadd.f32 %v4460_v42, %v4451_v13  ;;  %v4575_v46 = vrot.slane %v6128_v54, %v6861_v55  ;;  %v6129_v15 = vld [vmem:[%s9117_s1 + $0x186] ss:$8 sm:$0x3] }
 0x300   :  { %v4510_v47 = vadd.f32 %v4506_v38, %v4497_v19  ;;  %v4578_v26 = vadd.f32 %v4571_v2, %v4565_v48  ;;  %v6131_v19 = vld [vmem:[%s9117_s1 + $0x190] ss:$8 sm:$0x3]  ;;  %v6134_v48 = vld [vmem:[%s9117_s1 + $0x193] ss:$8 sm:$0x3] }
 0x301   :  { %v4471_v63 = vpop.permute.xlu1 %4470  ;;  %v4465_v0 = vmax.f32 %v4442_v40, %v4463_v5  ;;  %v4466_v28 = vmax.f32 %v4443_v52, %v4464_v4  ;;  %v4594_v52 = vrot.slane %v6129_v15, %v6856_v53  ;;  %v4598_v5 = vrot.slane %v6129_v15, %v6861_v55  ;;  %v6130_v4 = vld [vmem:[%s9117_s1 + $0x187] ss:$8 sm:$0x3] }
 0x302   :  { %v4473_v57 = vmul.f32 %v4471_v63, %v6871_v59  ;;  %v4474_v36 = vmul.f32 %v4471_v63, %v6874_v61  ;;  %v4617_v38 = vrot.slane %v6130_v4, %v6856_v53 }
 0x303   :  { %6548 = vset.pattern.permute.xlu1 %v9250_v16 }
 0x304   :  { %v4486_v21 = vadd.f32 %v4479_v17, %v4473_v57  ;;  %v4487_v41 = vadd.f32 %v4483_v29, %v4474_v36  ;;  %5367 = vperm.xlu1 %6548, %v8522_v34   ;;  %v4621_v57 = vrot.slane %v6130_v4, %v6861_v55 }
 0x306   :  { %v4488_v20 = vmax.f32 %v4465_v0, %v4486_v21  ;;  %v4489_v51 = vmax.f32 %v4466_v28, %v4487_v41  ;;  %v4517_v30 = vpop.permute.xlu1 %4516  ;;  %v4634_v21 = vmul.f32 %v4632_v44, %v6871_v59  ;;  %v4640_v41 = vrot.slane %v6131_v19, %v6856_v53 }
 0x307   :  { %v4519_v32 = vmul.f32 %v4517_v30, %v6871_v59  ;;  %v4520_v11 = vmul.f32 %v4517_v30, %v6874_v61  ;;  %v6132_v30 = vld [vmem:[%s9117_s1 + $0x191] ss:$8 sm:$0x3] }
 0x308   :  { %6550 = vset.pattern.permute.xlu1 %v6715_v27  ;;  %v4511_v39 = vmax.f32 %v4488_v20, %v4509_v22  ;;  %v4512_v3 = vmax.f32 %v4489_v51, %v4510_v47  ;;  %v4566_v27 = vmul.f32 %v4563_v6, %v6874_v61  ;;  %v4644_v22 = vrot.slane %v6131_v19, %v6861_v55 }
 0x309   :  { %5413 = vperm.xlu1 %6550, %v8522_v34   ;;  %v4532_v1 = vadd.f32 %v4525_v7, %v4519_v32  ;;  %v4533_v10 = vadd.f32 %v4529_v62, %v4520_v11  ;;  %v9252_v51 = vmov 110   ;;  %v4647_v11 = vadd.f32 %v4640_v41, %v4634_v21 }
 0x30a   :  { %v4579_v25 = vadd.f32 %v4575_v46, %v4566_v27  ;;  %v4701_v27 = vpop.permute.xlu0 %4700 }
 0x30b   :  { %v4540_v14 = vpop.permute.xlu1 %4539  ;;  %v4534_v42 = vmax.f32 %v4511_v39, %v4532_v1  ;;  %v4535_v31 = vmax.f32 %v4512_v3, %v4533_v10  ;;  %v4663_v39 = vrot.slane %v6132_v30, %v6856_v53  ;;  %v4667_v3 = vrot.slane %v6132_v30, %v6861_v55  ;;  %v6133_v1 = vld [vmem:[%s9117_s1 + $0x192] ss:$8 sm:$0x3] }
 0x30c   :  { %v4542_v12 = vmul.f32 %v4540_v14, %v6871_v59  ;;  %v4543_v50 = vmul.f32 %v4540_v14, %v6874_v61  ;;  %v4686_v2 = vrot.slane %v6133_v1, %v6856_v53  ;;  %v4690_v46 = vrot.slane %v6133_v1, %v6861_v55 }
 0x30d   :  { %6551 = vset.pattern.permute.xlu1 %v9251_v33 }
 0x30e   :  { %v4555_v9 = vadd.f32 %v4548_v45, %v4542_v12  ;;  %v4556_v13 = vadd.f32 %v4552_v23, %v4543_v50  ;;  %5436 = vperm.xlu1 %6551, %v8522_v34   ;;  %v4770_v21 = vpop.permute.xlu0 %4769 }
 0x310   :  { %v4557_v17 = vmax.f32 %v4534_v42, %v4555_v9  ;;  %v4558_v29 = vmax.f32 %v4535_v31, %v4556_v13  ;;  %v4586_v40 = vpop.permute.xlu1 %4585  ;;  %v4703_v31 = vmul.f32 %v4701_v27, %v6871_v59  ;;  %v4709_v9 = vrot.slane %v6134_v48, %v6856_v53 }
 0x311   :  { %v4588_v63 = vmul.f32 %v4586_v40, %v6871_v59  ;;  %v4589_v8 = vmul.f32 %v4586_v40, %v6874_v61  ;;  %v4713_v13 = vrot.slane %v6134_v48, %v6861_v55 }
 0x312   :  { %6553 = vset.pattern.permute.xlu1 %v6717_v35  ;;  %v4580_v36 = vmax.f32 %v4557_v17, %v4578_v26  ;;  %v4581_v16 = vmax.f32 %v4558_v29, %v4579_v25  ;;  %v4635_v35 = vmul.f32 %v4632_v44, %v6874_v61  ;;  %v9253_v17 = vmov 113   ;;  %v6135_v29 = vld [vmem:[%s9117_s1 + $0x194] ss:$8 sm:$0x3] }
 0x313   :  { %5482 = vperm.xlu1 %6553, %v8522_v34   ;;  %v4601_v37 = vadd.f32 %v4594_v52, %v4588_v63  ;;  %v4602_v0 = vadd.f32 %v4598_v5, %v4589_v8  ;;  %v4716_v63 = vadd.f32 %v4709_v9, %v4703_v31 }
 0x314   :  { %v4648_v54 = vadd.f32 %v4644_v22, %v4635_v35 }
 0x315   :  { %v4609_v28 = vpop.permute.xlu1 %4608  ;;  %v4603_v7 = vmax.f32 %v4580_v36, %v4601_v37  ;;  %v4604_v62 = vmax.f32 %v4581_v16, %v4602_v0  ;;  %v4736_v36 = vrot.slane %v6135_v29, %v6861_v55  ;;  %v6136_v16 = vld [vmem:[%s9117_s1 + $0x195] ss:$8 sm:$0x3] }
 0x316   :  { %v4611_v47 = vmul.f32 %v4609_v28, %v6871_v59  ;;  %v4612_v20 = vmul.f32 %v4609_v28, %v6874_v61  ;;  %v6137_v28 = vld [vmem:[%s9117_s1 + $0x196] ss:$8 sm:$0x3]  ;;  %v4755_v35 = vrot.slane %v6136_v16, %v6856_v53  ;;  %v4759_v41 = vrot.slane %v6136_v16, %v6861_v55 }
 0x317   :  { %6554 = vset.pattern.permute.xlu1 %v9252_v51 }
 0x318   :  { %v4624_v58 = vadd.f32 %v4617_v38, %v4611_v47  ;;  %v4625_v32 = vadd.f32 %v4621_v57, %v4612_v20  ;;  %5505 = vperm.xlu1 %6554, %v8522_v34   ;;  %v4732_v57 = vrot.slane %v6135_v29, %v6856_v53 }
 0x31a   :  { %v4626_v6 = vmax.f32 %v4603_v7, %v4624_v58  ;;  %v4627_v45 = vmax.f32 %v4604_v62, %v4625_v32  ;;  %v4655_v23 = vpop.permute.xlu1 %4654  ;;  %v4772_v7 = vmul.f32 %v4770_v21, %v6871_v59  ;;  %v4778_v62 = vrot.slane %v6137_v28, %v6856_v53 }
 0x31b   :  { %v4657_v10 = vmul.f32 %v4655_v23, %v6871_v59  ;;  %v4658_v14 = vmul.f32 %v4655_v23, %v6874_v61  ;;  %v4782_v58 = vrot.slane %v6137_v28, %v6861_v55 }
 0x31c   :  { %6556 = vset.pattern.permute.xlu1 %v6719_v43  ;;  %v4649_v12 = vmax.f32 %v4626_v6, %v4647_v11  ;;  %v4650_v50 = vmax.f32 %v4627_v45, %v4648_v54  ;;  %v4704_v43 = vmul.f32 %v4701_v27, %v6874_v61  ;;  %v9254_v54 = vmov 116   ;;  %v6138_v6 = vld [vmem:[%s9117_s1 + $0x197] ss:$8 sm:$0x3] }
 0x31d   :  { %5551 = vperm.xlu1 %6556, %v8522_v34   ;;  %v4670_v33 = vadd.f32 %v4663_v39, %v4657_v10  ;;  %v4671_v15 = vadd.f32 %v4667_v3, %v4658_v14  ;;  %v4785_v1 = vadd.f32 %v4778_v62, %v4772_v7 }
 0x31e   :  { %v4717_v8 = vadd.f32 %v4713_v13, %v4704_v43 }
 0x31f   :  { %v4678_v42 = vpop.permute.xlu1 %4677  ;;  %v4672_v40 = vmax.f32 %v4649_v12, %v4670_v33  ;;  %v4673_v52 = vmax.f32 %v4650_v50, %v4671_v15  ;;  %v6139_v12 = vld [vmem:[%s9117_s1 + $0x1a0] ss:$8 sm:$0x3]  ;;  %v6140_v15 = vld [vmem:[%s9117_s1 + $0x1a1] ss:$8 sm:$0x3] }
 0x320   :  { %v4680_v26 = vmul.f32 %v4678_v42, %v6871_v59  ;;  %v4681_v25 = vmul.f32 %v4678_v42, %v6874_v61  ;;  %v4839_v42 = vpop.permute.xlu0 %4838  ;;  %v4824_v31 = vrot.slane %v6139_v12, %v6856_v53  ;;  %v4828_v43 = vrot.slane %v6139_v12, %v6861_v55 }
 0x321   :  { %6557 = vset.pattern.permute.xlu1 %v9253_v17  ;;  %v4841_v29 = vmul.f32 %v4839_v42, %v6871_v59 }
 0x322   :  { %v4693_v5 = vadd.f32 %v4686_v2, %v4680_v26  ;;  %v4694_v4 = vadd.f32 %v4690_v46, %v4681_v25  ;;  %5574 = vperm.xlu1 %6557, %v8522_v34   ;;  %v4801_v2 = vrot.slane %v6138_v6, %v6856_v53  ;;  %v4805_v46 = vrot.slane %v6138_v6, %v6861_v55 }
 0x324   :  { %v4695_v19 = vmax.f32 %v4672_v40, %v4693_v5  ;;  %v4696_v44 = vmax.f32 %v4673_v52, %v4694_v4  ;;  %v4724_v38 = vpop.permute.xlu1 %4723  ;;  %v4847_v40 = vrot.slane %v6140_v15, %v6856_v53  ;;  %v4851_v52 = vrot.slane %v6140_v15, %v6861_v55 }
 0x325   :  { %v4726_v37 = vmul.f32 %v4724_v38, %v6871_v59  ;;  %v4727_v0 = vmul.f32 %v4724_v38, %v6874_v61 }
 0x326   :  { %6559 = vset.pattern.permute.xlu1 %v6721_v56  ;;  %v4718_v22 = vmax.f32 %v4695_v19, %v4716_v63  ;;  %v4719_v47 = vmax.f32 %v4696_v44, %v4717_v8  ;;  %v4773_v56 = vmul.f32 %v4770_v21, %v6874_v61  ;;  %v9255_v63 = vmov 119   ;;  %v6141_v8 = vld [vmem:[%s9117_s1 + $0x1a2] ss:$8 sm:$0x3] }
 0x327   :  { %5620 = vperm.xlu1 %6559, %v8522_v34   ;;  %v4739_v20 = vadd.f32 %v4732_v57, %v4726_v37  ;;  %v4740_v51 = vadd.f32 %v4736_v36, %v4727_v0  ;;  %v4854_v36 = vadd.f32 %v4847_v40, %v4841_v29  ;;  %v4870_v21 = vrot.slane %v6141_v8, %v6856_v53 }
 0x328   :  { %v4786_v10 = vadd.f32 %v4782_v58, %v4773_v56 }
 0x329   :  { %v4747_v30 = vpop.permute.xlu1 %4746  ;;  %v4741_v45 = vmax.f32 %v4718_v22, %v4739_v20  ;;  %v4742_v23 = vmax.f32 %v4719_v47, %v4740_v51  ;;  %v6143_v20 = vld [vmem:[%s9117_s1 + $0x1a4] ss:$8 sm:$0x3]  ;;  %v4908_v51 = vpop.permute.xlu0 %4907 }
 0x32a   :  { %v4749_v32 = vmul.f32 %v4747_v30, %v6871_v59  ;;  %v4750_v11 = vmul.f32 %v4747_v30, %v6874_v61  ;;  %v4916_v6 = vrot.slane %v6143_v20, %v6856_v53 }
 0x32b   :  { %6560 = vset.pattern.permute.xlu1 %v9254_v54  ;;  %v4910_v54 = vmul.f32 %v4908_v51, %v6871_v59 }
 0x32c   :  { %v4762_v39 = vadd.f32 %v4755_v35, %v4749_v32  ;;  %v4763_v3 = vadd.f32 %v4759_v41, %v4750_v11  ;;  %5643 = vperm.xlu1 %6560, %v8522_v34   ;;  %v4874_v35 = vrot.slane %v6141_v8, %v6861_v55  ;;  %v6142_v41 = vld [vmem:[%s9117_s1 + $0x1a3] ss:$8 sm:$0x3] }
 0x32d   :  { %v4893_v30 = vrot.slane %v6142_v41, %v6856_v53  ;;  %v4897_v7 = vrot.slane %v6142_v41, %v6861_v55 }
 0x32e   :  { %v4764_v14 = vmax.f32 %v4741_v45, %v4762_v39  ;;  %v4765_v48 = vmax.f32 %v4742_v23, %v4763_v3  ;;  %v4793_v27 = vpop.permute.xlu1 %4792  ;;  %v4920_v45 = vrot.slane %v6143_v20, %v6861_v55  ;;  %v9256_v3 = vmov 122  }
 0x32f   :  { %v4795_v50 = vmul.f32 %v4793_v27, %v6871_v59  ;;  %v4796_v33 = vmul.f32 %v4793_v27, %v6874_v61 }
 0x330   :  { %6562 = vset.pattern.permute.xlu1 %v6723_v60  ;;  %v4787_v9 = vmax.f32 %v4764_v14, %v4785_v1  ;;  %v4788_v13 = vmax.f32 %v4765_v48, %v4786_v10  ;;  %v4842_v60 = vmul.f32 %v4839_v42, %v6874_v61  ;;  %v6144_v1 = vld [vmem:[%s9117_s1 + $0x1a5] ss:$8 sm:$0x3] }
 0x331   :  { %5689 = vperm.xlu1 %6562, %v8522_v34   ;;  %v4808_v26 = vadd.f32 %v4801_v2, %v4795_v50  ;;  %v4809_v25 = vadd.f32 %v4805_v46, %v4796_v33  ;;  %v4923_v2 = vadd.f32 %v4916_v6, %v4910_v54  ;;  %v4939_v15 = vrot.slane %v6144_v1, %v6856_v53 }
 0x332   :  { %v4855_v16 = vadd.f32 %v4851_v52, %v4842_v60  ;;  %v4943_v42 = vrot.slane %v6144_v1, %v6861_v55 }
 0x333   :  { %v4816_v17 = vpop.permute.xlu1 %4815  ;;  %v4810_v19 = vmax.f32 %v4787_v9, %v4808_v26  ;;  %v4811_v44 = vmax.f32 %v4788_v13, %v4809_v25  ;;  %v6146_v13 = vld [vmem:[%s9117_s1 + $0x1a7] ss:$8 sm:$0x3]  ;;  %v4977_v26 = vpop.permute.xlu0 %4976 }
 0x334   :  { %v4818_v5 = vmul.f32 %v4816_v17, %v6871_v59  ;;  %v4819_v4 = vmul.f32 %v4816_v17, %v6874_v61  ;;  %v4989_v8 = vrot.slane %v6146_v13, %v6861_v55 }
 0x335   :  { %6563 = vset.pattern.permute.xlu1 %v9255_v63  ;;  %v4985_v63 = vrot.slane %v6146_v13, %v6856_v53 }
 0x336   :  { %v4831_v38 = vadd.f32 %v4824_v31, %v4818_v5  ;;  %v4832_v57 = vadd.f32 %v4828_v43, %v4819_v4  ;;  %5712 = vperm.xlu1 %6563, %v8522_v34   ;;  %v6145_v31 = vld [vmem:[%s9117_s1 + $0x1a6] ss:$8 sm:$0x3]  ;;  %v4979_v4 = vmul.f32 %v4977_v26, %v6871_v59 }
 0x337   :  { %v4962_v25 = vrot.slane %v6145_v31, %v6856_v53  ;;  %v4966_v17 = vrot.slane %v6145_v31, %v6861_v55 }
 0x338   :  { %v4833_v37 = vmax.f32 %v4810_v19, %v4831_v38  ;;  %v4834_v0 = vmax.f32 %v4811_v44, %v4832_v57  ;;  %v4862_v28 = vpop.permute.xlu1 %4861  ;;  %v9257_v38 = vmov 125   ;;  %v6147_v57 = vld [vmem:[%s9117_s1 + $0x1b0] ss:$8 sm:$0x3] }
 0x339   :  { %v4864_v22 = vmul.f32 %v4862_v28, %v6871_v59  ;;  %v4865_v47 = vmul.f32 %v4862_v28, %v6874_v61  ;;  %v4992_v28 = vadd.f32 %v4985_v63, %v4979_v4  ;;  %v5012_v20 = vrot.slane %v6147_v57, %v6861_v55 }
 0x33a   :  { %6565 = vset.pattern.permute.xlu1 %v6725_v49  ;;  %v4856_v56 = vmax.f32 %v4833_v37, %v4854_v36  ;;  %v4857_v62 = vmax.f32 %v4834_v0, %v4855_v16  ;;  %v4911_v49 = vmul.f32 %v4908_v51, %v6874_v61  ;;  %v6148_v51 = vld [vmem:[%s9117_s1 + $0x1b1] ss:$8 sm:$0x3] }
 0x33b   :  { %5758 = vperm.xlu1 %6565, %v8522_v34   ;;  %v4877_v58 = vadd.f32 %v4870_v21, %v4864_v22  ;;  %v4878_v32 = vadd.f32 %v4874_v35, %v4865_v47  ;;  %v5008_v47 = vrot.slane %v6147_v57, %v6856_v53  ;;  %v6153_v57 = vld [vmem:[%s9117_s1 + $0x1b6] ss:$8 sm:$0x3] }
 0x33c   :  { %v4924_v46 = vadd.f32 %v4920_v45, %v4911_v49 }
 0x33d   :  { %v4885_v11 = vpop.permute.xlu1 %4884  ;;  %v4879_v10 = vmax.f32 %v4856_v56, %v4877_v58  ;;  %v4880_v14 = vmax.f32 %v4857_v62, %v4878_v32  ;;  %v6149_v56 = vld [vmem:[%s9117_s1 + $0x1b2] ss:$8 sm:$0x3]  ;;  %v5046_v62 = vpop.permute.xlu0 %5045  ;;  %v5031_v58 = vrot.slane %v6148_v51, %v6856_v53  ;;  %v5035_v32 = vrot.slane %v6148_v51, %v6861_v55  ;;  %v6154_v51 = vld [vmem:[%s9117_s1 + $0x1b7] ss:$8 sm:$0x3] }
 0x33e   :  { %v4887_v23 = vmul.f32 %v4885_v11, %v6871_v59  ;;  %v4888_v39 = vmul.f32 %v4885_v11, %v6874_v61 }
 0x33f   :  { %6566 = vset.pattern.permute.xlu1 %v9256_v3  ;;  %v5058_v3 = vrot.slane %v6149_v56, %v6861_v55 }
 0x340   :  { %v4900_v48 = vadd.f32 %v4893_v30, %v4887_v23  ;;  %v4901_v27 = vadd.f32 %v4897_v7, %v4888_v39  ;;  %5781 = vperm.xlu1 %6566, %v8522_v34   ;;  %v5048_v23 = vmul.f32 %v5046_v62, %v6871_v59  ;;  %v5054_v39 = vrot.slane %v6149_v56, %v6856_v53  ;;  %v6155_v56 = vld [vmem:[%s9117_s1 + $0x1c0] ss:$8 sm:$0x3] }
 0x342   :  { %v4902_v12 = vmax.f32 %v4879_v10, %v4900_v48  ;;  %v4903_v50 = vmax.f32 %v4880_v14, %v4901_v27  ;;  %v4931_v33 = vpop.permute.xlu1 %4930  ;;  %v6150_v10 = vld [vmem:[%s9117_s1 + $0x1b3] ss:$8 sm:$0x3] }
 0x343   :  { %v4933_v43 = vmul.f32 %v4931_v33, %v6871_v59  ;;  %v4934_v9 = vmul.f32 %v4931_v33, %v6874_v61  ;;  %v5081_v31 = vrot.slane %v6150_v10, %v6861_v55 }
 0x344   :  { %6568 = vset.pattern.permute.xlu1 %v6727_v18  ;;  %v4925_v29 = vmax.f32 %v4902_v12, %v4923_v2  ;;  %v4926_v60 = vmax.f32 %v4903_v50, %v4924_v46  ;;  %v4980_v18 = vmul.f32 %v4977_v26, %v6874_v61  ;;  %v5061_v46 = vadd.f32 %v5054_v39, %v5048_v23  ;;  %v6152_v26 = vld [vmem:[%s9117_s1 + $0x1b5] ss:$8 sm:$0x3] }
 0x345   :  { %5827 = vperm.xlu1 %6568, %v8522_v34   ;;  %v4946_v40 = vadd.f32 %v4939_v15, %v4933_v43  ;;  %v4947_v52 = vadd.f32 %v4943_v42, %v4934_v9  ;;  %v5077_v42 = vrot.slane %v6150_v10, %v6856_v53  ;;  %v6151_v43 = vld [vmem:[%s9117_s1 + $0x1b4] ss:$8 sm:$0x3]  ;;  %v5192_v39 = vrot.slane %v6155_v56, %v6856_v53  ;;  %v6156_v10 = vld [vmem:[%s9117_s1 + $0x1c1] ss:$8 sm:$0x3] }
 0x346   :  { %v4993_v21 = vadd.f32 %v4989_v8, %v4980_v18  ;;  %v5123_v8 = vrot.slane %v6152_v26, %v6856_v53 }
 0x347   :  { %v4954_v5 = vpop.permute.xlu1 %4953  ;;  %v4948_v36 = vmax.f32 %v4925_v29, %v4946_v40  ;;  %v4949_v16 = vmax.f32 %v4926_v60, %v4947_v52  ;;  %v5104_v29 = vrot.slane %v6151_v43, %v6861_v55 }
 0x348   :  { %v4956_v19 = vmul.f32 %v4954_v5, %v6871_v59  ;;  %v4957_v44 = vmul.f32 %v4954_v5, %v6874_v61 }
 0x349   :  { %6569 = vset.pattern.permute.xlu1 %v9257_v38 }
 0x34a   :  { %v4969_v37 = vadd.f32 %v4962_v25, %v4956_v19  ;;  %v4970_v0 = vadd.f32 %v4966_v17, %v4957_v44  ;;  %5850 = vperm.xlu1 %6569, %v8522_v34   ;;  %v5115_v25 = vpop.permute.xlu0 %5114  ;;  %v5100_v17 = vrot.slane %v6151_v43, %v6856_v53  ;;  %v5127_v19 = vrot.slane %v6152_v26, %v6861_v55  ;;  %v6157_v43 = vld [vmem:[%s9117_s1 + $0x1c2] ss:$8 sm:$0x3]  ;;  %v6158_v26 = vld [vmem:[%s9117_s1 + $0x1c3] ss:$8 sm:$0x3] }
 0x34b   :  { %v5117_v18 = vmul.f32 %v5115_v25, %v6871_v59  ;;  %v5118_v63 = vmul.f32 %v5115_v25, %v6874_v61 }
 0x34c   :  { %v4971_v35 = vmax.f32 %v4948_v36, %v4969_v37  ;;  %v4972_v41 = vmax.f32 %v4949_v16, %v4970_v0  ;;  %v5000_v22 = vpop.permute.xlu1 %4999 }
 0x34d   :  { %v5002_v30 = vmul.f32 %v5000_v22, %v6871_v59  ;;  %v5003_v7 = vmul.f32 %v5000_v22, %v6874_v61 }
 0x34e   :  { %6571 = vset.pattern.permute.xlu1 %v6729_v24  ;;  %v4994_v11 = vmax.f32 %v4971_v35, %v4992_v28  ;;  %v4995_v54 = vmax.f32 %v4972_v41, %v4993_v21  ;;  %v5049_v24 = vmul.f32 %v5046_v62, %v6874_v61  ;;  %v5130_v28 = vadd.f32 %v5123_v8, %v5117_v18  ;;  %v5184_v62 = vpop.permute.xlu0 %5183 }
 0x34f   :  { %5896 = vperm.xlu1 %6571, %v8522_v34   ;;  %v5015_v49 = vadd.f32 %v5008_v47, %v5002_v30  ;;  %v5016_v6 = vadd.f32 %v5012_v20, %v5003_v7  ;;  %v5131_v21 = vadd.f32 %v5127_v19, %v5118_v63  ;;  %v5146_v47 = vrot.slane %v6153_v57, %v6856_v53 }
 0x350   :  { %v5062_v12 = vadd.f32 %v5058_v3, %v5049_v24  ;;  %v5150_v20 = vrot.slane %v6153_v57, %v6861_v55  ;;  %v5186_v23 = vmul.f32 %v5184_v62, %v6871_v59  ;;  %v5187_v24 = vmul.f32 %v5184_v62, %v6874_v61  ;;  %v6159_v57 = vld [vmem:[%s9117_s1 + $0x1c4] ss:$8 sm:$0x3] }
 0x351   :  { %v5023_v45 = vpop.permute.xlu1 %5022  ;;  %v5017_v14 = vmax.f32 %v4994_v11, %v5015_v49  ;;  %v5018_v48 = vmax.f32 %v4995_v54, %v5016_v6  ;;  %v5196_v3 = vrot.slane %v6155_v56, %v6861_v55  ;;  %v5261_v8 = vrot.slane %v6158_v26, %v6856_v53  ;;  %v6161_v56 = vld [vmem:[%s9117_s1 + $0x1c6] ss:$8 sm:$0x3] }
 0x352   :  { %v5025_v1 = vmul.f32 %v5023_v45, %v6871_v59  ;;  %v5026_v34 = vmul.f32 %v5023_v45, %v6874_v61  ;;  %v5253_v25 = vpop.permute.xlu0 %5252  ;;  %v5265_v19 = vrot.slane %v6158_v26, %v6861_v55  ;;  %v6164_v26 = vld [vmem:[%s9117_s1 + $0x1d1] ss:$8 sm:$0x3] }
 0x353   :  { %v5255_v18 = vmul.f32 %v5253_v25, %v6871_v59  ;;  %v5256_v63 = vmul.f32 %v5253_v25, %v6874_v61 }
 0x354   :  { %v5038_v27 = vadd.f32 %v5031_v58, %v5025_v1  ;;  %v5039_v2 = vadd.f32 %v5035_v32, %v5026_v34  ;;  %v5169_v58 = vrot.slane %v6154_v51, %v6856_v53  ;;  %v5173_v32 = vrot.slane %v6154_v51, %v6861_v55  ;;  %v6160_v51 = vld [vmem:[%s9117_s1 + $0x1c5] ss:$8 sm:$0x3] }
 0x356   :  { %v5040_v50 = vmax.f32 %v5017_v14, %v5038_v27  ;;  %v5041_v33 = vmax.f32 %v5018_v48, %v5039_v2  ;;  %v5069_v15 = vpop.permute.xlu1 %5068  ;;  %v5322_v62 = vpop.permute.xlu0 %5321 }
 0x357   :  { %v5071_v9 = vmul.f32 %v5069_v15, %v6871_v59  ;;  %v5072_v13 = vmul.f32 %v5069_v15, %v6874_v61 }
 0x358   :  { %v5063_v60 = vmax.f32 %v5040_v50, %v5061_v46  ;;  %v5064_v40 = vmax.f32 %v5041_v33, %v5062_v12  ;;  %v5199_v46 = vadd.f32 %v5192_v39, %v5186_v23  ;;  %v5200_v12 = vadd.f32 %v5196_v3, %v5187_v24 }
 0x359   :  { %v5084_v52 = vadd.f32 %v5077_v42, %v5071_v9  ;;  %v5085_v5 = vadd.f32 %v5081_v31, %v5072_v13  ;;  %v5215_v42 = vrot.slane %v6156_v10, %v6856_v53  ;;  %v5219_v31 = vrot.slane %v6156_v10, %v6861_v55  ;;  %v6162_v10 = vld [vmem:[%s9117_s1 + $0x1c7] ss:$8 sm:$0x3] }
 0x35a   :  { %v5324_v23 = vmul.f32 %v5322_v62, %v6871_v59  ;;  %v5325_v24 = vmul.f32 %v5322_v62, %v6874_v61  ;;  %v5330_v39 = vrot.slane %v6161_v56, %v6856_v53  ;;  %v5334_v3 = vrot.slane %v6161_v56, %v6861_v55  ;;  %v5391_v25 = vpop.permute.xlu0 %5390  ;;  %v6167_v56 = vld [vmem:[%s9117_s1 + $0x1d4] ss:$8 sm:$0x3] }
 0x35b   :  { %v5092_v4 = vpop.permute.xlu1 %5091  ;;  %v5086_v36 = vmax.f32 %v5063_v60, %v5084_v52  ;;  %v5087_v16 = vmax.f32 %v5064_v40, %v5085_v5 }
 0x35c   :  { %v5094_v44 = vmul.f32 %v5092_v4, %v6871_v59  ;;  %v5095_v38 = vmul.f32 %v5092_v4, %v6874_v61 }
 0x35e   :  { %v5107_v37 = vadd.f32 %v5100_v17, %v5094_v44  ;;  %v5108_v0 = vadd.f32 %v5104_v29, %v5095_v38  ;;  %v5238_v17 = vrot.slane %v6157_v43, %v6856_v53  ;;  %v5242_v29 = vrot.slane %v6157_v43, %v6861_v55  ;;  %v6163_v43 = vld [vmem:[%s9117_s1 + $0x1d0] ss:$8 sm:$0x3]  ;;  %v5460_v62 = vpop.permute.xlu0 %5459 }
 0x360   :  { %v5109_v35 = vmax.f32 %v5086_v36, %v5107_v37  ;;  %v5110_v41 = vmax.f32 %v5087_v16, %v5108_v0  ;;  %v5138_v22 = vpop.permute.xlu1 %5137 }
 0x361   :  { %v5140_v30 = vmul.f32 %v5138_v22, %v6871_v59  ;;  %v5141_v7 = vmul.f32 %v5138_v22, %v6874_v61 }
 0x362   :  { %v5132_v11 = vmax.f32 %v5109_v35, %v5130_v28  ;;  %v5133_v54 = vmax.f32 %v5110_v41, %v5131_v21  ;;  %v5268_v28 = vadd.f32 %v5261_v8, %v5255_v18  ;;  %v5269_v21 = vadd.f32 %v5265_v19, %v5256_v63 }
 0x363   :  { %v5153_v49 = vadd.f32 %v5146_v47, %v5140_v30  ;;  %v5154_v6 = vadd.f32 %v5150_v20, %v5141_v7  ;;  %v5284_v47 = vrot.slane %v6159_v57, %v6856_v53  ;;  %v5288_v20 = vrot.slane %v6159_v57, %v6861_v55  ;;  %v6165_v57 = vld [vmem:[%s9117_s1 + $0x1d2] ss:$8 sm:$0x3] }
 0x364   :  { %v5393_v18 = vmul.f32 %v5391_v25, %v6871_v59  ;;  %v5394_v63 = vmul.f32 %v5391_v25, %v6874_v61  ;;  %v5399_v8 = vrot.slane %v6164_v26, %v6856_v53  ;;  %v5403_v19 = vrot.slane %v6164_v26, %v6861_v55  ;;  %v6170_v26 = vld [vmem:[%s9117_s1 + $0x1d7] ss:$8 sm:$0x3]  ;;  %v5529_v25 = vpop.permute.xlu0 %5528 }
 0x365   :  { %v5161_v45 = vpop.permute.xlu1 %5160  ;;  %v5155_v14 = vmax.f32 %v5132_v11, %v5153_v49  ;;  %v5156_v48 = vmax.f32 %v5133_v54, %v5154_v6 }
 0x366   :  { %v5163_v1 = vmul.f32 %v5161_v45, %v6871_v59  ;;  %v5164_v34 = vmul.f32 %v5161_v45, %v6874_v61 }
 0x368   :  { %v5176_v27 = vadd.f32 %v5169_v58, %v5163_v1  ;;  %v5177_v2 = vadd.f32 %v5173_v32, %v5164_v34  ;;  %v5307_v58 = vrot.slane %v6160_v51, %v6856_v53  ;;  %v5311_v32 = vrot.slane %v6160_v51, %v6861_v55  ;;  %v6166_v51 = vld [vmem:[%s9117_s1 + $0x1d3] ss:$8 sm:$0x3] }
 0x36a   :  { %v5178_v50 = vmax.f32 %v5155_v14, %v5176_v27  ;;  %v5179_v33 = vmax.f32 %v5156_v48, %v5177_v2  ;;  %v5207_v15 = vpop.permute.xlu1 %5206 }
 0x36b   :  { %v5209_v9 = vmul.f32 %v5207_v15, %v6871_v59  ;;  %v5210_v13 = vmul.f32 %v5207_v15, %v6874_v61 }
 0x36c   :  { %v5201_v60 = vmax.f32 %v5178_v50, %v5199_v46  ;;  %v5202_v40 = vmax.f32 %v5179_v33, %v5200_v12  ;;  %v5337_v46 = vadd.f32 %v5330_v39, %v5324_v23  ;;  %v5338_v12 = vadd.f32 %v5334_v3, %v5325_v24 }
 0x36d   :  { %v5222_v52 = vadd.f32 %v5215_v42, %v5209_v9  ;;  %v5223_v5 = vadd.f32 %v5219_v31, %v5210_v13  ;;  %v5353_v42 = vrot.slane %v6162_v10, %v6856_v53  ;;  %v5357_v31 = vrot.slane %v6162_v10, %v6861_v55  ;;  %v6168_v10 = vld [vmem:[%s9117_s1 + $0x1d5] ss:$8 sm:$0x3] }
 0x36e   :  { %v5462_v23 = vmul.f32 %v5460_v62, %v6871_v59  ;;  %v5463_v24 = vmul.f32 %v5460_v62, %v6874_v61  ;;  %v5468_v39 = vrot.slane %v6167_v56, %v6856_v53  ;;  %v5472_v3 = vrot.slane %v6167_v56, %v6861_v55  ;;  %v6173_v56 = vld [vmem:[%s9117_s1 + $0x1e2] ss:$8 sm:$0x3]  ;;  %v5598_v62 = vpop.permute.xlu0 %5597 }
 0x36f   :  { %v5230_v4 = vpop.permute.xlu1 %5229  ;;  %v5224_v36 = vmax.f32 %v5201_v60, %v5222_v52  ;;  %v5225_v16 = vmax.f32 %v5202_v40, %v5223_v5 }
 0x370   :  { %v5232_v44 = vmul.f32 %v5230_v4, %v6871_v59  ;;  %v5233_v38 = vmul.f32 %v5230_v4, %v6874_v61 }
 0x372   :  { %v5245_v37 = vadd.f32 %v5238_v17, %v5232_v44  ;;  %v5246_v0 = vadd.f32 %v5242_v29, %v5233_v38  ;;  %v5376_v17 = vrot.slane %v6163_v43, %v6856_v53  ;;  %v5380_v29 = vrot.slane %v6163_v43, %v6861_v55  ;;  %v6169_v43 = vld [vmem:[%s9117_s1 + $0x1d6] ss:$8 sm:$0x3] }
 0x374   :  { %v5247_v35 = vmax.f32 %v5224_v36, %v5245_v37  ;;  %v5248_v41 = vmax.f32 %v5225_v16, %v5246_v0  ;;  %v5276_v22 = vpop.permute.xlu1 %5275 }
 0x375   :  { %v5278_v30 = vmul.f32 %v5276_v22, %v6871_v59  ;;  %v5279_v7 = vmul.f32 %v5276_v22, %v6874_v61 }
 0x376   :  { %v5270_v11 = vmax.f32 %v5247_v35, %v5268_v28  ;;  %v5271_v54 = vmax.f32 %v5248_v41, %v5269_v21  ;;  %v5406_v28 = vadd.f32 %v5399_v8, %v5393_v18  ;;  %v5407_v21 = vadd.f32 %v5403_v19, %v5394_v63 }
 0x377   :  { %v5291_v49 = vadd.f32 %v5284_v47, %v5278_v30  ;;  %v5292_v6 = vadd.f32 %v5288_v20, %v5279_v7  ;;  %v5422_v47 = vrot.slane %v6165_v57, %v6856_v53  ;;  %v5426_v20 = vrot.slane %v6165_v57, %v6861_v55  ;;  %v6171_v57 = vld [vmem:[%s9117_s1 + $0x1e0] ss:$8 sm:$0x3] }
 0x378   :  { %v5531_v18 = vmul.f32 %v5529_v25, %v6871_v59  ;;  %v5532_v63 = vmul.f32 %v5529_v25, %v6874_v61  ;;  %v5537_v8 = vrot.slane %v6170_v26, %v6856_v53  ;;  %v5541_v19 = vrot.slane %v6170_v26, %v6861_v55  ;;  %v6176_v26 = vld [vmem:[%s9117_s1 + $0x1e5] ss:$8 sm:$0x3]  ;;  %v5667_v25 = vpop.permute.xlu0 %5666 }
 0x379   :  { %v5299_v45 = vpop.permute.xlu1 %5298  ;;  %v5293_v14 = vmax.f32 %v5270_v11, %v5291_v49  ;;  %v5294_v48 = vmax.f32 %v5271_v54, %v5292_v6 }
 0x37a   :  { %v5301_v1 = vmul.f32 %v5299_v45, %v6871_v59  ;;  %v5302_v34 = vmul.f32 %v5299_v45, %v6874_v61 }
 0x37c   :  { %v5314_v27 = vadd.f32 %v5307_v58, %v5301_v1  ;;  %v5315_v2 = vadd.f32 %v5311_v32, %v5302_v34  ;;  %v5445_v58 = vrot.slane %v6166_v51, %v6856_v53  ;;  %v5449_v32 = vrot.slane %v6166_v51, %v6861_v55  ;;  %v6172_v51 = vld [vmem:[%s9117_s1 + $0x1e1] ss:$8 sm:$0x3] }
 0x37e   :  { %v5316_v50 = vmax.f32 %v5293_v14, %v5314_v27  ;;  %v5317_v33 = vmax.f32 %v5294_v48, %v5315_v2  ;;  %v5345_v15 = vpop.permute.xlu1 %5344 }
 0x37f   :  { %v5347_v9 = vmul.f32 %v5345_v15, %v6871_v59  ;;  %v5348_v13 = vmul.f32 %v5345_v15, %v6874_v61 }
 0x380   :  { %v5339_v60 = vmax.f32 %v5316_v50, %v5337_v46  ;;  %v5340_v40 = vmax.f32 %v5317_v33, %v5338_v12  ;;  %v5475_v46 = vadd.f32 %v5468_v39, %v5462_v23  ;;  %v5476_v12 = vadd.f32 %v5472_v3, %v5463_v24 }
 0x381   :  { %v5360_v52 = vadd.f32 %v5353_v42, %v5347_v9  ;;  %v5361_v5 = vadd.f32 %v5357_v31, %v5348_v13  ;;  %v5491_v42 = vrot.slane %v6168_v10, %v6856_v53  ;;  %v5495_v31 = vrot.slane %v6168_v10, %v6861_v55  ;;  %v6174_v10 = vld [vmem:[%s9117_s1 + $0x1e3] ss:$8 sm:$0x3] }
 0x382   :  { %v5600_v23 = vmul.f32 %v5598_v62, %v6871_v59  ;;  %v5601_v24 = vmul.f32 %v5598_v62, %v6874_v61  ;;  %v5606_v39 = vrot.slane %v6173_v56, %v6856_v53  ;;  %v5610_v3 = vrot.slane %v6173_v56, %v6861_v55  ;;  %v6179_v56 = vld [vmem:[%s9117_s1 + $0x1f0] ss:$8 sm:$0x3]  ;;  %v5736_v62 = vpop.permute.xlu0 %5735 }
 0x383   :  { %v5368_v4 = vpop.permute.xlu1 %5367  ;;  %v5362_v36 = vmax.f32 %v5339_v60, %v5360_v52  ;;  %v5363_v16 = vmax.f32 %v5340_v40, %v5361_v5 }
 0x384   :  { %v5370_v44 = vmul.f32 %v5368_v4, %v6871_v59  ;;  %v5371_v38 = vmul.f32 %v5368_v4, %v6874_v61 }
 0x386   :  { %v5383_v37 = vadd.f32 %v5376_v17, %v5370_v44  ;;  %v5384_v0 = vadd.f32 %v5380_v29, %v5371_v38  ;;  %v5514_v17 = vrot.slane %v6169_v43, %v6856_v53  ;;  %v5518_v29 = vrot.slane %v6169_v43, %v6861_v55  ;;  %v6175_v43 = vld [vmem:[%s9117_s1 + $0x1e4] ss:$8 sm:$0x3] }
 0x388   :  { %v5385_v35 = vmax.f32 %v5362_v36, %v5383_v37  ;;  %v5386_v41 = vmax.f32 %v5363_v16, %v5384_v0  ;;  %v5414_v22 = vpop.permute.xlu1 %5413 }
 0x389   :  { %v5416_v30 = vmul.f32 %v5414_v22, %v6871_v59  ;;  %v5417_v7 = vmul.f32 %v5414_v22, %v6874_v61 }
 0x38a   :  { %v5408_v11 = vmax.f32 %v5385_v35, %v5406_v28  ;;  %v5409_v54 = vmax.f32 %v5386_v41, %v5407_v21  ;;  %v5544_v28 = vadd.f32 %v5537_v8, %v5531_v18  ;;  %v5545_v21 = vadd.f32 %v5541_v19, %v5532_v63 }
 0x38b   :  { %v5429_v49 = vadd.f32 %v5422_v47, %v5416_v30  ;;  %v5430_v6 = vadd.f32 %v5426_v20, %v5417_v7  ;;  %v5560_v47 = vrot.slane %v6171_v57, %v6856_v53  ;;  %v5564_v20 = vrot.slane %v6171_v57, %v6861_v55  ;;  %v6177_v57 = vld [vmem:[%s9117_s1 + $0x1e6] ss:$8 sm:$0x3] }
 0x38c   :  { %v5669_v18 = vmul.f32 %v5667_v25, %v6871_v59  ;;  %v5670_v63 = vmul.f32 %v5667_v25, %v6874_v61  ;;  %v5675_v8 = vrot.slane %v6176_v26, %v6856_v53  ;;  %v5679_v19 = vrot.slane %v6176_v26, %v6861_v55  ;;  %v6182_v26 = vld [vmem:[%s9117_s1 + $0x1f3] ss:$8 sm:$0x3]  ;;  %v5805_v25 = vpop.permute.xlu0 %5804 }
 0x38d   :  { %v5437_v45 = vpop.permute.xlu1 %5436  ;;  %v5431_v14 = vmax.f32 %v5408_v11, %v5429_v49  ;;  %v5432_v48 = vmax.f32 %v5409_v54, %v5430_v6 }
 0x38e   :  { %v5439_v1 = vmul.f32 %v5437_v45, %v6871_v59  ;;  %v5440_v34 = vmul.f32 %v5437_v45, %v6874_v61 }
 0x390   :  { %v5452_v27 = vadd.f32 %v5445_v58, %v5439_v1  ;;  %v5453_v2 = vadd.f32 %v5449_v32, %v5440_v34  ;;  %v5583_v58 = vrot.slane %v6172_v51, %v6856_v53  ;;  %v5587_v32 = vrot.slane %v6172_v51, %v6861_v55  ;;  %v6178_v51 = vld [vmem:[%s9117_s1 + $0x1e7] ss:$8 sm:$0x3] }
 0x392   :  { %v5454_v50 = vmax.f32 %v5431_v14, %v5452_v27  ;;  %v5455_v33 = vmax.f32 %v5432_v48, %v5453_v2  ;;  %v5483_v15 = vpop.permute.xlu1 %5482 }
 0x393   :  { %v5485_v9 = vmul.f32 %v5483_v15, %v6871_v59  ;;  %v5486_v13 = vmul.f32 %v5483_v15, %v6874_v61 }
 0x394   :  { %v5477_v60 = vmax.f32 %v5454_v50, %v5475_v46  ;;  %v5478_v40 = vmax.f32 %v5455_v33, %v5476_v12  ;;  %v5613_v46 = vadd.f32 %v5606_v39, %v5600_v23  ;;  %v5614_v12 = vadd.f32 %v5610_v3, %v5601_v24 }
 0x395   :  { %v5498_v52 = vadd.f32 %v5491_v42, %v5485_v9  ;;  %v5499_v5 = vadd.f32 %v5495_v31, %v5486_v13  ;;  %v5629_v42 = vrot.slane %v6174_v10, %v6856_v53  ;;  %v5633_v31 = vrot.slane %v6174_v10, %v6861_v55  ;;  %v6180_v10 = vld [vmem:[%s9117_s1 + $0x1f1] ss:$8 sm:$0x3] }
 0x396   :  { %v5738_v23 = vmul.f32 %v5736_v62, %v6871_v59  ;;  %v5739_v24 = vmul.f32 %v5736_v62, %v6874_v61  ;;  %v5744_v39 = vrot.slane %v6179_v56, %v6856_v53  ;;  %v5748_v3 = vrot.slane %v6179_v56, %v6861_v55 }
 0x397   :  { %v5506_v4 = vpop.permute.xlu1 %5505  ;;  %v5500_v36 = vmax.f32 %v5477_v60, %v5498_v52  ;;  %v5501_v16 = vmax.f32 %v5478_v40, %v5499_v5 }
 0x398   :  { %v5508_v44 = vmul.f32 %v5506_v4, %v6871_v59  ;;  %v5509_v38 = vmul.f32 %v5506_v4, %v6874_v61 }
 0x39a   :  { %v5521_v37 = vadd.f32 %v5514_v17, %v5508_v44  ;;  %v5522_v0 = vadd.f32 %v5518_v29, %v5509_v38  ;;  %v5652_v17 = vrot.slane %v6175_v43, %v6856_v53  ;;  %v5656_v29 = vrot.slane %v6175_v43, %v6861_v55  ;;  %v6181_v43 = vld [vmem:[%s9117_s1 + $0x1f2] ss:$8 sm:$0x3] }
 0x39c   :  { %v5523_v35 = vmax.f32 %v5500_v36, %v5521_v37  ;;  %v5524_v41 = vmax.f32 %v5501_v16, %v5522_v0  ;;  %v5552_v22 = vpop.permute.xlu1 %5551 }
 0x39d   :  { %v5554_v30 = vmul.f32 %v5552_v22, %v6871_v59  ;;  %v5555_v7 = vmul.f32 %v5552_v22, %v6874_v61 }
 0x39e   :  { %v5546_v11 = vmax.f32 %v5523_v35, %v5544_v28  ;;  %v5547_v54 = vmax.f32 %v5524_v41, %v5545_v21  ;;  %v5682_v28 = vadd.f32 %v5675_v8, %v5669_v18  ;;  %v5683_v21 = vadd.f32 %v5679_v19, %v5670_v63 }
 0x39f   :  { %v5567_v49 = vadd.f32 %v5560_v47, %v5554_v30  ;;  %v5568_v6 = vadd.f32 %v5564_v20, %v5555_v7  ;;  %v5698_v47 = vrot.slane %v6177_v57, %v6856_v53  ;;  %v5702_v20 = vrot.slane %v6177_v57, %v6861_v55  ;;  %v6183_v57 = vld [vmem:[%s9117_s1 + $0x1f4] ss:$8 sm:$0x3] }
 0x3a0   :  { %v5807_v18 = vmul.f32 %v5805_v25, %v6871_v59  ;;  %v5808_v63 = vmul.f32 %v5805_v25, %v6874_v61  ;;  %v5813_v8 = vrot.slane %v6182_v26, %v6856_v53  ;;  %v5817_v19 = vrot.slane %v6182_v26, %v6861_v55 }
 0x3a1   :  { %v5575_v45 = vpop.permute.xlu1 %5574  ;;  %v5569_v14 = vmax.f32 %v5546_v11, %v5567_v49  ;;  %v5570_v48 = vmax.f32 %v5547_v54, %v5568_v6 }
 0x3a2   :  { %v5577_v1 = vmul.f32 %v5575_v45, %v6871_v59  ;;  %v5578_v34 = vmul.f32 %v5575_v45, %v6874_v61 }
 0x3a4   :  { %v5590_v27 = vadd.f32 %v5583_v58, %v5577_v1  ;;  %v5591_v2 = vadd.f32 %v5587_v32, %v5578_v34  ;;  %v5721_v58 = vrot.slane %v6178_v51, %v6856_v53  ;;  %v5725_v32 = vrot.slane %v6178_v51, %v6861_v55 }
 0x3a5   :  { %v5840_v51 = vrot.slane %v6183_v57, %v6861_v55 }
 0x3a6   :  { %v5592_v50 = vmax.f32 %v5569_v14, %v5590_v27  ;;  %v5593_v33 = vmax.f32 %v5570_v48, %v5591_v2  ;;  %v5621_v15 = vpop.permute.xlu1 %5620 }
 0x3a7   :  { %v5623_v9 = vmul.f32 %v5621_v15, %v6871_v59  ;;  %v5624_v13 = vmul.f32 %v5621_v15, %v6874_v61 }
 0x3a8   :  { %v5615_v60 = vmax.f32 %v5592_v50, %v5613_v46  ;;  %v5616_v40 = vmax.f32 %v5593_v33, %v5614_v12  ;;  %v5751_v46 = vadd.f32 %v5744_v39, %v5738_v23  ;;  %v5752_v12 = vadd.f32 %v5748_v3, %v5739_v24 }
 0x3a9   :  { %v5636_v52 = vadd.f32 %v5629_v42, %v5623_v9  ;;  %v5637_v5 = vadd.f32 %v5633_v31, %v5624_v13  ;;  %v5767_v42 = vrot.slane %v6180_v10, %v6856_v53  ;;  %v5771_v31 = vrot.slane %v6180_v10, %v6861_v55  ;;  %v6186_v10 = vld [vmem:[%s9117_s1 + $0x1f7] ss:$8 sm:$0x3] }
 0x3ab   :  { %v5644_v4 = vpop.permute.xlu1 %5643  ;;  %v5638_v36 = vmax.f32 %v5615_v60, %v5636_v52  ;;  %v5639_v16 = vmax.f32 %v5616_v40, %v5637_v5 }
 0x3ac   :  { %v5646_v44 = vmul.f32 %v5644_v4, %v6871_v59  ;;  %v5647_v38 = vmul.f32 %v5644_v4, %v6874_v61 }
 0x3ae   :  { %v5659_v37 = vadd.f32 %v5652_v17, %v5646_v44  ;;  %v5660_v0 = vadd.f32 %v5656_v29, %v5647_v38  ;;  %v5790_v17 = vrot.slane %v6181_v43, %v6856_v53  ;;  %v5794_v29 = vrot.slane %v6181_v43, %v6861_v55 }
 0x3b0   :  { %v5661_v35 = vmax.f32 %v5638_v36, %v5659_v37  ;;  %v5662_v41 = vmax.f32 %v5639_v16, %v5660_v0  ;;  %v5690_v22 = vpop.permute.xlu1 %5689 }
 0x3b1   :  { %v5692_v30 = vmul.f32 %v5690_v22, %v6871_v59  ;;  %v5693_v7 = vmul.f32 %v5690_v22, %v6874_v61 }
 0x3b2   :  { %v5684_v11 = vmax.f32 %v5661_v35, %v5682_v28  ;;  %v5685_v54 = vmax.f32 %v5662_v41, %v5683_v21  ;;  %v5820_v28 = vadd.f32 %v5813_v8, %v5807_v18  ;;  %v5821_v21 = vadd.f32 %v5817_v19, %v5808_v63  ;;  %v6184_v35 = vld [vmem:[%s9117_s1 + $0x1f5] ss:$8 sm:$0x3] }
 0x3b3   :  { %v5705_v49 = vadd.f32 %v5698_v47, %v5692_v30  ;;  %v5706_v6 = vadd.f32 %v5702_v20, %v5693_v7  ;;  %v5836_v20 = vrot.slane %v6183_v57, %v6856_v53  ;;  %v6185_v30 = vld [vmem:[%s9117_s1 + $0x1f6] ss:$8 sm:$0x3]  ;;  %v5874_v7 = vpop.permute.xlu0 %5873  ;;  %s6730_s1 = smov [#allocation2]  }
 0x3b4   :  { %s5924_s29 = sshll.u32 %s6730_s1, 4  ;;  %s5925_s29 = int_to_ptr.vmem [resolvable:$true] %s5924_s29 }
 0x3b5   :  { %v5713_v45 = vpop.permute.xlu1 %5712  ;;  %v5707_v14 = vmax.f32 %v5684_v11, %v5705_v49  ;;  %v5708_v48 = vmax.f32 %v5685_v54, %v5706_v6  ;;  %v5876_v11 = vmul.f32 %v5874_v7, %v6871_v59  ;;  %v5877_v54 = vmul.f32 %v5874_v7, %v6874_v61  ;;  %s6578_s30 = scalar_lea.vmem %s5925_s29, 256  ;;  %p6583_p1 = scmp.lt.s32.totalorder %s5925_s29, %s5925_s29 }
 0x3b6   :  { %v5715_v1 = vmul.f32 %v5713_v45, %v6871_v59  ;;  %v5716_v34 = vmul.f32 %v5713_v45, %v6874_v61  ;;  %v5882_v49 = vrot.slane %v6185_v30, %v6856_v53  ;;  %v5886_v6 = vrot.slane %v6185_v30, %v6861_v55  ;;  %p6579_p0 = scmp.ne.s32.totalorder %s5925_s29, %s6578_s30  ;;  %p6584_p2 = scmp.lt.s32.totalorder %s6578_s30, %s6578_s30 }
 0x3b8   :  { %v5728_v27 = vadd.f32 %v5721_v58, %v5715_v1  ;;  %v5729_v2 = vadd.f32 %v5725_v32, %v5716_v34  ;;  %v5859_v58 = vrot.slane %v6184_v35, %v6856_v53  ;;  %v5863_v32 = vrot.slane %v6184_v35, %v6861_v55  ;;  %p6585_p3 = por %p6584_p2, %p6583_p1 }
 0x3ba   :  { %v5730_v50 = vmax.f32 %v5707_v14, %v5728_v27  ;;  %v5731_v33 = vmax.f32 %v5708_v48, %v5729_v2  ;;  %v5759_v15 = vpop.permute.xlu1 %5758  ;;  %v5889_v14 = vadd.f32 %v5882_v49, %v5876_v11  ;;  %v5890_v48 = vadd.f32 %v5886_v6, %v5877_v54  ;;  %p6586_p4 = pnand %p6585_p3, %p6579_p0 }
 0x3bb   :  { %v5761_v9 = vmul.f32 %v5759_v15, %v6871_v59  ;;  %v5762_v13 = vmul.f32 %v5759_v15, %v6874_v61 }
 0x3bc   :  { %v5753_v60 = vmax.f32 %v5730_v50, %v5751_v46  ;;  %v5754_v40 = vmax.f32 %v5731_v33, %v5752_v12  ;;  %v5905_v50 = vrot.slane %v6186_v10, %v6856_v53  ;;  %v5909_v33 = vrot.slane %v6186_v10, %v6861_v55 }
 0x3bd   :  { %v5774_v52 = vadd.f32 %v5767_v42, %v5761_v9  ;;  %v5775_v5 = vadd.f32 %v5771_v31, %v5762_v13 }
 0x3bf   :  { %v5782_v4 = vpop.permute.xlu1 %5781  ;;  %v5776_v36 = vmax.f32 %v5753_v60, %v5774_v52  ;;  %v5777_v16 = vmax.f32 %v5754_v40, %v5775_v5 }
 0x3c0   :  { %v5784_v44 = vmul.f32 %v5782_v4, %v6871_v59  ;;  %v5785_v38 = vmul.f32 %v5782_v4, %v6874_v61 }
 0x3c2   :  { %v5797_v37 = vadd.f32 %v5790_v17, %v5784_v44  ;;  %v5798_v0 = vadd.f32 %v5794_v29, %v5785_v38 }
 0x3c4   :  { %v5799_v41 = vmax.f32 %v5776_v36, %v5797_v37  ;;  %v5800_v22 = vmax.f32 %v5777_v16, %v5798_v0  ;;  %v5828_v47 = vpop.permute.xlu1 %5827 }
 0x3c5   :  { %v5830_v56 = vmul.f32 %v5828_v47, %v6871_v59  ;;  %v5831_v62 = vmul.f32 %v5828_v47, %v6874_v61 }
 0x3c6   :  { %v5822_v45 = vmax.f32 %v5799_v41, %v5820_v28  ;;  %v5823_v23 = vmax.f32 %v5800_v22, %v5821_v21 }
 0x3c7   :  { %v5843_v24 = vadd.f32 %v5836_v20, %v5830_v56  ;;  %v5844_v39 = vadd.f32 %v5840_v51, %v5831_v62 }
 0x3c9   :  { %v5851_v3 = vpop.permute.xlu1 %5850  ;;  %v5845_v27 = vmax.f32 %v5822_v45, %v5843_v24  ;;  %v5846_v2 = vmax.f32 %v5823_v23, %v5844_v39 }
 0x3ca   :  { %v5853_v1 = vmul.f32 %v5851_v3, %v6871_v59  ;;  %v5854_v34 = vmul.f32 %v5851_v3, %v6874_v61 }
 0x3cc   :  { %v5866_v46 = vadd.f32 %v5859_v58, %v5853_v1  ;;  %v5867_v12 = vadd.f32 %v5863_v32, %v5854_v34 }
 0x3ce   :  { %v5868_v15 = vmax.f32 %v5845_v27, %v5866_v46  ;;  %v5869_v42 = vmax.f32 %v5846_v2, %v5867_v12  ;;  %v5897_v31 = vpop.permute.xlu1 %5896 }
 0x3cf   :  { %v5899_v43 = vmul.f32 %v5897_v31, %v6871_v59  ;;  %v5900_v9 = vmul.f32 %v5897_v31, %v6874_v61 }
 0x3d0   :  { %v5891_v13 = vmax.f32 %v5868_v15, %v5889_v14  ;;  %v5892_v26 = vmax.f32 %v5869_v42, %v5890_v48 }
 0x3d1   :  { %v5912_v25 = vadd.f32 %v5905_v50, %v5899_v43  ;;  %v5913_v17 = vadd.f32 %v5909_v33, %v5900_v9 }
 0x3d3   :  { %v5914_v29 = vmax.f32 %v5891_v13, %v5912_v25  ;;  %v5915_v60 = vmax.f32 %v5892_v26, %v5913_v17 }
 0x3d5   :  { %5916 = vst [vmem:[#allocation2] sm:$0xff] %v5914_v29  ;;  %5917 = vst [vmem:[#allocation2 + $0x8] sm:$0xff] %v5915_v60 }
 0x3d6   :  { %6589 = shalt.err (!%p6586_p4)
}
 0x3d7   :  { %s6590_s6 = scalar_lea.hbm %s9119_s3, 256 }
 0x3d8   :  { %p6591_p5 = scmp.ne.s32.totalorder %s9119_s3, %s6590_s6  ;;  %p6594_p6 = scmp.lt.u32.totalorder %s6590_s6, %s9119_s3 }
 0x3da   :  { %p6596_p7 = pnand %p6594_p6, %p6591_p5 }
 0x3dc   :  { %6599 = shalt.err (!%p6596_p7)
}
 0x3dd   :  { %5927 = dma.vmem_to_hbm [thread:$0]  %s5925_s29, 256, %s9119_s3, [#allocation3]  }
 0x3de   :  { %6600 = dma.done.wait [#allocation3], 256  }
 0x3df   :  { %6601 = vsyncadd [#allocation3], 4294967040 }
 0x3e0   :  { %5931 = vsyncpa [#allocation3], 1 }

</bundles_post_ra>
